<compile_context>
chip_gen: v7x
topology: tpu7x:2x2x1
jax: 0.10.0
libtpu: 0.0.40
codegen_flags: <defaults>
</compile_context>

<pallas_src>
import functools

import jax
import jax.numpy as jnp
from jax.experimental import pallas as pl
from jax.experimental.pallas import tpu as pltpu

GROWTH_RATE = 32
BN_SIZE = 4
NUM_INIT_FEATURES = 64
BLOCK_CONFIG = (2, 2)          # TODO(synk): densenet121 uses (6, 12, 24, 16)
NUM_CLASSES = 10

MATMUL_TM = 256                # row-tile target (gives >=2 grid steps -> v7x megacore)


def _pick_tm(m, target=MATMUL_TM):
    """Row tile: multiple of 8, divides m, <= m//2 so the grid has >= 2 steps
    (both v7x TensorCores get work); falls back to m for tiny inputs."""
    if m <= 16:
        return m
    cap = min(target, m // 2)
    cap -= cap % 8
    tm = cap
    while tm >= 8:
        if m % tm == 0:
            return tm
        tm -= 8
    return m


def _vmem_limit(block_bytes):
    """Scoped-VMEM budget from actual per-step block bytes (double-buffer +
    headroom), clamped so it also fits v7x's 64 MiB physical VMEM."""
    return int(min(max(4 * block_bytes, 8 * 1024 * 1024), 48 * 1024 * 1024))


# ----------------------------- Pallas kernels ------------------------------

def _fused_matmul_kernel(*refs, n_chunks, has_pre, has_post):
    """[on-chip concat -> BN+ReLU] -> matmul (bf16 in / f32 acc) -> [BN+ReLU]."""
    o_ref = refs[-1]
    xs = [refs[i][...] for i in range(n_chunks)]
    x = xs[0] if n_chunks == 1 else jnp.concatenate(xs, axis=-1)
    idx = n_chunks
    if has_pre:                                   # folded BatchNorm + ReLU
        s, t = refs[idx][...], refs[idx + 1][...]
        idx += 2
        x = jnp.maximum(x.astype(jnp.float32) * s + t, 0.0).astype(jnp.bfloat16)
    else:
        x = x.astype(jnp.bfloat16)
    w = refs[idx][...]
    idx += 1
    acc = jnp.dot(x, w, preferred_element_type=jnp.float32)
    if has_post:                                  # next layer's BN + ReLU
        s, t = refs[idx][...], refs[idx + 1][...]
        acc = jnp.maximum(acc * s + t, 0.0)
    o_ref[...] = acc.astype(o_ref.dtype)


def pallas_fused_matmul(chunks, w, *, pre_bn=None, post_bn=None,
                        out_dtype=jnp.bfloat16):
    """(M, sum K_i) @ (K, N): chunks stay separate in HBM (no concat pass) and
    are joined on-chip; optional fused scale/shift/ReLU before and after."""
    chunks = [c.astype(jnp.bfloat16) for c in chunks]
    M = chunks[0].shape[0]
    k_sizes = [c.shape[1] for c in chunks]
    K = sum(k_sizes)
    Kw, N = w.shape
    assert Kw == K
    tm = _pick_tm(M)
    grid = (M // tm,)

    in_specs = [pl.BlockSpec((tm, k), lambda i: (i, 0)) for k in k_sizes]
    args = list(chunks)
    blk = sum(tm * k * 2 for k in k_sizes)
    if pre_bn is not None:
        s, t = pre_bn
        in_specs += [pl.BlockSpec((1, K), lambda i: (0, 0))] * 2
        args += [s.reshape(1, K).astype(jnp.float32),
                 t.reshape(1, K).astype(jnp.float32)]
        blk += 2 * K * 4
    in_specs.append(pl.BlockSpec((K, N), lambda i: (0, 0)))
    args.append(w.astype(jnp.bfloat16))
    blk += K * N * 2
    if post_bn is not None:
        s, t = post_bn
        in_specs += [pl.BlockSpec((1, N), lambda i: (0, 0))] * 2
        args += [s.reshape(1, N).astype(jnp.float32),
                 t.reshape(1, N).astype(jnp.float32)]
        blk += 2 * N * 4
    blk += tm * N * 4                              # output tile (f32 upper bound)

    kernel = functools.partial(_fused_matmul_kernel, n_chunks=len(chunks),
                               has_pre=pre_bn is not None,
                               has_post=post_bn is not None)
    return pl.pallas_call(
        kernel,
        out_shape=jax.ShapeDtypeStruct((M, N), out_dtype),
        grid=grid,
        in_specs=in_specs,
        out_specs=pl.BlockSpec((tm, N), lambda i: (i, 0)),
        compiler_params=pltpu.CompilerParams(
            dimension_semantics=("parallel",),
            vmem_limit_bytes=_vmem_limit(blk)),
    )(*args)


def _conv3x3_kernel(x_ref, w_ref, o_ref, *, th, W):
    """3x3/s1/p1 conv for th output rows: 3 aligned row loads, 3 K=3C matmuls."""
    r = pl.program_id(1)
    C = x_ref.shape[-1]
    Cout = o_ref.shape[-1]
    acc = jnp.zeros((th * W, Cout), jnp.float32)
    for di in range(3):
        rows = x_ref[pl.ds(r * th + di, th), :, :]            # (th, Wp, C)
        slab = jnp.concatenate([rows[:, dj:dj + W, :] for dj in range(3)],
                               axis=-1)                        # (th, W, 3C)
        acc = acc + jnp.dot(slab.reshape(th * W, 3 * C), w_ref[di],
                            preferred_element_type=jnp.float32)
    # TODO(synk): Cout=32 (<128 lanes) still means masked stores; a lane-dense
    # packed slab output would need a relayout that costs about as much here.
    o_ref[...] = acc.reshape(th, W, Cout).astype(o_ref.dtype)


def pallas_conv3x3(x_nhwc, w_rows):
    """3x3 conv (stride 1, pad 1) written directly in NHWC (no un-stagger)."""
    N, H, W, C = x_nhwc.shape
    Cout = w_rows.shape[-1]
    Hp, Wp = H + 2, W + 2
    th = 8 if H % 8 == 0 else H
    grid = (N, H // th)
    xp = jnp.pad(x_nhwc.astype(jnp.bfloat16), ((0, 0), (1, 1), (1, 1), (0, 0)))
    blk = Hp * Wp * C * 2 + 3 * (3 * C) * Cout * 2 + th * W * Cout * 4
    return pl.pallas_call(
        functools.partial(_conv3x3_kernel, th=th, W=W),
        out_shape=jax.ShapeDtypeStruct((N, H, W, Cout), jnp.bfloat16),
        grid=grid,
        in_specs=[
            # whole padded sample stays VMEM-resident across the row-tile axis
            pl.BlockSpec((None, Hp, Wp, C), lambda n, r: (n, 0, 0, 0)),
            pl.BlockSpec((3, 3 * C, Cout), lambda n, r: (0, 0, 0)),
        ],
        out_specs=pl.BlockSpec((None, th, W, Cout), lambda n, r: (n, r, 0, 0)),
        compiler_params=pltpu.CompilerParams(
            dimension_semantics=("parallel", "parallel"),
            vmem_limit_bytes=_vmem_limit(blk)),
    )(xp, w_rows)


def _transition_kernel(*refs, n_chunks, rt, wo):
    """BN+ReLU -> 2x2 avg-pool -> 1x1 conv (pool/conv commute, pool runs first
    so the matmul sees 4x fewer pixels); chunks concatenated on-chip."""
    o_ref = refs[-1]
    xs = [refs[i][...] for i in range(n_chunks)]
    x = xs[0] if n_chunks == 1 else jnp.concatenate(xs, axis=-1)   # (2rt, W, K)
    s = refs[n_chunks][...]
    t = refs[n_chunks + 1][...]
    w = refs[n_chunks + 2][...]
    k = x.shape[-1]
    z = jnp.maximum(x.astype(jnp.float32) * s + t, 0.0)
    zh = z.reshape(rt, 2, z.shape[1], k)
    sh = zh[:, 0] + zh[:, 1]                                       # pool over H
    sw = sh.reshape(rt, wo, 2, k)
    pooled = (sw[:, :, 0, :] + sw[:, :, 1, :]) * 0.25              # pool over W
    xm = pooled.reshape(rt * wo, k).astype(jnp.bfloat16)
    acc = jnp.dot(xm, w, preferred_element_type=jnp.float32)
    o_ref[...] = acc.reshape(rt, wo, w.shape[-1]).astype(o_ref.dtype)


def pallas_transition(chunks_nhwc, w, pre_bn):
    N, H, W, _ = chunks_nhwc[0].shape
    K = sum(c.shape[-1] for c in chunks_nhwc)
    Nout = w.shape[1]
    Ho, Wo = H // 2, W // 2
    rt = min(4, Ho)
    while Ho % rt:
        rt -= 1
    grid = (N, Ho // rt)
    s, t = pre_bn
    in_specs = [pl.BlockSpec((None, 2 * rt, W, c.shape[-1]),
                             lambda n, r: (n, r, 0, 0)) for c in chunks_nhwc]
    in_specs += [pl.BlockSpec((1, 1, K), lambda n, r: (0, 0, 0))] * 2
    in_specs.append(pl.BlockSpec((K, Nout), lambda n, r: (0, 0)))
    args = [c.astype(jnp.bfloat16) for c in chunks_nhwc] + [
        s.reshape(1, 1, K).astype(jnp.float32),
        t.reshape(1, 1, K).astype(jnp.float32),
        w.astype(jnp.bfloat16)]
    blk = (sum(2 * rt * W * c.shape[-1] * 2 for c in chunks_nhwc)
           + 2 * K * 4 + K * Nout * 2 + rt * Wo * Nout * 4)
    return pl.pallas_call(
        functools.partial(_transition_kernel, n_chunks=len(chunks_nhwc),
                          rt=rt, wo=Wo),
        out_shape=jax.ShapeDtypeStruct((N, Ho, Wo, Nout), jnp.bfloat16),
        grid=grid,
        in_specs=in_specs,
        out_specs=pl.BlockSpec((None, rt, Wo, Nout), lambda n, r: (n, r, 0, 0)),
        compiler_params=pltpu.CompilerParams(
            dimension_semantics=("parallel", "parallel"),
            vmem_limit_bytes=_vmem_limit(blk)),
    )(*args)


def _head_kernel(*refs, n_chunks):
    """Fused tail: BN+ReLU -> global average pool -> linear classifier."""
    o_ref = refs[-1]
    xs = [refs[i][...] for i in range(n_chunks)]
    x = xs[0] if n_chunks == 1 else jnp.concatenate(xs, axis=-1)   # (N, HW, K)
    s = refs[n_chunks][...]
    t = refs[n_chunks + 1][...]
    w = refs[n_chunks + 2][...]
    b = refs[n_chunks + 3][...]
    z = jnp.maximum(x.astype(jnp.float32) * s + t, 0.0)
    feat = jnp.mean(z, axis=1)                                     # (N, K)
    logits = jnp.dot(feat.astype(jnp.bfloat16), w,
                     preferred_element_type=jnp.float32) + b
    o_ref[...] = logits.astype(o_ref.dtype)


def pallas_head(chunks_nhwc, scale, shift, w, b):
    N, H, W, _ = chunks_nhwc[0].shape
    HW = H * W
    K = sum(c.shape[-1] for c in chunks_nhwc)
    Cout = w.shape[1]
    chunks = [c.reshape(N, HW, c.shape[-1]).astype(jnp.bfloat16)
              for c in chunks_nhwc]
    in_specs = [pl.BlockSpec((N, HW, c.shape[-1]), lambda i: (0, 0, 0))
                for c in chunks]
    in_specs += [pl.BlockSpec((1, 1, K), lambda i: (0, 0, 0))] * 2
    in_specs += [pl.BlockSpec((K, Cout), lambda i: (0, 0)),
                 pl.BlockSpec((1, Cout), lambda i: (0, 0))]
    args = chunks + [scale.reshape(1, 1, K).astype(jnp.float32),
                     shift.reshape(1, 1, K).astype(jnp.float32),
                     w.astype(jnp.bfloat16),
                     b.reshape(1, Cout).astype(jnp.float32)]
    blk = (sum(N * HW * c.shape[-1] * 2 for c in chunks)
           + 2 * K * 4 + K * Cout * 2 + Cout * 4 + N * Cout * 4)
    return pl.pallas_call(
        functools.partial(_head_kernel, n_chunks=len(chunks)),
        out_shape=jax.ShapeDtypeStruct((N, Cout), jnp.float32),
        grid=(1,),
        in_specs=in_specs,
        out_specs=pl.BlockSpec((N, Cout), lambda i: (0, 0)),
        compiler_params=pltpu.CompilerParams(
            dimension_semantics=("arbitrary",),
            vmem_limit_bytes=_vmem_limit(blk)),
    )(*args)


# ------------------------------- JAX glue -----------------------------------

def _im2col(x, kh, kw, stride, pad):
    """NHWC patch extraction -> (N*Ho*Wo, kh*kw*C) bf16 matrix (stem only)."""
    # TODO(synk): the one-time 7x7 stem im2col is still built JAX-side.
    N, H, W, C = x.shape
    xp = jnp.pad(x, ((0, 0), (pad, pad), (pad, pad), (0, 0)))
    Ho = (H + 2 * pad - kh) // stride + 1
    Wo = (W + 2 * pad - kw) // stride + 1
    patches = []
    for i in range(kh):
        for j in range(kw):
            patches.append(
                xp[:, i:i + stride * Ho:stride, j:j + stride * Wo:stride, :])
    cols = jnp.concatenate(patches, axis=-1)
    return cols.reshape(N * Ho * Wo, kh * kw * C), (N, Ho, Wo)


def _maxpool_3x3_s2_p1(x):
    """Stem max-pool (one-time XLA glue, bf16). ReLU output is >= 0 so
    zero-padding is equivalent to -inf padding.
    TODO(synk): fuse into the stem matmul kernel's epilogue."""
    N, H, W, C = x.shape
    xp = jnp.pad(x, ((0, 0), (1, 1), (1, 1), (0, 0)))
    Ho, Wo = H // 2, W // 2
    out = jnp.zeros((N, Ho, Wo, C), x.dtype)
    for i in range(3):
        for j in range(3):
            out = jnp.maximum(out, xp[:, i:i + 2 * Ho:2, j:j + 2 * Wo:2, :])
    return out


def _conv_w_to_mat(w):
    """PyTorch conv weight (Cout,Cin,kh,kw) -> (kh*kw*Cin, Cout)."""
    cout, cin, kh, kw = w.shape
    return jnp.transpose(w, (2, 3, 1, 0)).reshape(kh * kw * cin, cout)


# --------------------------- parameter building -----------------------------

def _init_conv(key, cout, cin, kh, kw):
    fan_in = cin * kh * kw
    std = (2.0 / fan_in) ** 0.5                         # kaiming normal
    return jax.random.normal(key, (cout, cin, kh, kw), jnp.float32) * std


def _conv_mat(key, cout, cin, kh, kw):
    """Conv weight already in (kh*kw*Cin, Cout) matmul layout, bf16."""
    return _conv_w_to_mat(_init_conv(key, cout, cin, kh, kw)).astype(jnp.bfloat16)


def _conv3x3_rows(key, cout, cin):
    """3x3 conv weight as (3, 3*Cin, Cout) per-tap-row matrices, bf16."""
    w = _init_conv(key, cout, cin, 3, 3)
    w = jnp.transpose(w, (2, 3, 1, 0))                  # (3, 3, Cin, Cout)
    return w.reshape(3, 3 * cin, cout).astype(jnp.bfloat16)


def _init_linear(key, cout, cin):
    k1, k2 = jax.random.split(key)
    bound = 1.0 / (cin ** 0.5)
    w = jax.random.uniform(k1, (cout, cin), jnp.float32, -bound, bound)
    b = jax.random.uniform(k2, (cout,), jnp.float32, -bound, bound)
    return w, b


def _bn_fold(c, eps=1e-5):
    # fresh inference-mode BN: gamma=1, beta=0, running_mean=0, running_var=1
    scale = jnp.full((c,), 1.0 / (1.0 + eps) ** 0.5, jnp.float32)
    shift = jnp.zeros((c,), jnp.float32)
    return scale, shift


def build_basenet_params(key, cfg):
    if cfg["COCO"] != "False":
        # TODO(synk): fasterrcnn_resnet50_fpn backbone branch not implemented.
        raise NotImplementedError("COCO backbone branch not implemented")
    keys = iter(jax.random.split(key, 256))
    P = {
        "conv0": _conv_mat(next(keys), NUM_INIT_FEATURES, 3, 7, 7),
        "norm0": _bn_fold(NUM_INIT_FEATURES),
        "blocks": [],
        "transitions": [],
    }
    c = NUM_INIT_FEATURES
    for bi, n_layers in enumerate(BLOCK_CONFIG):
        block = []
        for _ in range(n_layers):
            block.append({
                "norm1": _bn_fold(c),
                "conv1": _conv_mat(next(keys), BN_SIZE * GROWTH_RATE, c, 1, 1),
                "norm2": _bn_fold(BN_SIZE * GROWTH_RATE),
                "conv2": _conv3x3_rows(next(keys), GROWTH_RATE,
                                       BN_SIZE * GROWTH_RATE),
            })
            c += GROWTH_RATE
        P["blocks"].append(block)
        if bi != len(BLOCK_CONFIG) - 1:
            P["transitions"].append({
                "norm": _bn_fold(c),
                "conv": _conv_mat(next(keys), c // 2, c, 1, 1),
            })
            c //= 2
    P["norm5"] = _bn_fold(c)
    num_features = c                    # == model.classifier.in_features analog
    print(f"Number of features: {num_features}")
    wc, bc = _init_linear(next(keys), cfg["output"], num_features)
    # classifier weight pre-transposed once (in_features, out) and bf16.
    P["classifier"] = (jnp.transpose(wc).astype(jnp.bfloat16), bc)
    return P


# -------------------------------- forward -----------------------------------

def basenet_forward(P, x_nchw):
    x = jnp.transpose(x_nchw, (0, 2, 3, 1)).astype(jnp.bfloat16)  # NCHW -> NHWC bf16

    # stem: conv0 7x7 s2 p3 (bias-free) + norm0 + ReLU fused; 3x3/s2 maxpool glue
    cols, (N, H, W) = _im2col(x, 7, 7, stride=2, pad=3)
    h = pallas_fused_matmul([cols], P["conv0"], post_bn=P["norm0"])
    x = _maxpool_3x3_s2_p1(h.reshape(N, H, W, -1))

    # dense blocks: features kept as separate chunks, no HBM concatenate
    N, H, W, _ = x.shape
    feats = [x]
    for bi, block in enumerate(P["blocks"]):
        for lp in block:
            chunks_m = [f.reshape(N * H * W, f.shape[-1]) for f in feats]
            # norm1+ReLU, 1x1 conv and norm2+ReLU fused into one MXU kernel.
            bott = pallas_fused_matmul(chunks_m, lp["conv1"],
                                       pre_bn=lp["norm1"], post_bn=lp["norm2"])
            feats.append(pallas_conv3x3(bott.reshape(N, H, W, -1), lp["conv2"]))
        if bi < len(P["transitions"]):
            tp = P["transitions"][bi]
            x = pallas_transition(feats, tp["conv"], tp["norm"])
            N, H, W, _ = x.shape
            feats = [x]

    # fused tail: norm5 + ReLU, adaptive avg pool (1,1), linear classifier
    s5, t5 = P["norm5"]
    wc, bc = P["classifier"]
    return pallas_head(feats, s5, t5, wc, bc)


# --------------------------------- main --------------------------------------

if __name__ == "__main__":
    cfg = {"COCO": "False", "output": NUM_CLASSES}
    key = jax.random.PRNGKey(0)
    pkey, xkey = jax.random.split(key)
    model_params = build_basenet_params(pkey, cfg)
    x = jax.random.normal(xkey, (2, 3, 64, 64), jnp.float32)  # NCHW like PyTorch
    fwd = jax.jit(basenet_forward)
    y = jax.block_until_ready(fwd(model_params, x))
    assert y.shape == (2, NUM_CLASSES) and y.dtype == jnp.float32
    assert bool(jnp.all(jnp.isfinite(y)))
    print("KERNEL_OK")
</pallas_src>

<mosaic_0001>
module attributes {stable_mosaic.version = 11 : i64} {
  func.func @_fused_matmul_kernel(%arg0: i32, %arg1: memref<256x147xbf16, #tpu.memory_space<vmem>>, %arg2: memref<147x64xbf16, #tpu.memory_space<vmem>>, %arg3: memref<1x64xf32, #tpu.memory_space<vmem>>, %arg4: memref<1x64xf32, #tpu.memory_space<vmem>>, %arg5: memref<256x64xbf16, #tpu.memory_space<vmem>>) attributes {dimension_semantics = [#tpu.dimension_semantics<parallel>], iteration_bounds = array<i64: 8>, scalar_prefetch = 0 : i64, scratch_operands = 0 : i64, tpu.core_type = #tpu.core_type<tc>, window_params = [{transform_indices = @transform_0, window_bounds = array<i64: 256, 147>}, {pipeline_mode = #tpu.pipeline_mode<synchronous>, transform_indices = @transform_1, window_bounds = array<i64: 147, 64>}, {pipeline_mode = #tpu.pipeline_mode<synchronous>, transform_indices = @transform_2, window_bounds = array<i64: 1, 64>}, {pipeline_mode = #tpu.pipeline_mode<synchronous>, transform_indices = @transform_3, window_bounds = array<i64: 1, 64>}, {transform_indices = @transform_4, window_bounds = array<i64: 256, 64>}]} {
    %c0 = arith.constant 0 : index
    %c0_0 = arith.constant 0 : index
    %0 = vector.load %arg1[%c0, %c0_0] : memref<256x147xbf16, #tpu.memory_space<vmem>>, vector<256x147xbf16>
    %c0_1 = arith.constant 0 : index
    %c0_2 = arith.constant 0 : index
    %1 = vector.load %arg2[%c0_1, %c0_2] : memref<147x64xbf16, #tpu.memory_space<vmem>>, vector<147x64xbf16>
    %cst = arith.constant dense<0.000000e+00> : vector<256x64xf32>
    %2 = tpu.matmul %0, %1, %cst {dimension_numbers = #tpu.dot_dimension_numbers<[1], [0], [0], [1], [0, 0, 1, 1], [], []>} : vector<256x147xbf16>, vector<147x64xbf16>, vector<256x64xf32> -> vector<256x64xf32>
    %c0_3 = arith.constant 0 : index
    %c0_4 = arith.constant 0 : index
    %3 = vector.load %arg3[%c0_3, %c0_4] : memref<1x64xf32, #tpu.memory_space<vmem>>, vector<1x64xf32>
    %c0_5 = arith.constant 0 : index
    %c0_6 = arith.constant 0 : index
    %4 = vector.load %arg4[%c0_5, %c0_6] : memref<1x64xf32, #tpu.memory_space<vmem>>, vector<1x64xf32>
    %5 = vector.broadcast %3 : vector<1x64xf32> to vector<256x64xf32>
    %6 = arith.mulf %2, %5 : vector<256x64xf32>
    %7 = vector.broadcast %4 : vector<1x64xf32> to vector<256x64xf32>
    %8 = arith.addf %6, %7 : vector<256x64xf32>
    %cst_7 = arith.constant 0.000000e+00 : f32
    %9 = vector.broadcast %cst_7 : f32 to vector<256x64xf32>
    %10 = arith.maximumf %8, %9 : vector<256x64xf32>
    %11 = arith.truncf %10 : vector<256x64xf32> to vector<256x64xbf16>
    %c0_8 = arith.constant 0 : index
    %c0_9 = arith.constant 0 : index
    %12 = vector.load %arg5[%c0_8, %c0_9] : memref<256x64xbf16, #tpu.memory_space<vmem>>, vector<256x64xbf16>
    tpu.vector_store %arg5[%c0_8, %c0_9], %11 {strides = array<i32>} : memref<256x64xbf16, #tpu.memory_space<vmem>>, vector<256x64xbf16>,
    return
  }
  func.func @transform_0(%arg0: i32) -> (i32, i32) {
    %c0_i32 = arith.constant 0 : i32
    %c0_i32_0 = arith.constant 0 : i32
    return %arg0, %c0_i32 : i32, i32
  }
  func.func @transform_1(%arg0: i32) -> (i32, i32) {
    %c0_i32 = arith.constant 0 : i32
    %c0_i32_0 = arith.constant 0 : i32
    %c0_i32_1 = arith.constant 0 : i32
    return %c0_i32, %c0_i32_0 : i32, i32
  }
  func.func @transform_2(%arg0: i32) -> (i32, i32) {
    %c0_i32 = arith.constant 0 : i32
    %c0_i32_0 = arith.constant 0 : i32
    %c0_i32_1 = arith.constant 0 : i32
    return %c0_i32, %c0_i32_0 : i32, i32
  }
  func.func @transform_3(%arg0: i32) -> (i32, i32) {
    %c0_i32 = arith.constant 0 : i32
    %c0_i32_0 = arith.constant 0 : i32
    %c0_i32_1 = arith.constant 0 : i32
    return %c0_i32, %c0_i32_0 : i32, i32
  }
  func.func @transform_4(%arg0: i32) -> (i32, i32) {
    %c0_i32 = arith.constant 0 : i32
    %c0_i32_0 = arith.constant 0 : i32
    return %arg0, %c0_i32 : i32, i32
  }
}

module attributes {stable_mosaic.version = 11 : i64} {
  func.func @_fused_matmul_kernel(%arg0: i32, %arg1: memref<256x64xbf16, #tpu.memory_space<vmem>>, %arg2: memref<1x64xf32, #tpu.memory_space<vmem>>, %arg3: memref<1x64xf32, #tpu.memory_space<vmem>>, %arg4: memref<64x128xbf16, #tpu.memory_space<vmem>>, %arg5: memref<1x128xf32, #tpu.memory_space<vmem>>, %arg6: memref<1x128xf32, #tpu.memory_space<vmem>>, %arg7: memref<256x128xbf16, #tpu.memory_space<vmem>>) attributes {dimension_semantics = [#tpu.dimension_semantics<parallel>], iteration_bounds = array<i64: 2>, scalar_prefetch = 0 : i64, scratch_operands = 0 : i64, tpu.core_type = #tpu.core_type<tc>, window_params = [{transform_indices = @transform_0, window_bounds = array<i64: 256, 64>}, {pipeline_mode = #tpu.pipeline_mode<synchronous>, transform_indices = @transform_1, window_bounds = array<i64: 1, 64>}, {pipeline_mode = #tpu.pipeline_mode<synchronous>, transform_indices = @transform_2, window_bounds = array<i64: 1, 64>}, {pipeline_mode = #tpu.pipeline_mode<synchronous>, transform_indices = @transform_3, window_bounds = array<i64: 64, 128>}, {pipeline_mode = #tpu.pipeline_mode<synchronous>, transform_indices = @transform_4, window_bounds = array<i64: 1, 128>}, {pipeline_mode = #tpu.pipeline_mode<synchronous>, transform_indices = @transform_5, window_bounds = array<i64: 1, 128>}, {transform_indices = @transform_6, window_bounds = array<i64: 256, 128>}]} {
    %c0 = arith.constant 0 : index
    %c0_0 = arith.constant 0 : index
    %0 = vector.load %arg1[%c0, %c0_0] : memref<256x64xbf16, #tpu.memory_space<vmem>>, vector<256x64xbf16>
    %c0_1 = arith.constant 0 : index
    %c0_2 = arith.constant 0 : index
    %1 = vector.load %arg2[%c0_1, %c0_2] : memref<1x64xf32, #tpu.memory_space<vmem>>, vector<1x64xf32>
    %c0_3 = arith.constant 0 : index
    %c0_4 = arith.constant 0 : index
    %2 = vector.load %arg3[%c0_3, %c0_4] : memref<1x64xf32, #tpu.memory_space<vmem>>, vector<1x64xf32>
    %3 = arith.extf %0 : vector<256x64xbf16> to vector<256x64xf32>
    %4 = vector.broadcast %1 : vector<1x64xf32> to vector<256x64xf32>
    %5 = arith.mulf %3, %4 : vector<256x64xf32>
    %6 = vector.broadcast %2 : vector<1x64xf32> to vector<256x64xf32>
    %7 = arith.addf %5, %6 : vector<256x64xf32>
    %cst = arith.constant 0.000000e+00 : f32
    %8 = vector.broadcast %cst : f32 to vector<256x64xf32>
    %9 = arith.maximumf %7, %8 : vector<256x64xf32>
    %10 = arith.truncf %9 : vector<256x64xf32> to vector<256x64xbf16>
    %c0_5 = arith.constant 0 : index
    %c0_6 = arith.constant 0 : index
    %11 = vector.load %arg4[%c0_5, %c0_6] : memref<64x128xbf16, #tpu.memory_space<vmem>>, vector<64x128xbf16>
    %cst_7 = arith.constant dense<0.000000e+00> : vector<256x128xf32>
    %12 = tpu.matmul %10, %11, %cst_7 {dimension_numbers = #tpu.dot_dimension_numbers<[1], [0], [0], [1], [0, 0, 1, 1], [], []>} : vector<256x64xbf16>, vector<64x128xbf16>, vector<256x128xf32> -> vector<256x128xf32>
    %c0_8 = arith.constant 0 : index
    %c0_9 = arith.constant 0 : index
    %13 = vector.load %arg5[%c0_8, %c0_9] : memref<1x128xf32, #tpu.memory_space<vmem>>, vector<1x128xf32>
    %c0_10 = arith.constant 0 : index
    %c0_11 = arith.constant 0 : index
    %14 = vector.load %arg6[%c0_10, %c0_11] : memref<1x128xf32, #tpu.memory_space<vmem>>, vector<1x128xf32>
    %15 = vector.broadcast %13 : vector<1x128xf32> to vector<256x128xf32>
    %16 = arith.mulf %12, %15 : vector<256x128xf32>
    %17 = vector.broadcast %14 : vector<1x128xf32> to vector<256x128xf32>
    %18 = arith.addf %16, %17 : vector<256x128xf32>
    %cst_12 = arith.constant 0.000000e+00 : f32
    %19 = vector.broadcast %cst_12 : f32 to vector<256x128xf32>
    %20 = arith.maximumf %18, %19 : vector<256x128xf32>
    %21 = arith.truncf %20 : vector<256x128xf32> to vector<256x128xbf16>
    %c0_13 = arith.constant 0 : index
    %c0_14 = arith.constant 0 : index
    %22 = vector.load %arg7[%c0_13, %c0_14] : memref<256x128xbf16, #tpu.memory_space<vmem>>, vector<256x128xbf16>
    tpu.vector_store %arg7[%c0_13, %c0_14], %21 {strides = array<i32>} : memref<256x128xbf16, #tpu.memory_space<vmem>>, vector<256x128xbf16>,
    return
  }
  func.func @transform_0(%arg0: i32) -> (i32, i32) {
    %c0_i32 = arith.constant 0 : i32
    %c0_i32_0 = arith.constant 0 : i32
    return %arg0, %c0_i32 : i32, i32
  }
  func.func @transform_1(%arg0: i32) -> (i32, i32) {
    %c0_i32 = arith.constant 0 : i32
    %c0_i32_0 = arith.constant 0 : i32
    %c0_i32_1 = arith.constant 0 : i32
    return %c0_i32, %c0_i32_0 : i32, i32
  }
  func.func @transform_2(%arg0: i32) -> (i32, i32) {
    %c0_i32 = arith.constant 0 : i32
    %c0_i32_0 = arith.constant 0 : i32
    %c0_i32_1 = arith.constant 0 : i32
    return %c0_i32, %c0_i32_0 : i32, i32
  }
  func.func @transform_3(%arg0: i32) -> (i32, i32) {
    %c0_i32 = arith.constant 0 : i32
    %c0_i32_0 = arith.constant 0 : i32
    %c0_i32_1 = arith.constant 0 : i32
    return %c0_i32, %c0_i32_0 : i32, i32
  }
  func.func @transform_4(%arg0: i32) -> (i32, i32) {
    %c0_i32 = arith.constant 0 : i32
    %c0_i32_0 = arith.constant 0 : i32
    %c0_i32_1 = arith.constant 0 : i32
    return %c0_i32, %c0_i32_0 : i32, i32
  }
  func.func @transform_5(%arg0: i32) -> (i32, i32) {
    %c0_i32 = arith.constant 0 : i32
    %c0_i32_0 = arith.constant 0 : i32
    %c0_i32_1 = arith.constant 0 : i32
    return %c0_i32, %c0_i32_0 : i32, i32
  }
  func.func @transform_6(%arg0: i32) -> (i32, i32) {
    %c0_i32 = arith.constant 0 : i32
    %c0_i32_0 = arith.constant 0 : i32
    return %arg0, %c0_i32 : i32, i32
  }
}

module attributes {stable_mosaic.version = 11 : i64} {
  func.func @_conv3x3_kernel(%arg0: i32, %arg1: i32, %arg2: memref<1x18x18x128xbf16, #tpu.memory_space<vmem>>, %arg3: memref<3x384x32xbf16, #tpu.memory_space<vmem>>, %arg4: memref<1x8x16x32xbf16, #tpu.memory_space<vmem>>) attributes {dimension_semantics = [#tpu.dimension_semantics<parallel>, #tpu.dimension_semantics<parallel>], iteration_bounds = array<i64: 2, 2>, scalar_prefetch = 0 : i64, scratch_operands = 0 : i64, tpu.core_type = #tpu.core_type<tc>, window_params = [{transform_indices = @transform_0, window_bounds = array<i64: 1, 18, 18, 128>}, {pipeline_mode = #tpu.pipeline_mode<synchronous>, transform_indices = @transform_1, window_bounds = array<i64: 3, 384, 32>}, {transform_indices = @transform_2, window_bounds = array<i64: 1, 8, 16, 32>}]} {
    %cst = arith.constant 0.000000e+00 : f32
    %0 = vector.broadcast %cst : f32 to vector<128x32xf32>
    %c8_i32 = arith.constant 8 : i32
    %1 = arith.muli %arg1, %c8_i32 : i32
    %c0_i32 = arith.constant 0 : i32
    %2 = arith.addi %1, %c0_i32 : i32
    %c0 = arith.constant 0 : index
    %3 = arith.index_cast %2 : i32 to index
    %c0_0 = arith.constant 0 : index
    %c0_1 = arith.constant 0 : index
    %4 = vector.load %arg2[%c0, %3, %c0_0, %c0_1] : memref<1x18x18x128xbf16, #tpu.memory_space<vmem>>, vector<1x8x18x128xbf16>
    %5 = vector.shape_cast %4 : vector<1x8x18x128xbf16> to vector<8x18x128xbf16>
    %6 = vector.extract_strided_slice %5 {offsets = [0, 0, 0], sizes = [8, 16, 128], strides = [1, 1, 1]} : vector<8x18x128xbf16> to vector<8x16x128xbf16>
    %7 = vector.extract_strided_slice %5 {offsets = [0, 1, 0], sizes = [8, 16, 128], strides = [1, 1, 1]} : vector<8x18x128xbf16> to vector<8x16x128xbf16>
    %8 = vector.extract_strided_slice %5 {offsets = [0, 2, 0], sizes = [8, 16, 128], strides = [1, 1, 1]} : vector<8x18x128xbf16> to vector<8x16x128xbf16>
    %9 = tpu.concatenate %6, %7, %8 in 2 : vector<8x16x128xbf16>, vector<8x16x128xbf16>, vector<8x16x128xbf16> -> vector<8x16x384xbf16>
    %10 = vector.shape_cast %9 : vector<8x16x384xbf16> to vector<128x384xbf16>
    %c0_2 = arith.constant 0 : index
    %c0_3 = arith.constant 0 : index
    %c0_4 = arith.constant 0 : index
    %11 = vector.load %arg3[%c0_2, %c0_3, %c0_4] : memref<3x384x32xbf16, #tpu.memory_space<vmem>>, vector<1x384x32xbf16>
    %12 = vector.shape_cast %11 : vector<1x384x32xbf16> to vector<384x32xbf16>
    %cst_5 = arith.constant dense<0.000000e+00> : vector<128x32xf32>
    %13 = tpu.matmul %10, %12, %cst_5 {dimension_numbers = #tpu.dot_dimension_numbers<[1], [0], [0], [1], [0, 0, 1, 1], [], []>} : vector<128x384xbf16>, vector<384x32xbf16>, vector<128x32xf32> -> vector<128x32xf32>
    %14 = arith.addf %0, %13 : vector<128x32xf32>
    %c8_i32_6 = arith.constant 8 : i32
    %15 = arith.muli %arg1, %c8_i32_6 : i32
    %c1_i32 = arith.constant 1 : i32
    %16 = arith.addi %15, %c1_i32 : i32
    %c0_7 = arith.constant 0 : index
    %17 = arith.index_cast %16 : i32 to index
    %c0_8 = arith.constant 0 : index
    %c0_9 = arith.constant 0 : index
    %18 = vector.load %arg2[%c0_7, %17, %c0_8, %c0_9] : memref<1x18x18x128xbf16, #tpu.memory_space<vmem>>, vector<1x8x18x128xbf16>
    %19 = vector.shape_cast %18 : vector<1x8x18x128xbf16> to vector<8x18x128xbf16>
    %20 = vector.extract_strided_slice %19 {offsets = [0, 0, 0], sizes = [8, 16, 128], strides = [1, 1, 1]} : vector<8x18x128xbf16> to vector<8x16x128xbf16>
    %21 = vector.extract_strided_slice %19 {offsets = [0, 1, 0], sizes = [8, 16, 128], strides = [1, 1, 1]} : vector<8x18x128xbf16> to vector<8x16x128xbf16>
    %22 = vector.extract_strided_slice %19 {offsets = [0, 2, 0], sizes = [8, 16, 128], strides = [1, 1, 1]} : vector<8x18x128xbf16> to vector<8x16x128xbf16>
    %23 = tpu.concatenate %20, %21, %22 in 2 : vector<8x16x128xbf16>, vector<8x16x128xbf16>, vector<8x16x128xbf16> -> vector<8x16x384xbf16>
    %24 = vector.shape_cast %23 : vector<8x16x384xbf16> to vector<128x384xbf16>
    %c1 = arith.constant 1 : index
    %c0_10 = arith.constant 0 : index
    %c0_11 = arith.constant 0 : index
    %25 = vector.load %arg3[%c1, %c0_10, %c0_11] : memref<3x384x32xbf16, #tpu.memory_space<vmem>>, vector<1x384x32xbf16>
    %26 = vector.shape_cast %25 : vector<1x384x32xbf16> to vector<384x32xbf16>
    %cst_12 = arith.constant dense<0.000000e+00> : vector<128x32xf32>
    %27 = tpu.matmul %24, %26, %cst_12 {dimension_numbers = #tpu.dot_dimension_numbers<[1], [0], [0], [1], [0, 0, 1, 1], [], []>} : vector<128x384xbf16>, vector<384x32xbf16>, vector<128x32xf32> -> vector<128x32xf32>
    %28 = arith.addf %14, %27 : vector<128x32xf32>
    %c8_i32_13 = arith.constant 8 : i32
    %29 = arith.muli %arg1, %c8_i32_13 : i32
    %c2_i32 = arith.constant 2 : i32
    %30 = arith.addi %29, %c2_i32 : i32
    %c0_14 = arith.constant 0 : index
    %31 = arith.index_cast %30 : i32 to index
    %c0_15 = arith.constant 0 : index
    %c0_16 = arith.constant 0 : index
    %32 = vector.load %arg2[%c0_14, %31, %c0_15, %c0_16] : memref<1x18x18x128xbf16, #tpu.memory_space<vmem>>, vector<1x8x18x128xbf16>
    %33 = vector.shape_cast %32 : vector<1x8x18x128xbf16> to vector<8x18x128xbf16>
    %34 = vector.extract_strided_slice %33 {offsets = [0, 0, 0], sizes = [8, 16, 128], strides = [1, 1, 1]} : vector<8x18x128xbf16> to vector<8x16x128xbf16>
    %35 = vector.extract_strided_slice %33 {offsets = [0, 1, 0], sizes = [8, 16, 128], strides = [1, 1, 1]} : vector<8x18x128xbf16> to vector<8x16x128xbf16>
    %36 = vector.extract_strided_slice %33 {offsets = [0, 2, 0], sizes = [8, 16, 128], strides = [1, 1, 1]} : vector<8x18x128xbf16> to vector<8x16x128xbf16>
    %37 = tpu.concatenate %34, %35, %36 in 2 : vector<8x16x128xbf16>, vector<8x16x128xbf16>, vector<8x16x128xbf16> -> vector<8x16x384xbf16>
    %38 = vector.shape_cast %37 : vector<8x16x384xbf16> to vector<128x384xbf16>
    %c2 = arith.constant 2 : index
    %c0_17 = arith.constant 0 : index
    %c0_18 = arith.constant 0 : index
    %39 = vector.load %arg3[%c2, %c0_17, %c0_18] : memref<3x384x32xbf16, #tpu.memory_space<vmem>>, vector<1x384x32xbf16>
    %40 = vector.shape_cast %39 : vector<1x384x32xbf16> to vector<384x32xbf16>
    %cst_19 = arith.constant dense<0.000000e+00> : vector<128x32xf32>
    %41 = tpu.matmul %38, %40, %cst_19 {dimension_numbers = #tpu.dot_dimension_numbers<[1], [0], [0], [1], [0, 0, 1, 1], [], []>} : vector<128x384xbf16>, vector<384x32xbf16>, vector<128x32xf32> -> vector<128x32xf32>
    %42 = arith.addf %28, %41 : vector<128x32xf32>
    %43 = vector.shape_cast %42 : vector<128x32xf32> to vector<8x16x32xf32>
    %44 = arith.truncf %43 : vector<8x16x32xf32> to vector<8x16x32xbf16>
    %c0_20 = arith.constant 0 : index
    %c0_21 = arith.constant 0 : index
    %c0_22 = arith.constant 0 : index
    %c0_23 = arith.constant 0 : index
    %45 = vector.load %arg4[%c0_20, %c0_21, %c0_22, %c0_23] : memref<1x8x16x32xbf16, #tpu.memory_space<vmem>>, vector<1x8x16x32xbf16>
    %46 = vector.shape_cast %45 : vector<1x8x16x32xbf16> to vector<8x16x32xbf16>
    %47 = vector.shape_cast %44 : vector<8x16x32xbf16> to vector<1x8x16x32xbf16>
    tpu.vector_store %arg4[%c0_20, %c0_21, %c0_22, %c0_23], %47 {strides = array<i32>} : memref<1x8x16x32xbf16, #tpu.memory_space<vmem>>, vector<1x8x16x32xbf16>,
    return
  }
  func.func @transform_0(%arg0: i32, %arg1: i32) -> (i32, i32, i32, i32) {
    %c0_i32 = arith.constant 0 : i32
    %c0_i32_0 = arith.constant 0 : i32
    %c0_i32_1 = arith.constant 0 : i32
    %c0_i32_2 = arith.constant 0 : i32
    return %arg0, %c0_i32, %c0_i32_0, %c0_i32_1 : i32, i32, i32, i32
  }
  func.func @transform_1(%arg0: i32, %arg1: i32) -> (i32, i32, i32) {
    %c0_i32 = arith.constant 0 : i32
    %c0_i32_0 = arith.constant 0 : i32
    %c0_i32_1 = arith.constant 0 : i32
    %c0_i32_2 = arith.constant 0 : i32
    return %c0_i32, %c0_i32_0, %c0_i32_1 : i32, i32, i32
  }
  func.func @transform_2(%arg0: i32, %arg1: i32) -> (i32, i32, i32, i32) {
    %c0_i32 = arith.constant 0 : i32
    %c0_i32_0 = arith.constant 0 : i32
    %c0_i32_1 = arith.constant 0 : i32
    return %arg0, %arg1, %c0_i32, %c0_i32_0 : i32, i32, i32, i32
  }
}

module attributes {stable_mosaic.version = 11 : i64} {
  func.func @_fused_matmul_kernel(%arg0: i32, %arg1: memref<256x64xbf16, #tpu.memory_space<vmem>>, %arg2: memref<256x32xbf16, #tpu.memory_space<vmem>>, %arg3: memref<1x96xf32, #tpu.memory_space<vmem>>, %arg4: memref<1x96xf32, #tpu.memory_space<vmem>>, %arg5: memref<96x128xbf16, #tpu.memory_space<vmem>>, %arg6: memref<1x128xf32, #tpu.memory_space<vmem>>, %arg7: memref<1x128xf32, #tpu.memory_space<vmem>>, %arg8: memref<256x128xbf16, #tpu.memory_space<vmem>>) attributes {dimension_semantics = [#tpu.dimension_semantics<parallel>], iteration_bounds = array<i64: 2>, scalar_prefetch = 0 : i64, scratch_operands = 0 : i64, tpu.core_type = #tpu.core_type<tc>, window_params = [{transform_indices = @transform_0, window_bounds = array<i64: 256, 64>}, {transform_indices = @transform_1, window_bounds = array<i64: 256, 32>}, {pipeline_mode = #tpu.pipeline_mode<synchronous>, transform_indices = @transform_2, window_bounds = array<i64: 1, 96>}, {pipeline_mode = #tpu.pipeline_mode<synchronous>, transform_indices = @transform_3, window_bounds = array<i64: 1, 96>}, {pipeline_mode = #tpu.pipeline_mode<synchronous>, transform_indices = @transform_4, window_bounds = array<i64: 96, 128>}, {pipeline_mode = #tpu.pipeline_mode<synchronous>, transform_indices = @transform_5, window_bounds = array<i64: 1, 128>}, {pipeline_mode = #tpu.pipeline_mode<synchronous>, transform_indices = @transform_6, window_bounds = array<i64: 1, 128>}, {transform_indices = @transform_7, window_bounds = array<i64: 256, 128>}]} {
    %c0 = arith.constant 0 : index
    %c0_0 = arith.constant 0 : index
    %0 = vector.load %arg1[%c0, %c0_0] : memref<256x64xbf16, #tpu.memory_space<vmem>>, vector<256x64xbf16>
    %c0_1 = arith.constant 0 : index
    %c0_2 = arith.constant 0 : index
    %1 = vector.load %arg2[%c0_1, %c0_2] : memref<256x32xbf16, #tpu.memory_space<vmem>>, vector<256x32xbf16>
    %2 = tpu.concatenate %0, %1 in 1 : vector<256x64xbf16>, vector<256x32xbf16> -> vector<256x96xbf16>
    %c0_3 = arith.constant 0 : index
    %c0_4 = arith.constant 0 : index
    %3 = vector.load %arg3[%c0_3, %c0_4] : memref<1x96xf32, #tpu.memory_space<vmem>>, vector<1x96xf32>
    %c0_5 = arith.constant 0 : index
    %c0_6 = arith.constant 0 : index
    %4 = vector.load %arg4[%c0_5, %c0_6] : memref<1x96xf32, #tpu.memory_space<vmem>>, vector<1x96xf32>
    %5 = arith.extf %2 : vector<256x96xbf16> to vector<256x96xf32>
    %6 = vector.broadcast %3 : vector<1x96xf32> to vector<256x96xf32>
    %7 = arith.mulf %5, %6 : vector<256x96xf32>
    %8 = vector.broadcast %4 : vector<1x96xf32> to vector<256x96xf32>
    %9 = arith.addf %7, %8 : vector<256x96xf32>
    %cst = arith.constant 0.000000e+00 : f32
    %10 = vector.broadcast %cst : f32 to vector<256x96xf32>
    %11 = arith.maximumf %9, %10 : vector<256x96xf32>
    %12 = arith.truncf %11 : vector<256x96xf32> to vector<256x96xbf16>
    %c0_7 = arith.constant 0 : index
    %c0_8 = arith.constant 0 : index
    %13 = vector.load %arg5[%c0_7, %c0_8] : memref<96x128xbf16, #tpu.memory_space<vmem>>, vector<96x128xbf16>
    %cst_9 = arith.constant dense<0.000000e+00> : vector<256x128xf32>
    %14 = tpu.matmul %12, %13, %cst_9 {dimension_numbers = #tpu.dot_dimension_numbers<[1], [0], [0], [1], [0, 0, 1, 1], [], []>} : vector<256x96xbf16>, vector<96x128xbf16>, vector<256x128xf32> -> vector<256x128xf32>
    %c0_10 = arith.constant 0 : index
    %c0_11 = arith.constant 0 : index
    %15 = vector.load %arg6[%c0_10, %c0_11] : memref<1x128xf32, #tpu.memory_space<vmem>>, vector<1x128xf32>
    %c0_12 = arith.constant 0 : index
    %c0_13 = arith.constant 0 : index
    %16 = vector.load %arg7[%c0_12, %c0_13] : memref<1x128xf32, #tpu.memory_space<vmem>>, vector<1x128xf32>
    %17 = vector.broadcast %15 : vector<1x128xf32> to vector<256x128xf32>
    %18 = arith.mulf %14, %17 : vector<256x128xf32>
    %19 = vector.broadcast %16 : vector<1x128xf32> to vector<256x128xf32>
    %20 = arith.addf %18, %19 : vector<256x128xf32>
    %cst_14 = arith.constant 0.000000e+00 : f32
    %21 = vector.broadcast %cst_14 : f32 to vector<256x128xf32>
    %22 = arith.maximumf %20, %21 : vector<256x128xf32>
    %23 = arith.truncf %22 : vector<256x128xf32> to vector<256x128xbf16>
    %c0_15 = arith.constant 0 : index
    %c0_16 = arith.constant 0 : index
    %24 = vector.load %arg8[%c0_15, %c0_16] : memref<256x128xbf16, #tpu.memory_space<vmem>>, vector<256x128xbf16>
    tpu.vector_store %arg8[%c0_15, %c0_16], %23 {strides = array<i32>} : memref<256x128xbf16, #tpu.memory_space<vmem>>, vector<256x128xbf16>,
    return
  }
  func.func @transform_0(%arg0: i32) -> (i32, i32) {
    %c0_i32 = arith.constant 0 : i32
    %c0_i32_0 = arith.constant 0 : i32
    return %arg0, %c0_i32 : i32, i32
  }
  func.func @transform_1(%arg0: i32) -> (i32, i32) {
    %c0_i32 = arith.constant 0 : i32
    %c0_i32_0 = arith.constant 0 : i32
    return %arg0, %c0_i32 : i32, i32
  }
  func.func @transform_2(%arg0: i32) -> (i32, i32) {
    %c0_i32 = arith.constant 0 : i32
    %c0_i32_0 = arith.constant 0 : i32
    %c0_i32_1 = arith.constant 0 : i32
    return %c0_i32, %c0_i32_0 : i32, i32
  }
  func.func @transform_3(%arg0: i32) -> (i32, i32) {
    %c0_i32 = arith.constant 0 : i32
    %c0_i32_0 = arith.constant 0 : i32
    %c0_i32_1 = arith.constant 0 : i32
    return %c0_i32, %c0_i32_0 : i32, i32
  }
  func.func @transform_4(%arg0: i32) -> (i32, i32) {
    %c0_i32 = arith.constant 0 : i32
    %c0_i32_0 = arith.constant 0 : i32
    %c0_i32_1 = arith.constant 0 : i32
    return %c0_i32, %c0_i32_0 : i32, i32
  }
  func.func @transform_5(%arg0: i32) -> (i32, i32) {
    %c0_i32 = arith.constant 0 : i32
    %c0_i32_0 = arith.constant 0 : i32
    %c0_i32_1 = arith.constant 0 : i32
    return %c0_i32, %c0_i32_0 : i32, i32
  }
  func.func @transform_6(%arg0: i32) -> (i32, i32) {
    %c0_i32 = arith.constant 0 : i32
    %c0_i32_0 = arith.constant 0 : i32
    %c0_i32_1 = arith.constant 0 : i32
    return %c0_i32, %c0_i32_0 : i32, i32
  }
  func.func @transform_7(%arg0: i32) -> (i32, i32) {
    %c0_i32 = arith.constant 0 : i32
    %c0_i32_0 = arith.constant 0 : i32
    return %arg0, %c0_i32 : i32, i32
  }
}

module attributes {stable_mosaic.version = 11 : i64} {
  func.func @_transition_kernel(%arg0: i32, %arg1: i32, %arg2: memref<1x8x16x64xbf16, #tpu.memory_space<vmem>>, %arg3: memref<1x8x16x32xbf16, #tpu.memory_space<vmem>>, %arg4: memref<1x8x16x32xbf16, #tpu.memory_space<vmem>>, %arg5: memref<1x1x128xf32, #tpu.memory_space<vmem>>, %arg6: memref<1x1x128xf32, #tpu.memory_space<vmem>>, %arg7: memref<128x64xbf16, #tpu.memory_space<vmem>>, %arg8: memref<1x4x8x64xbf16, #tpu.memory_space<vmem>>) attributes {dimension_semantics = [#tpu.dimension_semantics<parallel>, #tpu.dimension_semantics<parallel>], iteration_bounds = array<i64: 2, 2>, scalar_prefetch = 0 : i64, scratch_operands = 0 : i64, tpu.core_type = #tpu.core_type<tc>, window_params = [{transform_indices = @transform_0, window_bounds = array<i64: 1, 8, 16, 64>}, {transform_indices = @transform_1, window_bounds = array<i64: 1, 8, 16, 32>}, {transform_indices = @transform_2, window_bounds = array<i64: 1, 8, 16, 32>}, {pipeline_mode = #tpu.pipeline_mode<synchronous>, transform_indices = @transform_3, window_bounds = array<i64: 1, 1, 128>}, {pipeline_mode = #tpu.pipeline_mode<synchronous>, transform_indices = @transform_4, window_bounds = array<i64: 1, 1, 128>}, {pipeline_mode = #tpu.pipeline_mode<synchronous>, transform_indices = @transform_5, window_bounds = array<i64: 128, 64>}, {transform_indices = @transform_6, window_bounds = array<i64: 1, 4, 8, 64>}]} {
    %c0 = arith.constant 0 : index
    %c0_0 = arith.constant 0 : index
    %c0_1 = arith.constant 0 : index
    %c0_2 = arith.constant 0 : index
    %0 = vector.load %arg2[%c0, %c0_0, %c0_1, %c0_2] : memref<1x8x16x64xbf16, #tpu.memory_space<vmem>>, vector<1x8x16x64xbf16>
    %1 = vector.shape_cast %0 : vector<1x8x16x64xbf16> to vector<8x16x64xbf16>
    %c0_3 = arith.constant 0 : index
    %c0_4 = arith.constant 0 : index
    %c0_5 = arith.constant 0 : index
    %c0_6 = arith.constant 0 : index
    %2 = vector.load %arg3[%c0_3, %c0_4, %c0_5, %c0_6] : memref<1x8x16x32xbf16, #tpu.memory_space<vmem>>, vector<1x8x16x32xbf16>
    %3 = vector.shape_cast %2 : vector<1x8x16x32xbf16> to vector<8x16x32xbf16>
    %c0_7 = arith.constant 0 : index
    %c0_8 = arith.constant 0 : index
    %c0_9 = arith.constant 0 : index
    %c0_10 = arith.constant 0 : index
    %4 = vector.load %arg4[%c0_7, %c0_8, %c0_9, %c0_10] : memref<1x8x16x32xbf16, #tpu.memory_space<vmem>>, vector<1x8x16x32xbf16>
    %5 = vector.shape_cast %4 : vector<1x8x16x32xbf16> to vector<8x16x32xbf16>
    %6 = tpu.concatenate %1, %3, %5 in 2 : vector<8x16x64xbf16>, vector<8x16x32xbf16>, vector<8x16x32xbf16> -> vector<8x16x128xbf16>
    %c0_11 = arith.constant 0 : index
    %c0_12 = arith.constant 0 : index
    %c0_13 = arith.constant 0 : index
    %7 = vector.load %arg5[%c0_11, %c0_12, %c0_13] : memref<1x1x128xf32, #tpu.memory_space<vmem>>, vector<1x1x128xf32>
    %c0_14 = arith.constant 0 : index
    %c0_15 = arith.constant 0 : index
    %c0_16 = arith.constant 0 : index
    %8 = vector.load %arg6[%c0_14, %c0_15, %c0_16] : memref<1x1x128xf32, #tpu.memory_space<vmem>>, vector<1x1x128xf32>
    %c0_17 = arith.constant 0 : index
    %c0_18 = arith.constant 0 : index
    %9 = vector.load %arg7[%c0_17, %c0_18] : memref<128x64xbf16, #tpu.memory_space<vmem>>, vector<128x64xbf16>
    %10 = arith.extf %6 : vector<8x16x128xbf16> to vector<8x16x128xf32>
    %11 = vector.broadcast %7 : vector<1x1x128xf32> to vector<8x16x128xf32>
    %12 = arith.mulf %10, %11 : vector<8x16x128xf32>
    %13 = vector.broadcast %8 : vector<1x1x128xf32> to vector<8x16x128xf32>
    %14 = arith.addf %12, %13 : vector<8x16x128xf32>
    %cst = arith.constant 0.000000e+00 : f32
    %15 = vector.broadcast %cst : f32 to vector<8x16x128xf32>
    %16 = arith.maximumf %14, %15 : vector<8x16x128xf32>
    %17 = vector.shape_cast %16 : vector<8x16x128xf32> to vector<4x2x16x128xf32>
    %18 = vector.extract_strided_slice %17 {offsets = [0, 0, 0, 0], sizes = [4, 1, 16, 128], strides = [1, 1, 1, 1]} : vector<4x2x16x128xf32> to vector<4x1x16x128xf32>
    %19 = vector.shape_cast %18 : vector<4x1x16x128xf32> to vector<4x16x128xf32>
    %20 = vector.extract_strided_slice %17 {offsets = [0, 1, 0, 0], sizes = [4, 1, 16, 128], strides = [1, 1, 1, 1]} : vector<4x2x16x128xf32> to vector<4x1x16x128xf32>
    %21 = vector.shape_cast %20 : vector<4x1x16x128xf32> to vector<4x16x128xf32>
    %22 = arith.addf %19, %21 : vector<4x16x128xf32>
    %23 = vector.shape_cast %22 : vector<4x16x128xf32> to vector<4x8x2x128xf32>
    %24 = vector.extract_strided_slice %23 {offsets = [0, 0, 0, 0], sizes = [4, 8, 1, 128], strides = [1, 1, 1, 1]} : vector<4x8x2x128xf32> to vector<4x8x1x128xf32>
    %25 = vector.shape_cast %24 : vector<4x8x1x128xf32> to vector<4x8x128xf32>
    %26 = vector.extract_strided_slice %23 {offsets = [0, 0, 1, 0], sizes = [4, 8, 1, 128], strides = [1, 1, 1, 1]} : vector<4x8x2x128xf32> to vector<4x8x1x128xf32>
    %27 = vector.shape_cast %26 : vector<4x8x1x128xf32> to vector<4x8x128xf32>
    %28 = arith.addf %25, %27 : vector<4x8x128xf32>
    %cst_19 = arith.constant 2.500000e-01 : f32
    %29 = vector.broadcast %cst_19 : f32 to vector<4x8x128xf32>
    %30 = arith.mulf %28, %29 : vector<4x8x128xf32>
    %31 = vector.shape_cast %30 : vector<4x8x128xf32> to vector<32x128xf32>
    %32 = arith.truncf %31 : vector<32x128xf32> to vector<32x128xbf16>
    %cst_20 = arith.constant dense<0.000000e+00> : vector<32x64xf32>
    %33 = tpu.matmul %32, %9, %cst_20 {dimension_numbers = #tpu.dot_dimension_numbers<[1], [0], [0], [1], [0, 0, 1, 1], [], []>} : vector<32x128xbf16>, vector<128x64xbf16>, vector<32x64xf32> -> vector<32x64xf32>
    %34 = vector.shape_cast %33 : vector<32x64xf32> to vector<4x8x64xf32>
    %35 = arith.truncf %34 : vector<4x8x64xf32> to vector<4x8x64xbf16>
    %c0_21 = arith.constant 0 : index
    %c0_22 = arith.constant 0 : index
    %c0_23 = arith.constant 0 : index
    %c0_24 = arith.constant 0 : index
    %36 = vector.load %arg8[%c0_21, %c0_22, %c0_23, %c0_24] : memref<1x4x8x64xbf16, #tpu.memory_space<vmem>>, vector<1x4x8x64xbf16>
    %37 = vector.shape_cast %36 : vector<1x4x8x64xbf16> to vector<4x8x64xbf16>
    %38 = vector.shape_cast %35 : vector<4x8x64xbf16> to vector<1x4x8x64xbf16>
    tpu.vector_store %arg8[%c0_21, %c0_22, %c0_23, %c0_24], %38 {strides = array<i32>} : memref<1x4x8x64xbf16, #tpu.memory_space<vmem>>, vector<1x4x8x64xbf16>,
    return
  }
  func.func @transform_0(%arg0: i32, %arg1: i32) -> (i32, i32, i32, i32) {
    %c0_i32 = arith.constant 0 : i32
    %c0_i32_0 = arith.constant 0 : i32
    %c0_i32_1 = arith.constant 0 : i32
    return %arg0, %arg1, %c0_i32, %c0_i32_0 : i32, i32, i32, i32
  }
  func.func @transform_1(%arg0: i32, %arg1: i32) -> (i32, i32, i32, i32) {
    %c0_i32 = arith.constant 0 : i32
    %c0_i32_0 = arith.constant 0 : i32
    %c0_i32_1 = arith.constant 0 : i32
    return %arg0, %arg1, %c0_i32, %c0_i32_0 : i32, i32, i32, i32
  }
  func.func @transform_2(%arg0: i32, %arg1: i32) -> (i32, i32, i32, i32) {
    %c0_i32 = arith.constant 0 : i32
    %c0_i32_0 = arith.constant 0 : i32
    %c0_i32_1 = arith.constant 0 : i32
    return %arg0, %arg1, %c0_i32, %c0_i32_0 : i32, i32, i32, i32
  }
  func.func @transform_3(%arg0: i32, %arg1: i32) -> (i32, i32, i32) {
    %c0_i32 = arith.constant 0 : i32
    %c0_i32_0 = arith.constant 0 : i32
    %c0_i32_1 = arith.constant 0 : i32
    %c0_i32_2 = arith.constant 0 : i32
    return %c0_i32, %c0_i32_0, %c0_i32_1 : i32, i32, i32
  }
  func.func @transform_4(%arg0: i32, %arg1: i32) -> (i32, i32, i32) {
    %c0_i32 = arith.constant 0 : i32
    %c0_i32_0 = arith.constant 0 : i32
    %c0_i32_1 = arith.constant 0 : i32
    %c0_i32_2 = arith.constant 0 : i32
    return %c0_i32, %c0_i32_0, %c0_i32_1 : i32, i32, i32
  }
  func.func @transform_5(%arg0: i32, %arg1: i32) -> (i32, i32) {
    %c0_i32 = arith.constant 0 : i32
    %c0_i32_0 = arith.constant 0 : i32
    %c0_i32_1 = arith.constant 0 : i32
    return %c0_i32, %c0_i32_0 : i32, i32
  }
  func.func @transform_6(%arg0: i32, %arg1: i32) -> (i32, i32, i32, i32) {
    %c0_i32 = arith.constant 0 : i32
    %c0_i32_0 = arith.constant 0 : i32
    %c0_i32_1 = arith.constant 0 : i32
    return %arg0, %arg1, %c0_i32, %c0_i32_0 : i32, i32, i32, i32
  }
}

module attributes {stable_mosaic.version = 11 : i64} {
  func.func @_fused_matmul_kernel(%arg0: i32, %arg1: memref<64x64xbf16, #tpu.memory_space<vmem>>, %arg2: memref<1x64xf32, #tpu.memory_space<vmem>>, %arg3: memref<1x64xf32, #tpu.memory_space<vmem>>, %arg4: memref<64x128xbf16, #tpu.memory_space<vmem>>, %arg5: memref<1x128xf32, #tpu.memory_space<vmem>>, %arg6: memref<1x128xf32, #tpu.memory_space<vmem>>, %arg7: memref<64x128xbf16, #tpu.memory_space<vmem>>) attributes {dimension_semantics = [#tpu.dimension_semantics<parallel>], iteration_bounds = array<i64: 2>, scalar_prefetch = 0 : i64, scratch_operands = 0 : i64, tpu.core_type = #tpu.core_type<tc>, window_params = [{transform_indices = @transform_0, window_bounds = array<i64: 64, 64>}, {pipeline_mode = #tpu.pipeline_mode<synchronous>, transform_indices = @transform_1, window_bounds = array<i64: 1, 64>}, {pipeline_mode = #tpu.pipeline_mode<synchronous>, transform_indices = @transform_2, window_bounds = array<i64: 1, 64>}, {pipeline_mode = #tpu.pipeline_mode<synchronous>, transform_indices = @transform_3, window_bounds = array<i64: 64, 128>}, {pipeline_mode = #tpu.pipeline_mode<synchronous>, transform_indices = @transform_4, window_bounds = array<i64: 1, 128>}, {pipeline_mode = #tpu.pipeline_mode<synchronous>, transform_indices = @transform_5, window_bounds = array<i64: 1, 128>}, {transform_indices = @transform_6, window_bounds = array<i64: 64, 128>}]} {
    %c0 = arith.constant 0 : index
    %c0_0 = arith.constant 0 : index
    %0 = vector.load %arg1[%c0, %c0_0] : memref<64x64xbf16, #tpu.memory_space<vmem>>, vector<64x64xbf16>
    %c0_1 = arith.constant 0 : index
    %c0_2 = arith.constant 0 : index
    %1 = vector.load %arg2[%c0_1, %c0_2] : memref<1x64xf32, #tpu.memory_space<vmem>>, vector<1x64xf32>
    %c0_3 = arith.constant 0 : index
    %c0_4 = arith.constant 0 : index
    %2 = vector.load %arg3[%c0_3, %c0_4] : memref<1x64xf32, #tpu.memory_space<vmem>>, vector<1x64xf32>
    %3 = arith.extf %0 : vector<64x64xbf16> to vector<64x64xf32>
    %4 = vector.broadcast %1 : vector<1x64xf32> to vector<64x64xf32>
    %5 = arith.mulf %3, %4 : vector<64x64xf32>
    %6 = vector.broadcast %2 : vector<1x64xf32> to vector<64x64xf32>
    %7 = arith.addf %5, %6 : vector<64x64xf32>
    %cst = arith.constant 0.000000e+00 : f32
    %8 = vector.broadcast %cst : f32 to vector<64x64xf32>
    %9 = arith.maximumf %7, %8 : vector<64x64xf32>
    %10 = arith.truncf %9 : vector<64x64xf32> to vector<64x64xbf16>
    %c0_5 = arith.constant 0 : index
    %c0_6 = arith.constant 0 : index
    %11 = vector.load %arg4[%c0_5, %c0_6] : memref<64x128xbf16, #tpu.memory_space<vmem>>, vector<64x128xbf16>
    %cst_7 = arith.constant dense<0.000000e+00> : vector<64x128xf32>
    %12 = tpu.matmul %10, %11, %cst_7 {dimension_numbers = #tpu.dot_dimension_numbers<[1], [0], [0], [1], [0, 0, 1, 1], [], []>} : vector<64x64xbf16>, vector<64x128xbf16>, vector<64x128xf32> -> vector<64x128xf32>
    %c0_8 = arith.constant 0 : index
    %c0_9 = arith.constant 0 : index
    %13 = vector.load %arg5[%c0_8, %c0_9] : memref<1x128xf32, #tpu.memory_space<vmem>>, vector<1x128xf32>
    %c0_10 = arith.constant 0 : index
    %c0_11 = arith.constant 0 : index
    %14 = vector.load %arg6[%c0_10, %c0_11] : memref<1x128xf32, #tpu.memory_space<vmem>>, vector<1x128xf32>
    %15 = vector.broadcast %13 : vector<1x128xf32> to vector<64x128xf32>
    %16 = arith.mulf %12, %15 : vector<64x128xf32>
    %17 = vector.broadcast %14 : vector<1x128xf32> to vector<64x128xf32>
    %18 = arith.addf %16, %17 : vector<64x128xf32>
    %cst_12 = arith.constant 0.000000e+00 : f32
    %19 = vector.broadcast %cst_12 : f32 to vector<64x128xf32>
    %20 = arith.maximumf %18, %19 : vector<64x128xf32>
    %21 = arith.truncf %20 : vector<64x128xf32> to vector<64x128xbf16>
    %c0_13 = arith.constant 0 : index
    %c0_14 = arith.constant 0 : index
    %22 = vector.load %arg7[%c0_13, %c0_14] : memref<64x128xbf16, #tpu.memory_space<vmem>>, vector<64x128xbf16>
    tpu.vector_store %arg7[%c0_13, %c0_14], %21 {strides = array<i32>} : memref<64x128xbf16, #tpu.memory_space<vmem>>, vector<64x128xbf16>,
    return
  }
  func.func @transform_0(%arg0: i32) -> (i32, i32) {
    %c0_i32 = arith.constant 0 : i32
    %c0_i32_0 = arith.constant 0 : i32
    return %arg0, %c0_i32 : i32, i32
  }
  func.func @transform_1(%arg0: i32) -> (i32, i32) {
    %c0_i32 = arith.constant 0 : i32
    %c0_i32_0 = arith.constant 0 : i32
    %c0_i32_1 = arith.constant 0 : i32
    return %c0_i32, %c0_i32_0 : i32, i32
  }
  func.func @transform_2(%arg0: i32) -> (i32, i32) {
    %c0_i32 = arith.constant 0 : i32
    %c0_i32_0 = arith.constant 0 : i32
    %c0_i32_1 = arith.constant 0 : i32
    return %c0_i32, %c0_i32_0 : i32, i32
  }
  func.func @transform_3(%arg0: i32) -> (i32, i32) {
    %c0_i32 = arith.constant 0 : i32
    %c0_i32_0 = arith.constant 0 : i32
    %c0_i32_1 = arith.constant 0 : i32
    return %c0_i32, %c0_i32_0 : i32, i32
  }
  func.func @transform_4(%arg0: i32) -> (i32, i32) {
    %c0_i32 = arith.constant 0 : i32
    %c0_i32_0 = arith.constant 0 : i32
    %c0_i32_1 = arith.constant 0 : i32
    return %c0_i32, %c0_i32_0 : i32, i32
  }
  func.func @transform_5(%arg0: i32) -> (i32, i32) {
    %c0_i32 = arith.constant 0 : i32
    %c0_i32_0 = arith.constant 0 : i32
    %c0_i32_1 = arith.constant 0 : i32
    return %c0_i32, %c0_i32_0 : i32, i32
  }
  func.func @transform_6(%arg0: i32) -> (i32, i32) {
    %c0_i32 = arith.constant 0 : i32
    %c0_i32_0 = arith.constant 0 : i32
    return %arg0, %c0_i32 : i32, i32
  }
}

module attributes {stable_mosaic.version = 11 : i64} {
  func.func @_conv3x3_kernel(%arg0: i32, %arg1: i32, %arg2: memref<1x10x10x128xbf16, #tpu.memory_space<vmem>>, %arg3: memref<3x384x32xbf16, #tpu.memory_space<vmem>>, %arg4: memref<1x8x8x32xbf16, #tpu.memory_space<vmem>>) attributes {dimension_semantics = [#tpu.dimension_semantics<parallel>, #tpu.dimension_semantics<parallel>], iteration_bounds = array<i64: 2, 1>, scalar_prefetch = 0 : i64, scratch_operands = 0 : i64, tpu.core_type = #tpu.core_type<tc>, window_params = [{transform_indices = @transform_0, window_bounds = array<i64: 1, 10, 10, 128>}, {pipeline_mode = #tpu.pipeline_mode<synchronous>, transform_indices = @transform_1, window_bounds = array<i64: 3, 384, 32>}, {transform_indices = @transform_2, window_bounds = array<i64: 1, 8, 8, 32>}]} {
    %cst = arith.constant 0.000000e+00 : f32
    %0 = vector.broadcast %cst : f32 to vector<64x32xf32>
    %c8_i32 = arith.constant 8 : i32
    %1 = arith.muli %arg1, %c8_i32 : i32
    %c0_i32 = arith.constant 0 : i32
    %2 = arith.addi %1, %c0_i32 : i32
    %c0 = arith.constant 0 : index
    %3 = arith.index_cast %2 : i32 to index
    %c0_0 = arith.constant 0 : index
    %c0_1 = arith.constant 0 : index
    %4 = vector.load %arg2[%c0, %3, %c0_0, %c0_1] : memref<1x10x10x128xbf16, #tpu.memory_space<vmem>>, vector<1x8x10x128xbf16>
    %5 = vector.shape_cast %4 : vector<1x8x10x128xbf16> to vector<8x10x128xbf16>
    %6 = vector.extract_strided_slice %5 {offsets = [0, 0, 0], sizes = [8, 8, 128], strides = [1, 1, 1]} : vector<8x10x128xbf16> to vector<8x8x128xbf16>
    %7 = vector.extract_strided_slice %5 {offsets = [0, 1, 0], sizes = [8, 8, 128], strides = [1, 1, 1]} : vector<8x10x128xbf16> to vector<8x8x128xbf16>
    %8 = vector.extract_strided_slice %5 {offsets = [0, 2, 0], sizes = [8, 8, 128], strides = [1, 1, 1]} : vector<8x10x128xbf16> to vector<8x8x128xbf16>
    %9 = tpu.concatenate %6, %7, %8 in 2 : vector<8x8x128xbf16>, vector<8x8x128xbf16>, vector<8x8x128xbf16> -> vector<8x8x384xbf16>
    %10 = vector.shape_cast %9 : vector<8x8x384xbf16> to vector<64x384xbf16>
    %c0_2 = arith.constant 0 : index
    %c0_3 = arith.constant 0 : index
    %c0_4 = arith.constant 0 : index
    %11 = vector.load %arg3[%c0_2, %c0_3, %c0_4] : memref<3x384x32xbf16, #tpu.memory_space<vmem>>, vector<1x384x32xbf16>
    %12 = vector.shape_cast %11 : vector<1x384x32xbf16> to vector<384x32xbf16>
    %cst_5 = arith.constant dense<0.000000e+00> : vector<64x32xf32>
    %13 = tpu.matmul %10, %12, %cst_5 {dimension_numbers = #tpu.dot_dimension_numbers<[1], [0], [0], [1], [0, 0, 1, 1], [], []>} : vector<64x384xbf16>, vector<384x32xbf16>, vector<64x32xf32> -> vector<64x32xf32>
    %14 = arith.addf %0, %13 : vector<64x32xf32>
    %c8_i32_6 = arith.constant 8 : i32
    %15 = arith.muli %arg1, %c8_i32_6 : i32
    %c1_i32 = arith.constant 1 : i32
    %16 = arith.addi %15, %c1_i32 : i32
    %c0_7 = arith.constant 0 : index
    %17 = arith.index_cast %16 : i32 to index
    %c0_8 = arith.constant 0 : index
    %c0_9 = arith.constant 0 : index
    %18 = vector.load %arg2[%c0_7, %17, %c0_8, %c0_9] : memref<1x10x10x128xbf16, #tpu.memory_space<vmem>>, vector<1x8x10x128xbf16>
    %19 = vector.shape_cast %18 : vector<1x8x10x128xbf16> to vector<8x10x128xbf16>
    %20 = vector.extract_strided_slice %19 {offsets = [0, 0, 0], sizes = [8, 8, 128], strides = [1, 1, 1]} : vector<8x10x128xbf16> to vector<8x8x128xbf16>
    %21 = vector.extract_strided_slice %19 {offsets = [0, 1, 0], sizes = [8, 8, 128], strides = [1, 1, 1]} : vector<8x10x128xbf16> to vector<8x8x128xbf16>
    %22 = vector.extract_strided_slice %19 {offsets = [0, 2, 0], sizes = [8, 8, 128], strides = [1, 1, 1]} : vector<8x10x128xbf16> to vector<8x8x128xbf16>
    %23 = tpu.concatenate %20, %21, %22 in 2 : vector<8x8x128xbf16>, vector<8x8x128xbf16>, vector<8x8x128xbf16> -> vector<8x8x384xbf16>
    %24 = vector.shape_cast %23 : vector<8x8x384xbf16> to vector<64x384xbf16>
    %c1 = arith.constant 1 : index
    %c0_10 = arith.constant 0 : index
    %c0_11 = arith.constant 0 : index
    %25 = vector.load %arg3[%c1, %c0_10, %c0_11] : memref<3x384x32xbf16, #tpu.memory_space<vmem>>, vector<1x384x32xbf16>
    %26 = vector.shape_cast %25 : vector<1x384x32xbf16> to vector<384x32xbf16>
    %cst_12 = arith.constant dense<0.000000e+00> : vector<64x32xf32>
    %27 = tpu.matmul %24, %26, %cst_12 {dimension_numbers = #tpu.dot_dimension_numbers<[1], [0], [0], [1], [0, 0, 1, 1], [], []>} : vector<64x384xbf16>, vector<384x32xbf16>, vector<64x32xf32> -> vector<64x32xf32>
    %28 = arith.addf %14, %27 : vector<64x32xf32>
    %c8_i32_13 = arith.constant 8 : i32
    %29 = arith.muli %arg1, %c8_i32_13 : i32
    %c2_i32 = arith.constant 2 : i32
    %30 = arith.addi %29, %c2_i32 : i32
    %c0_14 = arith.constant 0 : index
    %31 = arith.index_cast %30 : i32 to index
    %c0_15 = arith.constant 0 : index
    %c0_16 = arith.constant 0 : index
    %32 = vector.load %arg2[%c0_14, %31, %c0_15, %c0_16] : memref<1x10x10x128xbf16, #tpu.memory_space<vmem>>, vector<1x8x10x128xbf16>
    %33 = vector.shape_cast %32 : vector<1x8x10x128xbf16> to vector<8x10x128xbf16>
    %34 = vector.extract_strided_slice %33 {offsets = [0, 0, 0], sizes = [8, 8, 128], strides = [1, 1, 1]} : vector<8x10x128xbf16> to vector<8x8x128xbf16>
    %35 = vector.extract_strided_slice %33 {offsets = [0, 1, 0], sizes = [8, 8, 128], strides = [1, 1, 1]} : vector<8x10x128xbf16> to vector<8x8x128xbf16>
    %36 = vector.extract_strided_slice %33 {offsets = [0, 2, 0], sizes = [8, 8, 128], strides = [1, 1, 1]} : vector<8x10x128xbf16> to vector<8x8x128xbf16>
    %37 = tpu.concatenate %34, %35, %36 in 2 : vector<8x8x128xbf16>, vector<8x8x128xbf16>, vector<8x8x128xbf16> -> vector<8x8x384xbf16>
    %38 = vector.shape_cast %37 : vector<8x8x384xbf16> to vector<64x384xbf16>
    %c2 = arith.constant 2 : index
    %c0_17 = arith.constant 0 : index
    %c0_18 = arith.constant 0 : index
    %39 = vector.load %arg3[%c2, %c0_17, %c0_18] : memref<3x384x32xbf16, #tpu.memory_space<vmem>>, vector<1x384x32xbf16>
    %40 = vector.shape_cast %39 : vector<1x384x32xbf16> to vector<384x32xbf16>
    %cst_19 = arith.constant dense<0.000000e+00> : vector<64x32xf32>
    %41 = tpu.matmul %38, %40, %cst_19 {dimension_numbers = #tpu.dot_dimension_numbers<[1], [0], [0], [1], [0, 0, 1, 1], [], []>} : vector<64x384xbf16>, vector<384x32xbf16>, vector<64x32xf32> -> vector<64x32xf32>
    %42 = arith.addf %28, %41 : vector<64x32xf32>
    %43 = vector.shape_cast %42 : vector<64x32xf32> to vector<8x8x32xf32>
    %44 = arith.truncf %43 : vector<8x8x32xf32> to vector<8x8x32xbf16>
    %c0_20 = arith.constant 0 : index
    %c0_21 = arith.constant 0 : index
    %c0_22 = arith.constant 0 : index
    %c0_23 = arith.constant 0 : index
    %45 = vector.load %arg4[%c0_20, %c0_21, %c0_22, %c0_23] : memref<1x8x8x32xbf16, #tpu.memory_space<vmem>>, vector<1x8x8x32xbf16>
    %46 = vector.shape_cast %45 : vector<1x8x8x32xbf16> to vector<8x8x32xbf16>
    %47 = vector.shape_cast %44 : vector<8x8x32xbf16> to vector<1x8x8x32xbf16>
    tpu.vector_store %arg4[%c0_20, %c0_21, %c0_22, %c0_23], %47 {strides = array<i32>} : memref<1x8x8x32xbf16, #tpu.memory_space<vmem>>, vector<1x8x8x32xbf16>,
    return
  }
  func.func @transform_0(%arg0: i32, %arg1: i32) -> (i32, i32, i32, i32) {
    %c0_i32 = arith.constant 0 : i32
    %c0_i32_0 = arith.constant 0 : i32
    %c0_i32_1 = arith.constant 0 : i32
    %c0_i32_2 = arith.constant 0 : i32
    return %arg0, %c0_i32, %c0_i32_0, %c0_i32_1 : i32, i32, i32, i32
  }
  func.func @transform_1(%arg0: i32, %arg1: i32) -> (i32, i32, i32) {
    %c0_i32 = arith.constant 0 : i32
    %c0_i32_0 = arith.constant 0 : i32
    %c0_i32_1 = arith.constant 0 : i32
    %c0_i32_2 = arith.constant 0 : i32
    return %c0_i32, %c0_i32_0, %c0_i32_1 : i32, i32, i32
  }
  func.func @transform_2(%arg0: i32, %arg1: i32) -> (i32, i32, i32, i32) {
    %c0_i32 = arith.constant 0 : i32
    %c0_i32_0 = arith.constant 0 : i32
    %c0_i32_1 = arith.constant 0 : i32
    return %arg0, %arg1, %c0_i32, %c0_i32_0 : i32, i32, i32, i32
  }
}

module attributes {stable_mosaic.version = 11 : i64} {
  func.func @_fused_matmul_kernel(%arg0: i32, %arg1: memref<64x64xbf16, #tpu.memory_space<vmem>>, %arg2: memref<64x32xbf16, #tpu.memory_space<vmem>>, %arg3: memref<1x96xf32, #tpu.memory_space<vmem>>, %arg4: memref<1x96xf32, #tpu.memory_space<vmem>>, %arg5: memref<96x128xbf16, #tpu.memory_space<vmem>>, %arg6: memref<1x128xf32, #tpu.memory_space<vmem>>, %arg7: memref<1x128xf32, #tpu.memory_space<vmem>>, %arg8: memref<64x128xbf16, #tpu.memory_space<vmem>>) attributes {dimension_semantics = [#tpu.dimension_semantics<parallel>], iteration_bounds = array<i64: 2>, scalar_prefetch = 0 : i64, scratch_operands = 0 : i64, tpu.core_type = #tpu.core_type<tc>, window_params = [{transform_indices = @transform_0, window_bounds = array<i64: 64, 64>}, {transform_indices = @transform_1, window_bounds = array<i64: 64, 32>}, {pipeline_mode = #tpu.pipeline_mode<synchronous>, transform_indices = @transform_2, window_bounds = array<i64: 1, 96>}, {pipeline_mode = #tpu.pipeline_mode<synchronous>, transform_indices = @transform_3, window_bounds = array<i64: 1, 96>}, {pipeline_mode = #tpu.pipeline_mode<synchronous>, transform_indices = @transform_4, window_bounds = array<i64: 96, 128>}, {pipeline_mode = #tpu.pipeline_mode<synchronous>, transform_indices = @transform_5, window_bounds = array<i64: 1, 128>}, {pipeline_mode = #tpu.pipeline_mode<synchronous>, transform_indices = @transform_6, window_bounds = array<i64: 1, 128>}, {transform_indices = @transform_7, window_bounds = array<i64: 64, 128>}]} {
    %c0 = arith.constant 0 : index
    %c0_0 = arith.constant 0 : index
    %0 = vector.load %arg1[%c0, %c0_0] : memref<64x64xbf16, #tpu.memory_space<vmem>>, vector<64x64xbf16>
    %c0_1 = arith.constant 0 : index
    %c0_2 = arith.constant 0 : index
    %1 = vector.load %arg2[%c0_1, %c0_2] : memref<64x32xbf16, #tpu.memory_space<vmem>>, vector<64x32xbf16>
    %2 = tpu.concatenate %0, %1 in 1 : vector<64x64xbf16>, vector<64x32xbf16> -> vector<64x96xbf16>
    %c0_3 = arith.constant 0 : index
    %c0_4 = arith.constant 0 : index
    %3 = vector.load %arg3[%c0_3, %c0_4] : memref<1x96xf32, #tpu.memory_space<vmem>>, vector<1x96xf32>
    %c0_5 = arith.constant 0 : index
    %c0_6 = arith.constant 0 : index
    %4 = vector.load %arg4[%c0_5, %c0_6] : memref<1x96xf32, #tpu.memory_space<vmem>>, vector<1x96xf32>
    %5 = arith.extf %2 : vector<64x96xbf16> to vector<64x96xf32>
    %6 = vector.broadcast %3 : vector<1x96xf32> to vector<64x96xf32>
    %7 = arith.mulf %5, %6 : vector<64x96xf32>
    %8 = vector.broadcast %4 : vector<1x96xf32> to vector<64x96xf32>
    %9 = arith.addf %7, %8 : vector<64x96xf32>
    %cst = arith.constant 0.000000e+00 : f32
    %10 = vector.broadcast %cst : f32 to vector<64x96xf32>
    %11 = arith.maximumf %9, %10 : vector<64x96xf32>
    %12 = arith.truncf %11 : vector<64x96xf32> to vector<64x96xbf16>
    %c0_7 = arith.constant 0 : index
    %c0_8 = arith.constant 0 : index
    %13 = vector.load %arg5[%c0_7, %c0_8] : memref<96x128xbf16, #tpu.memory_space<vmem>>, vector<96x128xbf16>
    %cst_9 = arith.constant dense<0.000000e+00> : vector<64x128xf32>
    %14 = tpu.matmul %12, %13, %cst_9 {dimension_numbers = #tpu.dot_dimension_numbers<[1], [0], [0], [1], [0, 0, 1, 1], [], []>} : vector<64x96xbf16>, vector<96x128xbf16>, vector<64x128xf32> -> vector<64x128xf32>
    %c0_10 = arith.constant 0 : index
    %c0_11 = arith.constant 0 : index
    %15 = vector.load %arg6[%c0_10, %c0_11] : memref<1x128xf32, #tpu.memory_space<vmem>>, vector<1x128xf32>
    %c0_12 = arith.constant 0 : index
    %c0_13 = arith.constant 0 : index
    %16 = vector.load %arg7[%c0_12, %c0_13] : memref<1x128xf32, #tpu.memory_space<vmem>>, vector<1x128xf32>
    %17 = vector.broadcast %15 : vector<1x128xf32> to vector<64x128xf32>
    %18 = arith.mulf %14, %17 : vector<64x128xf32>
    %19 = vector.broadcast %16 : vector<1x128xf32> to vector<64x128xf32>
    %20 = arith.addf %18, %19 : vector<64x128xf32>
    %cst_14 = arith.constant 0.000000e+00 : f32
    %21 = vector.broadcast %cst_14 : f32 to vector<64x128xf32>
    %22 = arith.maximumf %20, %21 : vector<64x128xf32>
    %23 = arith.truncf %22 : vector<64x128xf32> to vector<64x128xbf16>
    %c0_15 = arith.constant 0 : index
    %c0_16 = arith.constant 0 : index
    %24 = vector.load %arg8[%c0_15, %c0_16] : memref<64x128xbf16, #tpu.memory_space<vmem>>, vector<64x128xbf16>
    tpu.vector_store %arg8[%c0_15, %c0_16], %23 {strides = array<i32>} : memref<64x128xbf16, #tpu.memory_space<vmem>>, vector<64x128xbf16>,
    return
  }
  func.func @transform_0(%arg0: i32) -> (i32, i32) {
    %c0_i32 = arith.constant 0 : i32
    %c0_i32_0 = arith.constant 0 : i32
    return %arg0, %c0_i32 : i32, i32
  }
  func.func @transform_1(%arg0: i32) -> (i32, i32) {
    %c0_i32 = arith.constant 0 : i32
    %c0_i32_0 = arith.constant 0 : i32
    return %arg0, %c0_i32 : i32, i32
  }
  func.func @transform_2(%arg0: i32) -> (i32, i32) {
    %c0_i32 = arith.constant 0 : i32
    %c0_i32_0 = arith.constant 0 : i32
    %c0_i32_1 = arith.constant 0 : i32
    return %c0_i32, %c0_i32_0 : i32, i32
  }
  func.func @transform_3(%arg0: i32) -> (i32, i32) {
    %c0_i32 = arith.constant 0 : i32
    %c0_i32_0 = arith.constant 0 : i32
    %c0_i32_1 = arith.constant 0 : i32
    return %c0_i32, %c0_i32_0 : i32, i32
  }
  func.func @transform_4(%arg0: i32) -> (i32, i32) {
    %c0_i32 = arith.constant 0 : i32
    %c0_i32_0 = arith.constant 0 : i32
    %c0_i32_1 = arith.constant 0 : i32
    return %c0_i32, %c0_i32_0 : i32, i32
  }
  func.func @transform_5(%arg0: i32) -> (i32, i32) {
    %c0_i32 = arith.constant 0 : i32
    %c0_i32_0 = arith.constant 0 : i32
    %c0_i32_1 = arith.constant 0 : i32
    return %c0_i32, %c0_i32_0 : i32, i32
  }
  func.func @transform_6(%arg0: i32) -> (i32, i32) {
    %c0_i32 = arith.constant 0 : i32
    %c0_i32_0 = arith.constant 0 : i32
    %c0_i32_1 = arith.constant 0 : i32
    return %c0_i32, %c0_i32_0 : i32, i32
  }
  func.func @transform_7(%arg0: i32) -> (i32, i32) {
    %c0_i32 = arith.constant 0 : i32
    %c0_i32_0 = arith.constant 0 : i32
    return %arg0, %c0_i32 : i32, i32
  }
}

module attributes {stable_mosaic.version = 11 : i64} {
  func.func @_head_kernel(%arg0: i32, %arg1: memref<2x64x64xbf16, #tpu.memory_space<vmem>>, %arg2: memref<2x64x32xbf16, #tpu.memory_space<vmem>>, %arg3: memref<2x64x32xbf16, #tpu.memory_space<vmem>>, %arg4: memref<1x1x128xf32, #tpu.memory_space<vmem>>, %arg5: memref<1x1x128xf32, #tpu.memory_space<vmem>>, %arg6: memref<128x10xbf16, #tpu.memory_space<vmem>>, %arg7: memref<1x10xf32, #tpu.memory_space<vmem>>, %arg8: memref<2x10xf32, #tpu.memory_space<vmem>>) attributes {dimension_semantics = [#tpu.dimension_semantics<arbitrary>], iteration_bounds = array<i64: 1>, scalar_prefetch = 0 : i64, scratch_operands = 0 : i64, tpu.core_type = #tpu.core_type<tc>, window_params = [{pipeline_mode = #tpu.pipeline_mode<synchronous>, transform_indices = @transform_0, window_bounds = array<i64: 2, 64, 64>}, {pipeline_mode = #tpu.pipeline_mode<synchronous>, transform_indices = @transform_1, window_bounds = array<i64: 2, 64, 32>}, {pipeline_mode = #tpu.pipeline_mode<synchronous>, transform_indices = @transform_2, window_bounds = array<i64: 2, 64, 32>}, {pipeline_mode = #tpu.pipeline_mode<synchronous>, transform_indices = @transform_3, window_bounds = array<i64: 1, 1, 128>}, {pipeline_mode = #tpu.pipeline_mode<synchronous>, transform_indices = @transform_4, window_bounds = array<i64: 1, 1, 128>}, {pipeline_mode = #tpu.pipeline_mode<synchronous>, transform_indices = @transform_5, window_bounds = array<i64: 128, 10>}, {pipeline_mode = #tpu.pipeline_mode<synchronous>, transform_indices = @transform_6, window_bounds = array<i64: 1, 10>}, {pipeline_mode = #tpu.pipeline_mode<synchronous>, transform_indices = @transform_7, window_bounds = array<i64: 2, 10>}]} {
    %c0 = arith.constant 0 : index
    %c0_0 = arith.constant 0 : index
    %c0_1 = arith.constant 0 : index
    %0 = vector.load %arg1[%c0, %c0_0, %c0_1] : memref<2x64x64xbf16, #tpu.memory_space<vmem>>, vector<2x64x64xbf16>
    %c0_2 = arith.constant 0 : index
    %c0_3 = arith.constant 0 : index
    %c0_4 = arith.constant 0 : index
    %1 = vector.load %arg2[%c0_2, %c0_3, %c0_4] : memref<2x64x32xbf16, #tpu.memory_space<vmem>>, vector<2x64x32xbf16>
    %c0_5 = arith.constant 0 : index
    %c0_6 = arith.constant 0 : index
    %c0_7 = arith.constant 0 : index
    %2 = vector.load %arg3[%c0_5, %c0_6, %c0_7] : memref<2x64x32xbf16, #tpu.memory_space<vmem>>, vector<2x64x32xbf16>
    %3 = tpu.concatenate %0, %1, %2 in 2 : vector<2x64x64xbf16>, vector<2x64x32xbf16>, vector<2x64x32xbf16> -> vector<2x64x128xbf16>
    %c0_8 = arith.constant 0 : index
    %c0_9 = arith.constant 0 : index
    %c0_10 = arith.constant 0 : index
    %4 = vector.load %arg4[%c0_8, %c0_9, %c0_10] : memref<1x1x128xf32, #tpu.memory_space<vmem>>, vector<1x1x128xf32>
    %c0_11 = arith.constant 0 : index
    %c0_12 = arith.constant 0 : index
    %c0_13 = arith.constant 0 : index
    %5 = vector.load %arg5[%c0_11, %c0_12, %c0_13] : memref<1x1x128xf32, #tpu.memory_space<vmem>>, vector<1x1x128xf32>
    %c0_14 = arith.constant 0 : index
    %c0_15 = arith.constant 0 : index
    %6 = vector.load %arg6[%c0_14, %c0_15] : memref<128x10xbf16, #tpu.memory_space<vmem>>, vector<128x10xbf16>
    %c0_16 = arith.constant 0 : index
    %c0_17 = arith.constant 0 : index
    %7 = vector.load %arg7[%c0_16, %c0_17] : memref<1x10xf32, #tpu.memory_space<vmem>>, vector<1x10xf32>
    %8 = arith.extf %3 : vector<2x64x128xbf16> to vector<2x64x128xf32>
    %9 = vector.broadcast %4 : vector<1x1x128xf32> to vector<2x64x128xf32>
    %10 = arith.mulf %8, %9 : vector<2x64x128xf32>
    %11 = vector.broadcast %5 : vector<1x1x128xf32> to vector<2x64x128xf32>
    %12 = arith.addf %10, %11 : vector<2x64x128xf32>
    %cst = arith.constant 0.000000e+00 : f32
    %13 = vector.broadcast %cst : f32 to vector<2x64x128xf32>
    %14 = arith.maximumf %12, %13 : vector<2x64x128xf32>
    %cst_18 = arith.constant dense<0.000000e+00> : vector<2x128xf32>
    %15 = vector.multi_reduction <add>, %14, %cst_18 [1] : vector<2x64x128xf32> to vector<2x128xf32>
    %cst_19 = arith.constant 6.400000e+01 : f32
    %16 = vector.broadcast %cst_19 : f32 to vector<2x128xf32>
    %17 = arith.divf %15, %16 : vector<2x128xf32>
    %18 = arith.truncf %17 : vector<2x128xf32> to vector<2x128xbf16>
    %cst_20 = arith.constant dense<0.000000e+00> : vector<2x10xf32>
    %19 = tpu.matmul %18, %6, %cst_20 {dimension_numbers = #tpu.dot_dimension_numbers<[1], [0], [0], [1], [0, 0, 1, 1], [], []>} : vector<2x128xbf16>, vector<128x10xbf16>, vector<2x10xf32> -> vector<2x10xf32>
    %20 = vector.broadcast %7 : vector<1x10xf32> to vector<2x10xf32>
    %21 = arith.addf %19, %20 : vector<2x10xf32>
    %c0_21 = arith.constant 0 : index
    %c0_22 = arith.constant 0 : index
    %22 = vector.load %arg8[%c0_21, %c0_22] : memref<2x10xf32, #tpu.memory_space<vmem>>, vector<2x10xf32>
    tpu.vector_store %arg8[%c0_21, %c0_22], %21 {strides = array<i32>} : memref<2x10xf32, #tpu.memory_space<vmem>>, vector<2x10xf32>,
    return
  }
  func.func @transform_0(%arg0: i32) -> (i32, i32, i32) {
    %c0_i32 = arith.constant 0 : i32
    %c0_i32_0 = arith.constant 0 : i32
    %c0_i32_1 = arith.constant 0 : i32
    %c0_i32_2 = arith.constant 0 : i32
    return %c0_i32, %c0_i32_0, %c0_i32_1 : i32, i32, i32
  }
  func.func @transform_1(%arg0: i32) -> (i32, i32, i32) {
    %c0_i32 = arith.constant 0 : i32
    %c0_i32_0 = arith.constant 0 : i32
    %c0_i32_1 = arith.constant 0 : i32
    %c0_i32_2 = arith.constant 0 : i32
    return %c0_i32, %c0_i32_0, %c0_i32_1 : i32, i32, i32
  }
  func.func @transform_2(%arg0: i32) -> (i32, i32, i32) {
    %c0_i32 = arith.constant 0 : i32
    %c0_i32_0 = arith.constant 0 : i32
    %c0_i32_1 = arith.constant 0 : i32
    %c0_i32_2 = arith.constant 0 : i32
    return %c0_i32, %c0_i32_0, %c0_i32_1 : i32, i32, i32
  }
  func.func @transform_3(%arg0: i32) -> (i32, i32, i32) {
    %c0_i32 = arith.constant 0 : i32
    %c0_i32_0 = arith.constant 0 : i32
    %c0_i32_1 = arith.constant 0 : i32
    %c0_i32_2 = arith.constant 0 : i32
    return %c0_i32, %c0_i32_0, %c0_i32_1 : i32, i32, i32
  }
  func.func @transform_4(%arg0: i32) -> (i32, i32, i32) {
    %c0_i32 = arith.constant 0 : i32
    %c0_i32_0 = arith.constant 0 : i32
    %c0_i32_1 = arith.constant 0 : i32
    %c0_i32_2 = arith.constant 0 : i32
    return %c0_i32, %c0_i32_0, %c0_i32_1 : i32, i32, i32
  }
  func.func @transform_5(%arg0: i32) -> (i32, i32) {
    %c0_i32 = arith.constant 0 : i32
    %c0_i32_0 = arith.constant 0 : i32
    %c0_i32_1 = arith.constant 0 : i32
    return %c0_i32, %c0_i32_0 : i32, i32
  }
  func.func @transform_6(%arg0: i32) -> (i32, i32) {
    %c0_i32 = arith.constant 0 : i32
    %c0_i32_0 = arith.constant 0 : i32
    %c0_i32_1 = arith.constant 0 : i32
    return %c0_i32, %c0_i32_0 : i32, i32
  }
  func.func @transform_7(%arg0: i32) -> (i32, i32) {
    %c0_i32 = arith.constant 0 : i32
    %c0_i32_0 = arith.constant 0 : i32
    %c0_i32_1 = arith.constant 0 : i32
    return %c0_i32, %c0_i32_0 : i32, i32
  }
}

</mosaic_0001>

<bundles_post_ra>
// kernel: basenet_forward.11
= control target key start
LH: loop header
LB: loop body
LE: loop exit
PB: predicated region body
PF: predicated region fallthrough
CT: control target
= control target key end

     0   :  { %s1261_s15 = smov 0   ;;  %s1502_s0 = inlined_call_operand.vmem [shape: bf16[2048,147], index: 0, kind: input, shape index: {}]   ;;  %s1503_s1 = inlined_call_operand.vmem [shape: bf16[147,64], index: 1, kind: input, shape index: {}]   ;;  %s1504_s2 = inlined_call_operand.vmem [shape: f32[1,64], index: 2, kind: input, shape index: {}]   ;;  %s1505_s3 = inlined_call_operand.vmem [shape: f32[1,64], index: 3, kind: input, shape index: {}]   ;;  %s1506_s4 = inlined_call_operand.vmem [shape: bf16[2048,64], index: 4, kind: output, shape index: {}]  }
   0x1 LB: > { %s1001_s16 = sadd.s32 4294967295, %s1232_s15   ;;  %p1005_p0 = scmp.ge.s32.totalorder %s1232_s15, 1  ;;  %s1232_s15 = sphi %s1261_s15, %s14_s15  }
   0x2   : > { %p164_p1 = scmp.lt.s32.totalorder %s1232_s15, 9 }
   0x4   : > { %p165_p2 = pnand %p1005_p0, %p164_p1 }
   0x5   : > { %v1168_v0 = vld [vmem:[%s1503_s1] sm:$0xff] (!%p165_p2)   ;;  %v1234_v1 = vmov (!%p165_p2), 0   ;;  %v1169_v2 = vld [vmem:[%s1503_s1 + $0x8] sm:$0xff] (!%p165_p2)   ;;  %v1170_v3 = vld [vmem:[%s1503_s1 + $0x10] sm:$0xff] (!%p165_p2)   ;;  %s1006_s23 = sshll.u32 (!%p165_p2), %s1001_s16, 5  ;;  %vm457_vm0 = vcmask (!%p165_p2), 154624  }
   0x6   : > { %168 = sbr.rel (%p165_p2) target bundleno = 325 (0x145), region = 36  ;;  %513 = vmatprep.subr.bf16.mxu0 (!%p165_p2), %v1234_v1  ;;  %1138 = vmatprep.subr.bf16.mxu1 (!%p165_p2), %v1234_v1  ;;  %p192_p3 = scmp.lt.s32.totalorder (!%p165_p2), %s1006_s23, 255  ;;  %v1171_v4 = vld [vmem:[%s1503_s1 + $0x18] sm:$0xff] (!%p165_p2)   ;;  %v1172_v5 = vld [vmem:[%s1503_s1 + $0x20] sm:$0xff] (!%p165_p2)   ;;  %v1173_v8 = vld [vmem:[%s1503_s1 + $0x28] sm:$0xff] (!%p165_p2)   ;;  %vm506_vm1 = vcmask (!%p165_p2), 1040384  }
   0x7   : > { %514 = vmatpush1.bf16.msra.mxu0 (!%p165_p2), %v1168_v0  ;;  %1148 = vmatpush1.bf16.msra.mxu1 (!%p165_p2), %v1168_v0  ;;  %v1174_v9 = vld [vmem:[%s1503_s1 + $0x30] sm:$0xff] (!%p165_p2)   ;;  %v1175_v10 = vld [vmem:[%s1503_s1 + $0x38] sm:$0xff] (!%p165_p2)   ;;  %vm507_vm2 = vcmask (!%p165_p2), 1041408   ;;  %v1235_v11 = vmov (!%p165_p2), 65535   ;;  %v1176_v13 = vld [vmem:[%s1503_s1 + $0x40] sm:$0xff] (!%p165_p2)   ;;  %vm912_vm3 = vcmask (!%p165_p2), 519168  }
   0x8   : > { %515 = vmatprep.subr.bf16.mxu0 (!%p165_p2), %v1234_v1  ;;  %1139 = vmatprep.subr.bf16.mxu1 (!%p165_p2), %v1234_v1  ;;  %v508_v12 = vsel (!%p165_p2), %vm506_vm1, 4294967295, %v1235_v11  ;;  %v1177_v14 = vld [vmem:[%s1503_s1 + $0x48] ss:$0 sps:$4 sm:$0x33] (!%p165_p2)   ;;  %v1358_v47 = vld [vmem:[%s1504_s2] ss:$0 sm:$0xff] (!%p165_p2) }
   0x9   : > { %v509_v15 = vsel (!%p165_p2), %vm507_vm2, %v508_v12, 0  ;;  %v1363_v49 = vld [vmem:[%s1505_s3] ss:$0 sm:$0xff] (!%p165_p2) }
   0xa   : > { %v511_v16 = vand.u32 (!%p165_p2), %v1177_v14, %v509_v15 }
   0xb   : > { %516 = vmatpush1.bf16.msra.mxu0 (!%p165_p2), %v1169_v2  ;;  %1149 = vmatpush1.bf16.msra.mxu1 (!%p165_p2), %v1169_v2 }
   0xc   : > { %517 = vmatprep.subr.bf16.mxu0 (!%p165_p2), %v1234_v1  ;;  %1140 = vmatprep.subr.bf16.mxu1 (!%p165_p2), %v1234_v1 }
   0xd   : > { %s1508_s23 = smov (!%p192_p3, %s1006_s23), 255 }
   0xe   : > { %s1105_s26 = sshll.u32 %s1508_s23, 3  ;;  %s1010_s21 = sshll.u32 %s1508_s23, 2 }
   0xf   : > { %518 = vmatpush1.bf16.msra.mxu0 %v1170_v3  ;;  %1150 = vmatpush1.bf16.msra.mxu1 %v1170_v3  ;;  %s1287_s29 = scalar_lea.vmem %s1502_s0, %s1105_s26  ;;  %s1377_s23 = scalar_lea.vmem %s1506_s4, %s1010_s21 }
  0x10   : > { %519 = vmatprep.subr.bf16.mxu0 %v1234_v1  ;;  %1141 = vmatprep.subr.bf16.mxu1 %v1234_v1  ;;  %v1180_v6 = vld [vmem:[%s1287_s29 + $0x4] ss:$8 sps:$4 sm:$0xff]   ;;  %v1178_v17 = vld [vmem:[%s1287_s29] ss:$8 sps:$4 sm:$0xff]   ;;  %v1184_v19 = vld [vmem:[%s1287_s29 + $0x14] ss:$8 sps:$4 sm:$0xff]  }
  0x11   : > { %v1183_v7 = vld [vmem:[%s1287_s29 + $0x84] ss:$8 sps:$4 sm:$0xff]   ;;  %1053 = vmatprep.mubr.msk.bf16.mxu0 %vm457_vm0, %v1180_v6  ;;  %v1181_v18 = vld [vmem:[%s1287_s29 + $0x80] ss:$8 sps:$4 sm:$0xff]   ;;  %v1186_v20 = vld [vmem:[%s1287_s29 + $0x94] ss:$8 sps:$4 sm:$0xff]  }
  0x12   : > { %1061 = vmatprep.mubr.msk.bf16.mxu1 %vm457_vm0, %v1183_v7  ;;  %v1188_v21 = vld [vmem:[%s1287_s29 + $0x10] ss:$8 sps:$4 sm:$0xff]   ;;  %v1190_v23 = vld [vmem:[%s1287_s29 + $0x24] ss:$8 sps:$4 sm:$0xff]   ;;  %v1194_v25 = vld [vmem:[%s1287_s29 + $0x20] ss:$8 sps:$4 sm:$0xff]  }
  0x13   : > { %520 = vmatpush1.bf16.msra.mxu0 %v1171_v4  ;;  %1151 = vmatpush1.bf16.msra.mxu1 %v1171_v4  ;;  %v1189_v22 = vld [vmem:[%s1287_s29 + $0x90] ss:$8 sps:$4 sm:$0xff]   ;;  %v1192_v24 = vld [vmem:[%s1287_s29 + $0xa4] ss:$8 sps:$4 sm:$0xff]   ;;  %v1195_v26 = vld [vmem:[%s1287_s29 + $0xa0] ss:$8 sps:$4 sm:$0xff]  }
  0x14   : > { %521 = vmatprep.subr.bf16.mxu0 %v1234_v1  ;;  %1142 = vmatprep.subr.bf16.mxu1 %v1234_v1  ;;  %v1196_v27 = vld [vmem:[%s1287_s29 + $0x34] ss:$8 sps:$4 sm:$0xff]   ;;  %v1200_v29 = vld [vmem:[%s1287_s29 + $0x30] ss:$8 sps:$4 sm:$0xff]   ;;  %v1202_v31 = vld [vmem:[%s1287_s29 + $0x44] ss:$8 sps:$4 sm:$0xff]  }
  0x15   : > { %v1198_v28 = vld [vmem:[%s1287_s29 + $0xb4] ss:$8 sps:$4 sm:$0xff]   ;;  %v1201_v30 = vld [vmem:[%s1287_s29 + $0xb0] ss:$8 sps:$4 sm:$0xff]   ;;  %v1204_v32 = vld [vmem:[%s1287_s29 + $0xc4] ss:$8 sps:$4 sm:$0xff]  }
  0x16   : > { %v1206_v33 = vld [vmem:[%s1287_s29 + $0x40] ss:$8 sps:$4 sm:$0xff]   ;;  %v1208_v35 = vld [vmem:[%s1287_s29 + $0x54] ss:$8 sps:$4 sm:$0xff]   ;;  %v1212_v37 = vld [vmem:[%s1287_s29 + $0x50] ss:$8 sps:$4 sm:$0xff]  }
  0x17   : > { %522 = vmatpush1.bf16.msra.mxu0 %v1172_v5  ;;  %1152 = vmatpush1.bf16.msra.mxu1 %v1172_v5  ;;  %v1207_v34 = vld [vmem:[%s1287_s29 + $0xc0] ss:$8 sps:$4 sm:$0xff]   ;;  %v1210_v36 = vld [vmem:[%s1287_s29 + $0xd4] ss:$8 sps:$4 sm:$0xff]   ;;  %v1213_v38 = vld [vmem:[%s1287_s29 + $0xd0] ss:$8 sps:$4 sm:$0xff]  }
  0x18   : > { %523 = vmatprep.subr.bf16.mxu0 %v1234_v1  ;;  %1143 = vmatprep.subr.bf16.mxu1 %v1234_v1  ;;  %v1214_v39 = vld [vmem:[%s1287_s29 + $0x64] ss:$8 sps:$4 sm:$0xff]   ;;  %v1218_v41 = vld [vmem:[%s1287_s29 + $0x60] ss:$8 sps:$4 sm:$0xff]   ;;  %v1220_v43 = vld [vmem:[%s1287_s29 + $0x74] ss:$8 sps:$4 sm:$0xff]  }
  0x19   : > { %v1216_v40 = vld [vmem:[%s1287_s29 + $0xe4] ss:$8 sps:$4 sm:$0xff]   ;;  %v1219_v42 = vld [vmem:[%s1287_s29 + $0xe0] ss:$8 sps:$4 sm:$0xff]   ;;  %v1222_v44 = vld [vmem:[%s1287_s29 + $0xf4] ss:$8 sps:$4 sm:$0xff]  }
  0x1a   : > { %v1224_v45 = vld [vmem:[%s1287_s29 + $0x70] ss:$8 sps:$4 sm:$0xff]  }
  0x1b   : > { %524 = vmatpush1.bf16.msra.mxu0 %v1173_v8  ;;  %1153 = vmatpush1.bf16.msra.mxu1 %v1173_v8  ;;  %v1225_v46 = vld [vmem:[%s1287_s29 + $0xf0] ss:$8 sps:$4 sm:$0xff]  }
  0x1c   : > { %525 = vmatprep.subr.bf16.mxu0 %v1234_v1  ;;  %1144 = vmatprep.subr.bf16.mxu1 %v1234_v1 }
  0x1f   : > { %526 = vmatpush1.bf16.msra.mxu0 %v1174_v9  ;;  %1154 = vmatpush1.bf16.msra.mxu1 %v1174_v9 }
  0x20   : > { %527 = vmatprep.subr.bf16.mxu0 %v1234_v1  ;;  %1145 = vmatprep.subr.bf16.mxu1 %v1234_v1 }
  0x23   : > { %528 = vmatpush1.bf16.msra.mxu0 %v1175_v10  ;;  %1155 = vmatpush1.bf16.msra.mxu1 %v1175_v10 }
  0x24   : > { %529 = vmatprep.subr.bf16.mxu0 %v1234_v1  ;;  %1146 = vmatprep.subr.bf16.mxu1 %v1234_v1 }
  0x27   : > { %530 = vmatpush1.bf16.msra.mxu0 %v1176_v13  ;;  %1156 = vmatpush1.bf16.msra.mxu1 %v1176_v13 }
  0x28   : > { %531 = vmatprep.subr.bf16.mxu0 %v1234_v1  ;;  %1147 = vmatprep.subr.bf16.mxu1 %v1234_v1 }
  0x2b   : > { %532 = vmatpush1.bf16.msra.mxu0 %v511_v16  ;;  %1157 = vmatpush1.bf16.msra.mxu1 %v511_v16 }
  0x2e   : > { %546 = vmatmul.mubr.bf16.vlgmr.msra.gmra.mrb[0].mxu0 %v1178_v17  ;;  %610 = vmatmul.mubr.bf16.vlgmr.msra.gmra.mrb[0].mxu1 %v1181_v18 }
  0x2f   : > { %1054 = vmatprep.mubr.msk.bf16.mxu0 %vm457_vm0, %v1184_v19  ;;  %1062 = vmatprep.mubr.msk.bf16.mxu1 %vm457_vm0, %v1186_v20 }
  0x36   : > { %554 = vmatmul.mubr.bf16.gmra.mrb[4].mxu0 %v1188_v21  ;;  %618 = vmatmul.mubr.bf16.gmra.mrb[4].mxu1 %v1189_v22 }
  0x37   : > { %1055 = vmatprep.mubr.msk.bf16.mxu0 %vm457_vm0, %v1190_v23  ;;  %1063 = vmatprep.mubr.msk.bf16.mxu1 %vm457_vm0, %v1192_v24 }
  0x3e   : > { %562 = vmatmul.mubr.bf16.gmra.mrb[8].mxu0 %v1194_v25  ;;  %626 = vmatmul.mubr.bf16.gmra.mrb[8].mxu1 %v1195_v26 }
  0x3f   : > { %1056 = vmatprep.mubr.msk.bf16.mxu0 %vm457_vm0, %v1196_v27  ;;  %1064 = vmatprep.mubr.msk.bf16.mxu1 %vm457_vm0, %v1198_v28 }
  0x46   : > { %570 = vmatmul.mubr.bf16.gmra.mrb[12].mxu0 %v1200_v29  ;;  %634 = vmatmul.mubr.bf16.gmra.mrb[12].mxu1 %v1201_v30 }
  0x47   : > { %1057 = vmatprep.mubr.msk.bf16.mxu0 %vm457_vm0, %v1202_v31  ;;  %1065 = vmatprep.mubr.msk.bf16.mxu1 %vm457_vm0, %v1204_v32 }
  0x4e   : > { %578 = vmatmul.mubr.bf16.gmra.mrb[16].mxu0 %v1206_v33  ;;  %642 = vmatmul.mubr.bf16.gmra.mrb[16].mxu1 %v1207_v34 }
  0x4f   : > { %1058 = vmatprep.mubr.msk.bf16.mxu0 %vm457_vm0, %v1208_v35  ;;  %1066 = vmatprep.mubr.msk.bf16.mxu1 %vm457_vm0, %v1210_v36 }
  0x56   : > { %586 = vmatmul.mubr.bf16.gmra.mrb[20].mxu0 %v1212_v37  ;;  %650 = vmatmul.mubr.bf16.gmra.mrb[20].mxu1 %v1213_v38 }
  0x57   : > { %1059 = vmatprep.mubr.msk.bf16.mxu0 %vm457_vm0, %v1214_v39  ;;  %1067 = vmatprep.mubr.msk.bf16.mxu1 %vm457_vm0, %v1216_v40 }
  0x5e   : > { %594 = vmatmul.mubr.bf16.gmra.mrb[24].mxu0 %v1218_v41  ;;  %658 = vmatmul.mubr.bf16.gmra.mrb[24].mxu1 %v1219_v42 }
  0x5f   : > { %1060 = vmatprep.mubr.msk.bf16.mxu0 %vm457_vm0, %v1220_v43  ;;  %1068 = vmatprep.mubr.msk.bf16.mxu1 %vm457_vm0, %v1222_v44 }
  0x66   : > { %602 = vmatmul.mubr.bf16.gmra.mrb[28].mxu0 %v1224_v45  ;;  %666 = vmatmul.mubr.bf16.gmra.mrb[28].mxu1 %v1225_v46 }
 0x101   : > { %v547_v48 = vpop.f32.mrb[0].mxu0  ;;  %v611_v50 = vpop.f32.mrb[0].mxu1 }
 0x102   : > { %v682_v51 = vmul.f32 %v1358_v47, %v547_v48  ;;  %v698_v52 = vmul.f32 %v1358_v47, %v611_v50  ;;  %v549_v53 = vpop.f32.mrb[1].mxu0  ;;  %v613_v54 = vpop.f32.mrb[1].mxu1 }
 0x103   : > { %v550_v55 = vpop.f32.mrb[2].mxu0  ;;  %v614_v56 = vpop.f32.mrb[2].mxu1 }
 0x104   : > { %v720_v57 = vadd.f32 %v1363_v49, %v682_v51  ;;  %v736_v58 = vadd.f32 %v1363_v49, %v698_v52  ;;  %v683_v59 = vmul.f32 %v1358_v47, %v550_v55  ;;  %v699_v60 = vmul.f32 %v1358_v47, %v614_v56  ;;  %v552_v61 = vpop.f32.mrb[3].mxu0  ;;  %v616_v62 = vpop.f32.mrb[3].mxu1 }
 0x106   : > { %v752_v63 = vmax.f32 %v720_v57, 0.0  ;;  %v768_v0 = vmax.f32 %v736_v58, 0.0  ;;  %v721_v1 = vadd.f32 %v1363_v49, %v683_v59  ;;  %v737_v2 = vadd.f32 %v1363_v49, %v699_v60 }
 0x108   : > { %v1106_v3 = vpack.c.bf16 %v752_v63, %v752_v63  ;;  %v1122_v4 = vpack.c.bf16 %v768_v0, %v768_v0  ;;  %v753_v5 = vmax.f32 %v721_v1, 0.0  ;;  %v769_v6 = vmax.f32 %v737_v2, 0.0 }
 0x109   : > { %v555_v7 = vpop.f32.mrb[4].mxu0  ;;  %v619_v8 = vpop.f32.mrb[4].mxu1 }
 0x10a   : > { %913 = vst.msk [vmem:[%s1377_s23] sm:$0xf] %vm912_vm3, %v1106_v3  ;;  %929 = vst.msk [vmem:[%s1377_s23 + $0x40] sm:$0xf] %vm912_vm3, %v1122_v4  ;;  %v1107_v9 = vpack.c.bf16 %v753_v5, %v753_v5  ;;  %v1123_v10 = vpack.c.bf16 %v769_v6, %v769_v6  ;;  %v684_v11 = vmul.f32 %v1358_v47, %v555_v7  ;;  %v557_v13 = vpop.f32.mrb[5].mxu0  ;;  %v621_v14 = vpop.f32.mrb[5].mxu1 }
 0x10b   : > { %v700_v12 = vmul.f32 %v1358_v47, %v619_v8  ;;  %v558_v15 = vpop.f32.mrb[6].mxu0  ;;  %v622_v16 = vpop.f32.mrb[6].mxu1 }
 0x10c   : > { %914 = vst.msk [vmem:[%s1377_s23 + $0x4] sm:$0xf] %vm912_vm3, %v1107_v9  ;;  %930 = vst.msk [vmem:[%s1377_s23 + $0x44] sm:$0xf] %vm912_vm3, %v1123_v10  ;;  %v722_v17 = vadd.f32 %v1363_v49, %v684_v11  ;;  %v685_v19 = vmul.f32 %v1358_v47, %v558_v15  ;;  %v701_v20 = vmul.f32 %v1358_v47, %v622_v16  ;;  %v560_v21 = vpop.f32.mrb[7].mxu0  ;;  %v624_v22 = vpop.f32.mrb[7].mxu1 }
 0x10d   : > { %v738_v18 = vadd.f32 %v1363_v49, %v700_v12 }
 0x10e   : > { %v754_v23 = vmax.f32 %v722_v17, 0.0  ;;  %v723_v25 = vadd.f32 %v1363_v49, %v685_v19  ;;  %v739_v26 = vadd.f32 %v1363_v49, %v701_v20 }
 0x10f   : > { %v770_v24 = vmax.f32 %v738_v18, 0.0 }
 0x110   : > { %v1108_v27 = vpack.c.bf16 %v754_v23, %v754_v23  ;;  %v755_v29 = vmax.f32 %v723_v25, 0.0  ;;  %v771_v30 = vmax.f32 %v739_v26, 0.0 }
 0x111   : > { %v1124_v28 = vpack.c.bf16 %v770_v24, %v770_v24  ;;  %v563_v31 = vpop.f32.mrb[8].mxu0  ;;  %v627_v32 = vpop.f32.mrb[8].mxu1 }
 0x112   : > { %915 = vst.msk [vmem:[%s1377_s23 + $0x8] sm:$0xf] %vm912_vm3, %v1108_v27  ;;  %v1109_v33 = vpack.c.bf16 %v755_v29, %v755_v29  ;;  %v1125_v34 = vpack.c.bf16 %v771_v30, %v771_v30  ;;  %v686_v35 = vmul.f32 %v1358_v47, %v563_v31  ;;  %v702_v36 = vmul.f32 %v1358_v47, %v627_v32  ;;  %v565_v37 = vpop.f32.mrb[9].mxu0  ;;  %v629_v38 = vpop.f32.mrb[9].mxu1 }
 0x113   : > { %931 = vst.msk [vmem:[%s1377_s23 + $0x48] sm:$0xf] %vm912_vm3, %v1124_v28  ;;  %v566_v39 = vpop.f32.mrb[10].mxu0  ;;  %v630_v40 = vpop.f32.mrb[10].mxu1 }
 0x114   : > { %916 = vst.msk [vmem:[%s1377_s23 + $0xc] sm:$0xf] %vm912_vm3, %v1109_v33  ;;  %932 = vst.msk [vmem:[%s1377_s23 + $0x4c] sm:$0xf] %vm912_vm3, %v1125_v34  ;;  %v724_v41 = vadd.f32 %v1363_v49, %v686_v35  ;;  %v740_v42 = vadd.f32 %v1363_v49, %v702_v36  ;;  %v687_v43 = vmul.f32 %v1358_v47, %v566_v39  ;;  %v568_v45 = vpop.f32.mrb[11].mxu0  ;;  %v632_v46 = vpop.f32.mrb[11].mxu1 }
 0x115   : > { %v703_v44 = vmul.f32 %v1358_v47, %v630_v40 }
 0x116   : > { %v756_v48 = vmax.f32 %v724_v41, 0.0  ;;  %v772_v50 = vmax.f32 %v740_v42, 0.0  ;;  %v725_v51 = vadd.f32 %v1363_v49, %v687_v43 }
 0x117   : > { %v741_v52 = vadd.f32 %v1363_v49, %v703_v44 }
 0x118   : > { %v1110_v53 = vpack.c.bf16 %v756_v48, %v756_v48  ;;  %v1126_v54 = vpack.c.bf16 %v772_v50, %v772_v50  ;;  %v757_v55 = vmax.f32 %v725_v51, 0.0 }
 0x119   : > { %v773_v56 = vmax.f32 %v741_v52, 0.0  ;;  %v571_v57 = vpop.f32.mrb[12].mxu0  ;;  %v635_v58 = vpop.f32.mrb[12].mxu1 }
 0x11a   : > { %917 = vst.msk [vmem:[%s1377_s23 + $0x10] sm:$0xf] %vm912_vm3, %v1110_v53  ;;  %933 = vst.msk [vmem:[%s1377_s23 + $0x50] sm:$0xf] %vm912_vm3, %v1126_v54  ;;  %v1111_v59 = vpack.c.bf16 %v757_v55, %v757_v55  ;;  %v688_v61 = vmul.f32 %v1358_v47, %v571_v57  ;;  %v704_v62 = vmul.f32 %v1358_v47, %v635_v58  ;;  %v573_v63 = vpop.f32.mrb[13].mxu0  ;;  %v637_v0 = vpop.f32.mrb[13].mxu1 }
 0x11b   : > { %v1127_v60 = vpack.c.bf16 %v773_v56, %v773_v56  ;;  %v574_v1 = vpop.f32.mrb[14].mxu0  ;;  %v638_v2 = vpop.f32.mrb[14].mxu1 }
 0x11c   : > { %918 = vst.msk [vmem:[%s1377_s23 + $0x14] sm:$0xf] %vm912_vm3, %v1111_v59  ;;  %v726_v3 = vadd.f32 %v1363_v49, %v688_v61  ;;  %v742_v4 = vadd.f32 %v1363_v49, %v704_v62  ;;  %v689_v5 = vmul.f32 %v1358_v47, %v574_v1  ;;  %v705_v6 = vmul.f32 %v1358_v47, %v638_v2  ;;  %v576_v7 = vpop.f32.mrb[15].mxu0  ;;  %v640_v8 = vpop.f32.mrb[15].mxu1 }
 0x11d   : > { %934 = vst.msk [vmem:[%s1377_s23 + $0x54] sm:$0xf] %vm912_vm3, %v1127_v60 }
 0x11e   : > { %v758_v9 = vmax.f32 %v726_v3, 0.0  ;;  %v774_v10 = vmax.f32 %v742_v4, 0.0  ;;  %v727_v11 = vadd.f32 %v1363_v49, %v689_v5  ;;  %v743_v12 = vadd.f32 %v1363_v49, %v705_v6 }
 0x120   : > { %v1112_v13 = vpack.c.bf16 %v758_v9, %v758_v9  ;;  %v1128_v14 = vpack.c.bf16 %v774_v10, %v774_v10  ;;  %v759_v15 = vmax.f32 %v727_v11, 0.0  ;;  %v775_v16 = vmax.f32 %v743_v12, 0.0 }
 0x121   : > { %v579_v17 = vpop.f32.mrb[16].mxu0  ;;  %v643_v18 = vpop.f32.mrb[16].mxu1 }
 0x122   : > { %919 = vst.msk [vmem:[%s1377_s23 + $0x18] sm:$0xf] %vm912_vm3, %v1112_v13  ;;  %935 = vst.msk [vmem:[%s1377_s23 + $0x58] sm:$0xf] %vm912_vm3, %v1128_v14  ;;  %v1113_v19 = vpack.c.bf16 %v759_v15, %v759_v15  ;;  %v1129_v20 = vpack.c.bf16 %v775_v16, %v775_v16  ;;  %v690_v21 = vmul.f32 %v1358_v47, %v579_v17  ;;  %v581_v23 = vpop.f32.mrb[17].mxu0  ;;  %v645_v24 = vpop.f32.mrb[17].mxu1 }
 0x123   : > { %v706_v22 = vmul.f32 %v1358_v47, %v643_v18  ;;  %v582_v25 = vpop.f32.mrb[18].mxu0  ;;  %v646_v26 = vpop.f32.mrb[18].mxu1 }
 0x124   : > { %920 = vst.msk [vmem:[%s1377_s23 + $0x1c] sm:$0xf] %vm912_vm3, %v1113_v19  ;;  %936 = vst.msk [vmem:[%s1377_s23 + $0x5c] sm:$0xf] %vm912_vm3, %v1129_v20  ;;  %v728_v27 = vadd.f32 %v1363_v49, %v690_v21  ;;  %v691_v29 = vmul.f32 %v1358_v47, %v582_v25  ;;  %v707_v30 = vmul.f32 %v1358_v47, %v646_v26  ;;  %v584_v31 = vpop.f32.mrb[19].mxu0  ;;  %v648_v32 = vpop.f32.mrb[19].mxu1 }
 0x125   : > { %v744_v28 = vadd.f32 %v1363_v49, %v706_v22 }
 0x126   : > { %v760_v33 = vmax.f32 %v728_v27, 0.0  ;;  %v729_v35 = vadd.f32 %v1363_v49, %v691_v29  ;;  %v745_v36 = vadd.f32 %v1363_v49, %v707_v30 }
 0x127   : > { %v776_v34 = vmax.f32 %v744_v28, 0.0 }
 0x128   : > { %v1114_v37 = vpack.c.bf16 %v760_v33, %v760_v33  ;;  %v761_v39 = vmax.f32 %v729_v35, 0.0  ;;  %v777_v40 = vmax.f32 %v745_v36, 0.0 }
 0x129   : > { %v1130_v38 = vpack.c.bf16 %v776_v34, %v776_v34  ;;  %v587_v41 = vpop.f32.mrb[20].mxu0  ;;  %v651_v42 = vpop.f32.mrb[20].mxu1 }
 0x12a   : > { %921 = vst.msk [vmem:[%s1377_s23 + $0x20] sm:$0xf] %vm912_vm3, %v1114_v37  ;;  %v1115_v43 = vpack.c.bf16 %v761_v39, %v761_v39  ;;  %v1131_v44 = vpack.c.bf16 %v777_v40, %v777_v40  ;;  %v692_v45 = vmul.f32 %v1358_v47, %v587_v41  ;;  %v708_v46 = vmul.f32 %v1358_v47, %v651_v42  ;;  %v589_v48 = vpop.f32.mrb[21].mxu0  ;;  %v653_v50 = vpop.f32.mrb[21].mxu1 }
 0x12b   : > { %937 = vst.msk [vmem:[%s1377_s23 + $0x60] sm:$0xf] %vm912_vm3, %v1130_v38  ;;  %v590_v51 = vpop.f32.mrb[22].mxu0  ;;  %v654_v52 = vpop.f32.mrb[22].mxu1 }
 0x12c   : > { %922 = vst.msk [vmem:[%s1377_s23 + $0x24] sm:$0xf] %vm912_vm3, %v1115_v43  ;;  %938 = vst.msk [vmem:[%s1377_s23 + $0x64] sm:$0xf] %vm912_vm3, %v1131_v44  ;;  %v730_v53 = vadd.f32 %v1363_v49, %v692_v45  ;;  %v746_v54 = vadd.f32 %v1363_v49, %v708_v46  ;;  %v693_v55 = vmul.f32 %v1358_v47, %v590_v51  ;;  %v592_v57 = vpop.f32.mrb[23].mxu0  ;;  %v656_v58 = vpop.f32.mrb[23].mxu1 }
 0x12d   : > { %v709_v56 = vmul.f32 %v1358_v47, %v654_v52 }
 0x12e   : > { %v762_v59 = vmax.f32 %v730_v53, 0.0  ;;  %v778_v60 = vmax.f32 %v746_v54, 0.0  ;;  %v731_v61 = vadd.f32 %v1363_v49, %v693_v55 }
 0x12f   : > { %v747_v62 = vadd.f32 %v1363_v49, %v709_v56 }
 0x130   : > { %v1116_v63 = vpack.c.bf16 %v762_v59, %v762_v59  ;;  %v1132_v0 = vpack.c.bf16 %v778_v60, %v778_v60  ;;  %v763_v1 = vmax.f32 %v731_v61, 0.0 }
 0x131   : > { %v779_v2 = vmax.f32 %v747_v62, 0.0  ;;  %v595_v3 = vpop.f32.mrb[24].mxu0  ;;  %v659_v4 = vpop.f32.mrb[24].mxu1 }
 0x132   : > { %923 = vst.msk [vmem:[%s1377_s23 + $0x28] sm:$0xf] %vm912_vm3, %v1116_v63  ;;  %939 = vst.msk [vmem:[%s1377_s23 + $0x68] sm:$0xf] %vm912_vm3, %v1132_v0  ;;  %v1117_v5 = vpack.c.bf16 %v763_v1, %v763_v1  ;;  %v694_v7 = vmul.f32 %v1358_v47, %v595_v3  ;;  %v710_v8 = vmul.f32 %v1358_v47, %v659_v4  ;;  %v597_v9 = vpop.f32.mrb[25].mxu0  ;;  %v661_v10 = vpop.f32.mrb[25].mxu1 }
 0x133   : > { %v1133_v6 = vpack.c.bf16 %v779_v2, %v779_v2  ;;  %v598_v11 = vpop.f32.mrb[26].mxu0  ;;  %v662_v12 = vpop.f32.mrb[26].mxu1 }
 0x134   : > { %924 = vst.msk [vmem:[%s1377_s23 + $0x2c] sm:$0xf] %vm912_vm3, %v1117_v5  ;;  %v732_v13 = vadd.f32 %v1363_v49, %v694_v7  ;;  %v748_v14 = vadd.f32 %v1363_v49, %v710_v8  ;;  %v695_v15 = vmul.f32 %v1358_v47, %v598_v11  ;;  %v711_v16 = vmul.f32 %v1358_v47, %v662_v12  ;;  %v600_v17 = vpop.f32.mrb[27].mxu0  ;;  %v664_v18 = vpop.f32.mrb[27].mxu1 }
 0x135   : > { %940 = vst.msk [vmem:[%s1377_s23 + $0x6c] sm:$0xf] %vm912_vm3, %v1133_v6 }
 0x136   : > { %v764_v19 = vmax.f32 %v732_v13, 0.0  ;;  %v780_v20 = vmax.f32 %v748_v14, 0.0  ;;  %v733_v21 = vadd.f32 %v1363_v49, %v695_v15  ;;  %v749_v22 = vadd.f32 %v1363_v49, %v711_v16 }
 0x138   : > { %v1118_v23 = vpack.c.bf16 %v764_v19, %v764_v19  ;;  %v1134_v24 = vpack.c.bf16 %v780_v20, %v780_v20  ;;  %v765_v25 = vmax.f32 %v733_v21, 0.0  ;;  %v781_v26 = vmax.f32 %v749_v22, 0.0 }
 0x139   : > { %v603_v27 = vpop.f32.mrb[28].mxu0  ;;  %v667_v28 = vpop.f32.mrb[28].mxu1 }
 0x13a   : > { %925 = vst.msk [vmem:[%s1377_s23 + $0x30] sm:$0xf] %vm912_vm3, %v1118_v23  ;;  %941 = vst.msk [vmem:[%s1377_s23 + $0x70] sm:$0xf] %vm912_vm3, %v1134_v24  ;;  %v1119_v29 = vpack.c.bf16 %v765_v25, %v765_v25  ;;  %v1135_v30 = vpack.c.bf16 %v781_v26, %v781_v26  ;;  %v696_v31 = vmul.f32 %v1358_v47, %v603_v27  ;;  %v605_v33 = vpop.f32.mrb[29].mxu0  ;;  %v669_v34 = vpop.f32.mrb[29].mxu1 }
 0x13b   : > { %v712_v32 = vmul.f32 %v1358_v47, %v667_v28  ;;  %v606_v35 = vpop.f32.mrb[30].mxu0  ;;  %v670_v36 = vpop.f32.mrb[30].mxu1 }
 0x13c   : > { %926 = vst.msk [vmem:[%s1377_s23 + $0x34] sm:$0xf] %vm912_vm3, %v1119_v29  ;;  %942 = vst.msk [vmem:[%s1377_s23 + $0x74] sm:$0xf] %vm912_vm3, %v1135_v30  ;;  %v734_v37 = vadd.f32 %v1363_v49, %v696_v31  ;;  %v697_v39 = vmul.f32 %v1358_v47, %v606_v35  ;;  %v713_v40 = vmul.f32 %v1358_v47, %v670_v36  ;;  %v608_v41 = vpop.f32.mrb[31].mxu0  ;;  %v672_v42 = vpop.f32.mrb[31].mxu1 }
 0x13d   : > { %v750_v38 = vadd.f32 %v1363_v49, %v712_v32 }
 0x13e   : > { %v766_v43 = vmax.f32 %v734_v37, 0.0  ;;  %v735_v45 = vadd.f32 %v1363_v49, %v697_v39  ;;  %v751_v46 = vadd.f32 %v1363_v49, %v713_v40 }
 0x13f   : > { %v782_v44 = vmax.f32 %v750_v38, 0.0 }
 0x140   : > { %v1120_v48 = vpack.c.bf16 %v766_v43, %v766_v43  ;;  %v767_v51 = vmax.f32 %v735_v45, 0.0  ;;  %v783_v52 = vmax.f32 %v751_v46, 0.0 }
 0x141   : > { %v1136_v50 = vpack.c.bf16 %v782_v44, %v782_v44 }
 0x142   : > { %927 = vst.msk [vmem:[%s1377_s23 + $0x38] sm:$0xf] %vm912_vm3, %v1120_v48  ;;  %v1121_v53 = vpack.c.bf16 %v767_v51, %v767_v51  ;;  %v1137_v54 = vpack.c.bf16 %v783_v52, %v783_v52 }
 0x143   : > { %943 = vst.msk [vmem:[%s1377_s23 + $0x78] sm:$0xf] %vm912_vm3, %v1136_v50 }
 0x144   : > { %928 = vst.msk [vmem:[%s1377_s23 + $0x3c] sm:$0xf] %vm912_vm3, %v1121_v53  ;;  %944 = vst.msk [vmem:[%s1377_s23 + $0x7c] sm:$0xf] %vm912_vm3, %v1137_v54 }
 0x145 PF: > { %s14_s15 = sadd.s32 1, %s1232_s15  }
 0x146   : > { %p11_p4 = scmp.ge.s32.totalorder %s14_s15, 10  }
 0x148   :  { %13 = sbr.rel (!%p11_p4) target bundleno = 1 (0x1), region = 66 }

// kernel: basenet_forward.12
= control target key start
LH: loop header
LB: loop body
LE: loop exit
PB: predicated region body
PF: predicated region fallthrough
CT: control target
= control target key end

     0   :  { %s1410_s21 = smov 0   ;;  %s1646_s0 = inlined_call_operand.vmem [shape: bf16[512,64], index: 0, kind: input, shape index: {}]   ;;  %s1647_s1 = inlined_call_operand.vmem [shape: f32[1,64], index: 1, kind: input, shape index: {}]   ;;  %s1648_s2 = inlined_call_operand.vmem [shape: f32[1,64], index: 2, kind: input, shape index: {}]   ;;  %s1649_s3 = inlined_call_operand.vmem [shape: bf16[64,128], index: 3, kind: input, shape index: {}]   ;;  %s1650_s4 = inlined_call_operand.vmem [shape: f32[1,128], index: 4, kind: input, shape index: {}]   ;;  %s1651_s5 = inlined_call_operand.vmem [shape: f32[1,128], index: 5, kind: input, shape index: {}]   ;;  %s1652_s6 = inlined_call_operand.vmem [shape: bf16[512,128], index: 6, kind: output, shape index: {}]  }
   0x1 LB: > { %s1014_s22 = sadd.s32 4294967295, %s1373_s21   ;;  %p1018_p0 = scmp.ge.s32.totalorder %s1373_s21, 1  ;;  %s1373_s21 = sphi %s1410_s21, %s16_s21  }
   0x2   : > { %p213_p1 = scmp.lt.s32.totalorder %s1373_s21, 3 }
   0x4   : > { %p214_p2 = pnand %p1018_p0, %p213_p1 }
   0x5   : > { %v1363_v0 = vld [vmem:[%s1649_s3] sm:$0xff] (!%p214_p2)   ;;  %s1019_s25 = sshll.u32 (!%p214_p2), %s1014_s22, 5  ;;  %v1364_v1 = vld [vmem:[%s1649_s3 + $0x8] sm:$0xff] (!%p214_p2)   ;;  %v1365_v2 = vld [vmem:[%s1649_s3 + $0x10] sm:$0xff] (!%p214_p2)   ;;  %vm478_vm0 = vcmask (!%p214_p2), 523264  }
   0x6   : > { %217 = sbr.rel (%p214_p2) target bundleno = 282 (0x11a), region = 44  ;;  %p244_p3 = scmp.lt.s32.totalorder (!%p214_p2), %s1019_s25, 63  ;;  %1307 = vmatprep.subr.bf16.mxu0 (!%p214_p2), %v1363_v0  ;;  %1347 = vmatprep.subr.bf16.mxu1 (!%p214_p2), %v1363_v0  ;;  %v1440_v3 = vld [vmem:[%s1647_s1] ss:$0 sm:$0xff] (!%p214_p2)  ;;  %v1366_v7 = vld [vmem:[%s1649_s3 + $0x18] sm:$0xff] (!%p214_p2)  }
   0x7   : > { %1308 = vmatpush3.bf16.msra.mxu0 (!%p214_p2), %v1363_v0  ;;  %1351 = vmatpush3.bf16.msra.mxu1 (!%p214_p2), %v1363_v0  ;;  %v1453_v14 = vld [vmem:[%s1648_s2] ss:$0 sm:$0xff] (!%p214_p2) }
   0x8   : > { %1309 = vmatprep.subr.bf16.mxu0 (!%p214_p2), %v1364_v1  ;;  %1348 = vmatprep.subr.bf16.mxu1 (!%p214_p2), %v1364_v1 }
   0xb   : > { %1310 = vmatpush3.bf16.msra.mxu0 (!%p214_p2), %v1364_v1  ;;  %1352 = vmatpush3.bf16.msra.mxu1 (!%p214_p2), %v1364_v1 }
   0xc   : > { %1311 = vmatprep.subr.bf16.mxu0 (!%p214_p2), %v1365_v2  ;;  %1349 = vmatprep.subr.bf16.mxu1 (!%p214_p2), %v1365_v2 }
   0xd   : > { %s1654_s25 = smov (!%p244_p3, %s1019_s25), 63 }
   0xe   : > { %s1020_s30 = sshll.u32 %s1654_s25, 2 }
   0xf   : > { %s1435_s9 = scalar_lea.vmem %s1646_s0, %s1020_s30  ;;  %1312 = vmatpush3.bf16.msra.mxu0 %v1365_v2  ;;  %1353 = vmatpush3.bf16.msra.mxu1 %v1365_v2  ;;  %s1576_s23 = scalar_lea.vmem %s1652_s6, %s1020_s30 }
  0x10   : > { %v1114_v4 = vld [vmem:[%s1435_s9] sm:$0xff]   ;;  %v1257_v6 = vld [vmem:[%s1435_s9 + $0x8] sm:$0xff]   ;;  %v1258_v13 = vld [vmem:[%s1435_s9 + $0x10] sm:$0xff]   ;;  %1313 = vmatprep.subr.bf16.mxu0 %v1366_v7  ;;  %1350 = vmatprep.subr.bf16.mxu1 %v1366_v7 }
  0x11   : > { %v1264_v5 = vld [vmem:[%s1435_s9 + $0x40] sm:$0xff]   ;;  %v1115_v8 = vunpack.c.l.bf16 %v1114_v4  ;;  %v1116_v9 = vunpack.c.h.bf16 %v1114_v4  ;;  %v1265_v12 = vld [vmem:[%s1435_s9 + $0x48] sm:$0xff]   ;;  %v1119_v15 = vunpack.c.l.bf16 %v1257_v6  ;;  %v1120_v16 = vunpack.c.h.bf16 %v1257_v6  ;;  %v1266_v39 = vld [vmem:[%s1435_s9 + $0x50] sm:$0xff]  }
  0x12   : > { %v1147_v10 = vunpack.c.l.bf16 %v1264_v5  ;;  %v1148_v11 = vunpack.c.h.bf16 %v1264_v5  ;;  %v1151_v17 = vunpack.c.l.bf16 %v1265_v12  ;;  %v1152_v18 = vunpack.c.h.bf16 %v1265_v12  ;;  %v1259_v44 = vld [vmem:[%s1435_s9 + $0x18] sm:$0xff]   ;;  %v1260_v62 = vld [vmem:[%s1435_s9 + $0x20] sm:$0xff]  }
  0x13   : > { %v328_v19 = vmul.f32 %v1115_v8, %v1440_v3  ;;  %v329_v20 = vmul.f32 %v1116_v9, %v1440_v3  ;;  %v330_v23 = vmul.f32 %v1119_v15, %v1440_v3  ;;  %v331_v24 = vmul.f32 %v1120_v16, %v1440_v3  ;;  %1314 = vmatpush3.bf16.msra.mxu0 %v1366_v7  ;;  %v1267_v49 = vld [vmem:[%s1435_s9 + $0x58] sm:$0xff]   ;;  %v1268_v12 = vld [vmem:[%s1435_s9 + $0x60] sm:$0xff]  }
  0x14   : > { %v344_v21 = vmul.f32 %v1147_v10, %v1440_v3  ;;  %v345_v22 = vmul.f32 %v1148_v11, %v1440_v3  ;;  %v346_v25 = vmul.f32 %v1151_v17, %v1440_v3  ;;  %v1123_v26 = vunpack.c.l.bf16 %v1258_v13  ;;  %1354 = vmatpush3.bf16.msra.mxu1 %v1366_v7 }
  0x15   : > { %v366_v27 = vadd.f32 %v1453_v14, %v328_v19  ;;  %v367_v28 = vadd.f32 %v1453_v14, %v329_v20  ;;  %v1124_v30 = vunpack.c.h.bf16 %v1258_v13  ;;  %v368_v32 = vadd.f32 %v1453_v14, %v330_v23 }
  0x16   : > { %v382_v29 = vadd.f32 %v1453_v14, %v344_v21  ;;  %v383_v31 = vadd.f32 %v1453_v14, %v345_v22  ;;  %v369_v33 = vadd.f32 %v1453_v14, %v331_v24  ;;  %v347_v34 = vmul.f32 %v1152_v18, %v1440_v3  ;;  %v1261_v22 = vld [vmem:[%s1435_s9 + $0x28] sm:$0xff]  }
  0x17   : > { %v398_v35 = vmax.f32 %v366_v27, 0.0  ;;  %v399_v36 = vmax.f32 %v367_v28, 0.0  ;;  %v384_v38 = vadd.f32 %v1453_v14, %v346_v25  ;;  %v400_v41 = vmax.f32 %v368_v32, 0.0 }
  0x18   : > { %v414_v37 = vmax.f32 %v382_v29, 0.0  ;;  %v415_v40 = vmax.f32 %v383_v31, 0.0  ;;  %v401_v42 = vmax.f32 %v369_v33, 0.0  ;;  %v385_v43 = vadd.f32 %v1453_v14, %v347_v34  ;;  %v1269_v31 = vld [vmem:[%s1435_s9 + $0x68] sm:$0xff]  }
  0x19   : > { %v430_v45 = vpack.c.bf16 %v399_v36, %v398_v35  ;;  %v416_v46 = vmax.f32 %v384_v38, 0.0  ;;  %v332_v47 = vmul.f32 %v1123_v26, %v1440_v3  ;;  %v333_v48 = vmul.f32 %v1124_v30, %v1440_v3 }
  0x1a   : > { %v438_v50 = vpack.c.bf16 %v415_v40, %v414_v37  ;;  %v431_v51 = vpack.c.bf16 %v401_v42, %v400_v41  ;;  %v417_v52 = vmax.f32 %v385_v43, 0.0  ;;  %v1155_v53 = vunpack.c.l.bf16 %v1266_v39  ;;  %v1262_v40 = vld [vmem:[%s1435_s9 + $0x30] sm:$0xff]  }
  0x1b   : > { %1315 = vmatprep.mubr.msk.bf16.mxu0 %vm478_vm0, %v430_v45  ;;  %v370_v54 = vadd.f32 %v1453_v14, %v332_v47  ;;  %v371_v55 = vadd.f32 %v1453_v14, %v333_v48  ;;  %v1156_v56 = vunpack.c.h.bf16 %v1266_v39  ;;  %v1127_v57 = vunpack.c.l.bf16 %v1259_v44 }
  0x1c   : > { %1331 = vmatprep.mubr.msk.bf16.mxu1 %vm478_vm0, %v438_v50  ;;  %1316 = vmatmul.mubr.msk.bf16.vlgmr.msra.gmra.mrb[0].mxu0 %vm478_vm0, %v431_v51  ;;  %v439_v58 = vpack.c.bf16 %v417_v52, %v416_v46  ;;  %v348_v59 = vmul.f32 %v1155_v53, %v1440_v3  ;;  %v1128_v60 = vunpack.c.h.bf16 %v1259_v44  ;;  %v1159_v61 = vunpack.c.l.bf16 %v1267_v49  ;;  %v1270_v53 = vld [vmem:[%s1435_s9 + $0x70] sm:$0xff]  }
  0x1d   : > { %v402_v63 = vmax.f32 %v370_v54, 0.0  ;;  %v403_v0 = vmax.f32 %v371_v55, 0.0  ;;  %v349_v1 = vmul.f32 %v1156_v56, %v1440_v3  ;;  %v334_v2 = vmul.f32 %v1127_v57, %v1440_v3 }
  0x1e   : > { %1332 = vmatmul.mubr.msk.bf16.vlgmr.msra.gmra.mrb[0].mxu1 %vm478_vm0, %v439_v58  ;;  %v386_v4 = vadd.f32 %v1453_v14, %v348_v59  ;;  %v335_v5 = vmul.f32 %v1128_v60, %v1440_v3  ;;  %v1160_v6 = vunpack.c.h.bf16 %v1267_v49  ;;  %v350_v7 = vmul.f32 %v1159_v61, %v1440_v3 }
  0x1f   : > { %v432_v8 = vpack.c.bf16 %v403_v0, %v402_v63  ;;  %v387_v9 = vadd.f32 %v1453_v14, %v349_v1  ;;  %v372_v10 = vadd.f32 %v1453_v14, %v334_v2  ;;  %v1131_v11 = vunpack.c.l.bf16 %v1260_v62 }
  0x20   : > { %v418_v13 = vmax.f32 %v386_v4, 0.0  ;;  %v373_v15 = vadd.f32 %v1453_v14, %v335_v5  ;;  %v351_v16 = vmul.f32 %v1160_v6, %v1440_v3  ;;  %v388_v17 = vadd.f32 %v1453_v14, %v350_v7 }
  0x21   : > { %1319 = vmatprep.mubr.msk.bf16.mxu0 %vm478_vm0, %v432_v8  ;;  %v419_v18 = vmax.f32 %v387_v9, 0.0  ;;  %v404_v19 = vmax.f32 %v372_v10, 0.0  ;;  %v1132_v20 = vunpack.c.h.bf16 %v1260_v62  ;;  %v336_v21 = vmul.f32 %v1131_v11, %v1440_v3  ;;  %v1263_v62 = vld [vmem:[%s1435_s9 + $0x38] sm:$0xff]  }
  0x22   : > { %v405_v23 = vmax.f32 %v373_v15, 0.0  ;;  %v389_v24 = vadd.f32 %v1453_v14, %v351_v16  ;;  %v420_v25 = vmax.f32 %v388_v17, 0.0  ;;  %v1163_v26 = vunpack.c.l.bf16 %v1268_v12  ;;  %v1271_v8 = vld [vmem:[%s1435_s9 + $0x78] sm:$0xff]  }
  0x23   : > { %v440_v27 = vpack.c.bf16 %v419_v18, %v418_v13  ;;  %v337_v28 = vmul.f32 %v1132_v20, %v1440_v3  ;;  %v374_v29 = vadd.f32 %v1453_v14, %v336_v21  ;;  %v1164_v30 = vunpack.c.h.bf16 %v1268_v12 }
  0x24   : > { %v433_v32 = vpack.c.bf16 %v405_v23, %v404_v19  ;;  %v421_v33 = vmax.f32 %v389_v24, 0.0  ;;  %v352_v34 = vmul.f32 %v1163_v26, %v1440_v3  ;;  %v1135_v35 = vunpack.c.l.bf16 %v1261_v22 }
  0x25   : > { %1335 = vmatprep.mubr.msk.bf16.mxu1 %vm478_vm0, %v440_v27  ;;  %v375_v36 = vadd.f32 %v1453_v14, %v337_v28  ;;  %v406_v37 = vmax.f32 %v374_v29, 0.0  ;;  %v353_v38 = vmul.f32 %v1164_v30, %v1440_v3  ;;  %v1136_v39 = vunpack.c.h.bf16 %v1261_v22 }
  0x26   : > { %1320 = vmatmul.mubr.msk.bf16.gmra.mrb[4].mxu0 %vm478_vm0, %v433_v32  ;;  %v441_v41 = vpack.c.bf16 %v421_v33, %v420_v25  ;;  %v390_v42 = vadd.f32 %v1453_v14, %v352_v34  ;;  %v338_v43 = vmul.f32 %v1135_v35, %v1440_v3  ;;  %v1167_v44 = vunpack.c.l.bf16 %v1269_v31 }
  0x27   : > { %v407_v45 = vmax.f32 %v375_v36, 0.0  ;;  %v391_v46 = vadd.f32 %v1453_v14, %v353_v38  ;;  %v339_v47 = vmul.f32 %v1136_v39, %v1440_v3  ;;  %v1168_v48 = vunpack.c.h.bf16 %v1269_v31 }
  0x28   : > { %1336 = vmatmul.mubr.msk.bf16.gmra.mrb[4].mxu1 %vm478_vm0, %v441_v41  ;;  %v422_v49 = vmax.f32 %v390_v42, 0.0  ;;  %v376_v50 = vadd.f32 %v1453_v14, %v338_v43  ;;  %v354_v51 = vmul.f32 %v1167_v44, %v1440_v3  ;;  %v1139_v52 = vunpack.c.l.bf16 %v1262_v40 }
  0x29   : > { %v434_v54 = vpack.c.bf16 %v407_v45, %v406_v37  ;;  %v423_v55 = vmax.f32 %v391_v46, 0.0  ;;  %v377_v56 = vadd.f32 %v1453_v14, %v339_v47  ;;  %v355_v57 = vmul.f32 %v1168_v48, %v1440_v3 }
  0x2a   : > { %v408_v58 = vmax.f32 %v376_v50, 0.0  ;;  %v392_v59 = vadd.f32 %v1453_v14, %v354_v51  ;;  %v1140_v60 = vunpack.c.h.bf16 %v1262_v40  ;;  %v340_v61 = vmul.f32 %v1139_v52, %v1440_v3 }
  0x2b   : > { %1323 = vmatprep.mubr.msk.bf16.mxu0 %vm478_vm0, %v434_v54  ;;  %v442_v63 = vpack.c.bf16 %v423_v55, %v422_v49  ;;  %v409_v0 = vmax.f32 %v377_v56, 0.0  ;;  %v393_v1 = vadd.f32 %v1453_v14, %v355_v57  ;;  %v1171_v2 = vunpack.c.l.bf16 %v1270_v53 }
  0x2c   : > { %v424_v4 = vmax.f32 %v392_v59, 0.0  ;;  %v341_v5 = vmul.f32 %v1140_v60, %v1440_v3  ;;  %v378_v6 = vadd.f32 %v1453_v14, %v340_v61  ;;  %v1172_v7 = vunpack.c.h.bf16 %v1270_v53 }
  0x2d   : > { %1339 = vmatprep.mubr.msk.bf16.mxu1 %vm478_vm0, %v442_v63  ;;  %v435_v9 = vpack.c.bf16 %v409_v0, %v408_v58  ;;  %v425_v10 = vmax.f32 %v393_v1, 0.0  ;;  %v356_v11 = vmul.f32 %v1171_v2, %v1440_v3  ;;  %v1143_v12 = vunpack.c.l.bf16 %v1263_v62 }
  0x2e   : > { %v379_v13 = vadd.f32 %v1453_v14, %v341_v5  ;;  %v410_v15 = vmax.f32 %v378_v6, 0.0  ;;  %v357_v16 = vmul.f32 %v1172_v7, %v1440_v3  ;;  %v1144_v17 = vunpack.c.h.bf16 %v1263_v62 }
  0x2f   : > { %1324 = vmatmul.mubr.msk.bf16.gmra.mrb[8].mxu0 %vm478_vm0, %v435_v9  ;;  %v443_v18 = vpack.c.bf16 %v425_v10, %v424_v4  ;;  %v394_v19 = vadd.f32 %v1453_v14, %v356_v11  ;;  %v342_v20 = vmul.f32 %v1143_v12, %v1440_v3  ;;  %v1175_v21 = vunpack.c.l.bf16 %v1271_v8 }
  0x30   : > { %v411_v22 = vmax.f32 %v379_v13, 0.0  ;;  %v395_v23 = vadd.f32 %v1453_v14, %v357_v16  ;;  %v343_v24 = vmul.f32 %v1144_v17, %v1440_v3  ;;  %v1176_v25 = vunpack.c.h.bf16 %v1271_v8 }
  0x31   : > { %1340 = vmatmul.mubr.msk.bf16.gmra.mrb[8].mxu1 %vm478_vm0, %v443_v18  ;;  %v426_v26 = vmax.f32 %v394_v19, 0.0  ;;  %v380_v27 = vadd.f32 %v1453_v14, %v342_v20  ;;  %v358_v28 = vmul.f32 %v1175_v21, %v1440_v3 }
  0x32   : > { %v436_v29 = vpack.c.bf16 %v411_v22, %v410_v15  ;;  %v427_v30 = vmax.f32 %v395_v23, 0.0  ;;  %v381_v31 = vadd.f32 %v1453_v14, %v343_v24  ;;  %v359_v32 = vmul.f32 %v1176_v25, %v1440_v3  ;;  %v1549_v3 = vld [vmem:[%s1650_s4] ss:$0 sm:$0xff] }
  0x33   : > { %v412_v33 = vmax.f32 %v380_v27, 0.0  ;;  %v396_v34 = vadd.f32 %v1453_v14, %v358_v28 }
  0x34   : > { %1327 = vmatprep.mubr.msk.bf16.mxu0 %vm478_vm0, %v436_v29  ;;  %v444_v35 = vpack.c.bf16 %v427_v30, %v426_v26  ;;  %v413_v36 = vmax.f32 %v381_v31, 0.0  ;;  %v397_v37 = vadd.f32 %v1453_v14, %v359_v32  ;;  %v1554_v14 = vld [vmem:[%s1651_s5] ss:$0 sm:$0xff] }
  0x35   : > { %v428_v38 = vmax.f32 %v396_v34, 0.0 }
  0x36   : > { %1343 = vmatprep.mubr.msk.bf16.mxu1 %vm478_vm0, %v444_v35  ;;  %v437_v39 = vpack.c.bf16 %v413_v36, %v412_v33  ;;  %v429_v40 = vmax.f32 %v397_v37, 0.0 }
  0x38   : > { %1328 = vmatmul.mubr.msk.bf16.gmra.mrb[12].mxu0 %vm478_vm0, %v437_v39  ;;  %v445_v41 = vpack.c.bf16 %v429_v40, %v428_v38 }
  0x3a   : > { %1344 = vmatmul.mubr.msk.bf16.gmra.mrb[12].mxu1 %vm478_vm0, %v445_v41 }
  0xef   : > { %v1317_v42 = vpop.f32.mrb[0].mxu0 }
  0xf0   : > { %v698_v43 = vmul.f32 %v1317_v42, %v1549_v3  ;;  %v561_v44 = vpop.f32.mrb[1].mxu0 }
  0xf1   : > { %v1333_v45 = vpop.f32.mrb[0].mxu1  ;;  %v696_v46 = vmul.f32 %v1549_v3, %v561_v44  ;;  %v1318_v47 = vpop.f32.mrb[2].mxu0 }
  0xf2   : > { %v736_v48 = vadd.f32 %v1554_v14, %v698_v43  ;;  %v714_v49 = vmul.f32 %v1333_v45, %v1549_v3  ;;  %v625_v50 = vpop.f32.mrb[1].mxu1  ;;  %v699_v51 = vmul.f32 %v1318_v47, %v1549_v3  ;;  %v564_v52 = vpop.f32.mrb[3].mxu0 }
  0xf3   : > { %v734_v53 = vadd.f32 %v1554_v14, %v696_v46  ;;  %v712_v54 = vmul.f32 %v1549_v3, %v625_v50  ;;  %v1334_v55 = vpop.f32.mrb[2].mxu1  ;;  %v697_v56 = vmul.f32 %v1549_v3, %v564_v52 }
  0xf4   : > { %v752_v57 = vadd.f32 %v1554_v14, %v714_v49  ;;  %v737_v58 = vadd.f32 %v1554_v14, %v699_v51  ;;  %v715_v59 = vmul.f32 %v1334_v55, %v1549_v3  ;;  %v628_v60 = vpop.f32.mrb[3].mxu1  ;;  %v768_v0 = vmax.f32 %v736_v48, 0.0 }
  0xf5   : > { %v750_v61 = vadd.f32 %v1554_v14, %v712_v54  ;;  %v735_v62 = vadd.f32 %v1554_v14, %v697_v56  ;;  %v713_v63 = vmul.f32 %v1549_v3, %v628_v60  ;;  %v766_v4 = vmax.f32 %v734_v53, 0.0 }
  0xf6   : > { %v769_v1 = vmax.f32 %v737_v58, 0.0  ;;  %v753_v2 = vadd.f32 %v1554_v14, %v715_v59  ;;  %v784_v7 = vmax.f32 %v752_v57, 0.0 }
  0xf7   : > { %v767_v5 = vmax.f32 %v735_v62, 0.0  ;;  %v751_v6 = vadd.f32 %v1554_v14, %v713_v63  ;;  %v782_v10 = vmax.f32 %v750_v61, 0.0 }
  0xf8   : > { %v1185_v8 = vpack.c.bf16 %v769_v1, %v768_v0  ;;  %v785_v9 = vmax.f32 %v753_v2, 0.0 }
  0xf9   : > { %v1180_v11 = vpack.c.bf16 %v767_v5, %v766_v4  ;;  %v783_v12 = vmax.f32 %v751_v6, 0.0  ;;  %v1321_v13 = vpop.f32.mrb[4].mxu0 }
  0xfa   : > { %1272 = vst [vmem:[%s1576_s23 + $0x8] sm:$0xff] %v1185_v8   ;;  %v1225_v15 = vpack.c.bf16 %v785_v9, %v784_v7  ;;  %v702_v16 = vmul.f32 %v1321_v13, %v1549_v3  ;;  %v577_v17 = vpop.f32.mrb[5].mxu0 }
  0xfb   : > { %1181 = vst [vmem:[%s1576_s23] sm:$0xff] %v1180_v11   ;;  %v1220_v18 = vpack.c.bf16 %v783_v12, %v782_v10  ;;  %v1337_v19 = vpop.f32.mrb[4].mxu1  ;;  %v700_v20 = vmul.f32 %v1549_v3, %v577_v17  ;;  %v1322_v21 = vpop.f32.mrb[6].mxu0 }
  0xfc   : > { %1280 = vst [vmem:[%s1576_s23 + $0x48] sm:$0xff] %v1225_v15   ;;  %v740_v22 = vadd.f32 %v1554_v14, %v702_v16  ;;  %v718_v23 = vmul.f32 %v1337_v19, %v1549_v3  ;;  %v641_v24 = vpop.f32.mrb[5].mxu1  ;;  %v703_v25 = vmul.f32 %v1322_v21, %v1549_v3  ;;  %v580_v26 = vpop.f32.mrb[7].mxu0 }
  0xfd   : > { %1279 = vst [vmem:[%s1576_s23 + $0x40] sm:$0xff] %v1220_v18   ;;  %v738_v27 = vadd.f32 %v1554_v14, %v700_v20  ;;  %v716_v28 = vmul.f32 %v1549_v3, %v641_v24  ;;  %v1338_v29 = vpop.f32.mrb[6].mxu1  ;;  %v701_v30 = vmul.f32 %v1549_v3, %v580_v26 }
  0xfe   : > { %v756_v31 = vadd.f32 %v1554_v14, %v718_v23  ;;  %v741_v32 = vadd.f32 %v1554_v14, %v703_v25  ;;  %v719_v33 = vmul.f32 %v1338_v29, %v1549_v3  ;;  %v644_v34 = vpop.f32.mrb[7].mxu1  ;;  %v772_v38 = vmax.f32 %v740_v22, 0.0 }
  0xff   : > { %v754_v35 = vadd.f32 %v1554_v14, %v716_v28  ;;  %v739_v36 = vadd.f32 %v1554_v14, %v701_v30  ;;  %v717_v37 = vmul.f32 %v1549_v3, %v644_v34  ;;  %v770_v41 = vmax.f32 %v738_v27, 0.0 }
 0x100   : > { %v773_v39 = vmax.f32 %v741_v32, 0.0  ;;  %v757_v40 = vadd.f32 %v1554_v14, %v719_v33  ;;  %v788_v44 = vmax.f32 %v756_v31, 0.0 }
 0x101   : > { %v771_v42 = vmax.f32 %v739_v36, 0.0  ;;  %v755_v43 = vadd.f32 %v1554_v14, %v717_v37  ;;  %v786_v48 = vmax.f32 %v754_v35, 0.0 }
 0x102   : > { %v1195_v45 = vpack.c.bf16 %v773_v39, %v772_v38  ;;  %v789_v46 = vmax.f32 %v757_v40, 0.0  ;;  %v1325_v47 = vpop.f32.mrb[8].mxu0 }
 0x103   : > { %v1190_v49 = vpack.c.bf16 %v771_v42, %v770_v41  ;;  %v787_v50 = vmax.f32 %v755_v43, 0.0  ;;  %v706_v51 = vmul.f32 %v1325_v47, %v1549_v3  ;;  %v593_v52 = vpop.f32.mrb[9].mxu0 }
 0x104   : > { %1274 = vst [vmem:[%s1576_s23 + $0x18] sm:$0xff] %v1195_v45   ;;  %v1235_v53 = vpack.c.bf16 %v789_v46, %v788_v44  ;;  %v1341_v54 = vpop.f32.mrb[8].mxu1  ;;  %v704_v55 = vmul.f32 %v1549_v3, %v593_v52  ;;  %v1326_v56 = vpop.f32.mrb[10].mxu0 }
 0x105   : > { %1273 = vst [vmem:[%s1576_s23 + $0x10] sm:$0xff] %v1190_v49   ;;  %v1230_v57 = vpack.c.bf16 %v787_v50, %v786_v48  ;;  %v744_v58 = vadd.f32 %v1554_v14, %v706_v51  ;;  %v722_v59 = vmul.f32 %v1341_v54, %v1549_v3  ;;  %v657_v60 = vpop.f32.mrb[9].mxu1  ;;  %v707_v61 = vmul.f32 %v1326_v56, %v1549_v3  ;;  %v596_v62 = vpop.f32.mrb[11].mxu0 }
 0x106   : > { %1282 = vst [vmem:[%s1576_s23 + $0x58] sm:$0xff] %v1235_v53   ;;  %v742_v63 = vadd.f32 %v1554_v14, %v704_v55  ;;  %v720_v0 = vmul.f32 %v1549_v3, %v657_v60  ;;  %v1342_v1 = vpop.f32.mrb[10].mxu1  ;;  %v705_v2 = vmul.f32 %v1549_v3, %v596_v62 }
 0x107   : > { %1281 = vst [vmem:[%s1576_s23 + $0x50] sm:$0xff] %v1230_v57   ;;  %v760_v4 = vadd.f32 %v1554_v14, %v722_v59  ;;  %v745_v5 = vadd.f32 %v1554_v14, %v707_v61  ;;  %v723_v6 = vmul.f32 %v1342_v1, %v1549_v3  ;;  %v660_v7 = vpop.f32.mrb[11].mxu1  ;;  %v776_v11 = vmax.f32 %v744_v58, 0.0 }
 0x108   : > { %v758_v8 = vadd.f32 %v1554_v14, %v720_v0  ;;  %v743_v9 = vadd.f32 %v1554_v14, %v705_v2  ;;  %v721_v10 = vmul.f32 %v1549_v3, %v660_v7  ;;  %v774_v15 = vmax.f32 %v742_v63, 0.0 }
 0x109   : > { %v777_v12 = vmax.f32 %v745_v5, 0.0  ;;  %v761_v13 = vadd.f32 %v1554_v14, %v723_v6  ;;  %v792_v18 = vmax.f32 %v760_v4, 0.0 }
 0x10a   : > { %v775_v16 = vmax.f32 %v743_v9, 0.0  ;;  %v759_v17 = vadd.f32 %v1554_v14, %v721_v10  ;;  %v790_v22 = vmax.f32 %v758_v8, 0.0 }
 0x10b   : > { %v1205_v19 = vpack.c.bf16 %v777_v12, %v776_v11  ;;  %v793_v20 = vmax.f32 %v761_v13, 0.0  ;;  %v1329_v21 = vpop.f32.mrb[12].mxu0 }
 0x10c   : > { %v1200_v23 = vpack.c.bf16 %v775_v16, %v774_v15  ;;  %v791_v24 = vmax.f32 %v759_v17, 0.0  ;;  %v710_v25 = vmul.f32 %v1329_v21, %v1549_v3  ;;  %v609_v26 = vpop.f32.mrb[13].mxu0 }
 0x10d   : > { %1276 = vst [vmem:[%s1576_s23 + $0x28] sm:$0xff] %v1205_v19   ;;  %v1245_v27 = vpack.c.bf16 %v793_v20, %v792_v18  ;;  %v1345_v28 = vpop.f32.mrb[12].mxu1  ;;  %v708_v29 = vmul.f32 %v1549_v3, %v609_v26  ;;  %v1330_v30 = vpop.f32.mrb[14].mxu0 }
 0x10e   : > { %1275 = vst [vmem:[%s1576_s23 + $0x20] sm:$0xff] %v1200_v23   ;;  %v1240_v31 = vpack.c.bf16 %v791_v24, %v790_v22  ;;  %v748_v32 = vadd.f32 %v1554_v14, %v710_v25  ;;  %v726_v33 = vmul.f32 %v1345_v28, %v1549_v3  ;;  %v673_v34 = vpop.f32.mrb[13].mxu1  ;;  %v711_v35 = vmul.f32 %v1330_v30, %v1549_v3  ;;  %v612_v36 = vpop.f32.mrb[15].mxu0 }
 0x10f   : > { %1284 = vst [vmem:[%s1576_s23 + $0x68] sm:$0xff] %v1245_v27   ;;  %v746_v37 = vadd.f32 %v1554_v14, %v708_v29  ;;  %v724_v38 = vmul.f32 %v1549_v3, %v673_v34  ;;  %v1346_v39 = vpop.f32.mrb[14].mxu1  ;;  %v709_v40 = vmul.f32 %v1549_v3, %v612_v36 }
 0x110   : > { %1283 = vst [vmem:[%s1576_s23 + $0x60] sm:$0xff] %v1240_v31   ;;  %v764_v41 = vadd.f32 %v1554_v14, %v726_v33  ;;  %v749_v42 = vadd.f32 %v1554_v14, %v711_v35  ;;  %v727_v43 = vmul.f32 %v1346_v39, %v1549_v3  ;;  %v676_v44 = vpop.f32.mrb[15].mxu1  ;;  %v780_v48 = vmax.f32 %v748_v32, 0.0 }
 0x111   : > { %v762_v45 = vadd.f32 %v1554_v14, %v724_v38  ;;  %v747_v46 = vadd.f32 %v1554_v14, %v709_v40  ;;  %v725_v47 = vmul.f32 %v1549_v3, %v676_v44  ;;  %v778_v51 = vmax.f32 %v746_v37, 0.0 }
 0x112   : > { %v781_v49 = vmax.f32 %v749_v42, 0.0  ;;  %v765_v50 = vadd.f32 %v1554_v14, %v727_v43  ;;  %v796_v54 = vmax.f32 %v764_v41, 0.0 }
 0x113   : > { %v779_v52 = vmax.f32 %v747_v46, 0.0  ;;  %v763_v53 = vadd.f32 %v1554_v14, %v725_v47  ;;  %v794_v57 = vmax.f32 %v762_v45, 0.0 }
 0x114   : > { %v1215_v55 = vpack.c.bf16 %v781_v49, %v780_v48  ;;  %v797_v56 = vmax.f32 %v765_v50, 0.0 }
 0x115   : > { %v1210_v58 = vpack.c.bf16 %v779_v52, %v778_v51  ;;  %v795_v59 = vmax.f32 %v763_v53, 0.0 }
 0x116   : > { %1278 = vst [vmem:[%s1576_s23 + $0x38] sm:$0xff] %v1215_v55   ;;  %v1255_v60 = vpack.c.bf16 %v797_v56, %v796_v54 }
 0x117   : > { %1277 = vst [vmem:[%s1576_s23 + $0x30] sm:$0xff] %v1210_v58   ;;  %v1250_v3 = vpack.c.bf16 %v795_v59, %v794_v57 }
 0x118   : > { %1286 = vst [vmem:[%s1576_s23 + $0x78] sm:$0xff] %v1255_v60  }
 0x119   : > { %1285 = vst [vmem:[%s1576_s23 + $0x70] sm:$0xff] %v1250_v3  }
 0x11a PF: > { %s16_s21 = sadd.s32 1, %s1373_s21  }
 0x11b   : > { %p13_p4 = scmp.ge.s32.totalorder %s16_s21, 4  }
 0x11d   :  { %15 = sbr.rel (!%p13_p4) target bundleno = 1 (0x1), region = 74 }

// kernel: basenet_forward.14
= control target key start
LH: loop header
LB: loop body
LE: loop exit
PB: predicated region body
PF: predicated region fallthrough
CT: control target
= control target key end

     0   :  { %s1784_s24 = smov 0   ;;  %s2106_s0 = inlined_call_operand.vmem [shape: bf16[512,64], index: 0, kind: input, shape index: {}]   ;;  %s2107_s1 = inlined_call_operand.vmem [shape: bf16[512,32], index: 1, kind: input, shape index: {}]   ;;  %s2108_s2 = inlined_call_operand.vmem [shape: f32[1,96], index: 2, kind: input, shape index: {}]   ;;  %s2109_s3 = inlined_call_operand.vmem [shape: f32[1,96], index: 3, kind: input, shape index: {}]   ;;  %s2110_s4 = inlined_call_operand.vmem [shape: bf16[96,128], index: 4, kind: input, shape index: {}]   ;;  %s2111_s5 = inlined_call_operand.vmem [shape: f32[1,128], index: 5, kind: input, shape index: {}]   ;;  %s2112_s6 = inlined_call_operand.vmem [shape: f32[1,128], index: 6, kind: input, shape index: {}]   ;;  %s2113_s7 = inlined_call_operand.vmem [shape: bf16[512,128], index: 7, kind: output, shape index: {}]  }
   0x1 LB: > { %s1380_s25 = sadd.s32 4294967295, %s1741_s24   ;;  %p1384_p0 = scmp.ge.s32.totalorder %s1741_s24, 1  ;;  %s1741_s24 = sphi %s1784_s24, %s17_s24  }
   0x2   : > { %p249_p1 = scmp.lt.s32.totalorder %s1741_s24, 3 }
   0x4   : > { %p250_p2 = pnand %p1384_p0, %p249_p1 }
   0x5   : > { %s1385_s26 = sshll.u32 (!%p250_p2), %s1380_s25, 5  ;;  %v1713_v0 = vld [vmem:[%s2110_s4] sm:$0xff] (!%p250_p2)   ;;  %v1714_v1 = vld [vmem:[%s2110_s4 + $0x8] sm:$0xff] (!%p250_p2)   ;;  %v1715_v2 = vld [vmem:[%s2110_s4 + $0x10] sm:$0xff] (!%p250_p2)   ;;  %s1743_s16 = smov (!%p250_p2), 64   ;;  %vm561_vm0 = vcmask (!%p250_p2), 523264  }
   0x6   : > { %253 = sbr.rel (%p250_p2) target bundleno = 406 (0x196), region = 48  ;;  %p287_p3 = scmp.lt.s32.totalorder (!%p250_p2), %s1385_s26, 63  ;;  %1632 = vmatprep.subr.bf16.mxu0 (!%p250_p2), %v1713_v0  ;;  %1676 = vmatprep.subr.bf16.mxu1 (!%p250_p2), %v1713_v0  ;;  %v1717_v4 = vld [vmem:[%s2110_s4 + $0x18] sm:$0xff] (!%p250_p2)   ;;  %v1720_v8 = vld [vmem:[%s2110_s4 + $0x20] sm:$0xff] (!%p250_p2)   ;;  %v1723_v11 = vld [vmem:[%s2110_s4 + $0x28] sm:$0xff] (!%p250_p2)   ;;  %vm832_vm1 = vcmask (!%p250_p2), 785408  }
   0x7   : > { %1633 = vmatpush3.bf16.msra.mxu0 (!%p250_p2), %v1713_v0  ;;  %1682 = vmatpush3.bf16.msra.mxu1 (!%p250_p2), %v1713_v0  ;;  %v1861_v25 = vld [vmem:[%s2108_s2] ss:$0 sm:$0xff] (!%p250_p2) }
   0x8   : > { %1634 = vmatprep.subr.bf16.mxu0 (!%p250_p2), %v1714_v1  ;;  %1677 = vmatprep.subr.bf16.mxu1 (!%p250_p2), %v1714_v1  ;;  %v1870_v33 = vld [vmem:[%s2109_s3] ss:$0 sm:$0xff] (!%p250_p2) }
   0xb   : > { %1635 = vmatpush3.bf16.msra.mxu0 (!%p250_p2), %v1714_v1  ;;  %1683 = vmatpush3.bf16.msra.mxu1 (!%p250_p2), %v1714_v1 }
   0xc   : > { %1636 = vmatprep.subr.bf16.mxu0 (!%p250_p2), %v1715_v2  ;;  %1678 = vmatprep.subr.bf16.mxu1 (!%p250_p2), %v1715_v2 }
   0xd   : > { %s2115_s26 = smov (!%p287_p3, %s1385_s26), 63 }
   0xe   : > { %s1798_s8 = sshll.u32 %s2115_s26, 2 }
   0xf   : > { %s1807_s13 = scalar_lea.vmem %s2107_s1, %s1798_s8  ;;  %1637 = vmatpush3.bf16.msra.mxu0 %v1715_v2  ;;  %1684 = vmatpush3.bf16.msra.mxu1 %v1715_v2  ;;  %s1838_s23 = scalar_lea.vmem %s2106_s0, %s1798_s8 }
  0x10   : > { %v1697_v3 = vld [vmem:[%s1807_s13] sm:$0xff]   ;;  %v1698_v5 = vld [vmem:[%s1807_s13 + $0x8] sm:$0xff]   ;;  %v1701_v9 = vld [vmem:[%s1807_s13 + $0x10] sm:$0xff]   ;;  %1638 = vmatprep.subr.bf16.mxu0 %v1717_v4  ;;  %1679 = vmatprep.subr.bf16.mxu1 %v1717_v4 }
  0x11   : > { %529 = vrot.lane.b32.xlu0 %v1697_v3, %s1743_s16  ;;  %v1699_v6 = vld [vmem:[%s1807_s13 + $0x40] sm:$0xff]   ;;  %531 = vrot.lane.b32.xlu1 %v1698_v5, %s1743_s16  ;;  %v1700_v7 = vld [vmem:[%s1807_s13 + $0x48] sm:$0xff]  }
  0x12   : > { %v1702_v10 = vld [vmem:[%s1807_s13 + $0x50] sm:$0xff]   ;;  %v1703_v12 = vld [vmem:[%s1807_s13 + $0x18] sm:$0xff]   ;;  %v1705_v14 = vld [vmem:[%s1807_s13 + $0x20] sm:$0xff]  }
  0x13   : > { %1639 = vmatpush3.bf16.msra.mxu0 %v1717_v4  ;;  %1685 = vmatpush3.bf16.msra.mxu1 %v1717_v4  ;;  %v1704_v13 = vld [vmem:[%s1807_s13 + $0x58] sm:$0xff]   ;;  %v1706_v15 = vld [vmem:[%s1807_s13 + $0x60] sm:$0xff]   ;;  %v1707_v16 = vld [vmem:[%s1807_s13 + $0x28] sm:$0xff]  }
  0x14   : > { %1640 = vmatprep.subr.bf16.mxu0 %v1720_v8  ;;  %1680 = vmatprep.subr.bf16.mxu1 %v1720_v8  ;;  %v1708_v17 = vld [vmem:[%s1807_s13 + $0x68] sm:$0xff]   ;;  %v1709_v18 = vld [vmem:[%s1807_s13 + $0x30] sm:$0xff]   ;;  %v1711_v20 = vld [vmem:[%s1807_s13 + $0x38] sm:$0xff]  }
  0x15   : > { %545 = vrot.lane.b32.xlu0 %v1699_v6, %s1743_s16  ;;  %547 = vrot.lane.b32.xlu1 %v1700_v7, %s1743_s16  ;;  %v1710_v19 = vld [vmem:[%s1807_s13 + $0x70] sm:$0xff]   ;;  %v1712_v21 = vld [vmem:[%s1807_s13 + $0x78] sm:$0xff]   ;;  %s2029_s13 = scalar_lea.vmem %s2113_s7, %s1798_s8 }
  0x16   : > { %v1716_v22 = vld [vmem:[%s1838_s23] sm:$0xff]   ;;  %v1718_v23 = vld [vmem:[%s1838_s23 + $0x8] sm:$0xff]   ;;  %v1722_v46 = vld [vmem:[%s1838_s23 + $0x10] sm:$0xff]  }
  0x17   : > { %1641 = vmatpush3.bf16.msra.mxu0 %v1720_v8  ;;  %1686 = vmatpush3.bf16.msra.mxu1 %v1720_v8  ;;  %v1719_v28 = vld [vmem:[%s1838_s23 + $0x40] sm:$0xff]   ;;  %v1721_v32 = vld [vmem:[%s1838_s23 + $0x48] sm:$0xff]   ;;  %v1724_v47 = vld [vmem:[%s1838_s23 + $0x50] sm:$0xff]  }
  0x18   : > { %1642 = vmatprep.subr.bf16.mxu0 %v1723_v11  ;;  %1681 = vmatprep.subr.bf16.mxu1 %v1723_v11  ;;  %v1725_v1 = vld [vmem:[%s1838_s23 + $0x18] sm:$0xff]  }
  0x19   : > { %533 = vrot.lane.b32.xlu0 %v1701_v9, %s1743_s16  ;;  %549 = vrot.lane.b32.xlu1 %v1702_v10, %s1743_s16  ;;  %v1726_v3 = vld [vmem:[%s1838_s23 + $0x58] sm:$0xff]  }
  0x1b   : > { %1643 = vmatpush3.bf16.msra.mxu0 %v1723_v11  ;;  %1687 = vmatpush3.bf16.msra.mxu1 %v1723_v11 }
  0x1d   : > { %535 = vrot.lane.b32.xlu0 %v1703_v12, %s1743_s16  ;;  %551 = vrot.lane.b32.xlu1 %v1704_v13, %s1743_s16 }
  0x21   : > { %537 = vrot.lane.b32.xlu0 %v1705_v14, %s1743_s16  ;;  %553 = vrot.lane.b32.xlu1 %v1706_v15, %s1743_s16 }
  0x25   : > { %539 = vrot.lane.b32.xlu0 %v1707_v16, %s1743_s16  ;;  %555 = vrot.lane.b32.xlu1 %v1708_v17, %s1743_s16 }
  0x29   : > { %541 = vrot.lane.b32.xlu0 %v1709_v18, %s1743_s16  ;;  %557 = vrot.lane.b32.xlu1 %v1710_v19, %s1743_s16 }
  0x2d   : > { %543 = vrot.lane.b32.xlu0 %v1711_v20, %s1743_s16  ;;  %559 = vrot.lane.b32.xlu1 %v1712_v21, %s1743_s16 }
  0x83   : > { %v530_v24 = vpop.permute.xlu0 %529  ;;  %v532_v27 = vpop.permute.xlu1 %531 }
  0x84   : > { %v564_v26 = vsel %vm561_vm0, %v1716_v22, %v530_v24  ;;  %v568_v31 = vsel %vm561_vm0, %v1718_v23, %v532_v27 }
  0x85   : > { %v628_v29 = vunpack.c.l.bf16 %v564_v26  ;;  %v629_v30 = vunpack.c.h.bf16 %v564_v26  ;;  %v630_v34 = vunpack.c.l.bf16 %v568_v31  ;;  %v631_v35 = vunpack.c.h.bf16 %v568_v31 }
  0x87   : > { %v666_v36 = vmul.f32 %v1861_v25, %v628_v29  ;;  %v667_v37 = vmul.f32 %v1861_v25, %v629_v30  ;;  %v546_v38 = vpop.permute.xlu0 %545  ;;  %v668_v39 = vmul.f32 %v1861_v25, %v630_v34  ;;  %v669_v40 = vmul.f32 %v1861_v25, %v631_v35  ;;  %v548_v42 = vpop.permute.xlu1 %547 }
  0x88   : > { %v596_v41 = vsel %vm561_vm0, %v1719_v28, %v546_v38  ;;  %v600_v45 = vsel %vm561_vm0, %v1721_v32, %v548_v42  ;;  %v1727_v28 = vld [vmem:[%s1838_s23 + $0x20] sm:$0xff]  }
  0x89   : > { %v644_v43 = vunpack.c.l.bf16 %v596_v41  ;;  %v645_v44 = vunpack.c.h.bf16 %v596_v41  ;;  %v704_v48 = vadd.f32 %v1870_v33, %v666_v36  ;;  %v706_v49 = vadd.f32 %v1870_v33, %v668_v39 }
  0x8a   : > { %v707_v50 = vadd.f32 %v1870_v33, %v669_v40  ;;  %v646_v51 = vunpack.c.l.bf16 %v600_v45  ;;  %v647_v52 = vunpack.c.h.bf16 %v600_v45  ;;  %v705_v56 = vadd.f32 %v1870_v33, %v667_v37 }
  0x8b   : > { %v682_v53 = vmul.f32 %v1861_v25, %v644_v43  ;;  %v683_v54 = vmul.f32 %v1861_v25, %v645_v44  ;;  %v534_v55 = vpop.permute.xlu0 %533  ;;  %v736_v57 = vmax.f32 %v704_v48, 0.0  ;;  %v738_v58 = vmax.f32 %v706_v49, 0.0  ;;  %v550_v62 = vpop.permute.xlu1 %549  ;;  %v1728_v48 = vld [vmem:[%s1838_s23 + $0x60] sm:$0xff]   ;;  %v1729_v49 = vld [vmem:[%s1838_s23 + $0x28] sm:$0xff]  }
  0x8c   : > { %v739_v59 = vmax.f32 %v707_v50, 0.0  ;;  %v684_v60 = vmul.f32 %v1861_v25, %v646_v51  ;;  %v685_v61 = vmul.f32 %v1861_v25, %v647_v52  ;;  %v572_v63 = vsel %vm561_vm0, %v1722_v46, %v534_v55 }
  0x8d   : > { %v604_v0 = vsel %vm561_vm0, %v1724_v47, %v550_v62  ;;  %v737_v2 = vmax.f32 %v705_v56, 0.0  ;;  %v720_v4 = vadd.f32 %v1870_v33, %v682_v53  ;;  %v632_v7 = vunpack.c.l.bf16 %v572_v63 }
  0x8e   : > { %v1894_v5 = vadd.f32 %v1870_v33, %v684_v60  ;;  %v723_v6 = vadd.f32 %v1870_v33, %v685_v61  ;;  %v633_v8 = vunpack.c.h.bf16 %v572_v63  ;;  %v648_v9 = vunpack.c.l.bf16 %v604_v0 }
  0x8f   : > { %v649_v10 = vunpack.c.h.bf16 %v604_v0  ;;  %v536_v11 = vpop.permute.xlu0 %535  ;;  %v768_v12 = vpack.c.bf16 %v737_v2, %v736_v57  ;;  %v769_v13 = vpack.c.bf16 %v739_v59, %v738_v58  ;;  %v670_v16 = vmul.f32 %v1861_v25, %v632_v7  ;;  %v552_v18 = vpop.permute.xlu1 %551 }
  0x90   : > { %v754_v14 = vmax.f32 %v1894_v5, 0.0  ;;  %v755_v15 = vmax.f32 %v723_v6, 0.0  ;;  %v671_v17 = vmul.f32 %v1861_v25, %v633_v8  ;;  %v686_v19 = vmul.f32 %v1861_v25, %v648_v9  ;;  %v1731_v9 = vld [vmem:[%s1838_s23 + $0x30] sm:$0xff]  }
  0x91   : > { %v687_v20 = vmul.f32 %v1861_v25, %v649_v10  ;;  %v576_v21 = vsel %vm561_vm0, %v1725_v1, %v536_v11  ;;  %1644 = vmatprep.mubr.msk.bf16.mxu0 %vm832_vm1, %v768_v12  ;;  %v608_v22 = vsel %vm561_vm0, %v1726_v3, %v552_v18  ;;  %v708_v23 = vadd.f32 %v1870_v33, %v670_v16 }
  0x92   : > { %v709_v24 = vadd.f32 %v1870_v33, %v671_v17  ;;  %v634_v26 = vunpack.c.l.bf16 %v576_v21  ;;  %v635_v27 = vunpack.c.h.bf16 %v576_v21  ;;  %1645 = vmatmul.mubr.msk.bf16.vlgmr.msra.gmra.mrb[0].mxu0 %vm832_vm1, %v769_v13  ;;  %v1910_v29 = vadd.f32 %v1870_v33, %v686_v19 }
  0x93   : > { %v1913_v30 = vadd.f32 %v1870_v33, %v687_v20  ;;  %v650_v31 = vunpack.c.l.bf16 %v608_v22  ;;  %v651_v32 = vunpack.c.h.bf16 %v608_v22  ;;  %v538_v34 = vpop.permute.xlu0 %537  ;;  %v740_v35 = vmax.f32 %v708_v23, 0.0  ;;  %v554_v39 = vpop.permute.xlu1 %553 }
  0x94   : > { %v741_v36 = vmax.f32 %v709_v24, 0.0  ;;  %v672_v37 = vmul.f32 %v1861_v25, %v634_v26  ;;  %v673_v38 = vmul.f32 %v1861_v25, %v635_v27  ;;  %v756_v40 = vmax.f32 %v1910_v29, 0.0  ;;  %v1732_v29 = vld [vmem:[%s1838_s23 + $0x70] sm:$0xff]  }
  0x95   : > { %v757_v41 = vmax.f32 %v1913_v30, 0.0  ;;  %v688_v42 = vmul.f32 %v1861_v25, %v650_v31  ;;  %v689_v43 = vmul.f32 %v1861_v25, %v651_v32  ;;  %v580_v46 = vsel %vm561_vm0, %v1727_v28, %v538_v34 }
  0x96   : > { %v1922_v44 = vadd.f32 %v1870_v33, %v672_v37  ;;  %v1925_v45 = vadd.f32 %v1870_v33, %v673_v38  ;;  %v721_v47 = vadd.f32 %v1870_v33, %v683_v54  ;;  %v636_v52 = vunpack.c.l.bf16 %v580_v46  ;;  %v1730_v54 = vld [vmem:[%s1838_s23 + $0x68] sm:$0xff]  }
  0x97   : > { %v1932_v50 = vadd.f32 %v1870_v33, %v688_v42  ;;  %v1935_v51 = vadd.f32 %v1870_v33, %v689_v43  ;;  %v637_v53 = vunpack.c.h.bf16 %v580_v46  ;;  %v540_v55 = vpop.permute.xlu0 %539  ;;  %v752_v58 = vmax.f32 %v720_v4, 0.0  ;;  %v556_v60 = vpop.permute.xlu1 %555 }
  0x98   : > { %v742_v56 = vmax.f32 %v1922_v44, 0.0  ;;  %v743_v57 = vmax.f32 %v1925_v45, 0.0  ;;  %v753_v59 = vmax.f32 %v721_v47, 0.0  ;;  %v674_v63 = vmul.f32 %v1861_v25, %v636_v52 }
  0x99   : > { %v758_v61 = vmax.f32 %v1932_v50, 0.0  ;;  %v759_v62 = vmax.f32 %v1935_v51, 0.0  ;;  %v675_v0 = vmul.f32 %v1861_v25, %v637_v53  ;;  %v612_v2 = vsel %vm561_vm0, %v1728_v48, %v554_v39  ;;  %v1733_v39 = vld [vmem:[%s1838_s23 + $0x38] sm:$0xff]  }
  0x9a   : > { %v776_v1 = vpack.c.bf16 %v753_v59, %v752_v58  ;;  %v777_v3 = vpack.c.bf16 %v755_v15, %v754_v14  ;;  %v584_v5 = vsel %vm561_vm0, %v1729_v49, %v540_v55  ;;  %v1947_v4 = vadd.f32 %v1870_v33, %v674_v63  ;;  %v1734_v49 = vld [vmem:[%s1838_s23 + $0x78] sm:$0xff]  }
  0x9b   : > { %v1950_v6 = vadd.f32 %v1870_v33, %v675_v0  ;;  %v652_v7 = vunpack.c.l.bf16 %v612_v2  ;;  %v653_v8 = vunpack.c.h.bf16 %v612_v2  ;;  %v638_v10 = vunpack.c.l.bf16 %v584_v5  ;;  %v542_v16 = vpop.permute.xlu0 %541  ;;  %v558_v23 = vpop.permute.xlu1 %557 }
  0x9c   : > { %1660 = vmatprep.mubr.msk.bf16.mxu1 %vm832_vm1, %v776_v1  ;;  %v639_v11 = vunpack.c.h.bf16 %v584_v5  ;;  %v616_v12 = vsel %vm561_vm0, %v1730_v54, %v556_v60  ;;  %v770_v13 = vpack.c.bf16 %v741_v36, %v740_v35  ;;  %v744_v14 = vmax.f32 %v1947_v4, 0.0 }
  0x9d   : > { %v745_v15 = vmax.f32 %v1950_v6, 0.0  ;;  %v690_v17 = vmul.f32 %v1861_v25, %v652_v7  ;;  %v691_v18 = vmul.f32 %v1861_v25, %v653_v8  ;;  %1661 = vmatmul.mubr.msk.bf16.vlgmr.msra.gmra.mrb[0].mxu1 %vm832_vm1, %v777_v3  ;;  %v676_v19 = vmul.f32 %v1861_v25, %v638_v10 }
  0x9e   : > { %v677_v20 = vmul.f32 %v1861_v25, %v639_v11  ;;  %v654_v21 = vunpack.c.l.bf16 %v616_v12  ;;  %v655_v22 = vunpack.c.h.bf16 %v616_v12  ;;  %1648 = vmatprep.mubr.msk.bf16.mxu0 %vm832_vm1, %v770_v13  ;;  %v778_v27 = vpack.c.bf16 %v757_v41, %v756_v40 }
  0x9f   : > { %v728_v24 = vadd.f32 %v1870_v33, %v690_v17  ;;  %v729_v26 = vadd.f32 %v1870_v33, %v691_v18  ;;  %v588_v28 = vsel %vm561_vm0, %v1731_v9, %v542_v16  ;;  %v714_v30 = vadd.f32 %v1870_v33, %v676_v19  ;;  %v544_v44 = vpop.permute.xlu0 %543  ;;  %v560_v58 = vpop.permute.xlu1 %559 }
  0xa0   : > { %v715_v31 = vadd.f32 %v1870_v33, %v677_v20  ;;  %v692_v32 = vmul.f32 %v1861_v25, %v654_v21  ;;  %v693_v34 = vmul.f32 %v1861_v25, %v655_v22  ;;  %1664 = vmatprep.mubr.msk.bf16.mxu1 %vm832_vm1, %v778_v27  ;;  %v640_v37 = vunpack.c.l.bf16 %v588_v28 }
  0xa1   : > { %v760_v35 = vmax.f32 %v728_v24, 0.0  ;;  %v761_v36 = vmax.f32 %v729_v26, 0.0  ;;  %v641_v38 = vunpack.c.h.bf16 %v588_v28  ;;  %v746_v40 = vmax.f32 %v714_v30, 0.0 }
  0xa2   : > { %v747_v41 = vmax.f32 %v715_v31, 0.0  ;;  %v730_v42 = vadd.f32 %v1870_v33, %v692_v32  ;;  %v731_v43 = vadd.f32 %v1870_v33, %v693_v34  ;;  %v678_v45 = vmul.f32 %v1861_v25, %v640_v37 }
  0xa3   : > { %v679_v46 = vmul.f32 %v1861_v25, %v641_v38  ;;  %v771_v47 = vpack.c.bf16 %v743_v57, %v742_v56  ;;  %v620_v48 = vsel %vm561_vm0, %v1732_v29, %v558_v23  ;;  %v779_v54 = vpack.c.bf16 %v759_v62, %v758_v61  ;;  %v2015_v29 = vld [vmem:[%s2112_s6] ss:$0 sm:$0xff] }
  0xa4   : > { %v762_v51 = vmax.f32 %v730_v42, 0.0  ;;  %v763_v52 = vmax.f32 %v731_v43, 0.0  ;;  %v656_v53 = vunpack.c.l.bf16 %v620_v48  ;;  %v657_v55 = vunpack.c.h.bf16 %v620_v48 }
  0xa5   : > { %v716_v59 = vadd.f32 %v1870_v33, %v678_v45  ;;  %v717_v60 = vadd.f32 %v1870_v33, %v679_v46  ;;  %1649 = vmatmul.mubr.msk.bf16.gmra.mrb[4].mxu0 %vm832_vm1, %v771_v47  ;;  %v592_v63 = vsel %vm561_vm0, %v1733_v39, %v544_v44  ;;  %1665 = vmatmul.mubr.msk.bf16.gmra.mrb[4].mxu1 %vm832_vm1, %v779_v54 }
  0xa6   : > { %v694_v56 = vmul.f32 %v1861_v25, %v656_v53  ;;  %v695_v57 = vmul.f32 %v1861_v25, %v657_v55  ;;  %v642_v0 = vunpack.c.l.bf16 %v592_v63  ;;  %v643_v1 = vunpack.c.h.bf16 %v592_v63 }
  0xa7   : > { %v748_v2 = vmax.f32 %v716_v59, 0.0  ;;  %v749_v3 = vmax.f32 %v717_v60, 0.0  ;;  %v624_v5 = vsel %vm561_vm0, %v1734_v49, %v560_v58  ;;  %v772_v4 = vpack.c.bf16 %v745_v15, %v744_v14 }
  0xa8   : > { %v732_v6 = vadd.f32 %v1870_v33, %v694_v56  ;;  %v733_v50 = vadd.f32 %v1870_v33, %v695_v57  ;;  %v680_v61 = vmul.f32 %v1861_v25, %v642_v0  ;;  %v681_v62 = vmul.f32 %v1861_v25, %v643_v1 }
  0xa9   : > { %v658_v7 = vunpack.c.l.bf16 %v624_v5  ;;  %v659_v8 = vunpack.c.h.bf16 %v624_v5  ;;  %1652 = vmatprep.mubr.msk.bf16.mxu0 %vm832_vm1, %v772_v4  ;;  %v780_v9 = vpack.c.bf16 %v761_v36, %v760_v35  ;;  %v773_v10 = vpack.c.bf16 %v747_v41, %v746_v40 }
  0xaa   : > { %v764_v11 = vmax.f32 %v732_v6, 0.0  ;;  %v765_v12 = vmax.f32 %v733_v50, 0.0  ;;  %v718_v13 = vadd.f32 %v1870_v33, %v680_v61  ;;  %v719_v16 = vadd.f32 %v1870_v33, %v681_v62 }
  0xab   : > { %v696_v14 = vmul.f32 %v1861_v25, %v658_v7  ;;  %v697_v15 = vmul.f32 %v1861_v25, %v659_v8  ;;  %1668 = vmatprep.mubr.msk.bf16.mxu1 %vm832_vm1, %v780_v9  ;;  %v781_v17 = vpack.c.bf16 %v763_v52, %v762_v51  ;;  %v774_v18 = vpack.c.bf16 %v749_v3, %v748_v2 }
  0xac   : > { %v782_v19 = vpack.c.bf16 %v765_v12, %v764_v11  ;;  %v750_v20 = vmax.f32 %v718_v13, 0.0  ;;  %v751_v21 = vmax.f32 %v719_v16, 0.0 }
  0xad   : > { %v734_v22 = vadd.f32 %v1870_v33, %v696_v14  ;;  %v735_v23 = vadd.f32 %v1870_v33, %v697_v15  ;;  %1653 = vmatmul.mubr.msk.bf16.gmra.mrb[8].mxu0 %vm832_vm1, %v773_v10  ;;  %1669 = vmatmul.mubr.msk.bf16.gmra.mrb[8].mxu1 %vm832_vm1, %v781_v17  ;;  %v2010_v33 = vld [vmem:[%s2111_s5] ss:$0 sm:$0xff] }
  0xae   : > { %1656 = vmatprep.mubr.msk.bf16.mxu0 %vm832_vm1, %v774_v18  ;;  %1672 = vmatprep.mubr.msk.bf16.mxu1 %vm832_vm1, %v782_v19  ;;  %v775_v25 = vpack.c.bf16 %v751_v21, %v750_v20 }
  0xaf   : > { %v766_v24 = vmax.f32 %v734_v22, 0.0  ;;  %v767_v26 = vmax.f32 %v735_v23, 0.0 }
  0xb1   : > { %v783_v27 = vpack.c.bf16 %v767_v26, %v766_v24 }
  0xb5   : > { %1657 = vmatmul.mubr.msk.bf16.gmra.mrb[12].mxu0 %vm832_vm1, %v775_v25  ;;  %1673 = vmatmul.mubr.msk.bf16.gmra.mrb[12].mxu1 %vm832_vm1, %v783_v27 }
 0x165   : > { %v1646_v28 = vpop.f32.mrb[0].mxu0 }
 0x166   : > { %v1052_v30 = vmul.f32 %v1646_v28, %v2010_v33  ;;  %v915_v31 = vpop.f32.mrb[1].mxu0 }
 0x167   : > { %v1050_v32 = vmul.f32 %v2010_v33, %v915_v31  ;;  %v1647_v34 = vpop.f32.mrb[2].mxu0 }
 0x168   : > { %v1090_v35 = vadd.f32 %v2015_v29, %v1052_v30  ;;  %v1053_v36 = vmul.f32 %v1647_v34, %v2010_v33  ;;  %v918_v37 = vpop.f32.mrb[3].mxu0 }
 0x169   : > { %v1088_v38 = vadd.f32 %v2015_v29, %v1050_v32  ;;  %v1051_v39 = vmul.f32 %v2010_v33, %v918_v37 }
 0x16a   : > { %v1091_v40 = vadd.f32 %v2015_v29, %v1053_v36  ;;  %v1122_v42 = vmax.f32 %v1090_v35, 0.0 }
 0x16b   : > { %v1089_v41 = vadd.f32 %v2015_v29, %v1051_v39  ;;  %v1120_v44 = vmax.f32 %v1088_v38, 0.0 }
 0x16c   : > { %v1123_v43 = vmax.f32 %v1091_v40, 0.0 }
 0x16d   : > { %v1121_v45 = vmax.f32 %v1089_v41, 0.0 }
 0x16e   : > { %v1523_v46 = vpack.c.bf16 %v1123_v43, %v1122_v42 }
 0x16f   : > { %v1518_v47 = vpack.c.bf16 %v1121_v45, %v1120_v44 }
 0x170   : > { %1595 = vst [vmem:[%s2029_s13 + $0x8] sm:$0xff] %v1523_v46   ;;  %v1662_v48 = vpop.f32.mrb[0].mxu1 }
 0x171   : > { %1519 = vst [vmem:[%s2029_s13] sm:$0xff] %v1518_v47   ;;  %v1068_v49 = vmul.f32 %v1662_v48, %v2010_v33  ;;  %v979_v51 = vpop.f32.mrb[1].mxu1 }
 0x172   : > { %v1066_v52 = vmul.f32 %v2010_v33, %v979_v51  ;;  %v1663_v53 = vpop.f32.mrb[2].mxu1 }
 0x173   : > { %v1106_v55 = vadd.f32 %v2015_v29, %v1068_v49  ;;  %v1069_v58 = vmul.f32 %v1663_v53, %v2010_v33  ;;  %v982_v59 = vpop.f32.mrb[3].mxu1 }
 0x174   : > { %v1104_v60 = vadd.f32 %v2015_v29, %v1066_v52  ;;  %v1067_v54 = vmul.f32 %v2010_v33, %v982_v59 }
 0x175   : > { %v1107_v63 = vadd.f32 %v2015_v29, %v1069_v58  ;;  %v1138_v57 = vmax.f32 %v1106_v55, 0.0 }
 0x176   : > { %v1105_v56 = vadd.f32 %v2015_v29, %v1067_v54  ;;  %v1136_v1 = vmax.f32 %v1104_v60, 0.0 }
 0x177   : > { %v1139_v0 = vmax.f32 %v1107_v63, 0.0 }
 0x178   : > { %v1137_v2 = vmax.f32 %v1105_v56, 0.0  ;;  %v1650_v3 = vpop.f32.mrb[4].mxu0  ;;  %v1666_v62 = vpop.f32.mrb[4].mxu1 }
 0x179   : > { %v1563_v5 = vpack.c.bf16 %v1139_v0, %v1138_v57  ;;  %v1056_v4 = vmul.f32 %v1650_v3, %v2010_v33  ;;  %v931_v6 = vpop.f32.mrb[5].mxu0  ;;  %v1072_v9 = vmul.f32 %v1666_v62, %v2010_v33  ;;  %v995_v11 = vpop.f32.mrb[5].mxu1 }
 0x17a   : > { %v1558_v50 = vpack.c.bf16 %v1137_v2, %v1136_v1  ;;  %v1054_v61 = vmul.f32 %v2010_v33, %v931_v6  ;;  %v1651_v7 = vpop.f32.mrb[6].mxu0  ;;  %v1070_v16 = vmul.f32 %v2010_v33, %v995_v11  ;;  %v1667_v15 = vpop.f32.mrb[6].mxu1 }
 0x17b   : > { %1603 = vst [vmem:[%s2029_s13 + $0x48] sm:$0xff] %v1563_v5   ;;  %v1094_v8 = vadd.f32 %v2015_v29, %v1056_v4  ;;  %v1057_v10 = vmul.f32 %v1651_v7, %v2010_v33  ;;  %v934_v12 = vpop.f32.mrb[7].mxu0  ;;  %v1110_v18 = vadd.f32 %v2015_v29, %v1072_v9  ;;  %v1073_v20 = vmul.f32 %v1667_v15, %v2010_v33  ;;  %v998_v21 = vpop.f32.mrb[7].mxu1 }
 0x17c   : > { %1602 = vst [vmem:[%s2029_s13 + $0x40] sm:$0xff] %v1558_v50   ;;  %v1092_v13 = vadd.f32 %v2015_v29, %v1054_v61  ;;  %v1055_v14 = vmul.f32 %v2010_v33, %v934_v12  ;;  %v1108_v22 = vadd.f32 %v2015_v29, %v1070_v16  ;;  %v1071_v24 = vmul.f32 %v2010_v33, %v998_v21 }
 0x17d   : > { %v1126_v17 = vmax.f32 %v1094_v8, 0.0  ;;  %v1095_v19 = vadd.f32 %v2015_v29, %v1057_v10  ;;  %v1111_v25 = vadd.f32 %v2015_v29, %v1073_v20  ;;  %v1142_v32 = vmax.f32 %v1110_v18, 0.0 }
 0x17e   : > { %v1093_v23 = vadd.f32 %v2015_v29, %v1055_v14  ;;  %v1124_v27 = vmax.f32 %v1092_v13, 0.0  ;;  %v1109_v30 = vadd.f32 %v2015_v29, %v1071_v24  ;;  %v1140_v38 = vmax.f32 %v1108_v22, 0.0 }
 0x17f   : > { %v1127_v26 = vmax.f32 %v1095_v19, 0.0  ;;  %v1143_v35 = vmax.f32 %v1111_v25, 0.0 }
 0x180   : > { %v1125_v28 = vmax.f32 %v1093_v23, 0.0  ;;  %v1654_v31 = vpop.f32.mrb[8].mxu0  ;;  %v1141_v40 = vmax.f32 %v1109_v30, 0.0  ;;  %v1670_v42 = vpop.f32.mrb[8].mxu1 }
 0x181   : > { %v1533_v34 = vpack.c.bf16 %v1127_v26, %v1126_v17  ;;  %v1060_v36 = vmul.f32 %v1654_v31, %v2010_v33  ;;  %v947_v37 = vpop.f32.mrb[9].mxu0  ;;  %v1573_v44 = vpack.c.bf16 %v1143_v35, %v1142_v32  ;;  %v1076_v46 = vmul.f32 %v1670_v42, %v2010_v33  ;;  %v1011_v48 = vpop.f32.mrb[9].mxu1 }
 0x182   : > { %v1528_v39 = vpack.c.bf16 %v1125_v28, %v1124_v27  ;;  %v1058_v41 = vmul.f32 %v2010_v33, %v947_v37  ;;  %v1655_v43 = vpop.f32.mrb[10].mxu0  ;;  %v1568_v51 = vpack.c.bf16 %v1141_v40, %v1140_v38  ;;  %v1074_v53 = vmul.f32 %v2010_v33, %v1011_v48  ;;  %v1671_v58 = vpop.f32.mrb[10].mxu1 }
 0x183   : > { %1597 = vst [vmem:[%s2029_s13 + $0x18] sm:$0xff] %v1533_v34   ;;  %v1098_v45 = vadd.f32 %v2015_v29, %v1060_v36  ;;  %v1061_v47 = vmul.f32 %v1655_v43, %v2010_v33  ;;  %v950_v49 = vpop.f32.mrb[11].mxu0  ;;  %1605 = vst [vmem:[%s2029_s13 + $0x58] sm:$0xff] %v1573_v44   ;;  %v1114_v60 = vadd.f32 %v2015_v29, %v1076_v46  ;;  %v1014_v56 = vpop.f32.mrb[11].mxu1 }
 0x184   : > { %1596 = vst [vmem:[%s2029_s13 + $0x10] sm:$0xff] %v1528_v39   ;;  %v1096_v52 = vadd.f32 %v2015_v29, %v1058_v41  ;;  %v1059_v55 = vmul.f32 %v2010_v33, %v950_v49  ;;  %v1077_v63 = vmul.f32 %v1671_v58, %v2010_v33  ;;  %1604 = vst [vmem:[%s2029_s13 + $0x50] sm:$0xff] %v1568_v51  }
 0x185   : > { %v1130_v59 = vmax.f32 %v1098_v45, 0.0  ;;  %v1099_v54 = vadd.f32 %v2015_v29, %v1061_v47  ;;  %v1112_v57 = vadd.f32 %v2015_v29, %v1074_v53  ;;  %v1075_v1 = vmul.f32 %v2010_v33, %v1014_v56 }
 0x186   : > { %v1097_v0 = vadd.f32 %v2015_v29, %v1059_v55  ;;  %v1115_v3 = vadd.f32 %v2015_v29, %v1077_v63  ;;  %v1128_v5 = vmax.f32 %v1096_v52, 0.0  ;;  %v1146_v61 = vmax.f32 %v1114_v60, 0.0 }
 0x187   : > { %v1131_v2 = vmax.f32 %v1099_v54, 0.0  ;;  %v1113_v6 = vadd.f32 %v2015_v29, %v1075_v1  ;;  %v1144_v10 = vmax.f32 %v1112_v57, 0.0 }
 0x188   : > { %v1129_v4 = vmax.f32 %v1097_v0, 0.0  ;;  %v1658_v50 = vpop.f32.mrb[12].mxu0  ;;  %v1147_v7 = vmax.f32 %v1115_v3, 0.0  ;;  %v1674_v16 = vpop.f32.mrb[12].mxu1 }
 0x189   : > { %v1543_v62 = vpack.c.bf16 %v1131_v2, %v1130_v59  ;;  %v1064_v8 = vmul.f32 %v1658_v50, %v2010_v33  ;;  %v963_v9 = vpop.f32.mrb[13].mxu0  ;;  %v1145_v12 = vmax.f32 %v1113_v6, 0.0  ;;  %v1080_v18 = vmul.f32 %v1674_v16, %v2010_v33  ;;  %v1027_v20 = vpop.f32.mrb[13].mxu1 }
 0x18a   : > { %v1538_v11 = vpack.c.bf16 %v1129_v4, %v1128_v5  ;;  %v1062_v13 = vmul.f32 %v2010_v33, %v963_v9  ;;  %v1659_v14 = vpop.f32.mrb[14].mxu0  ;;  %v1583_v15 = vpack.c.bf16 %v1147_v7, %v1146_v61  ;;  %v1078_v24 = vmul.f32 %v2010_v33, %v1027_v20  ;;  %v1675_v25 = vpop.f32.mrb[14].mxu1 }
 0x18b   : > { %1599 = vst [vmem:[%s2029_s13 + $0x28] sm:$0xff] %v1543_v62   ;;  %v1102_v17 = vadd.f32 %v2015_v29, %v1064_v8  ;;  %v1065_v19 = vmul.f32 %v1659_v14, %v2010_v33  ;;  %v966_v21 = vpop.f32.mrb[15].mxu0  ;;  %v1578_v22 = vpack.c.bf16 %v1145_v12, %v1144_v10  ;;  %v1118_v28 = vadd.f32 %v2015_v29, %v1080_v18  ;;  %v1030_v32 = vpop.f32.mrb[15].mxu1 }
 0x18c   : > { %1598 = vst [vmem:[%s2029_s13 + $0x20] sm:$0xff] %v1538_v11   ;;  %v1100_v23 = vadd.f32 %v2015_v29, %v1062_v13  ;;  %v1063_v26 = vmul.f32 %v2010_v33, %v966_v21  ;;  %1607 = vst [vmem:[%s2029_s13 + $0x68] sm:$0xff] %v1583_v15   ;;  %v1081_v31 = vmul.f32 %v1675_v25, %v2010_v33 }
 0x18d   : > { %v1134_v27 = vmax.f32 %v1102_v17, 0.0  ;;  %v1103_v30 = vadd.f32 %v2015_v29, %v1065_v19  ;;  %1606 = vst [vmem:[%s2029_s13 + $0x60] sm:$0xff] %v1578_v22   ;;  %v1116_v34 = vadd.f32 %v2015_v29, %v1078_v24  ;;  %v1079_v36 = vmul.f32 %v2010_v33, %v1030_v32 }
 0x18e   : > { %v1101_v35 = vadd.f32 %v2015_v29, %v1063_v26  ;;  %v1119_v38 = vadd.f32 %v2015_v29, %v1081_v31  ;;  %v1132_v39 = vmax.f32 %v1100_v23, 0.0  ;;  %v1150_v42 = vmax.f32 %v1118_v28, 0.0 }
 0x18f   : > { %v1135_v37 = vmax.f32 %v1103_v30, 0.0  ;;  %v1117_v41 = vadd.f32 %v2015_v29, %v1079_v36  ;;  %v1148_v45 = vmax.f32 %v1116_v34, 0.0 }
 0x190   : > { %v1133_v40 = vmax.f32 %v1101_v35, 0.0  ;;  %v1151_v44 = vmax.f32 %v1119_v38, 0.0 }
 0x191   : > { %v1553_v43 = vpack.c.bf16 %v1135_v37, %v1134_v27  ;;  %v1149_v47 = vmax.f32 %v1117_v41, 0.0 }
 0x192   : > { %v1548_v46 = vpack.c.bf16 %v1133_v40, %v1132_v39  ;;  %v1593_v48 = vpack.c.bf16 %v1151_v44, %v1150_v42 }
 0x193   : > { %1601 = vst [vmem:[%s2029_s13 + $0x38] sm:$0xff] %v1553_v43   ;;  %v1588_v49 = vpack.c.bf16 %v1149_v47, %v1148_v45 }
 0x194   : > { %1600 = vst [vmem:[%s2029_s13 + $0x30] sm:$0xff] %v1548_v46   ;;  %1609 = vst [vmem:[%s2029_s13 + $0x78] sm:$0xff] %v1593_v48  }
 0x195   : > { %1608 = vst [vmem:[%s2029_s13 + $0x70] sm:$0xff] %v1588_v49  }
 0x196 PF: > { %s17_s24 = sadd.s32 1, %s1741_s24  }
 0x197   : > { %p14_p4 = scmp.ge.s32.totalorder %s17_s24, 4  }
 0x199   :  { %16 = sbr.rel (!%p14_p4) target bundleno = 1 (0x1), region = 81 }

// kernel: basenet_forward.16
= control target key start
LH: loop header
LB: loop body
LE: loop exit
PB: predicated region body
PF: predicated region fallthrough
CT: control target
= control target key end

     0   :  { %s1736_s21 = smov 0   ;;  %s1738_s22 = smov 0   ;;  %s2069_s0 = inlined_call_operand.vmem [shape: bf16[2,16,16,64], index: 0, kind: input, shape index: {}]   ;;  %s2070_s1 = inlined_call_operand.vmem [shape: bf16[2,16,16,32], index: 1, kind: input, shape index: {}]   ;;  %s2071_s2 = inlined_call_operand.vmem [shape: bf16[2,16,16,32], index: 2, kind: input, shape index: {}]   ;;  %s2072_s3 = inlined_call_operand.vmem [shape: f32[1,1,128], index: 3, kind: input, shape index: {}]   ;;  %s2073_s4 = inlined_call_operand.vmem [shape: f32[1,1,128], index: 4, kind: input, shape index: {}]   ;;  %s2074_s5 = inlined_call_operand.vmem [shape: bf16[128,64], index: 5, kind: input, shape index: {}]   ;;  %s2075_s6 = inlined_call_operand.vmem [shape: bf16[2,8,8,64], index: 6, kind: output, shape index: {}]  }
   0x1   :  { %s1740_s23 = smov 0   ;;  %s1742_s24 = smov 0  }
   0x2   :  { %s1744_s25 = smov 0  }
   0x3 LB: > { %s25_s26 = sadd.s32 1, %s1688_s23  ;;  %s28_s27 = sadd.s32 1, %s1692_s24  ;;  %s1696_s25 = sphi %s1744_s25, %s16_s25   ;;  %s1692_s24 = sphi %s1742_s24, %s2079_s24   ;;  %s1688_s23 = sphi %s1740_s23, %s2078_s23   ;;  %s1684_s22 = sphi %s1738_s22, %s2077_s22   ;;  %s1680_s21 = sphi %s1736_s21, %s2076_s21  }
   0x4   : > { %p26_p0 = scmp.ge.s32.totalorder %s25_s26, 2  ;;  %p1469_p1 = scmp.ge.s32.totalorder %s1696_s25, 1 }
   0x5   : > { %p270_p2 = scmp.lt.s32.totalorder %s1696_s25, 5 }
   0x6   : > { %s2081_s26 = smov (%p26_p0, %s25_s26), 0  ;;  %s2083_s27 = smov (!%p26_p0, %s28_s27), %s1692_s24 }
   0x7   : > { %p271_p3 = pnand %p1469_p1, %p270_p2  ;;  %p30_p4 = scmp.ge.s32.totalorder %s2083_s27, 2 }
   0x8   : > { %s1470_s28 = sshll.u32 (!%p271_p3), %s1680_s21, 3  ;;  %p330_p5 = scmp.lt.s32.totalorder (!%p271_p3), %s1684_s22, 1  ;;  %v1650_v16 = vld [vmem:[%s2074_s5] sm:$0xff] (!%p271_p3)   ;;  %v1651_v17 = vld [vmem:[%s2074_s5 + $0x8] sm:$0xff] (!%p271_p3)   ;;  %v1652_v18 = vld [vmem:[%s2074_s5 + $0x10] sm:$0xff] (!%p271_p3)   ;;  %v737_v34 = vlaneseq (!%p271_p3)  ;;  %vm573_vm0 = vcmask (!%p271_p3), 523264  }
   0x9   : > { %s2085_s27 = smov (%p30_p4, %s2083_s27), 0  ;;  %274 = sbr.rel (%p271_p3) target bundleno = 461 (0x1cd), region = 44 }
   0xa   : > { %p332_p6 = scmp.lt.s32.totalorder (!%p271_p3), %s1470_s28, 15  ;;  %s1698_s12 = smov (!%p271_p3), 64   ;;  %1563 = vmatprep.subr.bf16.mxu0 (!%p271_p3), %v1650_v16  ;;  %v1653_v19 = vld [vmem:[%s2074_s5 + $0x18] sm:$0xff] (!%p271_p3)   ;;  %v1654_v20 = vld [vmem:[%s2074_s5 + $0x20] sm:$0xff] (!%p271_p3)   ;;  %v1655_v21 = vld [vmem:[%s2074_s5 + $0x28] sm:$0xff] (!%p271_p3)   ;;  %vm598_vm1 = vcmask (!%p271_p3), 785408  }
   0xb   : > { %s1699_s19 = smov (!%p271_p3), 96   ;;  %1564 = vmatpush3.bf16.msra.mxu0 (!%p271_p3), %v1650_v16  ;;  %v1656_v22 = vld [vmem:[%s2074_s5 + $0x30] sm:$0xff] (!%p271_p3)   ;;  %v1657_v23 = vld [vmem:[%s2074_s5 + $0x38] sm:$0xff] (!%p271_p3)   ;;  %v1700_v32 = vmov (!%p271_p3), 1983009808   ;;  %v738_v41 = vshrl.u32 (!%p271_p3), %v737_v34, 7 }
   0xc   : > { %1565 = vmatprep.subr.bf16.mxu0 (!%p271_p3), %v1651_v17  ;;  %v735_v33 = vunpack.c.l.s4 (!%p271_p3), %v1700_v32  ;;  %v1820_v44 = vld [vmem:[%s2072_s3] ss:$0 sm:$0xff] (!%p271_p3)  ;;  %vm1158_vm2 = vcmask (!%p271_p3), 1041409   ;;  %vm1161_vm3 = vcmask (!%p271_p3), 1042434   ;;  %vm1164_vm4 = vcmask (!%p271_p3), 1043459  }
   0xd   : > { %v1828_v51 = vld [vmem:[%s2073_s4] ss:$0 sm:$0xff] (!%p271_p3)  ;;  %vm1167_vm5 = vcmask (!%p271_p3), 1044484   ;;  %vm1170_vm6 = vcmask (!%p271_p3), 1045509   ;;  %vm1173_vm7 = vcmask (!%p271_p3), 1046534   ;;  %vm1176_vm8 = vcmask (!%p271_p3), 1047559  }
   0xe   : > { %v736_v40 = vunpack.c.0.s8 (!%p271_p3), %v735_v33  ;;  %vm1325_vm9 = vcmask (!%p271_p3), 519168  }
   0xf   : > { %1566 = vmatpush3.bf16.msra.mxu0 (!%p271_p3), %v1651_v17 }
  0x10   : > { %s2087_s22 = smov (!%p330_p5, %s1684_s22), 1  ;;  %s2089_s28 = smov (!%p332_p6, %s1470_s28), 15  ;;  %1567 = vmatprep.subr.bf16.mxu0 %v1652_v18  ;;  %v1833_v57 = vsub.s32 %v736_v40, %v738_v41 }
  0x11   : > { %s1472_s29 = sshll.u32 %s2087_s22, 5  ;;  %s1471_s30 = sshll.u32 %s2089_s28, 1 }
  0x12   : > { %s336_s7 = sadd.s32 %s1472_s29, %s1471_s30 }
  0x13   : > { %s1473_s8 = sshll.u32 %s336_s7, 2  ;;  %1568 = vmatpush3.bf16.msra.mxu0 %v1652_v18  ;;  %s1483_s7 = sshll.u32 %s2087_s22, 3 }
  0x14   : > { %s349_s11 = scalar_lea.vmem %s2070_s1, %s1473_s8  ;;  %s360_s15 = scalar_lea.vmem %s2071_s2, %s1473_s8  ;;  %1569 = vmatprep.subr.bf16.mxu0 %v1653_v19 }
  0x15   : > { %v1626_v0 = vld [vmem:[%s349_s11 + $0x10] sm:$0xff]   ;;  %v1627_v1 = vld [vmem:[%s349_s11] sm:$0xff]   ;;  %v1628_v2 = vld [vmem:[%s349_s11 + $0x18] sm:$0xff]   ;;  %s1781_s18 = scalar_lea.vmem %s2069_s0, %s1473_s8 }
  0x16   : > { %505 = vrot.lane.b32.xlu1 %v1626_v0, %s1698_s12  ;;  %501 = vrot.lane.b32.xlu0 %v1627_v1, %s1698_s12  ;;  %v1629_v3 = vld [vmem:[%s349_s11 + $0x8] sm:$0xff]   ;;  %v1631_v5 = vld [vmem:[%s349_s11 + $0x20] sm:$0xff]  }
  0x17   : > { %v1630_v4 = vld [vmem:[%s349_s11 + $0x28] sm:$0xff]   ;;  %v1632_v6 = vld [vmem:[%s349_s11 + $0x38] sm:$0xff]   ;;  %v1633_v7 = vld [vmem:[%s349_s11 + $0x30] sm:$0xff]   ;;  %1570 = vmatpush3.bf16.msra.mxu0 %v1653_v19 }
  0x18   : > { %v1634_v8 = vld [vmem:[%s360_s15 + $0x8] sm:$0xff]   ;;  %v1635_v9 = vld [vmem:[%s360_s15] sm:$0xff]   ;;  %v1636_v10 = vld [vmem:[%s360_s15 + $0x18] sm:$0xff]   ;;  %1571 = vmatprep.subr.bf16.mxu0 %v1654_v20 }
  0x19   : > { %v1637_v11 = vld [vmem:[%s360_s15 + $0x10] sm:$0xff]   ;;  %v1638_v12 = vld [vmem:[%s360_s15 + $0x28] sm:$0xff]   ;;  %v1639_v13 = vld [vmem:[%s360_s15 + $0x20] sm:$0xff]  }
  0x1a   : > { %507 = vrot.lane.b32.xlu1 %v1628_v2, %s1698_s12  ;;  %503 = vrot.lane.b32.xlu0 %v1629_v3, %s1698_s12  ;;  %v1640_v14 = vld [vmem:[%s360_s15 + $0x38] sm:$0xff]   ;;  %v1641_v15 = vld [vmem:[%s360_s15 + $0x30] sm:$0xff]  }
  0x1b   : > { %1572 = vmatpush3.bf16.msra.mxu0 %v1654_v20  ;;  %v1645_v30 = vld [vmem:[%s1781_s18 + $0x8] sm:$0xff]   ;;  %v1643_v35 = vld [vmem:[%s1781_s18] sm:$0xff]   ;;  %v1644_v37 = vld [vmem:[%s1781_s18 + $0x18] sm:$0xff]  }
  0x1c   : > { %1573 = vmatprep.subr.bf16.mxu0 %v1655_v21  ;;  %v1642_v42 = vld [vmem:[%s1781_s18 + $0x10] sm:$0xff]   ;;  %v1646_v50 = vld [vmem:[%s1781_s18 + $0x28] sm:$0xff]   ;;  %v1647_v0 = vld [vmem:[%s1781_s18 + $0x20] sm:$0xff]  }
  0x1e   : > { %511 = vrot.lane.b32.xlu1 %v1630_v4, %s1698_s12  ;;  %509 = vrot.lane.b32.xlu0 %v1631_v5, %s1698_s12 }
  0x1f   : > { %1574 = vmatpush3.bf16.msra.mxu0 %v1655_v21 }
  0x20   : > { %1575 = vmatprep.subr.bf16.mxu0 %v1656_v22 }
  0x22   : > { %515 = vrot.lane.b32.xlu1 %v1632_v6, %s1698_s12  ;;  %513 = vrot.lane.b32.xlu0 %v1633_v7, %s1698_s12 }
  0x23   : > { %1576 = vmatpush3.bf16.msra.mxu0 %v1656_v22 }
  0x24   : > { %1577 = vmatprep.subr.bf16.mxu0 %v1657_v23 }
  0x26   : > { %559 = vrot.lane.b32.xlu1 %v1634_v8, %s1699_s19  ;;  %557 = vrot.lane.b32.xlu0 %v1635_v9, %s1699_s19  ;;  %v1648_v9 = vld [vmem:[%s1781_s18 + $0x38] sm:$0xff]  }
  0x27   : > { %1578 = vmatpush3.bf16.msra.mxu0 %v1657_v23 }
  0x2a   : > { %563 = vrot.lane.b32.xlu1 %v1636_v10, %s1699_s19  ;;  %561 = vrot.lane.b32.xlu0 %v1637_v11, %s1699_s19 }
  0x2e   : > { %567 = vrot.lane.b32.xlu1 %v1638_v12, %s1699_s19  ;;  %565 = vrot.lane.b32.xlu0 %v1639_v13, %s1699_s19 }
  0x32   : > { %571 = vrot.lane.b32.xlu1 %v1640_v14, %s1699_s19  ;;  %569 = vrot.lane.b32.xlu0 %v1641_v15, %s1699_s19 }
  0x88   : > { %v506_v24 = vpop.permute.xlu1 %505  ;;  %v502_v25 = vpop.permute.xlu0 %501 }
  0x89   : > { %v576_v43 = vsel %vm573_vm0, %v1643_v35, %v502_v25  ;;  %v582_v59 = vsel %vm573_vm0, %v1642_v42, %v506_v24 }
  0x8c   : > { %v508_v26 = vpop.permute.xlu1 %507  ;;  %v504_v27 = vpop.permute.xlu0 %503 }
  0x8d   : > { %v579_v38 = vsel %vm573_vm0, %v1645_v30, %v504_v27  ;;  %v585_v54 = vsel %vm573_vm0, %v1644_v37, %v508_v26 }
  0x90   : > { %v512_v28 = vpop.permute.xlu1 %511  ;;  %v510_v29 = vpop.permute.xlu0 %509 }
  0x91   : > { %v591_v5 = vsel %vm573_vm0, %v1646_v50, %v512_v28  ;;  %v588_v19 = vsel %vm573_vm0, %v1647_v0, %v510_v29  ;;  %v1649_v28 = vld [vmem:[%s1781_s18 + $0x30] sm:$0xff]   ;;  %s1482_s18 = sshll.u32 %s1680_s21, 2 }
  0x92   : > { %p365_p7 = scmp.lt.s32.totalorder %s1482_s18, 7 }
  0x94   : > { %v1808_v31 = vpop.permute.xlu1 %515  ;;  %v1811_v36 = vpop.permute.xlu0 %513  ;;  %s2091_s18 = smov (!%p365_p7, %s1482_s18), 7 }
  0x95   : > { %v597_v27 = vsel %vm573_vm0, %v1648_v9, %v1808_v31  ;;  %s368_s8 = sadd.s32 %s1483_s7, %s2091_s18 }
  0x96   : > { %s1484_s9 = sshll.u32 %s368_s8, 2 }
  0x97   : > { %s370_s12 = scalar_lea.vmem %s2075_s6, %s1484_s9 }
  0x98   : > { %v560_v39 = vpop.permute.xlu1 %559  ;;  %v558_v46 = vpop.permute.xlu0 %557 }
  0x99   : > { %v603_v45 = vsel %vm598_vm1, %v579_v38, %v560_v39  ;;  %v600_v49 = vsel %vm598_vm1, %v576_v43, %v558_v46 }
  0x9a   : > { %v643_v47 = vunpack.c.l.bf16 %v603_v45  ;;  %v644_v48 = vunpack.c.h.bf16 %v603_v45  ;;  %v641_v52 = vunpack.c.l.bf16 %v600_v49  ;;  %v642_v53 = vunpack.c.h.bf16 %v600_v49 }
  0x9c   : > { %v665_v55 = vmul.f32 %v1820_v44, %v643_v47  ;;  %v666_v56 = vmul.f32 %v1820_v44, %v644_v48  ;;  %v564_v58 = vpop.permute.xlu1 %563  ;;  %v663_v60 = vmul.f32 %v1820_v44, %v641_v52  ;;  %v664_v61 = vmul.f32 %v1820_v44, %v642_v53  ;;  %v562_v63 = vpop.permute.xlu0 %561 }
  0x9d   : > { %v609_v62 = vsel %vm598_vm1, %v585_v54, %v564_v58  ;;  %v606_v8 = vsel %vm598_vm1, %v582_v59, %v562_v63  ;;  %v594_v47 = vsel %vm573_vm0, %v1649_v28, %v1811_v36 }
  0x9e   : > { %v687_v1 = vadd.f32 %v1828_v51, %v665_v55  ;;  %v688_v2 = vadd.f32 %v1828_v51, %v666_v56  ;;  %v647_v3 = vunpack.c.l.bf16 %v609_v62  ;;  %v648_v4 = vunpack.c.h.bf16 %v609_v62 }
  0x9f   : > { %v685_v6 = vadd.f32 %v1828_v51, %v663_v60  ;;  %v686_v7 = vadd.f32 %v1828_v51, %v664_v61  ;;  %v645_v17 = vunpack.c.l.bf16 %v606_v8  ;;  %v646_v18 = vunpack.c.h.bf16 %v606_v8 }
  0xa0   : > { %v703_v10 = vmax.f32 %v687_v1, 0.0  ;;  %v704_v11 = vmax.f32 %v688_v2, 0.0  ;;  %v669_v12 = vmul.f32 %v1820_v44, %v647_v3  ;;  %v670_v13 = vmul.f32 %v1820_v44, %v648_v4  ;;  %v568_v14 = vpop.permute.xlu1 %567  ;;  %v566_v38 = vpop.permute.xlu0 %565 }
  0xa1   : > { %v701_v15 = vmax.f32 %v685_v6, 0.0  ;;  %v702_v16 = vmax.f32 %v686_v7, 0.0  ;;  %v615_v22 = vsel %vm598_vm1, %v591_v5, %v568_v14  ;;  %v667_v25 = vmul.f32 %v1820_v44, %v645_v17 }
  0xa2   : > { %v691_v20 = vadd.f32 %v1828_v51, %v669_v12  ;;  %v692_v21 = vadd.f32 %v1828_v51, %v670_v13  ;;  %v668_v26 = vmul.f32 %v1820_v44, %v646_v18  ;;  %v651_v32 = vunpack.c.l.bf16 %v615_v22 }
  0xa3   : > { %v717_v23 = vadd.f32 %v703_v10, %v701_v15  ;;  %v718_v24 = vadd.f32 %v704_v11, %v702_v16  ;;  %v652_v33 = vunpack.c.h.bf16 %v615_v22  ;;  %v689_v40 = vadd.f32 %v1828_v51, %v667_v25 }
  0xa4   : > { %v707_v30 = vmax.f32 %v691_v20, 0.0  ;;  %v708_v39 = vmax.f32 %v692_v21, 0.0  ;;  %v690_v41 = vadd.f32 %v1828_v51, %v668_v26  ;;  %v673_v42 = vmul.f32 %v1820_v44, %v651_v32  ;;  %v572_v12 = vpop.permute.xlu1 %571  ;;  %v570_v21 = vpop.permute.xlu0 %569 }
  0xa5   : > { %v733_v29 = vcombine.high %v717_v23, %v717_v23  ;;  %v740_v34 = vrot.slane %v717_v23, %v1833_v57  ;;  %v750_v35 = vcombine.high %v718_v24, %v718_v24  ;;  %v1860_v37 = vrot.slane %v718_v24, %v1833_v57 }
  0xa6   : > { %v674_v46 = vmul.f32 %v1820_v44, %v652_v33  ;;  %v705_v48 = vmax.f32 %v689_v40, 0.0  ;;  %v706_v49 = vmax.f32 %v690_v41, 0.0  ;;  %v612_v50 = vsel %vm598_vm1, %v588_v19, %v566_v38 }
  0xa7   : > { %v747_v31 = vrot.slane %v733_v29, %v1833_v57  ;;  %v748_v43 = vcombine.high %v740_v34, %v740_v34  ;;  %v1511_v45 = vrot.slane %v740_v34, 9  ;;  %v1871_v52 = vrot.slane %v750_v35, %v1833_v57 }
  0xa8   : > { %v1515_v54 = vrot.slane %v1860_v37, 9  ;;  %v719_v58 = vadd.f32 %v707_v30, %v705_v48  ;;  %v720_v59 = vadd.f32 %v708_v39, %v706_v49  ;;  %v695_v60 = vadd.f32 %v1828_v51, %v673_v42 }
  0xa9   : > { %v1512_v53 = vrot.slane %v748_v43, 9  ;;  %v997_v55 = vadd.f32 %v1511_v45, %v740_v34  ;;  %v1513_v56 = vrot.slane %v747_v31, 9  ;;  %v696_v36 = vadd.f32 %v1828_v51, %v674_v46 }
  0xaa   : > { %v649_v63 = vunpack.c.l.bf16 %v612_v50  ;;  %v1876_v0 = vcombine.high %v747_v31, %v747_v31  ;;  %v767_v1 = vcombine.high %v719_v58, %v719_v58  ;;  %v774_v2 = vrot.slane %v719_v58, %v1833_v57 }
  0xab   : > { %v998_v61 = vadd.f32 %v1512_v53, %v748_v43  ;;  %v1029_v62 = vmul.f32 0.25, %v997_v55  ;;  %v784_v3 = vcombine.high %v720_v59, %v720_v59  ;;  %v1880_v6 = vrot.slane %v720_v59, %v1833_v57 }
  0xac   : > { %v650_v7 = vunpack.c.h.bf16 %v612_v50  ;;  %v781_v8 = vrot.slane %v767_v1, %v1833_v57  ;;  %v782_v9 = vcombine.high %v774_v2, %v774_v2  ;;  %v1519_v10 = vrot.slane %v774_v2, 9 }
  0xad   : > { %v1030_v4 = vmul.f32 0.25, %v998_v61  ;;  %v1061_v5 = vpack.c.bf16 %v1029_v62, %v1029_v62  ;;  %v711_v11 = vmax.f32 %v695_v60, 0.0  ;;  %v1883_v13 = vadd.f32 %v1513_v56, %v747_v31 }
  0xae   : > { %v1886_v14 = vrot.slane %v784_v3, %v1833_v57  ;;  %v712_v15 = vmax.f32 %v696_v36, 0.0  ;;  %v671_v16 = vmul.f32 %v1820_v44, %v649_v63  ;;  %v1520_v19 = vrot.slane %v782_v9, 9 }
  0xaf   : > { %v1062_v17 = vpack.c.bf16 %v1030_v4, %v1030_v4  ;;  %v1889_v18 = vunpack.c.l.b16 %v1061_v5  ;;  %v1005_v20 = vadd.f32 %v1519_v10, %v774_v2  ;;  %v1523_v22 = vrot.slane %v1880_v6, 9 }
  0xb0   : > { %v672_v23 = vmul.f32 %v1820_v44, %v650_v7  ;;  %v693_v24 = vadd.f32 %v1828_v51, %v671_v16  ;;  %v621_v25 = vsel %vm598_vm1, %v597_v27, %v572_v12  ;;  %v1895_v26 = vcombine.high %v781_v8, %v781_v8 }
  0xb1   : > { %v1006_v28 = vadd.f32 %v1520_v19, %v782_v9  ;;  %v1037_v30 = vmul.f32 0.25, %v1005_v20  ;;  %v655_v32 = vunpack.c.l.bf16 %v621_v25  ;;  %v656_v34 = vunpack.c.h.bf16 %v621_v25 }
  0xb2   : > { %v694_v33 = vadd.f32 %v1828_v51, %v672_v23  ;;  %v709_v29 = vmax.f32 %v693_v24, 0.0  ;;  %v618_v35 = vsel %vm598_vm1, %v594_v47, %v570_v21  ;;  %v1521_v38 = vrot.slane %v781_v8, 9 }
  0xb3   : > { %v1038_v39 = vmul.f32 0.25, %v1006_v28  ;;  %v677_v40 = vmul.f32 %v1820_v44, %v655_v32  ;;  %v653_v41 = vunpack.c.l.bf16 %v618_v35  ;;  %v678_v27 = vmul.f32 %v1820_v44, %v656_v34 }
  0xb4   : > { %v710_v42 = vmax.f32 %v694_v33, 0.0  ;;  %v721_v31 = vadd.f32 %v711_v11, %v709_v29  ;;  %v654_v43 = vunpack.c.h.bf16 %v618_v35  ;;  %v1901_v45 = vunpack.c.l.b16 %v1062_v17 }
  0xb5   : > { %v1069_v46 = vpack.c.bf16 %v1037_v30, %v1037_v30  ;;  %v699_v48 = vadd.f32 %v1828_v51, %v677_v40  ;;  %v675_v49 = vmul.f32 %v1820_v44, %v653_v41  ;;  %v700_v55 = vadd.f32 %v1828_v51, %v678_v27 }
  0xb6   : > { %v722_v50 = vadd.f32 %v712_v15, %v710_v42  ;;  %v801_v53 = vcombine.high %v721_v31, %v721_v31  ;;  %v808_v47 = vrot.slane %v721_v31, %v1833_v57  ;;  %v1907_v56 = vadd.f32 %v1521_v38, %v781_v8 }
  0xb7   : > { %v1070_v58 = vpack.c.bf16 %v1038_v39, %v1038_v39  ;;  %v676_v59 = vmul.f32 %v1820_v44, %v654_v43  ;;  %v697_v60 = vadd.f32 %v1828_v51, %v675_v49  ;;  %v715_v63 = vmax.f32 %v699_v48, 0.0 }
  0xb8   : > { %v815_v61 = vrot.slane %v801_v53, %v1833_v57  ;;  %v816_v62 = vcombine.high %v808_v47, %v808_v47  ;;  %v825_v36 = vrot.slane %v722_v50, %v1833_v57  ;;  %v1527_v1 = vrot.slane %v808_v47, 9 }
  0xb9   : > { %v716_v2 = vmax.f32 %v700_v55, 0.0  ;;  %v698_v3 = vadd.f32 %v1828_v51, %v676_v59  ;;  %v713_v4 = vmax.f32 %v697_v60, 0.0  ;;  %v1914_v5 = vunpack.c.l.b16 %v1069_v46 }
  0xba   : > { %v817_v7 = vcombine.high %v815_v61, %v815_v61  ;;  %v818_v8 = vcombine.high %v722_v50, %v722_v50  ;;  %v1528_v9 = vrot.slane %v816_v62, 9  ;;  %v1529_v10 = vrot.slane %v815_v61, 9 }
  0xbb   : > { %v1531_v44 = vrot.slane %v825_v36, 9  ;;  %v1013_v11 = vadd.f32 %v1527_v1, %v808_v47  ;;  %v714_v12 = vmax.f32 %v698_v3, 0.0  ;;  %v1916_v15 = vcombine.high %v825_v36, %v825_v36 }
  0xbc   : > { %v1530_v16 = vrot.slane %v817_v7, 9  ;;  %v1014_v17 = vadd.f32 %v1528_v9, %v816_v62  ;;  %v723_v19 = vadd.f32 %v715_v63, %v713_v4  ;;  %v1015_v20 = vadd.f32 %v1529_v10, %v815_v61 }
  0xbd   : > { %v1017_v21 = vadd.f32 %v1531_v44, %v825_v36  ;;  %v1045_v23 = vmul.f32 0.25, %v1013_v11  ;;  %v724_v24 = vadd.f32 %v716_v2, %v714_v12  ;;  %v1918_v51 = vunpack.c.l.b16 %v1070_v58 }
  0xbe   : > { %v1046_v25 = vmul.f32 0.25, %v1014_v17  ;;  %v835_v28 = vcombine.high %v723_v19, %v723_v19  ;;  %v842_v30 = vrot.slane %v723_v19, %v1833_v57  ;;  %v1047_v32 = vmul.f32 0.25, %v1015_v20 }
  0xbf   : > { %v1921_v33 = vmul.f32 0.25, %v1017_v21  ;;  %v1077_v29 = vpack.c.bf16 %v1045_v23, %v1045_v23  ;;  %v852_v34 = vcombine.high %v724_v24, %v724_v24  ;;  %v859_v40 = vrot.slane %v724_v24, %v1833_v57 }
  0xc0   : > { %v1078_v35 = vpack.c.bf16 %v1046_v25, %v1046_v25  ;;  %v849_v38 = vrot.slane %v835_v28, %v1833_v57  ;;  %v850_v39 = vcombine.high %v842_v30, %v842_v30  ;;  %v1926_v41 = vrot.slane %v818_v8, %v1833_v57 }
  0xc1   : > { %v1532_v42 = vrot.slane %v1916_v15, 9  ;;  %v1929_v31 = vadd.f32 %v1530_v16, %v817_v7  ;;  %v1079_v27 = vpack.c.bf16 %v1047_v32, %v1047_v32  ;;  %v1081_v43 = vpack.c.bf16 %v1921_v33, %v1921_v33 }
  0xc2   : > { %v1933_v46 = vunpack.c.l.b16 %v1078_v35  ;;  %v851_v48 = vcombine.high %v849_v38, %v849_v38  ;;  %v1535_v49 = vrot.slane %v842_v30, 9  ;;  %v1935_v50 = vunpack.c.l.b16 %v1077_v29 }
  0xc3   : > { %v1536_v53 = vrot.slane %v850_v39, 9  ;;  %v1537_v47 = vrot.slane %v849_v38, 9  ;;  %v1539_v55 = vrot.slane %v859_v40, 9  ;;  %v1937_v58 = vunpack.c.l.b16 %v1079_v27 }
  0xc4   : > { %v1940_v59 = vrot.slane %v852_v34, %v1833_v57  ;;  %v1942_v60 = vcombine.high %v859_v40, %v859_v40  ;;  %v1021_v61 = vadd.f32 %v1535_v49, %v842_v30  ;;  %v1192_v62 = vrot.slane %v1933_v46, 7 }
  0xc5   : > { %v1022_v36 = vadd.f32 %v1536_v53, %v850_v39  ;;  %v1023_v63 = vadd.f32 %v1537_v47, %v849_v38  ;;  %v1025_v1 = vadd.f32 %v1539_v55, %v859_v40  ;;  %v1538_v2 = vrot.slane %v851_v48, 9 }
  0xc6   : > { %v1945_v3 = vmul.f32 0.25, %v1021_v61  ;;  %v765_v4 = vcombine.high %v1860_v37, %v1860_v37  ;;  %v766_v7 = vcombine.high %v1871_v52, %v1871_v52  ;;  %v799_v10 = vcombine.high %v1880_v6, %v1880_v6 }
  0xc7   : > { %v1054_v8 = vmul.f32 0.25, %v1022_v36  ;;  %v1055_v57 = vmul.f32 0.25, %v1023_v63  ;;  %v1951_v9 = vmul.f32 0.25, %v1025_v1  ;;  %v1540_v44 = vrot.slane %v1942_v60, 9 }
  0xc8   : > { %v800_v11 = vcombine.high %v1886_v14, %v1886_v14  ;;  %v1514_v12 = vrot.slane %v1876_v0, 9  ;;  %v1516_v16 = vrot.slane %v765_v4, 9  ;;  %v1194_v17 = vrot.slane %v1937_v58, 6 }
  0xc9   : > { %v1086_v19 = vpack.c.bf16 %v1054_v8, %v1054_v8  ;;  %v1087_v20 = vpack.c.bf16 %v1055_v57, %v1055_v57  ;;  %v1517_v21 = vrot.slane %v1871_v52, 9  ;;  %v1961_v23 = vadd.f32 %v1538_v2, %v851_v48 }
  0xca   : > { %v1518_v24 = vrot.slane %v766_v7, 9  ;;  %v1522_v25 = vrot.slane %v1895_v26, 9  ;;  %v1524_v28 = vrot.slane %v799_v10, 9  ;;  %v1085_v30 = vpack.c.bf16 %v1945_v3, %v1945_v3 }
  0xcb   : > { %v1089_v32 = vpack.c.bf16 %v1951_v9, %v1951_v9  ;;  %v1525_v29 = vrot.slane %v1886_v14, 9  ;;  %v1526_v34 = vrot.slane %v800_v11, 9  ;;  %v1000_v35 = vadd.f32 %v1514_v12, %v1876_v0 }
  0xcc   : > { %v1001_v38 = vadd.f32 %v1515_v54, %v1860_v37  ;;  %v1002_v39 = vadd.f32 %v1516_v16, %v765_v4  ;;  %v1003_v40 = vadd.f32 %v1517_v21, %v1871_v52  ;;  %v1974_v27 = vunpack.c.l.b16 %v1086_v19 }
  0xcd   : > { %v1976_v48 = vunpack.c.l.b16 %v1087_v20  ;;  %v1004_v49 = vadd.f32 %v1518_v24, %v766_v7  ;;  %v1008_v53 = vadd.f32 %v1522_v25, %v1895_v26  ;;  %v1009_v47 = vadd.f32 %v1523_v22, %v1880_v6 }
  0xce   : > { %v1010_v55 = vadd.f32 %v1524_v28, %v799_v10  ;;  %v1011_v0 = vadd.f32 %v1525_v29, %v1886_v14  ;;  %v1012_v61 = vadd.f32 %v1526_v34, %v800_v11  ;;  %v1031_v37 = vmul.f32 0.25, %v1883_v13 }
  0xcf   : > { %v1032_v54 = vmul.f32 0.25, %v1000_v35  ;;  %v1033_v36 = vmul.f32 0.25, %v1001_v38  ;;  %v1034_v52 = vmul.f32 0.25, %v1002_v39  ;;  %v1035_v63 = vmul.f32 0.25, %v1003_v40 }
  0xd0   : > { %v1036_v1 = vmul.f32 0.25, %v1004_v49  ;;  %v1039_v2 = vmul.f32 0.25, %v1907_v56  ;;  %v1040_v4 = vmul.f32 0.25, %v1008_v53  ;;  %v1041_v26 = vmul.f32 0.25, %v1009_v47 }
  0xd1   : > { %v1042_v7 = vmul.f32 0.25, %v1010_v55  ;;  %v1043_v8 = vmul.f32 0.25, %v1011_v0  ;;  %v1044_v6 = vmul.f32 0.25, %v1012_v61  ;;  %v1063_v22 = vpack.c.bf16 %v1031_v37, %v1031_v37 }
  0xd2   : > { %v1064_v14 = vpack.c.bf16 %v1032_v54, %v1032_v54  ;;  %v1065_v57 = vpack.c.bf16 %v1033_v36, %v1033_v36  ;;  %v1066_v10 = vpack.c.bf16 %v1034_v52, %v1034_v52  ;;  %v1067_v13 = vpack.c.bf16 %v1035_v63, %v1035_v63 }
  0xd3   : > { %v1068_v11 = vpack.c.bf16 %v1036_v1, %v1036_v1  ;;  %v1071_v12 = vpack.c.bf16 %v1039_v2, %v1039_v2  ;;  %v1072_v16 = vpack.c.bf16 %v1040_v4, %v1040_v4  ;;  %v1073_v19 = vpack.c.bf16 %v1041_v26, %v1041_v26 }
  0xd4   : > { %v1074_v20 = vpack.c.bf16 %v1042_v7, %v1042_v7  ;;  %v1075_v56 = vpack.c.bf16 %v1043_v8, %v1043_v8  ;;  %v1076_v21 = vpack.c.bf16 %v1044_v6, %v1044_v6  ;;  %v1127_v24 = vunpack.c.l.b16 %v1063_v22 }
  0xd5   : > { %v1128_v25 = vunpack.c.l.b16 %v1064_v14  ;;  %v1129_v28 = vunpack.c.l.b16 %v1065_v57  ;;  %v1130_v29 = vunpack.c.l.b16 %v1066_v10  ;;  %v1131_v34 = vunpack.c.l.b16 %v1067_v13 }
  0xd6   : > { %v1132_v35 = vunpack.c.l.b16 %v1068_v11  ;;  %v1135_v38 = vunpack.c.l.b16 %v1071_v12  ;;  %v1136_v39 = vunpack.c.l.b16 %v1072_v16  ;;  %v1137_v40 = vunpack.c.l.b16 %v1073_v19 }
  0xd7   : > { %v1138_v49 = vunpack.c.l.b16 %v1074_v20  ;;  %v1139_v53 = vunpack.c.l.b16 %v1075_v56  ;;  %v1140_v47 = vunpack.c.l.b16 %v1076_v21  ;;  %v1157_v55 = vrot.slane %v1901_v45, 7 }
  0xd8   : > { %v1160_v0 = vrot.slane %v1127_v24, 6  ;;  %v1163_v61 = vrot.slane %v1128_v25, 5  ;;  %v1166_v37 = vrot.slane %v1129_v28, 4  ;;  %v1169_v54 = vrot.slane %v1130_v29, 3 }
  0xd9   : > { %v1172_v36 = vrot.slane %v1131_v34, 2  ;;  %v1175_v52 = vrot.slane %v1132_v35, 1  ;;  %v1178_v63 = vrot.slane %v1918_v51, 7  ;;  %v1159_v1 = vsel %vm1158_vm2, %v1157_v55, %v1889_v18 }
  0xda   : > { %v1180_v2 = vrot.slane %v1135_v38, 6  ;;  %v1182_v4 = vrot.slane %v1136_v39, 5  ;;  %v1184_v26 = vrot.slane %v1137_v40, 4  ;;  %v1162_v7 = vsel %vm1161_vm3, %v1160_v0, %v1159_v1 }
  0xdb   : > { %v1179_v8 = vsel %vm1158_vm2, %v1178_v63, %v1914_v5  ;;  %v1186_v45 = vrot.slane %v1138_v49, 3  ;;  %v1188_v6 = vrot.slane %v1139_v53, 2  ;;  %v1165_v22 = vsel %vm1164_vm4, %v1163_v61, %v1162_v7 }
  0xdc   : > { %v1181_v14 = vsel %vm1161_vm3, %v1180_v2, %v1179_v8  ;;  %v1190_v57 = vrot.slane %v1140_v47, 1  ;;  %v834_v51 = vcombine.high %v1926_v41, %v1926_v41  ;;  %v1168_v18 = vsel %vm1167_vm5, %v1166_v37, %v1165_v22 }
  0xdd   : > { %v1183_v10 = vsel %vm1164_vm4, %v1182_v4, %v1181_v14  ;;  %v868_v13 = vcombine.high %v1940_v59, %v1940_v59  ;;  %v1533_v11 = vrot.slane %v1926_v41, 9  ;;  %v1171_v5 = vsel %vm1170_vm6, %v1169_v54, %v1168_v18 }
  0xde   : > { %v1185_v12 = vsel %vm1167_vm5, %v1184_v26, %v1183_v10  ;;  %v1534_v16 = vrot.slane %v834_v51, 9  ;;  %v1541_v19 = vrot.slane %v1940_v59, 9  ;;  %v1174_v20 = vsel %vm1173_vm7, %v1172_v36, %v1171_v5 }
  0xdf   : > { %v1187_v56 = vsel %vm1170_vm6, %v1186_v45, %v1185_v12  ;;  %v1542_v21 = vrot.slane %v868_v13, 9  ;;  %v1018_v24 = vadd.f32 %v1532_v42, %v1916_v15  ;;  %v1177_v25 = vsel %vm1176_vm8, %v1175_v52, %v1174_v20 }
  0xe0   : > { %v1189_v28 = vsel %vm1173_vm7, %v1188_v6, %v1187_v56  ;;  %v1019_v29 = vadd.f32 %v1533_v11, %v1926_v41  ;;  %v1020_v34 = vadd.f32 %v1534_v16, %v834_v51  ;;  %v1026_v38 = vadd.f32 %v1540_v44, %v1942_v60 }
  0xe1   : > { %v1191_v35 = vsel %vm1176_vm8, %v1190_v57, %v1189_v28  ;;  %v1027_v39 = vadd.f32 %v1541_v19, %v1940_v59  ;;  %v1028_v40 = vadd.f32 %v1542_v21, %v868_v13  ;;  %v1048_v53 = vmul.f32 0.25, %v1929_v31 }
  0xe2   : > { %v1220_v49 = vpack.c.b16 %v1191_v35, %v1177_v25  ;;  %v1050_v15 = vmul.f32 0.25, %v1018_v24  ;;  %v1051_v42 = vmul.f32 0.25, %v1019_v29  ;;  %v1052_v47 = vmul.f32 0.25, %v1020_v34 }
  0xe3   : > { %v1056_v55 = vmul.f32 0.25, %v1961_v23  ;;  %v1058_v0 = vmul.f32 0.25, %v1026_v38  ;;  %v1059_v41 = vmul.f32 0.25, %v1027_v39  ;;  %v1060_v61 = vmul.f32 0.25, %v1028_v40 }
  0xe4   : > { %1579 = vmatprep.mubr.bf16.mxu0 %v1220_v49  ;;  %v1080_v37 = vpack.c.bf16 %v1048_v53, %v1048_v53  ;;  %v1082_v54 = vpack.c.bf16 %v1050_v15, %v1050_v15  ;;  %v1083_v36 = vpack.c.bf16 %v1051_v42, %v1051_v42  ;;  %v1084_v52 = vpack.c.bf16 %v1052_v47, %v1052_v47 }
  0xe5   : > { %v1088_v60 = vpack.c.bf16 %v1056_v55, %v1056_v55  ;;  %v1090_v44 = vpack.c.bf16 %v1058_v0, %v1058_v0  ;;  %v1091_v59 = vpack.c.bf16 %v1059_v41, %v1059_v41  ;;  %v1206_v63 = vrot.slane %v1974_v27, 7 }
  0xe6   : > { %v1092_v1 = vpack.c.bf16 %v1060_v61, %v1060_v61  ;;  %v1144_v31 = vunpack.c.l.b16 %v1080_v37  ;;  %v1145_v2 = vunpack.c.l.b16 %v1081_v43  ;;  %v1208_v23 = vrot.slane %v1976_v48, 6 }
  0xe7   : > { %v1146_v4 = vunpack.c.l.b16 %v1082_v54  ;;  %v1152_v26 = vunpack.c.l.b16 %v1088_v60  ;;  %v1153_v7 = vunpack.c.l.b16 %v1089_v32  ;;  %v1149_v8 = vunpack.c.l.b16 %v1085_v30 }
  0xe8   : > { %v1147_v45 = vunpack.c.l.b16 %v1083_v36  ;;  %v1154_v27 = vunpack.c.l.b16 %v1090_v44  ;;  %v1193_v33 = vsel %vm1158_vm2, %v1192_v62, %v1935_v50  ;;  %v1148_v43 = vunpack.c.l.b16 %v1084_v52 }
  0xe9   : > { %v1155_v6 = vunpack.c.l.b16 %v1091_v59  ;;  %v1195_v48 = vsel %vm1161_vm3, %v1194_v17, %v1193_v33  ;;  %v1196_v22 = vrot.slane %v1144_v31, 5  ;;  %v1156_v9 = vunpack.c.l.b16 %v1092_v1 }
  0xea   : > { %v1198_v32 = vrot.slane %v1145_v2, 4  ;;  %v1207_v14 = vsel %vm1158_vm2, %v1206_v63, %v1149_v8  ;;  %v1210_v3 = vrot.slane %v1152_v26, 5  ;;  %v1200_v57 = vrot.slane %v1146_v4, 3 }
  0xeb   : > { %v1197_v30 = vsel %vm1164_vm4, %v1196_v22, %v1195_v48  ;;  %v1209_v51 = vsel %vm1161_vm3, %v1208_v23, %v1207_v14  ;;  %v1212_v46 = vrot.slane %v1153_v7, 4  ;;  %v1202_v62 = vrot.slane %v1147_v45, 2 }
  0xec   : > { %v1199_v50 = vsel %vm1167_vm5, %v1198_v32, %v1197_v30  ;;  %v1211_v58 = vsel %vm1164_vm4, %v1210_v3, %v1209_v51  ;;  %v1214_v18 = vrot.slane %v1154_v27, 3  ;;  %v1216_v13 = vrot.slane %v1155_v6, 2 }
  0xed   : > { %v1201_v17 = vsel %vm1170_vm6, %v1200_v57, %v1199_v50  ;;  %v1213_v10 = vsel %vm1167_vm5, %v1212_v46, %v1211_v58  ;;  %v1204_v5 = vrot.slane %v1148_v43, 1  ;;  %v1218_v16 = vrot.slane %v1156_v9, 1 }
  0xee   : > { %v1203_v11 = vsel %vm1173_vm7, %v1202_v62, %v1201_v17  ;;  %v1215_v12 = vsel %vm1170_vm6, %v1214_v18, %v1213_v10 }
  0xef   : > { %v1217_v19 = vsel %vm1173_vm7, %v1216_v13, %v1215_v12  ;;  %v1205_v20 = vsel %vm1176_vm8, %v1204_v5, %v1203_v11 }
  0xf0   : > { %v1219_v56 = vsel %vm1176_vm8, %v1218_v16, %v1217_v19 }
  0xf1   : > { %v1221_v21 = vpack.c.b16 %v1219_v56, %v1205_v20 }
  0xf3   : > { %1580 = vmatmul.mubr.bf16.vlgmr.msra.gmra.mrb[0].mxu0 %v1221_v21 }
 0x1c6   : > { %v1581_v24 = vpop.f32.mrb[0].mxu0 }
 0x1c7   : > { %v1323_v25 = vpack.c.bf16 %v1581_v24, %v1581_v24  ;;  %v1306_v28 = vpop.f32.mrb[1].mxu0 }
 0x1c8   : > { %v1321_v29 = vpack.c.bf16 %v1306_v28, %v1306_v28  ;;  %v1582_v34 = vpop.f32.mrb[2].mxu0 }
 0x1c9   : > { %1328 = vst.msk [vmem:[%s370_s12 + $0x8] sm:$0xf] %vm1325_vm9, %v1323_v25  ;;  %v1324_v35 = vpack.c.bf16 %v1582_v34, %v1582_v34  ;;  %v1309_v38 = vpop.f32.mrb[3].mxu0 }
 0x1ca   : > { %1326 = vst.msk [vmem:[%s370_s12] sm:$0xf] %vm1325_vm9, %v1321_v29  ;;  %v1322_v39 = vpack.c.bf16 %v1309_v38, %v1309_v38 }
 0x1cb   : > { %1329 = vst.msk [vmem:[%s370_s12 + $0xc] sm:$0xf] %vm1325_vm9, %v1324_v35 }
 0x1cc   : > { %1327 = vst.msk [vmem:[%s370_s12 + $0x4] sm:$0xf] %vm1325_vm9, %v1322_v39 }
 0x1cd PF: > { %s16_s25 = sadd.s32 1, %s1696_s25   ;;  %s2076_s21 = smov %s1688_s23 }
 0x1ce   : > { %p13_p8 = scmp.ge.s32.totalorder %s16_s25, 6   ;;  %s2077_s22 = smov %s1692_s24 }
 0x1cf   : > { %s2078_s23 = smov %s2081_s26  ;;  %s2079_s24 = smov %s2085_s27 }
 0x1d0   :  { %15 = sbr.rel (!%p13_p8) target bundleno = 3 (0x3), region = 80 }

// kernel: basenet_forward.13
= control target key start
LH: loop header
LB: loop body
LE: loop exit
PB: predicated region body
PF: predicated region fallthrough
CT: control target
= control target key end

     0   :  { %s3201_s9 = smov 0   ;;  %s3203_s10 = smov 0   ;;  %s3947_s0 = inlined_call_operand.vmem [shape: bf16[2,18,18,128], index: 0, kind: input, shape index: {}]   ;;  %s3948_s1 = inlined_call_operand.vmem [shape: bf16[3,384,32], index: 1, kind: input, shape index: {}]   ;;  %s3949_s2 = inlined_call_operand.vmem [shape: bf16[2,16,16,32], index: 2, kind: output, shape index: {}]  }
   0x1   :  { %s3205_s11 = smov 0   ;;  %s3207_s12 = smov 0  }
   0x2   :  { %s3209_s13 = smov 0  }
   0x3 LB: > { %s21_s14 = sadd.s32 1, %s3176_s11  ;;  %s24_s15 = sadd.s32 1, %s3180_s12  ;;  %s3184_s13 = sphi %s3209_s13, %s12_s13   ;;  %s3180_s12 = sphi %s3207_s12, %s3953_s12   ;;  %s3176_s11 = sphi %s3205_s11, %s3952_s11   ;;  %s3172_s10 = sphi %s3203_s10, %s3951_s10   ;;  %s3168_s9 = sphi %s3201_s9, %s3950_s9  }
   0x4   : > { %p22_p0 = scmp.ge.s32.totalorder %s21_s14, 2  ;;  %p2241_p1 = scmp.ge.s32.totalorder %s3184_s13, 1 }
   0x5   : > { %p126_p2 = scmp.lt.s32.totalorder %s3184_s13, 5 }
   0x6   : > { %s3955_s14 = smov (%p22_p0, %s21_s14), 0  ;;  %s3957_s15 = smov (!%p22_p0, %s24_s15), %s3180_s12 }
   0x7   : > { %p127_p3 = pnand %p2241_p1, %p126_p2  ;;  %p26_p4 = scmp.ge.s32.totalorder %s3957_s15, 2 }
   0x8   : > { %v3026_v0 = vld [vmem:[%s3948_s1 + $0x100] sm:$0xff] (!%p127_p3)   ;;  %v3029_v3 = vld [vmem:[%s3948_s1 + $0x108] sm:$0xff] (!%p127_p3)   ;;  %v3032_v6 = vld [vmem:[%s3948_s1 + $0x110] sm:$0xff] (!%p127_p3)   ;;  %p153_p5 = scmp.lt.s32.totalorder (!%p127_p3), %s3172_s10, 1  ;;  %s2536_s30 = smul.u32 (!%p127_p3), 96, %s3168_s9  ;;  %vm375_vm0 = vcmask (!%p127_p3), 1046528  }
   0x9   : > { %s3959_s15 = smov (%p26_p4, %s3957_s15), 0  ;;  %130 = sbr.rel (%p127_p3) target bundleno = 401 (0x191), region = 28 }
   0xa   : > { %v3027_v1 = vld [vmem:[%s3948_s1 + $0x140] sm:$0xff] (!%p127_p3)   ;;  %2553 = vmatprep.subr.bf16.mxu0 (!%p127_p3), %v3026_v0  ;;  %v3030_v4 = vld [vmem:[%s3948_s1 + $0x148] sm:$0xff] (!%p127_p3)   ;;  %v3033_v7 = vld [vmem:[%s3948_s1 + $0x150] sm:$0xff] (!%p127_p3)   ;;  %vm270_vm1 = vsmask.f32 (!%p127_p3), 7424  ;;  %vm2120_vm2 = vcmask (!%p127_p3), 257024  }
   0xb   : > { %v3028_v2 = vld [vmem:[%s3948_s1 + $0xc0] sm:$0xff] (!%p127_p3)   ;;  %2793 = vmatprep.subr.bf16.mxu1 (!%p127_p3), %v3027_v1  ;;  %v3031_v5 = vld [vmem:[%s3948_s1 + $0xc8] sm:$0xff] (!%p127_p3)   ;;  %v3034_v8 = vld [vmem:[%s3948_s1 + $0xd0] sm:$0xff] (!%p127_p3)  }
   0xc   : > { %2554 = vmatpush3.bf16.msra.mxu0 (!%p127_p3), %v3028_v2  ;;  %2794 = vmatpush3.bf16.msra.mxu1 (!%p127_p3), %v3027_v1  ;;  %v3035_v9 = vld [vmem:[%s3948_s1 + $0x118] sm:$0xff] (!%p127_p3)   ;;  %v3038_v12 = vld [vmem:[%s3948_s1 + $0x120] sm:$0xff] (!%p127_p3)   ;;  %v3041_v15 = vld [vmem:[%s3948_s1 + $0x128] sm:$0xff] (!%p127_p3)  }
   0xd   : > { %2555 = vmatprep.subr.bf16.mxu0 (!%p127_p3), %v3029_v3  ;;  %2795 = vmatprep.subr.bf16.mxu1 (!%p127_p3), %v3030_v4  ;;  %v3036_v10 = vld [vmem:[%s3948_s1 + $0x158] sm:$0xff] (!%p127_p3)   ;;  %v3039_v13 = vld [vmem:[%s3948_s1 + $0x160] sm:$0xff] (!%p127_p3)   ;;  %v3042_v16 = vld [vmem:[%s3948_s1 + $0x168] sm:$0xff] (!%p127_p3)  }
   0xe   : > { %v3037_v11 = vld [vmem:[%s3948_s1 + $0xd8] sm:$0xff] (!%p127_p3)   ;;  %v3040_v14 = vld [vmem:[%s3948_s1 + $0xe0] sm:$0xff] (!%p127_p3)   ;;  %v3043_v17 = vld [vmem:[%s3948_s1 + $0xe8] sm:$0xff] (!%p127_p3)  }
   0xf   : > { %v3044_v18 = vld [vmem:[%s3948_s1 + $0x130] sm:$0xff] (!%p127_p3)   ;;  %v3047_v21 = vld [vmem:[%s3948_s1 + $0x138] sm:$0xff] (!%p127_p3)   ;;  %v3054_v31 = vld [vmem:[%s3948_s1 + $0x40] sm:$0xff] (!%p127_p3)  }
  0x10   : > { %2556 = vmatpush3.bf16.msra.mxu0 %v3031_v5  ;;  %2796 = vmatpush3.bf16.msra.mxu1 %v3030_v4  ;;  %s3961_s10 = smov (!%p153_p5, %s3172_s10), 1  ;;  %v3045_v19 = vld [vmem:[%s3948_s1 + $0x170] sm:$0xff]   ;;  %v3048_v22 = vld [vmem:[%s3948_s1 + $0x178] sm:$0xff]   ;;  %v3055_v37 = vld [vmem:[%s3948_s1 + $0x1c0] sm:$0xff]  }
  0x11   : > { %2557 = vmatprep.subr.bf16.mxu0 %v3032_v6  ;;  %2797 = vmatprep.subr.bf16.mxu1 %v3033_v7  ;;  %s2985_s25 = smul.u32 216, %s3961_s10  ;;  %v3046_v20 = vld [vmem:[%s3948_s1 + $0xf0] sm:$0xff]   ;;  %v3049_v25 = vld [vmem:[%s3948_s1 + $0xf8] sm:$0xff]   ;;  %v3056_v40 = vld [vmem:[%s3948_s1] sm:$0xff]   ;;  %s2245_s24 = sshll.u32 %s3961_s10, 5 }
  0x12   : > { %v3057_v43 = vld [vmem:[%s3948_s1 + $0x180] sm:$0xff]   ;;  %v3058_v46 = vld [vmem:[%s3948_s1 + $0x48] sm:$0xff]   ;;  %v3064_v61 = vld [vmem:[%s3948_s1 + $0x50] sm:$0xff]  }
  0x13   : > { %s157_s7 = scalar_lea.vmem %s3947_s0, %s2985_s25  ;;  %v3059_v48 = vld [vmem:[%s3948_s1 + $0x8] sm:$0xff]   ;;  %v3066_v1 = vld [vmem:[%s3948_s1 + $0x10] sm:$0xff]   ;;  %v3068_v6 = vld [vmem:[%s3948_s1 + $0x58] sm:$0xff]  }
  0x14   : > { %2558 = vmatpush3.bf16.msra.mxu0 %v3034_v8  ;;  %2798 = vmatpush3.bf16.msra.mxu1 %v3033_v7  ;;  %s3307_s21 = scalar_lea.vmem %s157_s7, %s2536_s30  ;;  %v3065_v0 = vld [vmem:[%s3948_s1 + $0x1c8] sm:$0xff]   ;;  %v3069_v8 = vld [vmem:[%s3948_s1 + $0x18] sm:$0xff]  }
  0x15   : > { %2559 = vmatprep.subr.bf16.mxu0 %v3035_v9  ;;  %2799 = vmatprep.subr.bf16.mxu1 %v3036_v10  ;;  %v3050_v23 = vld [vmem:[%s3307_s21 + $0xc] sm:$0xff]   ;;  %v3051_v24 = vld [vmem:[%s3307_s21 + $0x14] ss:$0 sps:$4 sm:$0x11]   ;;  %v3052_v30 = vld [vmem:[%s3307_s21 + $0x18] sm:$0xff]  }
  0x16   : > { %v557_v26 = vshrl.u32 %v3050_v23, 16  ;;  %v559_v27 = vshll.u32 %v3050_v23, 16  ;;  %v564_v28 = vshll.u32 %v3051_v24, 16  ;;  %v660_v29 = vrot.slane %v3050_v23, 1  ;;  %v3060_v51 = vld [vmem:[%s3307_s21 + $0x24] sm:$0xff]   ;;  %v3346_v56 = vld [vmem:[%s3307_s21 + $0x30] sm:$0xff]  }
  0x17   : > { %v661_v32 = vrot.slane %v3051_v24, 1  ;;  %v3053_v33 = vld [vmem:[%s3307_s21 + $0x20] ss:$0 sps:$4 sm:$0x11]   ;;  %v663_v36 = vrot.slane %v3052_v30, 1  ;;  %v569_v44 = vshrl.u32 %v3052_v30, 16 }
  0x18   : > { %2560 = vmatpush3.bf16.msra.mxu0 %v3037_v11  ;;  %2800 = vmatpush3.bf16.msra.mxu1 %v3036_v10  ;;  %v561_v34 = vrot.slane %v559_v27, 1  ;;  %v566_v35 = vrot.slane %v564_v28, 1  ;;  %v664_v39 = vrot.slane %v3053_v33, 1  ;;  %v571_v47 = vshll.u32 %v3052_v30, 16  ;;  %v3067_v4 = vld [vmem:[%s3948_s1 + $0x188] sm:$0xff]   ;;  %v3372_v11 = vld [vmem:[%s3307_s21 + $0x3c] sm:$0xff]  }
  0x19   : > { %2561 = vmatprep.subr.bf16.mxu0 %v3038_v12  ;;  %2801 = vmatprep.subr.bf16.mxu1 %v3039_v13  ;;  %v662_v38 = vsel %vm375_vm0, %v660_v29, %v661_v32  ;;  %v576_v49 = vshll.u32 %v3053_v33, 16  ;;  %v3061_v53 = vld [vmem:[%s3307_s21 + $0x2c] ss:$0 sps:$4 sm:$0x11]   ;;  %v666_v55 = vrot.slane %v3060_v51, 1  ;;  %v669_v60 = vrot.slane %v3346_v56, 1 }
  0x1a   : > { %v562_v41 = vor.u32 %v561_v34, %v557_v26  ;;  %2809 = vmatprep.mubr.bf16.mxu1 %v662_v38  ;;  %v665_v42 = vsel %vm375_vm0, %v663_v36, %v664_v39  ;;  %v573_v50 = vrot.slane %v571_v47, 1  ;;  %v667_v57 = vrot.slane %v3061_v53, 1  ;;  %v3063_v58 = vld [vmem:[%s3307_s21 + $0x38] ss:$0 sps:$4 sm:$0x11]   ;;  %v3076_v24 = vld [vmem:[%s3948_s1 + $0x20] sm:$0xff]  }
  0x1b   : > { %v578_v52 = vrot.slane %v576_v49, 1  ;;  %v670_v63 = vrot.slane %v3063_v58, 1  ;;  %v581_v2 = vshrl.u32 %v3060_v51, 16  ;;  %v583_v5 = vshll.u32 %v3060_v51, 16  ;;  %v3077_v26 = vld [vmem:[%s3948_s1 + $0x190] sm:$0xff]   ;;  %v3078_v28 = vld [vmem:[%s3948_s1 + $0x68] sm:$0xff]  }
  0x1c   : > { %2562 = vmatpush3.bf16.msra.mxu0 %v3040_v14  ;;  %2802 = vmatpush3.bf16.msra.mxu1 %v3039_v13  ;;  %v567_v45 = vsel %vm270_vm1, %v562_v41, %v566_v35  ;;  %v574_v54 = vor.u32 %v573_v50, %v569_v44  ;;  %v668_v62 = vsel %vm375_vm0, %v666_v55, %v667_v57  ;;  %v588_v7 = vshll.u32 %v3061_v53, 16  ;;  %v3375_v13 = vld [vmem:[%s3307_s21 + $0x44] ss:$0 sps:$4 sm:$0x11]   ;;  %v3378_v14 = vld [vmem:[%s3307_s21 + $0x48] sm:$0xff]   ;;  %v3411_v33 = vld [vmem:[%s3307_s21 + $0x54] sm:$0xff]  }
  0x1d   : > { %2563 = vmatprep.subr.bf16.mxu0 %v3041_v15  ;;  %2803 = vmatprep.subr.bf16.mxu1 %v3042_v16  ;;  %v671_v3 = vsel %vm375_vm0, %v669_v60, %v670_v63  ;;  %v585_v9 = vrot.slane %v583_v5, 1  ;;  %v672_v15 = vrot.slane %v3372_v11, 1  ;;  %v593_v27 = vshrl.u32 %v3346_v56, 16  ;;  %v3414_v35 = vld [vmem:[%s3307_s21 + $0x5c] ss:$0 sps:$4 sm:$0x11]  }
  0x1e   : > { %917 = vmatprep.mubr.bf16.mxu0 %v567_v45  ;;  %v579_v59 = vsel %vm270_vm1, %v574_v54, %v578_v52  ;;  %v590_v10 = vrot.slane %v588_v7, 1  ;;  %v595_v29 = vshll.u32 %v3346_v56, 16  ;;  %v3418_v38 = vld [vmem:[%s3307_s21 + $0x60] sm:$0xff]   ;;  %v679_v39 = vrot.slane %v3414_v35, 1  ;;  %v3086_v47 = vld [vmem:[%s3948_s1 + $0x30] sm:$0xff]   ;;  %v3087_v50 = vld [vmem:[%s3948_s1 + $0x198] sm:$0xff]  }
  0x1f   : > { %v586_v12 = vor.u32 %v585_v9, %v581_v2  ;;  %v3088_v52 = vld [vmem:[%s3948_s1 + $0x78] sm:$0xff]   ;;  %v612_v53 = vshll.u32 %v3375_v13, 16  ;;  %v3452_v57 = vld [vmem:[%s3307_s21] sm:$0xff]   ;;  %v619_v5 = vshll.u32 %v3378_v14, 16  ;;  %v3474_v7 = vld [vmem:[%s3307_s21 + $0xc] sm:$0xff]  }
  0x20   : > { %2564 = vmatpush3.bf16.msra.mxu0 %v3043_v17  ;;  %2804 = vmatpush3.bf16.msra.mxu1 %v3042_v16  ;;  %v3074_v16 = vld [vmem:[%s3948_s1 + $0x60] sm:$0xff]   ;;  %v597_v32 = vrot.slane %v595_v29, 1  ;;  %v3089_v54 = vld [vmem:[%s3948_s1 + $0x38] sm:$0xff]  }
  0x21   : > { %2565 = vmatprep.subr.bf16.mxu0 %v3044_v18  ;;  %2805 = vmatprep.subr.bf16.mxu1 %v3045_v19  ;;  %v591_v17 = vsel %vm270_vm1, %v586_v12, %v590_v10  ;;  %v673_v18 = vrot.slane %v3375_v13, 1  ;;  %v3092_v60 = vld [vmem:[%s3948_s1 + $0x80] sm:$0xff]   ;;  %v621_v10 = vrot.slane %v619_v5, 1  ;;  %v284_v13 = vshrl.u32 %v3474_v7, 16  ;;  %v3499_v29 = vld [vmem:[%s3307_s21 + $0x18] sm:$0xff]  }
  0x22   : > { %v598_v36 = vor.u32 %v597_v32, %v593_v27  ;;  %v3502_v32 = vld [vmem:[%s3307_s21 + $0x20] ss:$0 sps:$4 sm:$0x11]   ;;  %v3551_v5 = vld [vmem:[%s3307_s21 + $0x18] sm:$0xff]  }
  0x24   : > { %2566 = vmatpush3.bf16.msra.mxu0 %v3046_v20  ;;  %2806 = vmatpush3.bf16.msra.mxu1 %v3045_v19  ;;  %v3387_v19 = vld [vmem:[%s3307_s21 + $0x50] ss:$0 sps:$4 sm:$0x11]   ;;  %v675_v20 = vrot.slane %v3378_v14, 1 }
  0x25   : > { %2567 = vmatprep.subr.bf16.mxu0 %v3047_v21  ;;  %2807 = vmatprep.subr.bf16.mxu1 %v3048_v22  ;;  %v3075_v21 = vld [vmem:[%s3948_s1 + $0x1d0] sm:$0xff]  }
  0x28   : > { %2568 = vmatpush3.bf16.msra.mxu0 %v3049_v25  ;;  %2808 = vmatpush3.bf16.msra.mxu1 %v3048_v22  ;;  %v674_v22 = vsel %vm375_vm0, %v672_v15, %v673_v18  ;;  %v3097_v15 = vld [vmem:[%s3948_s1 + $0x88] sm:$0xff]   ;;  %v286_v18 = vshll.u32 %v3474_v7, 16 }
  0x29   : > { %2633 = vmatprep.subr.bf16.mxu1 %v3054_v31  ;;  %2713 = vmatprep.subr.bf16.mxu0 %v3055_v37  ;;  %v600_v31 = vshll.u32 %v3063_v58, 16  ;;  %v678_v37 = vrot.slane %v3411_v33, 1 }
  0x2b   : > { %918 = vmatmul.mubr.bf16.vlgmr.msra.gmra.mrb[0].mxu0 %v3050_v23  ;;  %2810 = vmatmul.mubr.bf16.vlgmr.msra.gmra.mrb[0].mxu1 %v665_v42  ;;  %v676_v23 = vrot.slane %v3387_v19, 1  ;;  %v602_v34 = vrot.slane %v600_v31, 1  ;;  %v681_v42 = vrot.slane %v3418_v38, 1  ;;  %v680_v44 = vsel %vm375_vm0, %v678_v37, %v679_v39 }
  0x2c   : > { %2634 = vmatpush3.bf16.msra.mxu1 %v3056_v40  ;;  %2714 = vmatpush3.bf16.msra.mxu0 %v3057_v43  ;;  %v3422_v40 = vld [vmem:[%s3307_s21 + $0x68] ss:$0 sps:$4 sm:$0x11]   ;;  %v3084_v43 = vld [vmem:[%s3948_s1 + $0x70] sm:$0xff]   ;;  %v298_v37 = vshll.u32 %v3499_v29, 16 }
  0x2d   : > { %2635 = vmatprep.subr.bf16.mxu1 %v3058_v46  ;;  %925 = vmatprep.mubr.bf16.mxu0 %v579_v59  ;;  %v677_v25 = vsel %vm375_vm0, %v675_v20, %v676_v23  ;;  %v603_v41 = vsel %vm270_vm1, %v598_v36, %v602_v34  ;;  %v682_v45 = vrot.slane %v3422_v40, 1  ;;  %v3085_v46 = vld [vmem:[%s3948_s1 + $0x1d8] sm:$0xff]   ;;  %v3455_v59 = vld [vmem:[%s3307_s21 + $0x8] ss:$0 sps:$4 sm:$0x11]   ;;  %v288_v20 = vrot.slane %v286_v18, 1 }
  0x2e   : > { %2813 = vmatprep.mubr.bf16.mxu1 %v668_v62  ;;  %2715 = vmatprep.subr.bf16.mxu0 %v3065_v0  ;;  %v274_v62 = vshll.u32 %v3452_v57, 16  ;;  %v279_v0 = vshll.u32 %v3455_v59, 16  ;;  %v3099_v23 = vld [vmem:[%s3948_s1 + $0x1a8] sm:$0xff]   ;;  %v3102_v34 = vld [vmem:[%s3948_s1 + $0x90] sm:$0xff]  }
  0x2f   : > { %v683_v49 = vsel %vm375_vm0, %v681_v42, %v682_v45  ;;  %v289_v27 = vor.u32 %v288_v20, %v284_v13  ;;  %v3103_v42 = vld [vmem:[%s3948_s1 + $0x1f0] sm:$0xff]   ;;  %v1518_v13 = vshrl.u32 %v3551_v5, 16 }
  0x30   : > { %2636 = vmatpush3.bf16.msra.mxu1 %v3059_v48  ;;  %2716 = vmatpush3.bf16.msra.mxu0 %v3067_v4  ;;  %v605_v48 = vshrl.u32 %v3372_v11, 16  ;;  %v276_v2 = vrot.slane %v274_v62, 1  ;;  %v617_v4 = vshrl.u32 %v3378_v14, 16 }
  0x31   : > { %2637 = vmatprep.subr.bf16.mxu1 %v3064_v61  ;;  %2717 = vmatprep.subr.bf16.mxu0 %v3075_v21  ;;  %v272_v61 = vshrl.u32 %v3452_v57, 16 }
  0x33   : > { %926 = vmatmul.mubr.bf16.gmra.mrb[4].mxu0 %v3052_v30  ;;  %2814 = vmatmul.mubr.bf16.gmra.mrb[4].mxu1 %v671_v3  ;;  %v3079_v30 = vld [vmem:[%s3948_s1 + $0x28] sm:$0xff]   ;;  %v3094_v3 = vld [vmem:[%s3948_s1 + $0x1a0] sm:$0xff]   ;;  %v277_v9 = vor.u32 %v276_v2, %v272_v61 }
  0x34   : > { %2638 = vmatpush3.bf16.msra.mxu1 %v3066_v1  ;;  %933 = vmatprep.mubr.bf16.mxu0 %v591_v17  ;;  %v3093_v1 = vld [vmem:[%s3948_s1 + $0x1e0] sm:$0xff]   ;;  %v3485_v17 = vld [vmem:[%s3307_s21 + $0x14] ss:$0 sps:$4 sm:$0x11]  }
  0x35   : > { %2639 = vmatprep.subr.bf16.mxu1 %v3068_v6  ;;  %2817 = vmatprep.mubr.bf16.mxu1 %v674_v22  ;;  %v624_v6 = vshll.u32 %v3387_v19, 16  ;;  %v622_v19 = vor.u32 %v621_v10, %v617_v4  ;;  %v291_v21 = vshll.u32 %v3485_v17, 16  ;;  %v3548_v4 = vld [vmem:[%s3307_s21 + $0x38] ss:$0 sps:$4 sm:$0x11]  }
  0x36   : > { %2718 = vmatpush3.bf16.msra.mxu0 %v3077_v26  ;;  %v636_v26 = vshll.u32 %v3414_v35, 16  ;;  %v296_v35 = vshrl.u32 %v3499_v29, 16  ;;  %v3558_v10 = vld [vmem:[%s3307_s21 + $0x20] ss:$0 sps:$4 sm:$0x11]  }
  0x37   : > { %2719 = vmatprep.subr.bf16.mxu0 %v3085_v46  ;;  %v626_v12 = vrot.slane %v624_v6, 1  ;;  %v641_v46 = vshrl.u32 %v3418_v38, 16 }
  0x38   : > { %2640 = vmatpush3.bf16.msra.mxu1 %v3069_v8  ;;  %v281_v8 = vrot.slane %v279_v0, 1  ;;  %v638_v31 = vrot.slane %v636_v26, 1  ;;  %v3581_v26 = vld [vmem:[%s3307_s21 + $0x24] sm:$0xff]  }
  0x39   : > { %2641 = vmatprep.subr.bf16.mxu1 %v3074_v16  ;;  %v3098_v16 = vld [vmem:[%s3948_s1 + $0x1e8] sm:$0xff]   ;;  %v627_v22 = vsel %vm270_vm1, %v622_v19, %v626_v12 }
  0x3a   : > { %2720 = vmatpush3.bf16.msra.mxu0 %v3087_v50  ;;  %v648_v50 = vshll.u32 %v3422_v40, 16  ;;  %v3108_v40 = vld [vmem:[%s3948_s1 + $0x1f8] sm:$0xff]  }
  0x3b   : > { %934 = vmatmul.mubr.bf16.gmra.mrb[8].mxu0 %v3060_v51  ;;  %2818 = vmatmul.mubr.bf16.gmra.mrb[8].mxu1 %v677_v25  ;;  %v607_v51 = vshll.u32 %v3372_v11, 16  ;;  %v631_v25 = vshll.u32 %v3411_v33, 16 }
  0x3c   : > { %2642 = vmatpush3.bf16.msra.mxu1 %v3076_v24  ;;  %941 = vmatprep.mubr.bf16.mxu0 %v603_v41  ;;  %v629_v24 = vshrl.u32 %v3411_v33, 16  ;;  %v303_v41 = vshll.u32 %v3502_v32, 16 }
  0x3d   : > { %2643 = vmatprep.subr.bf16.mxu1 %v3078_v28  ;;  %2821 = vmatprep.mubr.bf16.mxu1 %v680_v44  ;;  %v609_v55 = vrot.slane %v607_v51, 1  ;;  %v293_v28 = vrot.slane %v291_v21, 1  ;;  %v3107_v51 = vld [vmem:[%s3948_s1 + $0x98] sm:$0xff]   ;;  %v3570_v21 = vld [vmem:[%s3948_s1 + $0x200] sm:$0xff]  }
  0x3e   : > { %2721 = vmatprep.subr.bf16.mxu0 %v3093_v1  ;;  %v305_v45 = vrot.slane %v303_v41, 1 }
  0x3f   : > { %v610_v58 = vor.u32 %v609_v55, %v605_v48  ;;  %2722 = vmatpush3.bf16.msra.mxu0 %v3094_v3  ;;  %v294_v36 = vsel %vm270_vm1, %v289_v27, %v293_v28  ;;  %v3522_v48 = vld [vmem:[%s3307_s21 + $0x24] sm:$0xff]   ;;  %v3545_v3 = vld [vmem:[%s3307_s21 + $0x30] sm:$0xff]  }
  0x40   : > { %2644 = vmatpush3.bf16.msra.mxu1 %v3079_v30  ;;  %2723 = vmatprep.subr.bf16.mxu0 %v3098_v16  ;;  %v633_v30 = vrot.slane %v631_v25, 1  ;;  %v310_v55 = vshll.u32 %v3522_v48, 16  ;;  %v320_v6 = vshrl.u32 %v3545_v3, 16  ;;  %v3114_v16 = vld [vmem:[%s3948_s1 + $0xa0] sm:$0xff]  }
  0x41   : > { %2645 = vmatprep.subr.bf16.mxu1 %v3084_v43  ;;  %v300_v43 = vrot.slane %v298_v37, 1  ;;  %v3578_v25 = vld [vmem:[%s3307_s21 + $0x44] ss:$0 sps:$4 sm:$0x11]  }
  0x42   : > { %v634_v39 = vor.u32 %v633_v30, %v629_v24  ;;  %v312_v61 = vrot.slane %v310_v55, 1 }
  0x43   : > { %942 = vmatmul.mubr.bf16.gmra.mrb[12].mxu0 %v3346_v56  ;;  %2822 = vmatmul.mubr.bf16.gmra.mrb[12].mxu1 %v683_v49  ;;  %v614_v56 = vrot.slane %v612_v53, 1  ;;  %v301_v49 = vor.u32 %v300_v43, %v296_v35  ;;  %v3530_v53 = vld [vmem:[%s3307_s21 + $0x2c] ss:$0 sps:$4 sm:$0x11]   ;;  %v1532_v35 = vshll.u32 %v3581_v26, 16 }
  0x44   : > { %2646 = vmatpush3.bf16.msra.mxu1 %v3086_v47  ;;  %2724 = vmatpush3.bf16.msra.mxu0 %v3099_v23  ;;  %v639_v44 = vsel %vm270_vm1, %v634_v39, %v638_v31  ;;  %v643_v47 = vshll.u32 %v3418_v38, 16  ;;  %v315_v62 = vshll.u32 %v3530_v53, 16  ;;  %v3574_v23 = vld [vmem:[%s3307_s21 + $0x3c] sm:$0xff]   ;;  %v3120_v39 = vld [vmem:[%s3948_s1 + $0xa8] sm:$0xff]  }
  0x45   : > { %2647 = vmatprep.subr.bf16.mxu1 %v3088_v52  ;;  %v615_v63 = vsel %vm270_vm1, %v610_v58, %v614_v56  ;;  %2725 = vmatprep.subr.bf16.mxu0 %v3103_v42  ;;  %v306_v56 = vsel %vm270_vm1, %v301_v49, %v305_v45  ;;  %v650_v58 = vrot.slane %v648_v50, 1  ;;  %v332_v28 = vshrl.u32 %v3574_v23, 16  ;;  %v3608_v49 = vld [vmem:[%s3307_s21 + $0x50] ss:$0 sps:$4 sm:$0x11]  }
  0x46   : > { %949 = vmatprep.mubr.bf16.mxu0 %v615_v63  ;;  %v645_v52 = vrot.slane %v643_v47, 1  ;;  %v3109_v63 = vld [vmem:[%s3948_s1 + $0x1b8] sm:$0xff]   ;;  %v317_v2 = vrot.slane %v315_v62, 1  ;;  %v334_v30 = vshll.u32 %v3574_v23, 16  ;;  %v1534_v42 = vrot.slane %v1532_v35, 1  ;;  %v3604_v47 = vld [vmem:[%s3307_s21 + $0x48] sm:$0xff]  }
  0x47   : > { %v3611_v50 = vld [vmem:[%s3307_s21 + $0x30] sm:$0xff]   ;;  %v351_v55 = vshll.u32 %v3608_v49, 16 }
  0x48   : > { %2648 = vmatpush3.bf16.msra.mxu1 %v3089_v54  ;;  %v308_v54 = vshrl.u32 %v3522_v48, 16  ;;  %v336_v37 = vrot.slane %v334_v30, 1  ;;  %v3126_v62 = vld [vmem:[%s3948_s1 + $0xb0] sm:$0xff]  }
  0x49   : > { %2825 = vmatprep.subr.bf16.mxu1 %v3092_v60 }
  0x4a   : > { %v313_v1 = vor.u32 %v312_v61, %v308_v54  ;;  %v346_v54 = vshll.u32 %v3604_v47, 16 }
  0x4b   : > { %950 = vmatmul.mubr.bf16.gmra.mrb[16].mxu0 %v3372_v11  ;;  %v282_v11 = vsel %vm270_vm1, %v277_v9, %v281_v8  ;;  %v322_v8 = vshll.u32 %v3545_v3, 16  ;;  %v327_v9 = vshll.u32 %v3548_v4, 16 }
  0x4c   : > { %1255 = vmatprep.mubr.bf16.mxu1 %v282_v11  ;;  %957 = vmatprep.mubr.bf16.mxu0 %v627_v22  ;;  %v1525_v11 = vshll.u32 %v3558_v10, 16  ;;  %v348_v61 = vrot.slane %v346_v54, 1  ;;  %v3688_v54 = vld [vmem:[%s3307_s21 + $0x54] sm:$0xff]  }
  0x4d   : > { %1256 = vmatmul.mubr.bf16.vlgmr.msra.gmra.mrb[16].mxu1 %v3452_v57  ;;  %v324_v12 = vrot.slane %v322_v8, 1  ;;  %v329_v18 = vrot.slane %v327_v9, 1  ;;  %v3637_v8 = vld [vmem:[%s3307_s21 + $0x54] sm:$0xff]   ;;  %v3640_v9 = vld [vmem:[%s3307_s21 + $0x5c] ss:$0 sps:$4 sm:$0x11]  }
  0x4e   : > { %2826 = vmatpush3.bf16.msra.mxu1 %v3092_v60  ;;  %1263 = vmatprep.mubr.bf16.mxu1 %v294_v36  ;;  %v646_v60 = vor.u32 %v645_v52, %v641_v46  ;;  %v1527_v22 = vrot.slane %v1525_v11, 1  ;;  %v1530_v36 = vshrl.u32 %v3581_v26, 16  ;;  %v344_v52 = vshrl.u32 %v3604_v47, 16 }
  0x4f   : > { %2827 = vmatprep.subr.bf16.mxu1 %v3097_v15  ;;  %v325_v19 = vor.u32 %v324_v12, %v320_v6  ;;  %v3643_v12 = vld [vmem:[%s3307_s21 + $0x3c] sm:$0xff]  }
  0x50   : > { %v651_v0 = vsel %vm270_vm1, %v646_v60, %v650_v58  ;;  %v1535_v45 = vor.u32 %v1534_v42, %v1530_v36  ;;  %v1542_v58 = vshrl.u32 %v3611_v50, 16  ;;  %v1554_v11 = vshrl.u32 %v3643_v12, 16  ;;  %v3668_v36 = vld [vmem:[%s3307_s21 + $0x48] sm:$0xff]  }
  0x51   : > { %v330_v27 = vsel %vm270_vm1, %v325_v19, %v329_v18  ;;  %v3650_v18 = vld [vmem:[%s3307_s21 + $0x44] ss:$0 sps:$4 sm:$0x11]   ;;  %v1556_v19 = vshll.u32 %v3643_v12, 16  ;;  %v1568_v42 = vshll.u32 %v3668_v36, 16 }
  0x52   : > { %2828 = vmatpush3.bf16.msra.mxu1 %v3097_v15  ;;  %v1520_v15 = vshll.u32 %v3551_v5, 16 }
  0x53   : > { %958 = vmatmul.mubr.bf16.gmra.mrb[20].mxu0 %v3378_v14  ;;  %v3104_v14 = vld [vmem:[%s3948_s1 + $0x1b0] sm:$0xff]   ;;  %2829 = vmatprep.subr.bf16.mxu1 %v3102_v34 }
  0x54   : > { %965 = vmatprep.mubr.bf16.mxu0 %v639_v44  ;;  %2726 = vmatpush3.bf16.msra.mxu0 %v3104_v14  ;;  %v1522_v20 = vrot.slane %v1520_v15, 1  ;;  %v3601_v14 = vld [vmem:[%s3948_s1 + $0x208] sm:$0xff]   ;;  %v337_v44 = vor.u32 %v336_v37, %v332_v28 }
  0x55   : > { %1264 = vmatmul.mubr.bf16.gmra.mrb[20].mxu1 %v3474_v7  ;;  %2727 = vmatprep.subr.bf16.mxu0 %v3108_v40  ;;  %v1544_v40 = vshll.u32 %v3611_v50, 16 }
  0x56   : > { %2830 = vmatpush3.bf16.msra.mxu1 %v3102_v34  ;;  %1271 = vmatprep.mubr.bf16.mxu1 %v306_v56  ;;  %v1523_v24 = vor.u32 %v1522_v20, %v1518_v13  ;;  %v3589_v34 = vld [vmem:[%s3307_s21 + $0x2c] ss:$0 sps:$4 sm:$0x11]   ;;  %v3620_v56 = vld [vmem:[%s3307_s21 + $0x38] ss:$0 sps:$4 sm:$0x11]   ;;  %v349_v13 = vor.u32 %v348_v61, %v344_v52 }
  0x57   : > { %2831 = vmatprep.subr.bf16.mxu1 %v3107_v51  ;;  %v1537_v43 = vshll.u32 %v3589_v34, 16  ;;  %v356_v20 = vshrl.u32 %v3637_v8, 16  ;;  %v1570_v52 = vrot.slane %v1568_v42, 1  ;;  %v3746_v42 = vld [vmem:[%s3307_s21 + $0x6c] sm:$0xff]  }
  0x58   : > { %2728 = vmatpush3.bf16.msra.mxu0 %v3109_v63  ;;  %v1528_v31 = vsel %vm270_vm1, %v1523_v24, %v1527_v22  ;;  %v353_v63 = vrot.slane %v351_v55, 1  ;;  %v363_v22 = vshll.u32 %v3640_v9, 16  ;;  %v1561_v24 = vshll.u32 %v3650_v18, 16  ;;  %v3692_v55 = vld [vmem:[%s3307_s21 + $0x5c] ss:$0 sps:$4 sm:$0x11]  }
  0x59   : > { %2857 = vmatprep.subr.bf16.mxu0 %v3570_v21  ;;  %v1539_v46 = vrot.slane %v1537_v43, 1 }
  0x5a   : > { %2832 = vmatpush3.bf16.msra.mxu1 %v3107_v51  ;;  %v354_v28 = vsel %vm270_vm1, %v349_v13, %v353_v63  ;;  %v1563_v35 = vrot.slane %v1561_v24, 1  ;;  %v1578_v63 = vshrl.u32 %v3688_v54, 16  ;;  %v376_v13 = vrot.slane %v3452_v57, 1 }
  0x5b   : > { %966 = vmatmul.mubr.bf16.gmra.mrb[24].mxu0 %v3411_v33  ;;  %v318_v33 = vsel %vm270_vm1, %v313_v1, %v317_v2  ;;  %2833 = vmatprep.subr.bf16.mxu1 %v3114_v16  ;;  %v1540_v51 = vsel %vm270_vm1, %v1535_v45, %v1539_v46  ;;  %v1549_v1 = vshll.u32 %v3620_v56, 16  ;;  %v3632_v2 = vld [vmem:[%s3948_s1 + $0x210] sm:$0xff]   ;;  %v1621_v24 = vrot.slane %v3551_v5, 1 }
  0x5c   : > { %973 = vmatprep.mubr.bf16.mxu0 %v651_v0  ;;  %v1546_v0 = vrot.slane %v1544_v40, 1 }
  0x5d   : > { %1272 = vmatmul.mubr.bf16.gmra.mrb[24].mxu1 %v3499_v29  ;;  %v1551_v6 = vrot.slane %v1549_v1, 1 }
  0x5e   : > { %1279 = vmatprep.mubr.bf16.mxu1 %v318_v33  ;;  %2834 = vmatpush3.bf16.msra.mxu1 %v3114_v16  ;;  %v1547_v33 = vor.u32 %v1546_v0, %v1542_v58  ;;  %v358_v16 = vshll.u32 %v3637_v8, 16  ;;  %v1585_v0 = vshll.u32 %v3692_v55, 16 }
  0x5f   : > { %2835 = vmatprep.subr.bf16.mxu1 %v3120_v39 }
  0x60   : > { %v1552_v15 = vsel %vm270_vm1, %v1547_v33, %v1551_v6  ;;  %v360_v30 = vrot.slane %v358_v16, 1  ;;  %v3708_v6 = vld [vmem:[%s3307_s21 + $0x60] sm:$0xff]   ;;  %v3716_v16 = vld [vmem:[%s3948_s1 + $0x230] sm:$0xff]  }
  0x61   : > { %v1592_v57 = vshll.u32 %v3708_v6, 16 }
  0x62   : > { %2836 = vmatpush3.bf16.msra.mxu1 %v3120_v39  ;;  %v3673_v39 = vld [vmem:[%s3307_s21 + $0x50] ss:$0 sps:$4 sm:$0x11]   ;;  %v361_v43 = vor.u32 %v360_v30, %v356_v20  ;;  %v1587_v20 = vrot.slane %v1585_v0, 1  ;;  %v380_v30 = vrot.slane %v3485_v17, 1  ;;  %v382_v17 = vrot.slane %v3499_v29, 1 }
  0x63   : > { %974 = vmatmul.mubr.bf16.gmra.mrb[28].mxu0 %v3418_v38  ;;  %v339_v38 = vshll.u32 %v3578_v25, 16  ;;  %2837 = vmatprep.subr.bf16.mxu1 %v3126_v62  ;;  %v1573_v46 = vshll.u32 %v3673_v39, 16  ;;  %v388_v0 = vrot.slane %v3545_v3, 1 }
  0x64   : > { %1878 = vmatprep.mubr.bf16.mxu0 %v1528_v31  ;;  %v1558_v31 = vrot.slane %v1556_v19, 1 }
  0x65   : > { %1280 = vmatmul.mubr.bf16.gmra.mrb[28].mxu1 %v3522_v48  ;;  %v341_v41 = vrot.slane %v339_v38, 1  ;;  %v3665_v38 = vld [vmem:[%s3948_s1 + $0x218] sm:$0xff]   ;;  %v1575_v40 = vrot.slane %v1573_v46, 1  ;;  %v3757_v46 = vld [vmem:[%s3307_s21 + $0x74] ss:$0 sps:$4 sm:$0x11]  }
  0x66   : > { %1287 = vmatprep.mubr.bf16.mxu1 %v330_v27  ;;  %2838 = vmatpush3.bf16.msra.mxu1 %v3126_v62  ;;  %v3132_v27 = vld [vmem:[%s3948_s1 + $0xb8] sm:$0xff]   ;;  %v1559_v37 = vor.u32 %v1558_v31, %v1554_v11  ;;  %v3700_v62 = vld [vmem:[%s3948_s1 + $0x228] sm:$0xff]  }
  0x67   : > { %v342_v60 = vsel %vm270_vm1, %v337_v44, %v341_v41  ;;  %2839 = vmatprep.subr.bf16.mxu1 %v3132_v27  ;;  %v1566_v41 = vshrl.u32 %v3668_v36, 16  ;;  %v365_v44 = vrot.slane %v363_v22, 1  ;;  %v3720_v11 = vld [vmem:[%s3307_s21 + $0x68] ss:$0 sps:$4 sm:$0x11]   ;;  %v3729_v22 = vld [vmem:[%s3948_s1 + $0x238] sm:$0xff]  }
  0x68   : > { %v1564_v45 = vsel %vm270_vm1, %v1559_v37, %v1563_v35  ;;  %v1624_v35 = vrot.slane %v3581_v26, 1  ;;  %v1625_v37 = vrot.slane %v3589_v34, 1  ;;  %s2243_s21 = sshll.u32 %s3168_s9, 3 }
  0x69   : > { %v1571_v58 = vor.u32 %v1570_v52, %v1566_v41  ;;  %v366_v61 = vsel %vm270_vm1, %v361_v43, %v365_v44  ;;  %v1597_v41 = vshll.u32 %v3720_v11, 16  ;;  %v383_v43 = vrot.slane %v3502_v32, 1  ;;  %p161_p6 = scmp.lt.s32.totalorder %s2243_s21, 15 }
  0x6a   : > { %2840 = vmatpush3.bf16.msra.mxu1 %v3132_v27  ;;  %v1622_v27 = vrot.slane %v3558_v10, 1  ;;  %v1590_v10 = vshrl.u32 %v3708_v6, 16  ;;  %v1604_v52 = vshll.u32 %v3746_v42, 16  ;;  %v385_v32 = vrot.slane %v3522_v48, 1 }
  0x6b   : > { %1879 = vmatmul.mubr.bf16.vlgmr.msra.gmra.mrb[32].mxu0 %v3551_v5  ;;  %2889 = vmatprep.subr.bf16.mxu1 %v3570_v21  ;;  %v1576_v1 = vsel %vm270_vm1, %v1571_v58, %v1575_v40  ;;  %v384_v29 = vsel %vm375_vm0, %v382_v17, %v383_v43  ;;  %v386_v58 = vrot.slane %v3530_v53, 1  ;;  %s3963_s21 = smov (!%p161_p6, %s2243_s21), 15 }
  0x6c   : > { %2858 = vmatpush3.bf16.msra.mxu0 %v3570_v21  ;;  %1886 = vmatprep.mubr.bf16.mxu0 %v1540_v51  ;;  %v3684_v51 = vld [vmem:[%s3948_s1 + $0x220] sm:$0xff]   ;;  %v3738_v31 = vsel %vm375_vm0, %v1621_v24, %v1622_v27  ;;  %s2244_s9 = sshll.u32 %s3963_s21, 1 }
  0x6d   : > { %2859 = vmatprep.subr.bf16.mxu0 %v3601_v14  ;;  %1288 = vmatmul.mubr.bf16.gmra.mrb[32].mxu1 %v3545_v3  ;;  %v387_v48 = vsel %vm375_vm0, %v385_v32, %v386_v58  ;;  %v391_v3 = vrot.slane %v3574_v23, 1  ;;  %s165_s25 = sadd.s32 %s2245_s24, %s2244_s9 }
  0x6e   : > { %1295 = vmatprep.mubr.bf16.mxu1 %v342_v60  ;;  %v1580_v60 = vshll.u32 %v3688_v54, 16  ;;  %s2246_s26 = sshll.u32 %s165_s25, 2 }
  0x6f   : > { %s3894_s29 = scalar_lea.vmem %s3949_s2, %s2246_s26 }
  0x70   : > { %2860 = vmatpush3.bf16.msra.mxu0 %v3601_v14  ;;  %v1582_v33 = vrot.slane %v1580_v60, 1  ;;  %v1602_v60 = vshrl.u32 %v3746_v42, 16 }
  0x71   : > { %2861 = vmatprep.subr.bf16.mxu0 %v3632_v2 }
  0x72   : > { %v1583_v19 = vor.u32 %v1582_v33, %v1578_v63  ;;  %v1609_v63 = vshll.u32 %v3757_v46, 16 }
  0x73   : > { %1887 = vmatmul.mubr.bf16.gmra.mrb[36].mxu0 %v3581_v26  ;;  %v3752_v26 = vsel %vm375_vm0, %v1624_v35, %v1625_v37 }
  0x74   : > { %1894 = vmatprep.mubr.bf16.mxu0 %v1552_v15  ;;  %2862 = vmatpush3.bf16.msra.mxu0 %v3632_v2  ;;  %v377_v15 = vrot.slane %v3455_v59, 1  ;;  %v1588_v5 = vsel %vm270_vm1, %v1583_v19, %v1587_v20  ;;  %v1630_v20 = vrot.slane %v3643_v12, 1 }
  0x75   : > { %1296 = vmatmul.mubr.bf16.gmra.mrb[36].mxu1 %v3574_v23  ;;  %2863 = vmatprep.subr.bf16.mxu0 %v3665_v38 }
  0x76   : > { %1303 = vmatprep.mubr.bf16.mxu1 %v354_v28  ;;  %v378_v59 = vsel %vm375_vm0, %v376_v13, %v377_v15  ;;  %v379_v28 = vrot.slane %v3474_v7, 1  ;;  %v1594_v7 = vrot.slane %v1592_v57, 1  ;;  %v395_v15 = vrot.slane %v3608_v49, 1 }
  0x77   : > { %v1633_v49 = vrot.slane %v3668_v36, 1 }
  0x78   : > { %2864 = vmatpush3.bf16.msra.mxu0 %v3665_v38  ;;  %v381_v34 = vsel %vm375_vm0, %v379_v28, %v380_v30  ;;  %v1595_v44 = vor.u32 %v1594_v7, %v1590_v10 }
  0x79   : > { %2865 = vmatprep.subr.bf16.mxu0 %v3684_v51 }
  0x7b   : > { %1895 = vmatmul.mubr.bf16.gmra.mrb[40].mxu0 %v3611_v50 }
  0x7c   : > { %1902 = vmatprep.mubr.bf16.mxu0 %v1564_v45  ;;  %2866 = vmatpush3.bf16.msra.mxu0 %v3684_v51  ;;  %v1599_v45 = vrot.slane %v1597_v41, 1 }
  0x7d   : > { %1304 = vmatmul.mubr.bf16.gmra.mrb[40].mxu1 %v3604_v47  ;;  %2867 = vmatprep.subr.bf16.mxu0 %v3700_v62 }
  0x7e   : > { %1311 = vmatprep.mubr.bf16.mxu1 %v366_v61  ;;  %v1600_v40 = vsel %vm270_vm1, %v1595_v44, %v1599_v45  ;;  %v1606_v61 = vrot.slane %v1604_v52, 1 }
  0x80   : > { %2868 = vmatpush3.bf16.msra.mxu0 %v3700_v62  ;;  %v1607_v53 = vor.u32 %v1606_v61, %v1602_v60 }
  0x81   : > { %2869 = vmatprep.subr.bf16.mxu0 %v3716_v16 }
  0x83   : > { %1903 = vmatmul.mubr.bf16.gmra.mrb[44].mxu0 %v3643_v12 }
  0x84   : > { %1910 = vmatprep.mubr.bf16.mxu0 %v1576_v1  ;;  %2870 = vmatpush3.bf16.msra.mxu0 %v3716_v16  ;;  %v389_v1 = vrot.slane %v3548_v4, 1  ;;  %v392_v4 = vrot.slane %v3578_v25, 1  ;;  %v397_v25 = vrot.slane %v3637_v8, 1 }
  0x85   : > { %1312 = vmatmul.mubr.bf16.gmra.mrb[44].mxu1 %v3637_v8  ;;  %2871 = vmatprep.subr.bf16.mxu0 %v3729_v22  ;;  %v1628_v8 = vrot.slane %v3620_v56, 1  ;;  %v1640_v56 = vrot.slane %v3720_v11, 1  ;;  %v1643_v11 = vrot.slane %v3757_v46, 1 }
  0x86   : > { %2841 = vmatprep.mubr.bf16.mxu1 %v378_v59  ;;  %v390_v33 = vsel %vm375_vm0, %v388_v0, %v389_v1 }
  0x88   : > { %2872 = vmatpush3.bf16.msra.mxu0 %v3729_v22 }
  0x8b   : > { %1911 = vmatmul.mubr.bf16.gmra.mrb[48].mxu0 %v3668_v36  ;;  %v1636_v36 = vrot.slane %v3688_v54, 1 }
  0x8c   : > { %1918 = vmatprep.mubr.bf16.mxu0 %v1588_v5 }
  0x8d   : > { %2842 = vmatmul.mubr.bf16.vlgmr.msra.gmra.mrb[0].mxu1 %v381_v34 }
  0x8e   : > { %2897 = vmatpush3.bf16.msra.mxu1 %v3570_v21  ;;  %2845 = vmatprep.mubr.bf16.mxu1 %v384_v29  ;;  %v1611_v21 = vrot.slane %v1609_v63, 1 }
  0x8f   : > { %2890 = vmatprep.subr.bf16.mxu1 %v3601_v14 }
  0x90   : > { %v1612_v13 = vsel %vm270_vm1, %v1607_v53, %v1611_v21 }
  0x92   : > { %2898 = vmatpush3.bf16.msra.mxu1 %v3601_v14  ;;  %v394_v14 = vrot.slane %v3604_v47, 1  ;;  %v398_v47 = vrot.slane %v3640_v9, 1 }
  0x93   : > { %1919 = vmatmul.mubr.bf16.gmra.mrb[52].mxu0 %v3688_v54  ;;  %2891 = vmatprep.subr.bf16.mxu1 %v3632_v2 }
  0x94   : > { %1926 = vmatprep.mubr.bf16.mxu0 %v1600_v40  ;;  %v396_v23 = vsel %vm375_vm0, %v394_v14, %v395_v15  ;;  %v399_v19 = vsel %vm375_vm0, %v397_v25, %v398_v47 }
  0x95   : > { %2846 = vmatmul.mubr.bf16.gmra.mrb[4].mxu1 %v387_v48 }
  0x96   : > { %2899 = vmatpush3.bf16.msra.mxu1 %v3632_v2  ;;  %2849 = vmatprep.mubr.bf16.mxu1 %v390_v33  ;;  %v393_v2 = vsel %vm375_vm0, %v391_v3, %v392_v4 }
  0x97   : > { %2892 = vmatprep.subr.bf16.mxu1 %v3665_v38 }
  0x9a   : > { %2900 = vmatpush3.bf16.msra.mxu1 %v3665_v38  ;;  %v1634_v38 = vrot.slane %v3673_v39, 1  ;;  %v1637_v39 = vrot.slane %v3692_v55, 1 }
  0x9b   : > { %1927 = vmatmul.mubr.bf16.gmra.mrb[56].mxu0 %v3708_v6  ;;  %2893 = vmatprep.subr.bf16.mxu1 %v3684_v51 }
  0x9c   : > { %1934 = vmatprep.mubr.bf16.mxu0 %v1612_v13  ;;  %v1635_v9 = vsel %vm375_vm0, %v1633_v49, %v1634_v38  ;;  %v1638_v54 = vsel %vm375_vm0, %v1636_v36, %v1637_v39 }
  0x9d   : > { %2850 = vmatmul.mubr.bf16.gmra.mrb[8].mxu1 %v393_v2 }
  0x9e   : > { %2901 = vmatpush3.bf16.msra.mxu1 %v3684_v51  ;;  %2853 = vmatprep.mubr.bf16.mxu1 %v396_v23  ;;  %v1627_v51 = vrot.slane %v3611_v50, 1  ;;  %v1639_v50 = vrot.slane %v3708_v6, 1  ;;  %v1642_v6 = vrot.slane %v3746_v42, 1 }
  0x9f   : > { %2894 = vmatprep.subr.bf16.mxu1 %v3700_v62 }
  0xa0   : > { %v1641_v55 = vsel %vm375_vm0, %v1639_v50, %v1640_v56  ;;  %v1644_v59 = vsel %vm375_vm0, %v1642_v6, %v1643_v11 }
  0xa2   : > { %2902 = vmatpush3.bf16.msra.mxu1 %v3700_v62  ;;  %v1629_v62 = vsel %vm375_vm0, %v1627_v51, %v1628_v8 }
  0xa3   : > { %1935 = vmatmul.mubr.bf16.gmra.mrb[60].mxu0 %v3746_v42  ;;  %2895 = vmatprep.subr.bf16.mxu1 %v3716_v16 }
  0xa4   : > { %2873 = vmatprep.mubr.bf16.mxu0 %v3738_v31 }
  0xa5   : > { %2854 = vmatmul.mubr.bf16.gmra.mrb[12].mxu1 %v399_v19 }
  0xa6   : > { %2903 = vmatpush3.bf16.msra.mxu1 %v3716_v16  ;;  %2881 = vmatprep.mubr.bf16.mxu1 %v1635_v9  ;;  %v1631_v16 = vrot.slane %v3650_v18, 1 }
  0xa7   : > { %2896 = vmatprep.subr.bf16.mxu1 %v3729_v22 }
  0xa8   : > { %v1632_v57 = vsel %vm375_vm0, %v1630_v20, %v1631_v16 }
  0xaa   : > { %2904 = vmatpush3.bf16.msra.mxu1 %v3729_v22 }
  0xab   : > { %2874 = vmatmul.mubr.bf16.vlgmr.msra.gmra.mrb[64].mxu0 %v3752_v26 }
  0xac   : > { %2877 = vmatprep.mubr.bf16.mxu0 %v1629_v62 }
  0xad   : > { %2882 = vmatmul.mubr.bf16.vlgmr.msra.gmra.mrb[8].mxu1 %v1638_v54 }
  0xae   : > { %2885 = vmatprep.mubr.bf16.mxu1 %v1641_v55 }
  0xb3   : > { %2878 = vmatmul.mubr.bf16.gmra.mrb[68].mxu0 %v1632_v57 }
  0xb5   : > { %2886 = vmatmul.mubr.bf16.gmra.mrb[12].mxu1 %v1644_v59 }
  0xfe   : > { %v2569_v12 = vpop.f32.mrb[0].mxu0 }
  0xff   : > { %v2570_v18 = vpop.f32.mrb[1].mxu0 }
 0x100   : > { %v2571_v24 = vadd.f32 %v2570_v18, %v2569_v12  ;;  %v2572_v22 = vpop.f32.mrb[2].mxu0 }
 0x101   : > { %v2573_v27 = vpop.f32.mrb[3].mxu0 }
 0x102   : > { %v2574_v28 = vadd.f32 %v2573_v27, %v2572_v22 }
 0x106   : > { %v2575_v30 = vpop.f32.mrb[4].mxu0 }
 0x107   : > { %v2576_v31 = vpop.f32.mrb[5].mxu0 }
 0x108   : > { %v2577_v35 = vadd.f32 %v2576_v31, %v2575_v30  ;;  %v2578_v37 = vpop.f32.mrb[6].mxu0 }
 0x109   : > { %v2579_v5 = vpop.f32.mrb[7].mxu0 }
 0x10a   : > { %v2580_v10 = vadd.f32 %v2579_v5, %v2578_v37 }
 0x10e   : > { %v2581_v7 = vpop.f32.mrb[8].mxu0 }
 0x10f   : > { %v2582_v41 = vpop.f32.mrb[9].mxu0 }
 0x110   : > { %v2583_v42 = vadd.f32 %v2582_v41, %v2581_v7  ;;  %v2584_v17 = vpop.f32.mrb[10].mxu0 }
 0x111   : > { %v2585_v43 = vpop.f32.mrb[11].mxu0 }
 0x112   : > { %v2586_v26 = vadd.f32 %v2585_v43, %v2584_v17 }
 0x116   : > { %v2587_v34 = vpop.f32.mrb[12].mxu0 }
 0x117   : > { %v2588_v44 = vpop.f32.mrb[13].mxu0 }
 0x118   : > { %v2589_v45 = vadd.f32 %v2588_v44, %v2587_v34  ;;  %v2590_v46 = vpop.f32.mrb[14].mxu0 }
 0x119   : > { %v2591_v52 = vpop.f32.mrb[15].mxu0 }
 0x11a   : > { %v2592_v29 = vadd.f32 %v2591_v52, %v2590_v46 }
 0x11e   : > { %v2593_v32 = vpop.f32.mrb[16].mxu0 }
 0x11f   : > { %v2594_v58 = vpop.f32.mrb[17].mxu0 }
 0x120   : > { %v3818_v40 = vadd.f32 %v2594_v58, %v2593_v32  ;;  %v2596_v60 = vpop.f32.mrb[18].mxu0  ;;  %v2649_v0 = vpop.f32.mrb[16].mxu1 }
 0x121   : > { %v2597_v61 = vpop.f32.mrb[19].mxu0  ;;  %v2650_v1 = vpop.f32.mrb[17].mxu1 }
 0x122   : > { %v3820_v63 = vadd.f32 %v2597_v61, %v2596_v60  ;;  %v2651_v48 = vadd.f32 %v2650_v1, %v2649_v0  ;;  %v2652_v53 = vpop.f32.mrb[18].mxu1 }
 0x123   : > { %v2653_v21 = vpop.f32.mrb[19].mxu1 }
 0x124   : > { %v2654_v3 = vadd.f32 %v2653_v21, %v2652_v53  ;;  %v3822_v13 = vadd.f32 %v2651_v48, %v2571_v24 }
 0x126   : > { %v2599_v33 = vpop.f32.mrb[20].mxu0  ;;  %v3826_v23 = vadd.f32 %v2654_v3, %v2574_v28 }
 0x127   : > { %v2600_v4 = vpop.f32.mrb[21].mxu0 }
 0x128   : > { %v3824_v14 = vadd.f32 %v2600_v4, %v2599_v33  ;;  %v2602_v15 = vpop.f32.mrb[22].mxu0  ;;  %v2655_v47 = vpop.f32.mrb[20].mxu1 }
 0x129   : > { %v2603_v2 = vpop.f32.mrb[23].mxu0  ;;  %v2656_v49 = vpop.f32.mrb[21].mxu1 }
 0x12a   : > { %v3828_v25 = vadd.f32 %v2603_v2, %v2602_v15  ;;  %v2657_v38 = vadd.f32 %v2656_v49, %v2655_v47  ;;  %v2658_v19 = vpop.f32.mrb[22].mxu1 }
 0x12b   : > { %v2659_v51 = vpop.f32.mrb[23].mxu1 }
 0x12c   : > { %v2660_v9 = vadd.f32 %v2659_v51, %v2658_v19  ;;  %v3830_v39 = vadd.f32 %v2657_v38, %v2577_v35 }
 0x12e   : > { %v2605_v8 = vpop.f32.mrb[24].mxu0  ;;  %v3834_v20 = vadd.f32 %v2660_v9, %v2580_v10 }
 0x12f   : > { %v2606_v36 = vpop.f32.mrb[25].mxu0 }
 0x130   : > { %v3832_v62 = vadd.f32 %v2606_v36, %v2605_v8  ;;  %v2608_v50 = vpop.f32.mrb[26].mxu0  ;;  %v2661_v54 = vpop.f32.mrb[24].mxu1 }
 0x131   : > { %v2609_v56 = vpop.f32.mrb[27].mxu0  ;;  %v2662_v55 = vpop.f32.mrb[25].mxu1 }
 0x132   : > { %v3836_v16 = vadd.f32 %v2609_v56, %v2608_v50  ;;  %v2663_v57 = vadd.f32 %v2662_v55, %v2661_v54  ;;  %v2664_v6 = vpop.f32.mrb[26].mxu1 }
 0x133   : > { %v2665_v11 = vpop.f32.mrb[27].mxu1 }
 0x134   : > { %v2666_v12 = vadd.f32 %v2665_v11, %v2664_v6  ;;  %v3838_v24 = vadd.f32 %v2663_v57, %v2583_v42 }
 0x136   : > { %v2611_v59 = vpop.f32.mrb[28].mxu0  ;;  %v3842_v30 = vadd.f32 %v2666_v12, %v2586_v26 }
 0x137   : > { %v2612_v18 = vpop.f32.mrb[29].mxu0 }
 0x138   : > { %v3840_v22 = vadd.f32 %v2612_v18, %v2611_v59  ;;  %v2614_v27 = vpop.f32.mrb[30].mxu0  ;;  %v2667_v35 = vpop.f32.mrb[28].mxu1 }
 0x139   : > { %v2615_v28 = vpop.f32.mrb[31].mxu0  ;;  %v2668_v37 = vpop.f32.mrb[29].mxu1 }
 0x13a   : > { %v3844_v31 = vadd.f32 %v2615_v28, %v2614_v27  ;;  %v2669_v5 = vadd.f32 %v2668_v37, %v2667_v35  ;;  %v2670_v10 = vpop.f32.mrb[30].mxu1 }
 0x13b   : > { %v2671_v7 = vpop.f32.mrb[31].mxu1 }
 0x13c   : > { %v2672_v17 = vadd.f32 %v2671_v7, %v2670_v10  ;;  %v3846_v34 = vadd.f32 %v2669_v5, %v2589_v45 }
 0x13e   : > { %v2729_v41 = vpop.f32.mrb[32].mxu0  ;;  %v3850_v52 = vadd.f32 %v2672_v17, %v2592_v29 }
 0x13f   : > { %v2730_v43 = vpop.f32.mrb[33].mxu0 }
 0x140   : > { %v3848_v42 = vadd.f32 %v2730_v43, %v2729_v41  ;;  %v2732_v44 = vpop.f32.mrb[34].mxu0  ;;  %v2673_v32 = vpop.f32.mrb[32].mxu1 }
 0x141   : > { %v2733_v46 = vpop.f32.mrb[35].mxu0  ;;  %v2674_v58 = vpop.f32.mrb[33].mxu1 }
 0x142   : > { %v3852_v26 = vadd.f32 %v2733_v46, %v2732_v44  ;;  %v2675_v60 = vadd.f32 %v2674_v58, %v2673_v32  ;;  %v2676_v61 = vpop.f32.mrb[34].mxu1 }
 0x143   : > { %v2677_v0 = vpop.f32.mrb[35].mxu1 }
 0x144   : > { %v2940_v48 = vadd.f32 %v2675_v60, %v3818_v40  ;;  %v2678_v53 = vadd.f32 %v2677_v0, %v2676_v61 }
 0x146   : > { %v2735_v1 = vpop.f32.mrb[36].mxu0  ;;  %v2946_v3 = vadd.f32 %v2678_v53, %v3820_v63 }
 0x147   : > { %v2736_v21 = vpop.f32.mrb[37].mxu0 }
 0x148   : > { %v2737_v45 = vadd.f32 %v2736_v21, %v2735_v1  ;;  %v2738_v33 = vpop.f32.mrb[38].mxu0  ;;  %v2679_v29 = vpop.f32.mrb[36].mxu1 }
 0x149   : > { %v2739_v4 = vpop.f32.mrb[39].mxu0  ;;  %v2680_v2 = vpop.f32.mrb[37].mxu1 }
 0x14a   : > { %v2740_v15 = vadd.f32 %v2739_v4, %v2738_v33  ;;  %v2681_v47 = vadd.f32 %v2680_v2, %v2679_v29  ;;  %v2682_v49 = vpop.f32.mrb[38].mxu1 }
 0x14b   : > { %v2683_v38 = vpop.f32.mrb[39].mxu1 }
 0x14c   : > { %v2937_v51 = vadd.f32 %v2681_v47, %v3824_v14  ;;  %v2684_v8 = vadd.f32 %v2683_v38, %v2682_v49 }
 0x14e   : > { %v2741_v19 = vpop.f32.mrb[40].mxu0  ;;  %v2943_v50 = vadd.f32 %v2684_v8, %v3828_v25 }
 0x14f   : > { %v2742_v9 = vpop.f32.mrb[41].mxu0 }
 0x150   : > { %v3857_v36 = vadd.f32 %v2742_v9, %v2741_v19  ;;  %v2744_v40 = vpop.f32.mrb[42].mxu0  ;;  %v2685_v63 = vpop.f32.mrb[40].mxu1 }
 0x151   : > { %v2745_v56 = vpop.f32.mrb[43].mxu0  ;;  %v2686_v55 = vpop.f32.mrb[41].mxu1 }
 0x152   : > { %v3860_v54 = vadd.f32 %v2745_v56, %v2744_v40  ;;  %v2687_v57 = vadd.f32 %v2686_v55, %v2685_v63  ;;  %v2688_v6 = vpop.f32.mrb[42].mxu1 }
 0x153   : > { %v2689_v11 = vpop.f32.mrb[43].mxu1 }
 0x154   : > { %v3863_v12 = vadd.f32 %v2687_v57, %v3832_v62  ;;  %v2690_v14 = vadd.f32 %v2689_v11, %v2688_v6 }
 0x156   : > { %v2747_v59 = vpop.f32.mrb[44].mxu0  ;;  %v2958_v35 = vadd.f32 %v2690_v14, %v3836_v16 }
 0x157   : > { %v2748_v18 = vpop.f32.mrb[45].mxu0 }
 0x158   : > { %v2749_v27 = vadd.f32 %v2748_v18, %v2747_v59  ;;  %v2750_v28 = vpop.f32.mrb[46].mxu0  ;;  %v2691_v5 = vpop.f32.mrb[44].mxu1 }
 0x159   : > { %v2751_v37 = vpop.f32.mrb[47].mxu0  ;;  %v2692_v10 = vpop.f32.mrb[45].mxu1 }
 0x15a   : > { %v2752_v25 = vadd.f32 %v2751_v37, %v2750_v28  ;;  %v2693_v7 = vadd.f32 %v2692_v10, %v2691_v5  ;;  %v2694_v41 = vpop.f32.mrb[46].mxu1 }
 0x15b   : > { %v2695_v17 = vpop.f32.mrb[47].mxu1 }
 0x15c   : > { %v2949_v44 = vadd.f32 %v2693_v7, %v3840_v22  ;;  %v2696_v46 = vadd.f32 %v2695_v17, %v2694_v41 }
 0x15e   : > { %v2753_v43 = vpop.f32.mrb[48].mxu0  ;;  %v2955_v60 = vadd.f32 %v2696_v46, %v3844_v31 }
 0x15f   : > { %v2754_v32 = vpop.f32.mrb[49].mxu0 }
 0x160   : > { %v2755_v62 = vadd.f32 %v2754_v32, %v2753_v43  ;;  %v2756_v58 = vpop.f32.mrb[50].mxu0  ;;  %v2843_v16 = vpop.f32.mrb[0].mxu1 }
 0x161   : > { %v2757_v61 = vpop.f32.mrb[51].mxu0  ;;  %v2906_v53 = vadd.f32 %v3830_v39, %v2843_v16  ;;  %v1354_v21 = vpop.f32.mrb[1].mxu1 }
 0x162   : > { %v2758_v0 = vadd.f32 %v2757_v61, %v2756_v58  ;;  %v3868_v1 = vadd.f32 %v2940_v48, %v2755_v62  ;;  %v2910_v4 = vadd.f32 %v3822_v13, %v1354_v21  ;;  %v2844_v29 = vpop.f32.mrb[2].mxu1 }
 0x163   : > { %v2914_v22 = vadd.f32 %v3834_v20, %v2844_v29  ;;  %v1357_v2 = vpop.f32.mrb[3].mxu1  ;;  %v2907_v49 = vadd.f32 %v2906_v53, %v2737_v45 }
 0x164   : > { %v3871_v33 = vadd.f32 %v2946_v3, %v2758_v0  ;;  %v2918_v31 = vadd.f32 %v3826_v23, %v1357_v2  ;;  %v2911_v48 = vadd.f32 %v2910_v4, %v3848_v42 }
 0x165   : > { %v2915_v39 = vadd.f32 %v2914_v22, %v2740_v15 }
 0x166   : > { %v2759_v47 = vpop.f32.mrb[52].mxu0  ;;  %v2919_v3 = vadd.f32 %v2918_v31, %v3852_v26 }
 0x167   : > { %v2760_v38 = vpop.f32.mrb[53].mxu0 }
 0x168   : > { %v2761_v19 = vadd.f32 %v2760_v38, %v2759_v47  ;;  %v2762_v8 = vpop.f32.mrb[54].mxu0  ;;  %v2847_v56 = vpop.f32.mrb[4].mxu1 }
 0x169   : > { %v2763_v9 = vpop.f32.mrb[55].mxu0  ;;  %v2922_v20 = vadd.f32 %v3846_v34, %v2847_v56  ;;  %v1370_v63 = vpop.f32.mrb[5].mxu1 }
 0x16a   : > { %v2764_v40 = vadd.f32 %v2763_v9, %v2762_v8  ;;  %v2938_v13 = vadd.f32 %v2937_v51, %v2761_v19  ;;  %v2926_v45 = vadd.f32 %v3838_v24, %v1370_v63  ;;  %v2848_v23 = vpop.f32.mrb[6].mxu1 }
 0x16b   : > { %v2930_v57 = vadd.f32 %v3850_v52, %v2848_v23  ;;  %v1373_v42 = vpop.f32.mrb[7].mxu1  ;;  %v2923_v11 = vadd.f32 %v2922_v20, %v2749_v27 }
 0x16c   : > { %v2944_v55 = vadd.f32 %v2943_v50, %v2764_v40  ;;  %v2934_v15 = vadd.f32 %v3842_v30, %v1373_v42  ;;  %v2927_v51 = vadd.f32 %v2926_v45, %v3857_v36 }
 0x16d   : > { %v2931_v14 = vadd.f32 %v2930_v57, %v2752_v25 }
 0x16e   : > { %v2765_v6 = vpop.f32.mrb[56].mxu0  ;;  %v2935_v50 = vadd.f32 %v2934_v15, %v3860_v54 }
 0x16f   : > { %v2766_v26 = vpop.f32.mrb[57].mxu0 }
 0x170   : > { %v2767_v59 = vadd.f32 %v2766_v26, %v2765_v6  ;;  %v2768_v34 = vpop.f32.mrb[58].mxu0 }
 0x171   : > { %v2769_v18 = vpop.f32.mrb[59].mxu0 }
 0x172   : > { %v2770_v24 = vadd.f32 %v2769_v18, %v2768_v34  ;;  %v3886_v28 = vadd.f32 %v3863_v12, %v2767_v59 }
 0x174   : > { %v3888_v52 = vadd.f32 %v2958_v35, %v2770_v24 }
 0x176   : > { %v2771_v27 = vpop.f32.mrb[60].mxu0 }
 0x177   : > { %v2772_v30 = vpop.f32.mrb[61].mxu0 }
 0x178   : > { %v2773_v37 = vadd.f32 %v2772_v30, %v2771_v27  ;;  %v2774_v5 = vpop.f32.mrb[62].mxu0 }
 0x179   : > { %v2775_v36 = vpop.f32.mrb[63].mxu0 }
 0x17a   : > { %v2776_v10 = vadd.f32 %v2775_v36, %v2774_v5  ;;  %v2950_v25 = vadd.f32 %v2949_v44, %v2773_v37 }
 0x17c   : > { %v2956_v7 = vadd.f32 %v2955_v60, %v2776_v10 }
 0x17e   : > { %v2875_v54 = vpop.f32.mrb[64].mxu0 }
 0x17f   : > { %v2908_v41 = vadd.f32 %v2907_v49, %v2875_v54  ;;  %v1977_v17 = vpop.f32.mrb[65].mxu0 }
 0x180   : > { %v2912_v12 = vadd.f32 %v2911_v48, %v1977_v17  ;;  %v2876_v35 = vpop.f32.mrb[66].mxu0  ;;  %v2883_v58 = vpop.f32.mrb[8].mxu1 }
 0x181   : > { %v2539_v43 = vpack.c.bf16 %v2908_v41, %v2908_v41  ;;  %v2916_v46 = vadd.f32 %v2915_v39, %v2876_v35  ;;  %v1980_v44 = vpop.f32.mrb[67].mxu0  ;;  %v2939_v61 = vadd.f32 %v2938_v13, %v2883_v58  ;;  %v2009_v0 = vpop.f32.mrb[9].mxu1 }
 0x182   : > { %v2537_v32 = vpack.c.bf16 %v2912_v12, %v2912_v12  ;;  %v2920_v62 = vadd.f32 %v2919_v3, %v1980_v44  ;;  %v2942_v53 = vadd.f32 %v3868_v1, %v2009_v0  ;;  %v2884_v21 = vpop.f32.mrb[10].mxu1 }
 0x183   : > { %2123 = vst.msk [vmem:[%s3894_s29 + $0x8] sm:$0xf] %vm2120_vm2, %v2539_v43  ;;  %v2540_v60 = vpack.c.bf16 %v2916_v46, %v2916_v46  ;;  %v2547_v4 = vpack.c.bf16 %v2939_v61, %v2939_v61  ;;  %v2945_v29 = vadd.f32 %v2944_v55, %v2884_v21  ;;  %v2012_v22 = vpop.f32.mrb[11].mxu1 }
 0x184   : > { %2121 = vst.msk [vmem:[%s3894_s29] sm:$0xf] %vm2120_vm2, %v2537_v32  ;;  %v2538_v16 = vpack.c.bf16 %v2920_v62, %v2920_v62  ;;  %v2545_v47 = vpack.c.bf16 %v2942_v53, %v2942_v53  ;;  %v2948_v49 = vadd.f32 %v3871_v33, %v2012_v22 }
 0x185   : > { %2124 = vst.msk [vmem:[%s3894_s29 + $0xc] sm:$0xf] %vm2120_vm2, %v2540_v60  ;;  %2131 = vst.msk [vmem:[%s3894_s29 + $0x28] sm:$0xf] %vm2120_vm2, %v2547_v4  ;;  %v2548_v1 = vpack.c.bf16 %v2945_v29, %v2945_v29 }
 0x186   : > { %2122 = vst.msk [vmem:[%s3894_s29 + $0x4] sm:$0xf] %vm2120_vm2, %v2538_v16  ;;  %v2879_v2 = vpop.f32.mrb[68].mxu0  ;;  %2129 = vst.msk [vmem:[%s3894_s29 + $0x20] sm:$0xf] %vm2120_vm2, %v2545_v47  ;;  %v2546_v8 = vpack.c.bf16 %v2948_v49, %v2948_v49 }
 0x187   : > { %v2924_v31 = vadd.f32 %v2923_v11, %v2879_v2  ;;  %v1993_v38 = vpop.f32.mrb[69].mxu0  ;;  %2132 = vst.msk [vmem:[%s3894_s29 + $0x2c] sm:$0xf] %vm2120_vm2, %v2548_v1 }
 0x188   : > { %v2928_v48 = vadd.f32 %v2927_v51, %v1993_v38  ;;  %v2880_v19 = vpop.f32.mrb[70].mxu0  ;;  %2130 = vst.msk [vmem:[%s3894_s29 + $0x24] sm:$0xf] %vm2120_vm2, %v2546_v8  ;;  %v2887_v13 = vpop.f32.mrb[12].mxu1 }
 0x189   : > { %v2543_v39 = vpack.c.bf16 %v2924_v31, %v2924_v31  ;;  %v2932_v9 = vadd.f32 %v2931_v14, %v2880_v19  ;;  %v1996_v3 = vpop.f32.mrb[71].mxu0  ;;  %v2951_v20 = vadd.f32 %v2950_v25, %v2887_v13  ;;  %v2025_v63 = vpop.f32.mrb[13].mxu1 }
 0x18a   : > { %v2541_v33 = vpack.c.bf16 %v2928_v48, %v2928_v48  ;;  %v2936_v40 = vadd.f32 %v2935_v50, %v1996_v3  ;;  %v2954_v45 = vadd.f32 %v3886_v28, %v2025_v63  ;;  %v2888_v23 = vpop.f32.mrb[14].mxu1 }
 0x18b   : > { %2127 = vst.msk [vmem:[%s3894_s29 + $0x18] sm:$0xf] %vm2120_vm2, %v2543_v39  ;;  %v2544_v56 = vpack.c.bf16 %v2932_v9, %v2932_v9  ;;  %v2551_v57 = vpack.c.bf16 %v2951_v20, %v2951_v20  ;;  %v2957_v42 = vadd.f32 %v2956_v7, %v2888_v23  ;;  %v2028_v6 = vpop.f32.mrb[15].mxu1 }
 0x18c   : > { %2125 = vst.msk [vmem:[%s3894_s29 + $0x10] sm:$0xf] %vm2120_vm2, %v2541_v33  ;;  %v2542_v55 = vpack.c.bf16 %v2936_v40, %v2936_v40  ;;  %v2549_v11 = vpack.c.bf16 %v2954_v45, %v2954_v45  ;;  %v2960_v15 = vadd.f32 %v3888_v52, %v2028_v6 }
 0x18d   : > { %2128 = vst.msk [vmem:[%s3894_s29 + $0x1c] sm:$0xf] %vm2120_vm2, %v2544_v56  ;;  %2135 = vst.msk [vmem:[%s3894_s29 + $0x38] sm:$0xf] %vm2120_vm2, %v2551_v57  ;;  %v2552_v26 = vpack.c.bf16 %v2957_v42, %v2957_v42 }
 0x18e   : > { %2126 = vst.msk [vmem:[%s3894_s29 + $0x14] sm:$0xf] %vm2120_vm2, %v2542_v55  ;;  %2133 = vst.msk [vmem:[%s3894_s29 + $0x30] sm:$0xf] %vm2120_vm2, %v2549_v11  ;;  %v2550_v51 = vpack.c.bf16 %v2960_v15, %v2960_v15 }
 0x18f   : > { %2136 = vst.msk [vmem:[%s3894_s29 + $0x3c] sm:$0xf] %vm2120_vm2, %v2552_v26 }
 0x190   : > { %2134 = vst.msk [vmem:[%s3894_s29 + $0x34] sm:$0xf] %vm2120_vm2, %v2550_v51 }
 0x191 PF: > { %s12_s13 = sadd.s32 1, %s3184_s13   ;;  %s3950_s9 = smov %s3176_s11 }
 0x192   : > { %p9_p7 = scmp.ge.s32.totalorder %s12_s13, 6   ;;  %s3951_s10 = smov %s3180_s12 }
 0x193   : > { %s3952_s11 = smov %s3955_s14  ;;  %s3953_s12 = smov %s3959_s15 }
 0x194   :  { %11 = sbr.rel (!%p9_p7) target bundleno = 3 (0x3), region = 63 }

// kernel: basenet_forward.17
= control target key start
LH: loop header
LB: loop body
LE: loop exit
PB: predicated region body
PF: predicated region fallthrough
CT: control target
= control target key end

     0   :  { %s726_s21 = smov 0   ;;  %s778_s0 = inlined_call_operand.vmem [shape: bf16[128,64], index: 0, kind: input, shape index: {}]   ;;  %s779_s1 = inlined_call_operand.vmem [shape: f32[1,64], index: 1, kind: input, shape index: {}]   ;;  %s780_s2 = inlined_call_operand.vmem [shape: f32[1,64], index: 2, kind: input, shape index: {}]   ;;  %s781_s3 = inlined_call_operand.vmem [shape: bf16[64,128], index: 3, kind: input, shape index: {}]   ;;  %s782_s4 = inlined_call_operand.vmem [shape: f32[1,128], index: 4, kind: input, shape index: {}]   ;;  %s783_s5 = inlined_call_operand.vmem [shape: f32[1,128], index: 5, kind: input, shape index: {}]   ;;  %s784_s6 = inlined_call_operand.vmem [shape: bf16[128,128], index: 6, kind: output, shape index: {}]  }
   0x1 LB: > { %s558_s22 = sadd.s32 4294967295, %s689_s21   ;;  %p562_p0 = scmp.ge.s32.totalorder %s689_s21, 1  ;;  %s689_s21 = sphi %s726_s21, %s16_s21  }
   0x2   : > { %p213_p1 = scmp.lt.s32.totalorder %s689_s21, 3 }
   0x4   : > { %p214_p2 = pnand %p562_p0, %p213_p1 }
   0x5   : > { %v679_v0 = vld [vmem:[%s781_s3] sm:$0xff] (!%p214_p2)   ;;  %s563_s25 = sshll.u32 (!%p214_p2), %s558_s22, 3  ;;  %v680_v1 = vld [vmem:[%s781_s3 + $0x8] sm:$0xff] (!%p214_p2)   ;;  %v681_v2 = vld [vmem:[%s781_s3 + $0x10] sm:$0xff] (!%p214_p2)   ;;  %vm346_vm0 = vcmask (!%p214_p2), 523264  }
   0x6   : > { %217 = sbr.rel (%p214_p2) target bundleno = 252 (0xfc), region = 44  ;;  %p244_p3 = scmp.lt.s32.totalorder (!%p214_p2), %s563_s25, 15  ;;  %647 = vmatprep.subr.bf16.mxu0 (!%p214_p2), %v679_v0  ;;  %663 = vmatprep.subr.bf16.mxu1 (!%p214_p2), %v679_v0  ;;  %v567_v3 = vld [vmem:[%s779_s1] ss:$0 sm:$0xff] (!%p214_p2)  ;;  %v682_v7 = vld [vmem:[%s781_s3 + $0x18] sm:$0xff] (!%p214_p2)  }
   0x7   : > { %648 = vmatpush3.bf16.msra.mxu0 (!%p214_p2), %v679_v0  ;;  %667 = vmatpush3.bf16.msra.mxu1 (!%p214_p2), %v679_v0  ;;  %v568_v13 = vld [vmem:[%s780_s2] ss:$0 sm:$0xff] (!%p214_p2) }
   0x8   : > { %649 = vmatprep.subr.bf16.mxu0 (!%p214_p2), %v680_v1  ;;  %664 = vmatprep.subr.bf16.mxu1 (!%p214_p2), %v680_v1  ;;  %v577_v46 = vld [vmem:[%s782_s4] ss:$0 sm:$0xff] (!%p214_p2) }
   0x9   : > { %v578_v48 = vld [vmem:[%s783_s5] ss:$0 sm:$0xff] (!%p214_p2) }
   0xb   : > { %650 = vmatpush3.bf16.msra.mxu0 (!%p214_p2), %v680_v1  ;;  %668 = vmatpush3.bf16.msra.mxu1 (!%p214_p2), %v680_v1 }
   0xc   : > { %651 = vmatprep.subr.bf16.mxu0 (!%p214_p2), %v681_v2  ;;  %665 = vmatprep.subr.bf16.mxu1 (!%p214_p2), %v681_v2 }
   0xd   : > { %s786_s25 = smov (!%p244_p3, %s563_s25), 15 }
   0xe   : > { %s564_s30 = sshll.u32 %s786_s25, 2 }
   0xf   : > { %s247_s9 = scalar_lea.vmem %s778_s0, %s564_s30  ;;  %652 = vmatpush3.bf16.msra.mxu0 %v681_v2  ;;  %669 = vmatpush3.bf16.msra.mxu1 %v681_v2  ;;  %s253_s23 = scalar_lea.vmem %s784_s6, %s564_s30 }
  0x10   : > { %v598_v4 = vld [vmem:[%s247_s9] sm:$0xff]   ;;  %v634_v5 = vld [vmem:[%s247_s9 + $0x10] sm:$0xff]   ;;  %v633_v6 = vld [vmem:[%s247_s9 + $0x8] sm:$0xff]   ;;  %653 = vmatprep.subr.bf16.mxu0 %v682_v7  ;;  %666 = vmatprep.subr.bf16.mxu1 %v682_v7 }
  0x11   : > { %v599_v8 = vunpack.c.l.bf16 %v598_v4  ;;  %v600_v9 = vunpack.c.h.bf16 %v598_v4  ;;  %v607_v10 = vunpack.c.l.bf16 %v634_v5  ;;  %v608_v11 = vunpack.c.h.bf16 %v634_v5  ;;  %v635_v12 = vld [vmem:[%s247_s9 + $0x18] sm:$0xff]  }
  0x12   : > { %v603_v14 = vunpack.c.l.bf16 %v633_v6  ;;  %v604_v15 = vunpack.c.h.bf16 %v633_v6  ;;  %v611_v16 = vunpack.c.l.bf16 %v635_v12  ;;  %v612_v17 = vunpack.c.h.bf16 %v635_v12 }
  0x13   : > { %v280_v18 = vmul.f32 %v599_v8, %v567_v3  ;;  %v281_v19 = vmul.f32 %v600_v9, %v567_v3  ;;  %v284_v20 = vmul.f32 %v607_v10, %v567_v3  ;;  %v285_v21 = vmul.f32 %v608_v11, %v567_v3  ;;  %654 = vmatpush3.bf16.msra.mxu0 %v682_v7 }
  0x14   : > { %v282_v22 = vmul.f32 %v603_v14, %v567_v3  ;;  %v283_v23 = vmul.f32 %v604_v15, %v567_v3  ;;  %v286_v24 = vmul.f32 %v611_v16, %v567_v3  ;;  %v287_v31 = vmul.f32 %v612_v17, %v567_v3  ;;  %670 = vmatpush3.bf16.msra.mxu1 %v682_v7 }
  0x15   : > { %v294_v25 = vadd.f32 %v568_v13, %v280_v18  ;;  %v295_v26 = vadd.f32 %v568_v13, %v281_v19  ;;  %v298_v27 = vadd.f32 %v568_v13, %v284_v20  ;;  %v299_v28 = vadd.f32 %v568_v13, %v285_v21 }
  0x16   : > { %v296_v29 = vadd.f32 %v568_v13, %v282_v22  ;;  %v297_v30 = vadd.f32 %v568_v13, %v283_v23  ;;  %v300_v35 = vadd.f32 %v568_v13, %v286_v24  ;;  %v301_v39 = vadd.f32 %v568_v13, %v287_v31 }
  0x17   : > { %v302_v32 = vmax.f32 %v294_v25, 0.0  ;;  %v303_v33 = vmax.f32 %v295_v26, 0.0  ;;  %v306_v34 = vmax.f32 %v298_v27, 0.0  ;;  %v307_v36 = vmax.f32 %v299_v28, 0.0 }
  0x18   : > { %v304_v37 = vmax.f32 %v296_v29, 0.0  ;;  %v305_v38 = vmax.f32 %v297_v30, 0.0  ;;  %v308_v41 = vmax.f32 %v300_v35, 0.0  ;;  %v309_v44 = vmax.f32 %v301_v39, 0.0 }
  0x19   : > { %v310_v40 = vpack.c.bf16 %v303_v33, %v302_v32  ;;  %v312_v42 = vpack.c.bf16 %v307_v36, %v306_v34 }
  0x1a   : > { %v311_v43 = vpack.c.bf16 %v305_v38, %v304_v37  ;;  %v313_v45 = vpack.c.bf16 %v309_v44, %v308_v41 }
  0x1b   : > { %655 = vmatprep.mubr.msk.bf16.mxu0 %vm346_vm0, %v310_v40  ;;  %659 = vmatprep.mubr.msk.bf16.mxu1 %vm346_vm0, %v312_v42 }
  0x1c   : > { %656 = vmatmul.mubr.msk.bf16.vlgmr.msra.gmra.mrb[0].mxu0 %vm346_vm0, %v311_v43  ;;  %660 = vmatmul.mubr.msk.bf16.vlgmr.msra.gmra.mrb[0].mxu1 %vm346_vm0, %v313_v45 }
  0xef   : > { %v657_v47 = vpop.f32.mrb[0].mxu0  ;;  %v661_v51 = vpop.f32.mrb[0].mxu1 }
  0xf0   : > { %v434_v49 = vmul.f32 %v657_v47, %v577_v46  ;;  %v393_v50 = vpop.f32.mrb[1].mxu0  ;;  %v438_v55 = vmul.f32 %v661_v51, %v577_v46  ;;  %v409_v56 = vpop.f32.mrb[1].mxu1 }
  0xf1   : > { %v432_v52 = vmul.f32 %v577_v46, %v393_v50  ;;  %v658_v53 = vpop.f32.mrb[2].mxu0  ;;  %v436_v60 = vmul.f32 %v577_v46, %v409_v56  ;;  %v662_v61 = vpop.f32.mrb[2].mxu1 }
  0xf2   : > { %v448_v54 = vadd.f32 %v578_v48, %v434_v49  ;;  %v435_v57 = vmul.f32 %v658_v53, %v577_v46  ;;  %v396_v58 = vpop.f32.mrb[3].mxu0  ;;  %v452_v63 = vadd.f32 %v578_v48, %v438_v55  ;;  %v439_v1 = vmul.f32 %v662_v61, %v577_v46  ;;  %v412_v2 = vpop.f32.mrb[3].mxu1 }
  0xf3   : > { %v446_v59 = vadd.f32 %v578_v48, %v432_v52  ;;  %v433_v62 = vmul.f32 %v577_v46, %v396_v58  ;;  %v450_v3 = vadd.f32 %v578_v48, %v436_v60  ;;  %v437_v5 = vmul.f32 %v577_v46, %v412_v2 }
  0xf4   : > { %v449_v0 = vadd.f32 %v578_v48, %v435_v57  ;;  %v456_v6 = vmax.f32 %v448_v54, 0.0  ;;  %v453_v8 = vadd.f32 %v578_v48, %v439_v1  ;;  %v460_v12 = vmax.f32 %v452_v63, 0.0 }
  0xf5   : > { %v447_v4 = vadd.f32 %v578_v48, %v433_v62  ;;  %v454_v9 = vmax.f32 %v446_v59, 0.0  ;;  %v451_v11 = vadd.f32 %v578_v48, %v437_v5  ;;  %v458_v15 = vmax.f32 %v450_v3, 0.0 }
  0xf6   : > { %v457_v7 = vmax.f32 %v449_v0, 0.0  ;;  %v461_v14 = vmax.f32 %v453_v8, 0.0 }
  0xf7   : > { %v455_v10 = vmax.f32 %v447_v4, 0.0  ;;  %v459_v17 = vmax.f32 %v451_v11, 0.0 }
  0xf8   : > { %v621_v13 = vpack.c.bf16 %v457_v7, %v456_v6  ;;  %v631_v18 = vpack.c.bf16 %v461_v14, %v460_v12 }
  0xf9   : > { %v616_v16 = vpack.c.bf16 %v455_v10, %v454_v9  ;;  %v626_v19 = vpack.c.bf16 %v459_v17, %v458_v15 }
  0xfa   : > { %636 = vst [vmem:[%s253_s23 + $0x8] sm:$0xff] %v621_v13   ;;  %638 = vst [vmem:[%s253_s23 + $0x18] sm:$0xff] %v631_v18  }
  0xfb   : > { %617 = vst [vmem:[%s253_s23] sm:$0xff] %v616_v16   ;;  %637 = vst [vmem:[%s253_s23 + $0x10] sm:$0xff] %v626_v19  }
  0xfc PF: > { %s16_s21 = sadd.s32 1, %s689_s21  }
  0xfd   : > { %p13_p4 = scmp.ge.s32.totalorder %s16_s21, 4  }
  0xff   :  { %15 = sbr.rel (!%p13_p4) target bundleno = 1 (0x1), region = 74 }

// kernel: basenet_forward.19
= control target key start
LH: loop header
LB: loop body
LE: loop exit
PB: predicated region body
PF: predicated region fallthrough
CT: control target
= control target key end

     0   :  { %s896_s24 = smov 0   ;;  %s961_s0 = inlined_call_operand.vmem [shape: bf16[128,64], index: 0, kind: input, shape index: {}]   ;;  %s962_s1 = inlined_call_operand.vmem [shape: bf16[128,32], index: 1, kind: input, shape index: {}]   ;;  %s963_s2 = inlined_call_operand.vmem [shape: f32[1,96], index: 2, kind: input, shape index: {}]   ;;  %s964_s3 = inlined_call_operand.vmem [shape: f32[1,96], index: 3, kind: input, shape index: {}]   ;;  %s965_s4 = inlined_call_operand.vmem [shape: bf16[96,128], index: 4, kind: input, shape index: {}]   ;;  %s966_s5 = inlined_call_operand.vmem [shape: f32[1,128], index: 5, kind: input, shape index: {}]   ;;  %s967_s6 = inlined_call_operand.vmem [shape: f32[1,128], index: 6, kind: input, shape index: {}]   ;;  %s968_s7 = inlined_call_operand.vmem [shape: bf16[128,128], index: 7, kind: output, shape index: {}]  }
   0x1 LB: > { %s708_s25 = sadd.s32 4294967295, %s853_s24   ;;  %p712_p0 = scmp.ge.s32.totalorder %s853_s24, 1  ;;  %s853_s24 = sphi %s896_s24, %s17_s24  }
   0x2   : > { %p249_p1 = scmp.lt.s32.totalorder %s853_s24, 3 }
   0x4   : > { %p250_p2 = pnand %p712_p0, %p249_p1 }
   0x5   : > { %s713_s26 = sshll.u32 (!%p250_p2), %s708_s25, 3  ;;  %v837_v0 = vld [vmem:[%s965_s4] sm:$0xff] (!%p250_p2)   ;;  %v838_v1 = vld [vmem:[%s965_s4 + $0x8] sm:$0xff] (!%p250_p2)   ;;  %v839_v2 = vld [vmem:[%s965_s4 + $0x10] sm:$0xff] (!%p250_p2)   ;;  %s855_s16 = smov (!%p250_p2), 64   ;;  %vm369_vm0 = vcmask (!%p250_p2), 523264  }
   0x6   : > { %253 = sbr.rel (%p250_p2) target bundleno = 372 (0x174), region = 48  ;;  %p287_p3 = scmp.lt.s32.totalorder (!%p250_p2), %s713_s26, 15  ;;  %792 = vmatprep.subr.bf16.mxu0 (!%p250_p2), %v837_v0  ;;  %812 = vmatprep.subr.bf16.mxu1 (!%p250_p2), %v837_v0  ;;  %v841_v4 = vld [vmem:[%s965_s4 + $0x18] sm:$0xff] (!%p250_p2)   ;;  %v844_v8 = vld [vmem:[%s965_s4 + $0x20] sm:$0xff] (!%p250_p2)   ;;  %v846_v9 = vld [vmem:[%s965_s4 + $0x28] sm:$0xff] (!%p250_p2)   ;;  %vm484_vm1 = vcmask (!%p250_p2), 785408  }
   0x7   : > { %793 = vmatpush3.bf16.msra.mxu0 (!%p250_p2), %v837_v0  ;;  %818 = vmatpush3.bf16.msra.mxu1 (!%p250_p2), %v837_v0  ;;  %v727_v13 = vld [vmem:[%s963_s2] ss:$0 sm:$0xff] (!%p250_p2) }
   0x8   : > { %794 = vmatprep.subr.bf16.mxu0 (!%p250_p2), %v838_v1  ;;  %813 = vmatprep.subr.bf16.mxu1 (!%p250_p2), %v838_v1  ;;  %v728_v21 = vld [vmem:[%s964_s3] ss:$0 sm:$0xff] (!%p250_p2) }
   0x9   : > { %v739_v60 = vld [vmem:[%s966_s5] ss:$0 sm:$0xff] (!%p250_p2) }
   0xa   : > { %v740_v62 = vld [vmem:[%s967_s6] ss:$0 sm:$0xff] (!%p250_p2) }
   0xb   : > { %795 = vmatpush3.bf16.msra.mxu0 (!%p250_p2), %v838_v1  ;;  %819 = vmatpush3.bf16.msra.mxu1 (!%p250_p2), %v838_v1 }
   0xc   : > { %796 = vmatprep.subr.bf16.mxu0 (!%p250_p2), %v839_v2  ;;  %814 = vmatprep.subr.bf16.mxu1 (!%p250_p2), %v839_v2 }
   0xd   : > { %s970_s26 = smov (!%p287_p3, %s713_s26), 15 }
   0xe   : > { %s910_s8 = sshll.u32 %s970_s26, 2 }
   0xf   : > { %s296_s13 = scalar_lea.vmem %s962_s1, %s910_s8  ;;  %s926_s19 = scalar_lea.vmem %s961_s0, %s910_s8  ;;  %797 = vmatpush3.bf16.msra.mxu0 %v839_v2  ;;  %820 = vmatpush3.bf16.msra.mxu1 %v839_v2 }
  0x10   : > { %v833_v3 = vld [vmem:[%s296_s13] sm:$0xff]   ;;  %v834_v5 = vld [vmem:[%s296_s13 + $0x8] sm:$0xff]   ;;  %v835_v6 = vld [vmem:[%s296_s13 + $0x10] sm:$0xff]   ;;  %798 = vmatprep.subr.bf16.mxu0 %v841_v4  ;;  %815 = vmatprep.subr.bf16.mxu1 %v841_v4 }
  0x11   : > { %361 = vrot.lane.b32.xlu0 %v833_v3, %s855_s16  ;;  %363 = vrot.lane.b32.xlu1 %v834_v5, %s855_s16  ;;  %v836_v7 = vld [vmem:[%s296_s13 + $0x18] sm:$0xff]   ;;  %v840_v10 = vld [vmem:[%s926_s19] sm:$0xff]   ;;  %s302_s13 = scalar_lea.vmem %s968_s7, %s910_s8 }
  0x12   : > { %v842_v11 = vld [vmem:[%s926_s19 + $0x8] sm:$0xff]   ;;  %v843_v16 = vld [vmem:[%s926_s19 + $0x10] sm:$0xff]   ;;  %v845_v20 = vld [vmem:[%s926_s19 + $0x18] sm:$0xff]  }
  0x13   : > { %799 = vmatpush3.bf16.msra.mxu0 %v841_v4  ;;  %821 = vmatpush3.bf16.msra.mxu1 %v841_v4 }
  0x14   : > { %800 = vmatprep.subr.bf16.mxu0 %v844_v8  ;;  %816 = vmatprep.subr.bf16.mxu1 %v844_v8 }
  0x15   : > { %365 = vrot.lane.b32.xlu0 %v835_v6, %s855_s16  ;;  %367 = vrot.lane.b32.xlu1 %v836_v7, %s855_s16 }
  0x17   : > { %801 = vmatpush3.bf16.msra.mxu0 %v844_v8  ;;  %822 = vmatpush3.bf16.msra.mxu1 %v844_v8 }
  0x18   : > { %802 = vmatprep.subr.bf16.mxu0 %v846_v9  ;;  %817 = vmatprep.subr.bf16.mxu1 %v846_v9 }
  0x1b   : > { %803 = vmatpush3.bf16.msra.mxu0 %v846_v9  ;;  %823 = vmatpush3.bf16.msra.mxu1 %v846_v9 }
  0x83   : > { %v362_v12 = vpop.permute.xlu0 %361  ;;  %v364_v15 = vpop.permute.xlu1 %363 }
  0x84   : > { %v372_v14 = vsel %vm369_vm0, %v840_v10, %v362_v12  ;;  %v376_v19 = vsel %vm369_vm0, %v842_v11, %v364_v15 }
  0x85   : > { %v388_v17 = vunpack.c.l.bf16 %v372_v14  ;;  %v389_v18 = vunpack.c.h.bf16 %v372_v14  ;;  %v390_v22 = vunpack.c.l.bf16 %v376_v19  ;;  %v391_v23 = vunpack.c.h.bf16 %v376_v19 }
  0x87   : > { %v402_v24 = vmul.f32 %v727_v13, %v388_v17  ;;  %v403_v25 = vmul.f32 %v727_v13, %v389_v18  ;;  %v366_v26 = vpop.permute.xlu0 %365  ;;  %v404_v27 = vmul.f32 %v727_v13, %v390_v22  ;;  %v405_v28 = vmul.f32 %v727_v13, %v391_v23  ;;  %v368_v30 = vpop.permute.xlu1 %367 }
  0x88   : > { %v380_v29 = vsel %vm369_vm0, %v843_v16, %v366_v26  ;;  %v384_v33 = vsel %vm369_vm0, %v845_v20, %v368_v30 }
  0x89   : > { %v392_v31 = vunpack.c.l.bf16 %v380_v29  ;;  %v393_v32 = vunpack.c.h.bf16 %v380_v29  ;;  %v416_v34 = vadd.f32 %v728_v21, %v402_v24  ;;  %v418_v35 = vadd.f32 %v728_v21, %v404_v27 }
  0x8a   : > { %v419_v36 = vadd.f32 %v728_v21, %v405_v28  ;;  %v394_v37 = vunpack.c.l.bf16 %v384_v33  ;;  %v395_v38 = vunpack.c.h.bf16 %v384_v33  ;;  %v417_v41 = vadd.f32 %v728_v21, %v403_v25 }
  0x8b   : > { %v406_v39 = vmul.f32 %v727_v13, %v392_v31  ;;  %v407_v40 = vmul.f32 %v727_v13, %v393_v32  ;;  %v424_v42 = vmax.f32 %v416_v34, 0.0  ;;  %v426_v43 = vmax.f32 %v418_v35, 0.0 }
  0x8c   : > { %v427_v44 = vmax.f32 %v419_v36, 0.0  ;;  %v408_v45 = vmul.f32 %v727_v13, %v394_v37  ;;  %v409_v46 = vmul.f32 %v727_v13, %v395_v38  ;;  %v425_v47 = vmax.f32 %v417_v41, 0.0 }
  0x8d   : > { %v420_v48 = vadd.f32 %v728_v21, %v406_v39  ;;  %v421_v49 = vadd.f32 %v728_v21, %v407_v40 }
  0x8e   : > { %v422_v50 = vadd.f32 %v728_v21, %v408_v45  ;;  %v423_v51 = vadd.f32 %v728_v21, %v409_v46  ;;  %v433_v52 = vpack.c.bf16 %v427_v44, %v426_v43  ;;  %v432_v53 = vpack.c.bf16 %v425_v47, %v424_v42 }
  0x8f   : > { %v428_v54 = vmax.f32 %v420_v48, 0.0  ;;  %v429_v55 = vmax.f32 %v421_v49, 0.0 }
  0x90   : > { %v430_v56 = vmax.f32 %v422_v50, 0.0  ;;  %v431_v57 = vmax.f32 %v423_v51, 0.0  ;;  %804 = vmatprep.mubr.msk.bf16.mxu0 %vm484_vm1, %v432_v53 }
  0x91   : > { %v434_v58 = vpack.c.bf16 %v429_v55, %v428_v54  ;;  %805 = vmatmul.mubr.msk.bf16.vlgmr.msra.gmra.mrb[0].mxu0 %vm484_vm1, %v433_v52 }
  0x92   : > { %v435_v59 = vpack.c.bf16 %v431_v57, %v430_v56 }
  0x93   : > { %808 = vmatprep.mubr.msk.bf16.mxu1 %vm484_vm1, %v434_v58 }
  0x94   : > { %809 = vmatmul.mubr.msk.bf16.vlgmr.msra.gmra.mrb[0].mxu1 %vm484_vm1, %v435_v59 }
 0x164   : > { %v806_v61 = vpop.f32.mrb[0].mxu0 }
 0x165   : > { %v572_v63 = vmul.f32 %v806_v61, %v739_v60  ;;  %v531_v0 = vpop.f32.mrb[1].mxu0 }
 0x166   : > { %v570_v1 = vmul.f32 %v739_v60, %v531_v0  ;;  %v807_v2 = vpop.f32.mrb[2].mxu0 }
 0x167   : > { %v810_v3 = vpop.f32.mrb[0].mxu1  ;;  %v586_v4 = vadd.f32 %v740_v62, %v572_v63  ;;  %v573_v5 = vmul.f32 %v807_v2, %v739_v60  ;;  %v534_v6 = vpop.f32.mrb[3].mxu0 }
 0x168   : > { %v576_v7 = vmul.f32 %v810_v3, %v739_v60  ;;  %v547_v8 = vpop.f32.mrb[1].mxu1  ;;  %v584_v9 = vadd.f32 %v740_v62, %v570_v1  ;;  %v571_v10 = vmul.f32 %v739_v60, %v534_v6 }
 0x169   : > { %v574_v11 = vmul.f32 %v739_v60, %v547_v8  ;;  %v811_v12 = vpop.f32.mrb[2].mxu1  ;;  %v587_v13 = vadd.f32 %v740_v62, %v573_v5  ;;  %v594_v20 = vmax.f32 %v586_v4, 0.0 }
 0x16a   : > { %v590_v14 = vadd.f32 %v740_v62, %v576_v7  ;;  %v577_v15 = vmul.f32 %v811_v12, %v739_v60  ;;  %v550_v16 = vpop.f32.mrb[3].mxu1  ;;  %v585_v17 = vadd.f32 %v740_v62, %v571_v10  ;;  %v592_v23 = vmax.f32 %v584_v9, 0.0 }
 0x16b   : > { %v588_v18 = vadd.f32 %v740_v62, %v574_v11  ;;  %v575_v19 = vmul.f32 %v739_v60, %v550_v16  ;;  %v595_v21 = vmax.f32 %v587_v13, 0.0 }
 0x16c   : > { %v591_v22 = vadd.f32 %v740_v62, %v577_v15  ;;  %v593_v24 = vmax.f32 %v585_v17, 0.0  ;;  %v598_v27 = vmax.f32 %v590_v14, 0.0 }
 0x16d   : > { %v589_v25 = vadd.f32 %v740_v62, %v575_v19  ;;  %v767_v26 = vpack.c.bf16 %v595_v21, %v594_v20  ;;  %v596_v30 = vmax.f32 %v588_v18, 0.0 }
 0x16e   : > { %v599_v28 = vmax.f32 %v591_v22, 0.0  ;;  %v762_v29 = vpack.c.bf16 %v593_v24, %v592_v23 }
 0x16f   : > { %v597_v31 = vmax.f32 %v589_v25, 0.0  ;;  %779 = vst [vmem:[%s302_s13 + $0x8] sm:$0xff] %v767_v26  }
 0x170   : > { %v777_v32 = vpack.c.bf16 %v599_v28, %v598_v27  ;;  %763 = vst [vmem:[%s302_s13] sm:$0xff] %v762_v29  }
 0x171   : > { %v772_v33 = vpack.c.bf16 %v597_v31, %v596_v30 }
 0x172   : > { %781 = vst [vmem:[%s302_s13 + $0x18] sm:$0xff] %v777_v32  }
 0x173   : > { %780 = vst [vmem:[%s302_s13 + $0x10] sm:$0xff] %v772_v33  }
 0x174 PF: > { %s17_s24 = sadd.s32 1, %s853_s24  }
 0x175   : > { %p14_p4 = scmp.ge.s32.totalorder %s17_s24, 4  }
 0x177   :  { %16 = sbr.rel (!%p14_p4) target bundleno = 1 (0x1), region = 81 }

// kernel: basenet_forward.21
= control target key start
LH: loop header
LB: loop body
LE: loop exit
PB: predicated region body
PF: predicated region fallthrough
CT: control target
= control target key end

     0   :  { %s647_s28 = smov 96   ;;  %s648_s8 = smov 64   ;;  %v649_v13 = vmov 0.0   ;;  %s877_s0 = inlined_call_operand.vmem [shape: bf16[2,64,64], index: 0, kind: input, shape index: {}]   ;;  %s878_s1 = inlined_call_operand.vmem [shape: bf16[2,64,32], index: 1, kind: input, shape index: {}]   ;;  %s879_s2 = inlined_call_operand.vmem [shape: bf16[2,64,32], index: 2, kind: input, shape index: {}]   ;;  %s880_s3 = inlined_call_operand.vmem [shape: f32[1,1,128], index: 3, kind: input, shape index: {}]   ;;  %s881_s4 = inlined_call_operand.vmem [shape: f32[1,1,128], index: 4, kind: input, shape index: {}]   ;;  %s882_s5 = inlined_call_operand.vmem [shape: bf16[128,10], index: 5, kind: input, shape index: {}]   ;;  %s883_s6 = inlined_call_operand.vmem [shape: f32[1,10], index: 6, kind: input, shape index: {}]   ;;  %s884_s7 = inlined_call_operand.hbm [shape: f32[2,10], index: 7, kind: output, shape index: {}]  }
   0x1   :  { %v591_v0 = vld [vmem:[%s879_s2] sm:$0xff]   ;;  %v595_v4 = vld [vmem:[%s878_s1 + $0x28] sm:$0xff]   ;;  %v599_v8 = vld [vmem:[%s878_s1 + $0x30] sm:$0xff]   ;;  %566 = vmatprep.subr.bf16.mxu0 %v649_v13 }
   0x2   :  { %v592_v1 = vld [vmem:[%s878_s1] sm:$0xff]   ;;  %212 = vrot.lane.b32.xlu1 %v591_v0, %s647_s28  ;;  %v596_v5 = vld [vmem:[%s878_s1 + $0x8] sm:$0xff]   ;;  %v600_v9 = vld [vmem:[%s878_s1 + $0x10] sm:$0xff]  }
   0x3   :  { %v593_v2 = vld [vmem:[%s879_s2 + $0x20] sm:$0xff]   ;;  %156 = vrot.lane.b32.xlu0 %v592_v1, %s648_s8  ;;  %v597_v6 = vld [vmem:[%s879_s2 + $0x28] sm:$0xff]   ;;  %v601_v10 = vld [vmem:[%s879_s2 + $0x30] sm:$0xff]  }
   0x4   :  { %v594_v3 = vld [vmem:[%s878_s1 + $0x20] sm:$0xff]   ;;  %v598_v7 = vld [vmem:[%s879_s2 + $0x8] sm:$0xff]   ;;  %v602_v11 = vld [vmem:[%s879_s2 + $0x10] sm:$0xff]  }
   0x5   :  { %v603_v12 = vld [vmem:[%s878_s1 + $0x38] sm:$0xff]   ;;  %v615_v17 = vld [vmem:[%s882_s5] sm:$0xff]   ;;  %v616_v18 = vld [vmem:[%s882_s5 + $0x8] sm:$0xff]  }
   0x6   :  { %220 = vrot.lane.b32.xlu1 %v593_v2, %s647_s28  ;;  %v604_v14 = vld [vmem:[%s878_s1 + $0x18] sm:$0xff]   ;;  %567 = vmatpush3.bf16.msra.mxu0 %v615_v17  ;;  %v617_v19 = vld [vmem:[%s882_s5 + $0x10] sm:$0xff]  }
   0x7   :  { %164 = vrot.lane.b32.xlu0 %v594_v3, %s648_s8  ;;  %v605_v15 = vld [vmem:[%s879_s2 + $0x38] sm:$0xff]   ;;  %568 = vmatprep.subr.bf16.mxu0 %v649_v13 }
   0x8   :  { %v606_v16 = vld [vmem:[%s879_s2 + $0x18] sm:$0xff]  }
   0xa   :  { %166 = vrot.lane.b32.xlu1 %v595_v4, %s648_s8  ;;  %569 = vmatpush3.bf16.msra.mxu0 %v616_v18 }
   0xb   :  { %158 = vrot.lane.b32.xlu0 %v596_v5, %s648_s8 }
   0xe   :  { %222 = vrot.lane.b32.xlu1 %v597_v6, %s647_s28 }
   0xf   :  { %214 = vrot.lane.b32.xlu0 %v598_v7, %s647_s28 }
  0x12   :  { %168 = vrot.lane.b32.xlu1 %v599_v8, %s648_s8 }
  0x13   :  { %160 = vrot.lane.b32.xlu0 %v600_v9, %s648_s8 }
  0x16   :  { %224 = vrot.lane.b32.xlu1 %v601_v10, %s647_s28 }
  0x17   :  { %216 = vrot.lane.b32.xlu0 %v602_v11, %s647_s28 }
  0x1a   :  { %170 = vrot.lane.b32.xlu1 %v603_v12, %s648_s8 }
  0x1b   :  { %162 = vrot.lane.b32.xlu0 %v604_v14, %s648_s8 }
  0x1e   :  { %226 = vrot.lane.b32.xlu1 %v605_v15, %s647_s28 }
  0x1f   :  { %218 = vrot.lane.b32.xlu0 %v606_v16, %s647_s28 }
  0x20   :  { %12 = vsyncpa [#allocation3], 0  ;;  %570 = vmatprep.subr.bf16.mxu0 %v649_v13  ;;  %v618_v20 = vld [vmem:[%s882_s5 + $0x18] sm:$0xff]   ;;  %vm650_vm0 = vmmov 0   ;;  %v619_v21 = vld [vmem:[%s882_s5 + $0x20] sm:$0xff]   ;;  %vm228_vm1 = vcmask 523264  }
  0x21   :  { %571 = vmatpush3.bf16.msra.mxu0 %v617_v19  ;;  %582 = vmatprep.mubr.msk.bf16.mxu0 %vm650_vm0, %v649_v13  ;;  %v620_v22 = vld [vmem:[%s882_s5 + $0x28] sm:$0xff]   ;;  %v621_v23 = vld [vmem:[%s882_s5 + $0x30] sm:$0xff]   ;;  %v622_v24 = vld [vmem:[%s882_s5 + $0x38] sm:$0xff]   ;;  %vm253_vm2 = vcmask 785408   ;;  %vm414_vm3 = vcmask 1041409   ;;  %s651_s20 = smov [#allocation2]  }
  0x22   :  { %572 = vmatprep.subr.bf16.mxu0 %v649_v13  ;;  %v607_v25 = vld [vmem:[%s877_s0] sm:$0xff]   ;;  %v609_v41 = vld [vmem:[%s877_s0 + $0x28] sm:$0xff]   ;;  %v611_v0 = vld [vmem:[%s877_s0 + $0x30] sm:$0xff]   ;;  %s514_s28 = sshll.u32 %s651_s20, 4  ;;  %vm506_vm4 = vcmask 74752   ;;  %s515_s28 = int_to_ptr.vmem [resolvable:$true] %s514_s28 }
  0x23   :  { %v608_v29 = vld [vmem:[%s877_s0 + $0x20] sm:$0xff]   ;;  %v610_v45 = vld [vmem:[%s877_s0 + $0x8] sm:$0xff]   ;;  %v612_v8 = vld [vmem:[%s877_s0 + $0x10] sm:$0xff]   ;;  %s623_s21 = scalar_lea.vmem %s515_s28, 32  ;;  %p628_p1 = scmp.lt.s32.totalorder %s515_s28, %s515_s28 }
  0x24   :  { %v793_v37 = vld [vmem:[%s880_s3] ss:$0 sm:$0xff]  ;;  %p624_p0 = scmp.ne.s32.totalorder %s515_s28, %s623_s21  ;;  %p629_p2 = scmp.lt.s32.totalorder %s623_s21, %s623_s21 }
  0x25   :  { %573 = vmatpush3.bf16.msra.mxu0 %v618_v20  ;;  %v808_v48 = vld [vmem:[%s881_s4] ss:$0 sm:$0xff] }
  0x26   :  { %574 = vmatprep.subr.bf16.mxu0 %v649_v13  ;;  %p630_p3 = por %p629_p2, %p628_p1 }
  0x28   :  { %p631_p4 = pnand %p630_p3, %p624_p0 }
  0x29   :  { %575 = vmatpush3.bf16.msra.mxu0 %v619_v21 }
  0x2a   :  { %576 = vmatprep.subr.bf16.mxu0 %v649_v13 }
  0x2d   :  { %577 = vmatpush3.bf16.msra.mxu0 %v620_v22 }
  0x2e   :  { %578 = vmatprep.subr.bf16.mxu0 %v649_v13 }
  0x31   :  { %579 = vmatpush3.bf16.msra.mxu0 %v621_v23 }
  0x32   :  { %580 = vmatprep.subr.bf16.mxu0 %v649_v13 }
  0x35   :  { %581 = vmatpush3.bf16.msra.mxu0 %v622_v24 }
  0x74   :  { %v213_v26 = vpop.permute.xlu1 %212 }
  0x75   :  { %v157_v27 = vpop.permute.xlu0 %156 }
  0x76   :  { %v231_v28 = vsel %vm228_vm1, %v607_v25, %v157_v27 }
  0x77   :  { %v255_v30 = vsel %vm253_vm2, %v231_v28, %v213_v26 }
  0x78   :  { %v221_v31 = vpop.permute.xlu1 %220  ;;  %v297_v34 = vunpack.c.l.bf16 %v255_v30  ;;  %v298_v35 = vunpack.c.h.bf16 %v255_v30  ;;  %v613_v30 = vld [vmem:[%s877_s0 + $0x38] sm:$0xff]  }
  0x79   :  { %v165_v32 = vpop.permute.xlu0 %164 }
  0x7a   :  { %v243_v33 = vsel %vm228_vm1, %v608_v29, %v165_v32  ;;  %v319_v46 = vmul.f32 %v793_v37, %v297_v34  ;;  %v320_v47 = vmul.f32 %v793_v37, %v298_v35  ;;  %v614_v35 = vld [vmem:[%s877_s0 + $0x18] sm:$0xff]  }
  0x7b   :  { %v267_v36 = vsel %vm253_vm2, %v243_v33, %v221_v31 }
  0x7c   :  { %v305_v38 = vunpack.c.l.bf16 %v267_v36  ;;  %v306_v39 = vunpack.c.h.bf16 %v267_v36  ;;  %v167_v40 = vpop.permute.xlu1 %166  ;;  %v341_v58 = vadd.f32 %v808_v48, %v319_v46  ;;  %v342_v59 = vadd.f32 %v808_v48, %v320_v47 }
  0x7d   :  { %v159_v42 = vpop.permute.xlu0 %158  ;;  %v246_v49 = vsel %vm228_vm1, %v609_v41, %v167_v40 }
  0x7e   :  { %v327_v43 = vmul.f32 %v793_v37, %v305_v38  ;;  %v328_v44 = vmul.f32 %v793_v37, %v306_v39  ;;  %v234_v55 = vsel %vm228_vm1, %v610_v45, %v159_v42  ;;  %v357_v9 = vmax.f32 %v341_v58, 0.0 }
  0x7f   :  { %v358_v10 = vmax.f32 %v342_v59, 0.0 }
  0x80   :  { %v223_v50 = vpop.permute.xlu1 %222  ;;  %v349_v51 = vadd.f32 %v808_v48, %v327_v43  ;;  %v350_v52 = vadd.f32 %v808_v48, %v328_v44 }
  0x81   :  { %v270_v53 = vsel %vm253_vm2, %v246_v49, %v223_v50  ;;  %v215_v54 = vpop.permute.xlu0 %214  ;;  %v373_v25 = vadd.f32 %v358_v10, %v357_v9 }
  0x82   :  { %v307_v56 = vunpack.c.l.bf16 %v270_v53  ;;  %v308_v57 = vunpack.c.h.bf16 %v270_v53  ;;  %v258_v60 = vsel %vm253_vm2, %v234_v55, %v215_v54  ;;  %v365_v1 = vmax.f32 %v349_v51, 0.0 }
  0x83   :  { %v299_v62 = vunpack.c.l.bf16 %v258_v60  ;;  %v366_v2 = vmax.f32 %v350_v52, 0.0  ;;  %v300_v4 = vunpack.c.h.bf16 %v258_v60 }
  0x84   :  { %v329_v61 = vmul.f32 %v793_v37, %v307_v56  ;;  %v169_v63 = vpop.permute.xlu1 %168  ;;  %v330_v3 = vmul.f32 %v793_v37, %v308_v57 }
  0x85   :  { %v161_v5 = vpop.permute.xlu0 %160  ;;  %v321_v7 = vmul.f32 %v793_v37, %v299_v62  ;;  %v322_v11 = vmul.f32 %v793_v37, %v300_v4  ;;  %v249_v14 = vsel %vm228_vm1, %v611_v0, %v169_v63  ;;  %v386_v17 = vadd.f32 %v366_v2, %v365_v1 }
  0x86   :  { %v351_v6 = vadd.f32 %v808_v48, %v329_v61  ;;  %v352_v16 = vadd.f32 %v808_v48, %v330_v3  ;;  %v237_v21 = vsel %vm228_vm1, %v612_v8, %v161_v5 }
  0x87   :  { %v343_v13 = vadd.f32 %v808_v48, %v321_v7  ;;  %v344_v24 = vadd.f32 %v808_v48, %v322_v11 }
  0x88   :  { %v367_v12 = vmax.f32 %v351_v6, 0.0  ;;  %v225_v15 = vpop.permute.xlu1 %224  ;;  %v368_v36 = vmax.f32 %v352_v16, 0.0 }
  0x89   :  { %v273_v18 = vsel %vm253_vm2, %v249_v14, %v225_v15  ;;  %v217_v19 = vpop.permute.xlu0 %216  ;;  %v359_v20 = vmax.f32 %v343_v13, 0.0  ;;  %v360_v40 = vmax.f32 %v344_v24, 0.0 }
  0x8a   :  { %v309_v22 = vunpack.c.l.bf16 %v273_v18  ;;  %v310_v23 = vunpack.c.h.bf16 %v273_v18  ;;  %v261_v26 = vsel %vm253_vm2, %v237_v21, %v217_v19  ;;  %v387_v27 = vadd.f32 %v386_v17, %v367_v12 }
  0x8b   :  { %v374_v31 = vadd.f32 %v373_v25, %v359_v20  ;;  %v301_v32 = vunpack.c.l.bf16 %v261_v26  ;;  %v302_v33 = vunpack.c.h.bf16 %v261_v26 }
  0x8c   :  { %v331_v28 = vmul.f32 %v793_v37, %v309_v22  ;;  %v171_v29 = vpop.permute.xlu1 %170  ;;  %v332_v38 = vmul.f32 %v793_v37, %v310_v23  ;;  %v388_v43 = vadd.f32 %v387_v27, %v368_v36 }
  0x8d   :  { %v163_v34 = vpop.permute.xlu0 %162  ;;  %v323_v41 = vmul.f32 %v793_v37, %v301_v32  ;;  %v324_v42 = vmul.f32 %v793_v37, %v302_v33  ;;  %v252_v45 = vsel %vm228_vm1, %v613_v30, %v171_v29  ;;  %v375_v47 = vadd.f32 %v374_v31, %v360_v40 }
  0x8e   :  { %v353_v39 = vadd.f32 %v808_v48, %v331_v28  ;;  %v240_v50 = vsel %vm228_vm1, %v614_v35, %v163_v34  ;;  %v354_v53 = vadd.f32 %v808_v48, %v332_v38  ;;  %v548_v38 = vld [vmem:[%s883_s6] ss:$0 sm:$0xff] }
  0x8f   :  { %v345_v49 = vadd.f32 %v808_v48, %v323_v41  ;;  %v346_v57 = vadd.f32 %v808_v48, %v324_v42 }
  0x90   :  { %v369_v44 = vmax.f32 %v353_v39, 0.0  ;;  %v227_v46 = vpop.permute.xlu1 %226  ;;  %v370_v3 = vmax.f32 %v354_v53, 0.0 }
  0x91   :  { %v276_v51 = vsel %vm253_vm2, %v252_v45, %v227_v46  ;;  %v219_v52 = vpop.permute.xlu0 %218  ;;  %v361_v58 = vmax.f32 %v345_v49, 0.0  ;;  %v362_v6 = vmax.f32 %v346_v57, 0.0 }
  0x92   :  { %v311_v54 = vunpack.c.l.bf16 %v276_v51  ;;  %v312_v55 = vunpack.c.h.bf16 %v276_v51  ;;  %v264_v56 = vsel %vm253_vm2, %v240_v50, %v219_v52  ;;  %v389_v61 = vadd.f32 %v388_v43, %v369_v44 }
  0x93   :  { %v303_v59 = vunpack.c.l.bf16 %v264_v56  ;;  %v304_v60 = vunpack.c.h.bf16 %v264_v56  ;;  %v376_v0 = vadd.f32 %v375_v47, %v361_v58 }
  0x94   :  { %v333_v62 = vmul.f32 %v793_v37, %v311_v54  ;;  %v334_v63 = vmul.f32 %v793_v37, %v312_v55  ;;  %v390_v9 = vadd.f32 %v389_v61, %v370_v3 }
  0x95   :  { %v325_v1 = vmul.f32 %v793_v37, %v303_v59  ;;  %v326_v2 = vmul.f32 %v793_v37, %v304_v60  ;;  %v377_v11 = vadd.f32 %v376_v0, %v362_v6 }
  0x96   :  { %v355_v4 = vadd.f32 %v808_v48, %v333_v62  ;;  %v356_v5 = vadd.f32 %v808_v48, %v334_v63 }
  0x97   :  { %v347_v7 = vadd.f32 %v808_v48, %v325_v1  ;;  %v348_v8 = vadd.f32 %v808_v48, %v326_v2 }
  0x98   :  { %v371_v10 = vmax.f32 %v355_v4, 0.0  ;;  %v372_v13 = vmax.f32 %v356_v5, 0.0 }
  0x99   :  { %v363_v12 = vmax.f32 %v347_v7, 0.0  ;;  %v364_v15 = vmax.f32 %v348_v8, 0.0 }
  0x9a   :  { %v391_v14 = vadd.f32 %v390_v9, %v371_v10 }
  0x9b   :  { %v378_v16 = vadd.f32 %v377_v11, %v363_v12 }
  0x9c   :  { %v392_v17 = vadd.f32 %v391_v14, %v372_v13 }
  0x9d   :  { %v379_v37 = vadd.f32 %v378_v16, %v364_v15 }
  0x9e   :  { %v393_v18 = vrot.slane %v392_v17, 4 }
  0x9f   :  { %v380_v19 = vrot.slane %v379_v37, 4 }
  0xa0   :  { %v394_v20 = vadd.f32 %v393_v18, %v392_v17 }
  0xa1   :  { %v381_v21 = vadd.f32 %v380_v19, %v379_v37 }
  0xa2   :  { %v395_v22 = vrot.slane %v394_v20, 2 }
  0xa3   :  { %v382_v23 = vrot.slane %v381_v21, 2 }
  0xa4   :  { %v396_v24 = vadd.f32 %v395_v22, %v394_v20 }
  0xa5   :  { %v383_v25 = vadd.f32 %v382_v23, %v381_v21 }
  0xa6   :  { %v397_v26 = vrot.slane %v396_v24, 1 }
  0xa7   :  { %v384_v48 = vrot.slane %v383_v25, 1 }
  0xa8   :  { %v398_v27 = vadd.f32 %v397_v26, %v396_v24 }
  0xa9   :  { %v385_v28 = vadd.f32 %v384_v48, %v383_v25 }
  0xaa   :  { %v401_v29 = vmul.f32 0.015625, %v398_v27 }
  0xab   :  { %v400_v30 = vmul.f32 0.015625, %v385_v28 }
  0xac   :  { %v403_v31 = vpack.c.bf16 %v401_v29, %v401_v29 }
  0xad   :  { %v402_v32 = vpack.c.bf16 %v400_v30, %v400_v30 }
  0xae   :  { %v413_v33 = vunpack.c.l.b16 %v403_v31 }
  0xaf   :  { %v412_v34 = vunpack.c.l.b16 %v402_v32 }
  0xb1   :  { %v415_v35 = vsel %vm414_vm3, %v413_v33, %v412_v34 }
  0xb2   :  { %v416_v36 = vpack.c.b16 %v415_v35, %v415_v35 }
  0xb4   :  { %583 = vmatmul.mubr.bf16.vlgmr.msra.gmra.mrb[0].mxu0 %v416_v36 }
 0x187   :  { %v500_v39 = vpop.f32.mrb[0].mxu0 }
 0x188   :  { %v501_v40 = vadd.f32 %v548_v38, %v500_v39  ;;  %v584_v41 = vpop.f32.mrb[1].mxu0 }
 0x189   :  { %v503_v42 = vpop.f32.mrb[2].mxu0 }
 0x18a   :  { %v585_v43 = vpop.f32.mrb[3].mxu0  ;;  %507 = vst.msk [vmem:[#allocation2] sm:$0x3] %vm506_vm4, %v501_v40 }
 0x18b   :  { %634 = shalt.err (!%p631_p4)
}
 0x18c   :  { %s635_s6 = scalar_lea.hbm %s884_s7, 32 }
 0x18d   :  { %p636_p5 = scmp.ne.s32.totalorder %s884_s7, %s635_s6  ;;  %p639_p6 = scmp.lt.u32.totalorder %s635_s6, %s884_s7 }
 0x18f   :  { %p641_p7 = pnand %p639_p6, %p636_p5 }
 0x191   :  { %644 = shalt.err (!%p641_p7)
}
 0x192   :  { %517 = dma.vmem_to_hbm [thread:$0]  %s515_s28, 32, %s884_s7, [#allocation3]  }
 0x193   :  { %645 = dma.done.wait [#allocation3], 32  }
 0x194   :  { %646 = vsyncadd [#allocation3], 4294967264 }
 0x195   :  { %521 = vsyncpa [#allocation3], 1 }

// kernel: basenet_forward.18
= control target key start
LH: loop header
LB: loop body
LE: loop exit
PB: predicated region body
PF: predicated region fallthrough
CT: control target
= control target key end

     0   :  { %s2455_s9 = smov 0   ;;  %s2457_s10 = smov 0   ;;  %s2828_s0 = inlined_call_operand.vmem [shape: bf16[2,10,10,128], index: 0, kind: input, shape index: {}]   ;;  %s2829_s1 = inlined_call_operand.vmem [shape: bf16[3,384,32], index: 1, kind: input, shape index: {}]   ;;  %s2830_s2 = inlined_call_operand.vmem [shape: bf16[2,8,8,32], index: 2, kind: output, shape index: {}]  }
   0x1   :  { %s2459_s11 = smov 0  }
   0x2 LB: > { %s24_s12 = sadd.s32 1, %s2434_s10  ;;  %p1748_p0 = scmp.ge.s32.totalorder %s2438_s11, 1  ;;  %s2438_s11 = sphi %s2459_s11, %s12_s11   ;;  %s2434_s10 = sphi %s2457_s10, %s2832_s10   ;;  %s2430_s9 = sphi %s2455_s9, %s2831_s9  }
   0x3   : > { %p26_p1 = scmp.ge.s32.totalorder %s24_s12, 2  ;;  %p126_p2 = scmp.lt.s32.totalorder %s2438_s11, 3 }
   0x5   : > { %s2834_s12 = smov (%p26_p1, %s24_s12), 0  ;;  %p127_p3 = pnand %p1748_p0, %p126_p2 }
   0x6   : > { %v2308_v0 = vld [vmem:[%s2829_s1 + $0x100] sm:$0xff] (!%p127_p3)   ;;  %v2311_v3 = vld [vmem:[%s2829_s1 + $0x108] sm:$0xff] (!%p127_p3)   ;;  %v2314_v6 = vld [vmem:[%s2829_s1 + $0x110] sm:$0xff] (!%p127_p3)   ;;  %p152_p4 = scmp.lt.s32.totalorder (!%p127_p3), %s2430_s9, 1  ;;  %vm1644_vm0 = vcmask (!%p127_p3), 257024  }
   0x7   : > { %130 = sbr.rel (%p127_p3) target bundleno = 352 (0x160), region = 28  ;;  %v2309_v1 = vld [vmem:[%s2829_s1 + $0x140] sm:$0xff] (!%p127_p3)   ;;  %2015 = vmatprep.subr.bf16.mxu0 (!%p127_p3), %v2308_v0  ;;  %v2312_v4 = vld [vmem:[%s2829_s1 + $0x148] sm:$0xff] (!%p127_p3)   ;;  %v2315_v7 = vld [vmem:[%s2829_s1 + $0x150] sm:$0xff] (!%p127_p3)  }
   0x8   : > { %v2310_v2 = vld [vmem:[%s2829_s1 + $0xc0] sm:$0xff] (!%p127_p3)   ;;  %2171 = vmatprep.subr.bf16.mxu1 (!%p127_p3), %v2309_v1  ;;  %v2313_v5 = vld [vmem:[%s2829_s1 + $0xc8] sm:$0xff] (!%p127_p3)   ;;  %v2316_v8 = vld [vmem:[%s2829_s1 + $0xd0] sm:$0xff] (!%p127_p3)  }
   0x9   : > { %2016 = vmatpush3.bf16.msra.mxu0 (!%p127_p3), %v2310_v2  ;;  %2172 = vmatpush3.bf16.msra.mxu1 (!%p127_p3), %v2309_v1  ;;  %v2317_v9 = vld [vmem:[%s2829_s1 + $0x118] sm:$0xff] (!%p127_p3)   ;;  %v2320_v12 = vld [vmem:[%s2829_s1 + $0x120] sm:$0xff] (!%p127_p3)   ;;  %v2323_v15 = vld [vmem:[%s2829_s1 + $0x128] sm:$0xff] (!%p127_p3)  }
   0xa   : > { %2017 = vmatprep.subr.bf16.mxu0 (!%p127_p3), %v2311_v3  ;;  %2173 = vmatprep.subr.bf16.mxu1 (!%p127_p3), %v2312_v4  ;;  %v2318_v10 = vld [vmem:[%s2829_s1 + $0x158] sm:$0xff] (!%p127_p3)   ;;  %v2321_v13 = vld [vmem:[%s2829_s1 + $0x160] sm:$0xff] (!%p127_p3)   ;;  %v2324_v16 = vld [vmem:[%s2829_s1 + $0x168] sm:$0xff] (!%p127_p3)  }
   0xb   : > { %v2319_v11 = vld [vmem:[%s2829_s1 + $0xd8] sm:$0xff] (!%p127_p3)   ;;  %v2322_v14 = vld [vmem:[%s2829_s1 + $0xe0] sm:$0xff] (!%p127_p3)   ;;  %v2325_v17 = vld [vmem:[%s2829_s1 + $0xe8] sm:$0xff] (!%p127_p3)  }
   0xc   : > { %v2326_v18 = vld [vmem:[%s2829_s1 + $0x130] sm:$0xff] (!%p127_p3)   ;;  %v2329_v21 = vld [vmem:[%s2829_s1 + $0x138] sm:$0xff] (!%p127_p3)   ;;  %v2335_v39 = vld [vmem:[%s2829_s1 + $0x40] sm:$0xff] (!%p127_p3)  }
   0xd   : > { %2018 = vmatpush3.bf16.msra.mxu0 (!%p127_p3), %v2313_v5  ;;  %2174 = vmatpush3.bf16.msra.mxu1 (!%p127_p3), %v2312_v4  ;;  %v2327_v19 = vld [vmem:[%s2829_s1 + $0x170] sm:$0xff] (!%p127_p3)   ;;  %v2330_v22 = vld [vmem:[%s2829_s1 + $0x178] sm:$0xff] (!%p127_p3)   ;;  %v2336_v45 = vld [vmem:[%s2829_s1 + $0x80] sm:$0xff] (!%p127_p3)  }
   0xe   : > { %2019 = vmatprep.subr.bf16.mxu0 %v2314_v6  ;;  %2175 = vmatprep.subr.bf16.mxu1 %v2315_v7  ;;  %s2836_s9 = smov (!%p152_p4, %s2430_s9), 1  ;;  %v2328_v20 = vld [vmem:[%s2829_s1 + $0xf0] sm:$0xff]   ;;  %v2331_v33 = vld [vmem:[%s2829_s1 + $0xf8] sm:$0xff]   ;;  %v2339_v51 = vld [vmem:[%s2829_s1] sm:$0xff]  }
   0xf   : > { %s2283_s23 = smul.u32 80, %s2836_s9  ;;  %v2341_v52 = vld [vmem:[%s2829_s1 + $0x88] sm:$0xff]   ;;  %v2344_v2 = vld [vmem:[%s2829_s1 + $0x50] sm:$0xff]  }
  0x10   : > { %v2340_v60 = vld [vmem:[%s2829_s1 + $0x48] sm:$0xff]   ;;  %v2345_v3 = vld [vmem:[%s2829_s1 + $0x90] sm:$0xff]  }
  0x11   : > { %2020 = vmatpush3.bf16.msra.mxu0 %v2316_v8  ;;  %2176 = vmatpush3.bf16.msra.mxu1 %v2315_v7  ;;  %s2543_s4 = scalar_lea.vmem %s2828_s0, %s2283_s23  ;;  %v2342_v63 = vld [vmem:[%s2829_s1 + $0x8] sm:$0xff]   ;;  %v2346_v5 = vld [vmem:[%s2829_s1 + $0x10] sm:$0xff]  }
  0x12   : > { %2021 = vmatprep.subr.bf16.mxu0 %v2317_v9  ;;  %2177 = vmatprep.subr.bf16.mxu1 %v2318_v10  ;;  %v1760_v23 = vld [vmem:[%s2543_s4 + $0x8] sm:$0xf]  ;;  %v1761_v24 = vld [vmem:[%s2543_s4 + $0xc] sm:$0x1]  ;;  %v1762_v25 = vld [vmem:[%s2543_s4 + $0x10] sm:$0xf] }
  0x13   : > { %v1763_v26 = vld [vmem:[%s2543_s4 + $0x14] sm:$0x1]  ;;  %v1776_v27 = vcombine.low %v1760_v23, %v1761_v24  ;;  %v2559_v32 = vld [vmem:[%s2543_s4 + $0x18] sm:$0xf]  ;;  %v1765_v37 = vld [vmem:[%s2543_s4 + $0x1c] sm:$0x1]  ;;  %v1832_v53 = vcombine.low %v1760_v23, %v1762_v25 }
  0x14   : > { %v1777_v28 = vcombine.low %v1762_v25, %v1763_v26  ;;  %v1766_v40 = vld [vmem:[%s2543_s4 + $0x20] sm:$0xf]  ;;  %v1767_v41 = vld [vmem:[%s2543_s4 + $0x24] sm:$0x1]  ;;  %v1778_v42 = vcombine.low %v2559_v32, %v1765_v37  ;;  %v1768_v6 = vld [vmem:[%s2543_s4 + $0x28] sm:$0xf] }
  0x15   : > { %2022 = vmatpush3.bf16.msra.mxu0 %v2319_v11  ;;  %2178 = vmatpush3.bf16.msra.mxu1 %v2318_v10  ;;  %v417_v29 = vshrl.u32 %v1776_v27, 16  ;;  %v419_v30 = vshll.u32 %v1776_v27, 16  ;;  %v472_v31 = vrot.slane %v1776_v27, 1  ;;  %v1779_v46 = vcombine.low %v1766_v40, %v1767_v41  ;;  %v1769_v7 = vld [vmem:[%s2543_s4 + $0x2c] sm:$0x1]  ;;  %v2353_v24 = vld [vmem:[%s2829_s1 + $0x60] sm:$0xff]  }
  0x16   : > { %2023 = vmatprep.subr.bf16.mxu0 %v2320_v12  ;;  %2179 = vmatprep.subr.bf16.mxu1 %v2321_v13  ;;  %v424_v34 = vshrl.u32 %v1777_v28, 16  ;;  %v426_v35 = vshll.u32 %v1777_v28, 16  ;;  %v473_v36 = vrot.slane %v1777_v28, 1  ;;  %v474_v48 = vrot.slane %v1778_v42, 1  ;;  %v1770_v8 = vld [vmem:[%s2543_s4 + $0x30] sm:$0xf] }
  0x17   : > { %v421_v38 = vrot.slane %v419_v30, 1  ;;  %v475_v50 = vrot.slane %v1779_v46, 1  ;;  %v431_v54 = vshrl.u32 %v1778_v42, 16  ;;  %v433_v55 = vshll.u32 %v1778_v42, 16  ;;  %v1771_v10 = vld [vmem:[%s2543_s4 + $0x34] sm:$0x1] }
  0x18   : > { %v428_v43 = vrot.slane %v426_v35, 1  ;;  %v1834_v44 = vcombine.low %v472_v31, %v473_v36  ;;  %v438_v58 = vshrl.u32 %v1779_v46, 16  ;;  %v440_v59 = vshll.u32 %v1779_v46, 16  ;;  %v2348_v12 = vld [vmem:[%s2829_s1 + $0x98] sm:$0xff]   ;;  %v2355_v28 = vld [vmem:[%s2829_s1 + $0x20] sm:$0xff]  }
  0x19   : > { %2024 = vmatpush3.bf16.msra.mxu0 %v2322_v14  ;;  %2180 = vmatpush3.bf16.msra.mxu1 %v2321_v13  ;;  %v422_v47 = vor.u32 %v421_v38, %v417_v29  ;;  %v1837_v57 = vcombine.low %v474_v48, %v475_v50  ;;  %v435_v61 = vrot.slane %v433_v55, 1  ;;  %v1835_v9 = vcombine.low %v2559_v32, %v1766_v40  ;;  %v2347_v14 = vld [vmem:[%s2829_s1 + $0x58] sm:$0xff]   ;;  %v1774_v30 = vld [vmem:[%s2543_s4 + $0x40] sm:$0xf]  ;;  %v1775_v31 = vld [vmem:[%s2543_s4 + $0x44] sm:$0x1] }
  0x1a   : > { %2025 = vmatprep.subr.bf16.mxu0 %v2323_v15  ;;  %2181 = vmatprep.subr.bf16.mxu1 %v2324_v16  ;;  %v429_v49 = vor.u32 %v428_v43, %v424_v34  ;;  %v442_v62 = vrot.slane %v440_v59, 1  ;;  %v1780_v11 = vcombine.low %v1768_v6, %v1769_v7  ;;  %v1781_v13 = vcombine.low %v1770_v8, %v1771_v10  ;;  %v2616_v25 = vld [vmem:[%s2543_s4 + $0x38] sm:$0xf]  ;;  %v1773_v29 = vld [vmem:[%s2543_s4 + $0x3c] sm:$0x1]  ;;  %v2357_v38 = vld [vmem:[%s2829_s1 + $0xa8] sm:$0xff]  }
  0x1b   : > { %2187 = vmatprep.mubr.bf16.mxu1 %v1834_v44  ;;  %v436_v0 = vor.u32 %v435_v61, %v431_v54  ;;  %v1838_v32 = vcombine.low %v1768_v6, %v1770_v8  ;;  %v1782_v34 = vcombine.low %v2616_v25, %v1773_v29  ;;  %v1783_v35 = vcombine.low %v1774_v30, %v1775_v31  ;;  %v2358_v43 = vld [vmem:[%s2829_s1 + $0x28] sm:$0xff]   ;;  %v2364_v54 = vld [vmem:[%s2829_s1 + $0x30] sm:$0xff]   ;;  %v172_v55 = vld [vmem:[%s2543_s4] sm:$0xf] }
  0x1c   : > { %v1833_v56 = vcombine.low %v422_v47, %v429_v49  ;;  %v443_v1 = vor.u32 %v442_v62, %v438_v58  ;;  %v445_v15 = vshrl.u32 %v1780_v11, 16  ;;  %v476_v26 = vrot.slane %v1780_v11, 1  ;;  %v2363_v49 = vld [vmem:[%s2829_s1 + $0xb0] sm:$0xff]   ;;  %v2366_v62 = vld [vmem:[%s2829_s1 + $0xb8] sm:$0xff]  }
  0x1d   : > { %2026 = vmatpush3.bf16.msra.mxu0 %v2325_v17  ;;  %2182 = vmatpush3.bf16.msra.mxu1 %v2324_v16  ;;  %v447_v16 = vshll.u32 %v1780_v11, 16  ;;  %v452_v17 = vshrl.u32 %v1781_v13, 16  ;;  %v477_v36 = vrot.slane %v1781_v13, 1  ;;  %v461_v40 = vshll.u32 %v1782_v34, 16  ;;  %v177_v8 = vld [vmem:[%s2543_s4 + $0x14] sm:$0x1] }
  0x1e   : > { %2027 = vmatprep.subr.bf16.mxu0 %v2326_v18  ;;  %2183 = vmatprep.subr.bf16.mxu1 %v2327_v19  ;;  %v1836_v4 = vcombine.low %v436_v0, %v443_v1  ;;  %v454_v18 = vshll.u32 %v1781_v13, 16  ;;  %v466_v41 = vshrl.u32 %v1783_v35, 16  ;;  %v468_v42 = vshll.u32 %v1783_v35, 16  ;;  %v2365_v0 = vld [vmem:[%s2829_s1 + $0x78] sm:$0xff]  }
  0x1f   : > { %745 = vmatprep.mubr.bf16.mxu0 %v1833_v56  ;;  %v1840_v44 = vcombine.low %v476_v26, %v477_v36  ;;  %v479_v46 = vrot.slane %v1783_v35, 1  ;;  %v463_v47 = vrot.slane %v461_v40, 1  ;;  %v173_v56 = vld [vmem:[%s2543_s4 + $0x4] sm:$0x1]  ;;  %v1841_v59 = vcombine.low %v2616_v25, %v1774_v30  ;;  %v2662_v11 = vld [vmem:[%s2543_s4 + $0x18] sm:$0xf] }
  0x20   : > { %v470_v48 = vrot.slane %v468_v42, 1  ;;  %v1752_v61 = vcombine.low %v172_v55, %v173_v56  ;;  %v2378_v35 = vld [vmem:[%s2829_s1 + $0x188] sm:$0xff]   ;;  %v180_v42 = vld [vmem:[%s2543_s4 + $0x20] sm:$0xf] }
  0x21   : > { %2028 = vmatpush3.bf16.msra.mxu0 %v2328_v20  ;;  %2184 = vmatpush3.bf16.msra.mxu1 %v2327_v19  ;;  %v2349_v19 = vld [vmem:[%s2829_s1 + $0x18] sm:$0xff]   ;;  %v449_v20 = vrot.slane %v447_v16, 1  ;;  %v2372_v16 = vld [vmem:[%s2829_s1 + $0x200] sm:$0xff]  }
  0x22   : > { %2029 = vmatprep.subr.bf16.mxu0 %v2329_v21  ;;  %2185 = vmatprep.subr.bf16.mxu1 %v2330_v22  ;;  %v456_v21 = vrot.slane %v454_v18, 1  ;;  %v229_v1 = vshrl.u32 %v1752_v61, 16 }
  0x23   : > { %v450_v23 = vor.u32 %v449_v20, %v445_v15 }
  0x24   : > { %v457_v27 = vor.u32 %v456_v21, %v452_v17 }
  0x25   : > { %2030 = vmatpush3.bf16.msra.mxu0 %v2331_v33  ;;  %2186 = vmatpush3.bf16.msra.mxu1 %v2330_v22  ;;  %v2354_v22 = vld [vmem:[%s2829_s1 + $0xa0] sm:$0xff]   ;;  %v2356_v33 = vld [vmem:[%s2829_s1 + $0x68] sm:$0xff]  }
  0x26   : > { %2067 = vmatprep.subr.bf16.mxu0 %v2335_v39  ;;  %2195 = vmatprep.subr.bf16.mxu1 %v2336_v45  ;;  %v1839_v37 = vcombine.low %v450_v23, %v457_v27  ;;  %v459_v39 = vshrl.u32 %v1782_v34, 16  ;;  %v2375_v23 = vld [vmem:[%s2829_s1 + $0x180] sm:$0xff]  }
  0x28   : > { %2188 = vmatmul.mubr.bf16.vlgmr.msra.gmra.mrb[0].mxu1 %v1837_v57  ;;  %746 = vmatmul.mubr.bf16.vlgmr.msra.gmra.mrb[0].mxu0 %v1832_v53  ;;  %v2362_v53 = vld [vmem:[%s2829_s1 + $0x70] sm:$0xff]   ;;  %v174_v57 = vld [vmem:[%s2543_s4 + $0x8] sm:$0xf] }
  0x29   : > { %2196 = vmatpush3.bf16.msra.mxu1 %v2336_v45  ;;  %2068 = vmatpush3.bf16.msra.mxu0 %v2339_v51  ;;  %v478_v45 = vrot.slane %v1782_v34, 1  ;;  %v464_v51 = vor.u32 %v463_v47, %v459_v39  ;;  %v1868_v25 = vcombine.low %v172_v55, %v174_v57  ;;  %v2381_v39 = vld [vmem:[%s2829_s1 + $0x210] sm:$0xff]   ;;  %v2385_v55 = vld [vmem:[%s2829_s1 + $0x198] sm:$0xff]  }
  0x2a   : > { %2197 = vmatprep.subr.bf16.mxu1 %v2341_v52  ;;  %2069 = vmatprep.subr.bf16.mxu0 %v2340_v60  ;;  %v175_v60 = vld [vmem:[%s2543_s4 + $0xc] sm:$0x1] }
  0x2b   : > { %753 = vmatprep.mubr.bf16.mxu0 %v1836_v4  ;;  %v1843_v50 = vcombine.low %v478_v45, %v479_v46  ;;  %2191 = vmatprep.mubr.bf16.mxu1 %v1840_v44  ;;  %v2655_v4 = vld [vmem:[%s2543_s4 + $0x10] sm:$0xf]  ;;  %v182_v44 = vld [vmem:[%s2543_s4 + $0x28] sm:$0xf]  ;;  %v183_v46 = vld [vmem:[%s2543_s4 + $0x2c] sm:$0x1] }
  0x2c   : > { %v1754_v13 = vcombine.low %v2655_v4, %v177_v8  ;;  %v1871_v45 = vcombine.low %v2655_v4, %v2662_v11  ;;  %v1874_v4 = vcombine.low %v180_v42, %v182_v44 }
  0x2d   : > { %2198 = vmatpush3.bf16.msra.mxu1 %v2341_v52  ;;  %2070 = vmatpush3.bf16.msra.mxu0 %v2342_v63  ;;  %v471_v52 = vor.u32 %v470_v48, %v466_v41  ;;  %v1753_v63 = vcombine.low %v174_v57, %v175_v60  ;;  %v2382_v41 = vld [vmem:[%s2829_s1 + $0x190] sm:$0xff]   ;;  %v2384_v48 = vld [vmem:[%s2829_s1 + $0x218] sm:$0xff]   ;;  %v2389_v60 = vld [vmem:[%s2829_s1 + $0x1e0] sm:$0xff]  }
  0x2e   : > { %2071 = vmatprep.subr.bf16.mxu0 %v2344_v2  ;;  %2199 = vmatprep.subr.bf16.mxu1 %v2345_v3  ;;  %v231_v2 = vshll.u32 %v1752_v61, 16  ;;  %v286_v20 = vrot.slane %v1754_v13, 1  ;;  %v243_v26 = vshrl.u32 %v1754_v13, 16  ;;  %v245_v27 = vshll.u32 %v1754_v13, 16 }
  0x2f   : > { %v1842_v58 = vcombine.low %v464_v51, %v471_v52  ;;  %v238_v6 = vshll.u32 %v1753_v63, 16  ;;  %v285_v7 = vrot.slane %v1753_v63, 1 }
  0x30   : > { %754 = vmatmul.mubr.bf16.gmra.mrb[4].mxu0 %v1835_v9  ;;  %2192 = vmatmul.mubr.bf16.gmra.mrb[4].mxu1 %v1843_v50  ;;  %v2367_v9 = vld [vmem:[%s2829_s1 + $0x38] sm:$0xff]   ;;  %v233_v10 = vrot.slane %v231_v2, 1 }
  0x31   : > { %2200 = vmatpush3.bf16.msra.mxu1 %v2345_v3  ;;  %2072 = vmatpush3.bf16.msra.mxu0 %v2346_v5  ;;  %v284_v3 = vrot.slane %v1752_v61, 1  ;;  %v236_v5 = vshrl.u32 %v1753_v63, 16  ;;  %v2383_v50 = vld [vmem:[%s2829_s1 + $0x1d8] sm:$0xff]   ;;  %v2716_v61 = vld [vmem:[%s2543_s4 + $0x30] sm:$0xf] }
  0x32   : > { %2201 = vmatprep.subr.bf16.mxu1 %v2348_v12  ;;  %2073 = vmatprep.subr.bf16.mxu0 %v2347_v14  ;;  %v240_v14 = vrot.slane %v238_v6, 1  ;;  %v234_v18 = vor.u32 %v233_v10, %v229_v1  ;;  %v185_v1 = vld [vmem:[%s2543_s4 + $0x34] sm:$0x1]  ;;  %v2723_v2 = vld [vmem:[%s2543_s4 + $0x38] sm:$0xf]  ;;  %v2393_v10 = vld [vmem:[%s2829_s1 + $0x228] sm:$0xff]  }
  0x33   : > { %761 = vmatprep.mubr.bf16.mxu0 %v1839_v37  ;;  %v1870_v15 = vcombine.low %v284_v3, %v285_v7  ;;  %v187_v3 = vld [vmem:[%s2543_s4 + $0x3c] sm:$0x1]  ;;  %v1758_v6 = vcombine.low %v2716_v61, %v185_v1 }
  0x34   : > { %v241_v21 = vor.u32 %v240_v14, %v236_v5  ;;  %v2392_v5 = vld [vmem:[%s2829_s1 + $0x1e8] sm:$0xff]   ;;  %v1759_v7 = vcombine.low %v2723_v2, %v187_v3 }
  0x35   : > { %2202 = vmatpush3.bf16.msra.mxu1 %v2348_v12  ;;  %2074 = vmatpush3.bf16.msra.mxu0 %v2349_v19  ;;  %v179_v12 = vld [vmem:[%s2543_s4 + $0x1c] sm:$0x1]  ;;  %v2371_v19 = vld [vmem:[%s2829_s1 + $0x1c0] sm:$0xff]  }
  0x36   : > { %2203 = vmatprep.subr.bf16.mxu1 %v2354_v22  ;;  %2075 = vmatprep.subr.bf16.mxu0 %v2353_v24  ;;  %v1755_v17 = vcombine.low %v2662_v11, %v179_v12  ;;  %v2377_v24 = vld [vmem:[%s2829_s1 + $0x208] sm:$0xff]   ;;  %v271_v11 = vshrl.u32 %v1758_v6, 16  ;;  %v273_v12 = vshll.u32 %v1758_v6, 16  ;;  %v278_v13 = vshrl.u32 %v1759_v7, 16 }
  0x37   : > { %2211 = vmatprep.mubr.bf16.mxu1 %v1870_v15  ;;  %v280_v14 = vshll.u32 %v1759_v7, 16  ;;  %v2394_v15 = vld [vmem:[%s2829_s1 + $0x1a8] sm:$0xff]  }
  0x38   : > { %762 = vmatmul.mubr.bf16.gmra.mrb[8].mxu0 %v1838_v32  ;;  %v250_v30 = vshrl.u32 %v1755_v17, 16  ;;  %v252_v31 = vshll.u32 %v1755_v17, 16  ;;  %v2376_v32 = vld [vmem:[%s2829_s1 + $0x1c8] sm:$0xff]  }
  0x39   : > { %2204 = vmatpush3.bf16.msra.mxu1 %v2354_v22  ;;  %2076 = vmatpush3.bf16.msra.mxu0 %v2355_v28  ;;  %v287_v22 = vrot.slane %v1755_v17, 1  ;;  %v1869_v28 = vcombine.low %v234_v18, %v241_v21  ;;  %v290_v17 = vrot.slane %v1758_v6, 1  ;;  %v291_v18 = vrot.slane %v1759_v7, 1 }
  0x3a   : > { %2205 = vmatprep.subr.bf16.mxu1 %v2357_v38  ;;  %2077 = vmatprep.subr.bf16.mxu0 %v2356_v33  ;;  %v247_v33 = vrot.slane %v245_v27, 1  ;;  %v254_v34 = vrot.slane %v252_v31, 1  ;;  %v2402_v27 = vld [vmem:[%s2829_s1 + $0x238] sm:$0xff]  }
  0x3b   : > { %769 = vmatprep.mubr.bf16.mxu0 %v1842_v58  ;;  %v1873_v29 = vcombine.low %v286_v20, %v287_v22  ;;  %v2390_v58 = vld [vmem:[%s2829_s1 + $0x220] sm:$0xff]   ;;  %v282_v20 = vrot.slane %v280_v14, 1  ;;  %v1879_v21 = vcombine.low %v290_v17, %v291_v18  ;;  %v2399_v22 = vld [vmem:[%s2829_s1 + $0x230] sm:$0xff]  }
  0x3c   : > { %v248_v36 = vor.u32 %v247_v33, %v243_v26  ;;  %v255_v37 = vor.u32 %v254_v34, %v250_v30  ;;  %v2400_v26 = vld [vmem:[%s2829_s1 + $0x1b0] sm:$0xff]   ;;  %v2754_v30 = vld [vmem:[%s2543_s4 + $0x18] sm:$0xf]  ;;  %v1907_v33 = vld [vmem:[%s2543_s4 + $0x1c] sm:$0x1] }
  0x3d   : > { %2206 = vmatpush3.bf16.msra.mxu1 %v2357_v38  ;;  %2078 = vmatpush3.bf16.msra.mxu0 %v2358_v43  ;;  %v2380_v38 = vld [vmem:[%s2829_s1 + $0x1d0] sm:$0xff]   ;;  %v181_v43 = vld [vmem:[%s2543_s4 + $0x24] sm:$0x1] }
  0x3e   : > { %2207 = vmatprep.subr.bf16.mxu1 %v2363_v49  ;;  %2079 = vmatprep.subr.bf16.mxu0 %v2362_v53  ;;  %v1872_v40 = vcombine.low %v248_v36, %v255_v37  ;;  %v1756_v47 = vcombine.low %v180_v42, %v181_v43  ;;  %v1909_v36 = vld [vmem:[%s2543_s4 + $0x24] sm:$0x1]  ;;  %v1921_v37 = vcombine.low %v2754_v30, %v1907_v33  ;;  %v2401_v42 = vld [vmem:[%s2829_s1 + $0x1f8] sm:$0xff]  }
  0x40   : > { %770 = vmatmul.mubr.bf16.gmra.mrb[12].mxu0 %v1841_v59  ;;  %v257_v51 = vshrl.u32 %v1756_v47, 16  ;;  %v259_v52 = vshll.u32 %v1756_v47, 16 }
  0x41   : > { %2208 = vmatpush3.bf16.msra.mxu1 %v2363_v49  ;;  %2080 = vmatpush3.bf16.msra.mxu0 %v2364_v54  ;;  %v1757_v49 = vcombine.low %v182_v44, %v183_v46 }
  0x42   : > { %2209 = vmatprep.subr.bf16.mxu1 %v2366_v62  ;;  %2081 = vmatprep.subr.bf16.mxu0 %v2365_v0  ;;  %v261_v56 = vrot.slane %v259_v52, 1  ;;  %v2391_v0 = vld [vmem:[%s2829_s1 + $0x1a0] sm:$0xff]   ;;  %v2779_v52 = vld [vmem:[%s2543_s4 + $0x38] sm:$0xf] }
  0x43   : > { %1043 = vmatprep.mubr.bf16.mxu0 %v1869_v28  ;;  %v264_v53 = vshrl.u32 %v1757_v49, 16  ;;  %v266_v54 = vshll.u32 %v1757_v49, 16  ;;  %v289_v8 = vrot.slane %v1757_v49, 1  ;;  %v2750_v28 = vld [vmem:[%s2543_s4 + $0x10] sm:$0xf]  ;;  %v1211_v49 = vshll.u32 %v1921_v37, 16 }
  0x44   : > { %v262_v59 = vor.u32 %v261_v56, %v257_v51  ;;  %v1976_v1 = vcombine.low %v2750_v28, %v2754_v30 }
  0x45   : > { %2210 = vmatpush3.bf16.msra.mxu1 %v2366_v62  ;;  %2082 = vmatpush3.bf16.msra.mxu0 %v2367_v9  ;;  %v268_v57 = vrot.slane %v266_v54, 1  ;;  %v288_v62 = vrot.slane %v1756_v47, 1  ;;  %v1913_v47 = vld [vmem:[%s2543_s4 + $0x34] sm:$0x1] }
  0x46   : > { %2219 = vmatprep.subr.bf16.mxu1 %v2372_v16  ;;  %2119 = vmatprep.subr.bf16.mxu0 %v2371_v19  ;;  %v275_v19 = vrot.slane %v273_v12, 1 }
  0x47   : > { %v269_v63 = vor.u32 %v268_v57, %v264_v53  ;;  %v1915_v57 = vld [vmem:[%s2543_s4 + $0x3c] sm:$0x1] }
  0x48   : > { %2212 = vmatmul.mubr.bf16.vlgmr.msra.gmra.mrb[0].mxu1 %v1873_v29  ;;  %1044 = vmatmul.mubr.bf16.vlgmr.msra.gmra.mrb[16].mxu0 %v1868_v25  ;;  %v2398_v25 = vld [vmem:[%s2829_s1 + $0x1f0] sm:$0xff]  }
  0x49   : > { %2220 = vmatpush3.bf16.msra.mxu1 %v2372_v16  ;;  %2120 = vmatpush3.bf16.msra.mxu0 %v2375_v23  ;;  %v1875_v9 = vcombine.low %v262_v59, %v269_v63  ;;  %v1876_v16 = vcombine.low %v288_v62, %v289_v8  ;;  %v276_v23 = vor.u32 %v275_v19, %v271_v11  ;;  %v1905_v29 = vld [vmem:[%s2543_s4 + $0x14] sm:$0x1]  ;;  %v1213_v59 = vrot.slane %v1211_v49, 1  ;;  %v1916_v63 = vld [vmem:[%s2543_s4 + $0x40] sm:$0xf] }
  0x4a   : > { %2221 = vmatprep.subr.bf16.mxu1 %v2377_v24  ;;  %2121 = vmatprep.subr.bf16.mxu0 %v2376_v32  ;;  %v1877_v32 = vcombine.low %v2716_v61, %v2723_v2  ;;  %v1920_v34 = vcombine.low %v2750_v28, %v1905_v29 }
  0x4b   : > { %1051 = vmatprep.mubr.bf16.mxu0 %v1872_v40  ;;  %2215 = vmatprep.mubr.bf16.mxu1 %v1876_v16 }
  0x4c   : > { %v1202_v43 = vshrl.u32 %v1920_v34, 16  ;;  %v1204_v44 = vshll.u32 %v1920_v34, 16 }
  0x4d   : > { %2222 = vmatpush3.bf16.msra.mxu1 %v2377_v24  ;;  %2122 = vmatpush3.bf16.msra.mxu0 %v2378_v35  ;;  %v283_v24 = vor.u32 %v282_v20, %v278_v13  ;;  %v2761_v35 = vld [vmem:[%s2543_s4 + $0x20] sm:$0xf] }
  0x4e   : > { %2123 = vmatprep.subr.bf16.mxu0 %v2380_v38  ;;  %2223 = vmatprep.subr.bf16.mxu1 %v2381_v39  ;;  %v2766_v38 = vld [vmem:[%s2543_s4 + $0x28] sm:$0xf]  ;;  %v1922_v40 = vcombine.low %v2761_v35, %v1909_v36  ;;  %v1206_v53 = vrot.slane %v1204_v44, 1 }
  0x4f   : > { %v1878_v31 = vcombine.low %v276_v23, %v283_v24  ;;  %v1979_v33 = vcombine.low %v2761_v35, %v2766_v38 }
  0x50   : > { %1052 = vmatmul.mubr.bf16.gmra.mrb[20].mxu0 %v1871_v45  ;;  %2216 = vmatmul.mubr.bf16.gmra.mrb[4].mxu1 %v1879_v21  ;;  %v1257_v45 = vrot.slane %v1920_v34, 1  ;;  %v1259_v51 = vrot.slane %v1922_v40, 1  ;;  %v1218_v56 = vshll.u32 %v1922_v40, 16 }
  0x51   : > { %2224 = vmatpush3.bf16.msra.mxu1 %v2381_v39  ;;  %2124 = vmatpush3.bf16.msra.mxu0 %v2382_v41  ;;  %v1911_v39 = vld [vmem:[%s2543_s4 + $0x2c] sm:$0x1]  ;;  %v2771_v41 = vld [vmem:[%s2543_s4 + $0x30] sm:$0xf] }
  0x52   : > { %2225 = vmatprep.subr.bf16.mxu1 %v2384_v48  ;;  %2125 = vmatprep.subr.bf16.mxu0 %v2383_v50  ;;  %v1923_v46 = vcombine.low %v2766_v38, %v1911_v39  ;;  %v1258_v50 = vrot.slane %v1921_v37, 1  ;;  %v1220_v2 = vrot.slane %v1218_v56, 1  ;;  %v1924_v3 = vcombine.low %v2771_v41, %v1913_v47 }
  0x53   : > { %1059 = vmatprep.mubr.bf16.mxu0 %v1875_v9  ;;  %v1925_v9 = vcombine.low %v2779_v52, %v1915_v57  ;;  %v1982_v44 = vcombine.low %v2771_v41, %v2779_v52 }
  0x54   : > { %v1260_v54 = vrot.slane %v1923_v46, 1  ;;  %v1223_v61 = vshrl.u32 %v1923_v46, 16  ;;  %v1225_v62 = vshll.u32 %v1923_v46, 16  ;;  %v1261_v12 = vrot.slane %v1924_v3, 1 }
  0x55   : > { %2226 = vmatpush3.bf16.msra.mxu1 %v2384_v48  ;;  %2126 = vmatpush3.bf16.msra.mxu0 %v2385_v55  ;;  %v1209_v48 = vshrl.u32 %v1921_v37, 16  ;;  %v1216_v55 = vshrl.u32 %v1922_v40, 16  ;;  %v1262_v17 = vrot.slane %v1925_v9, 1  ;;  %v1230_v20 = vshrl.u32 %v1924_v3, 16 }
  0x56   : > { %2227 = vmatprep.subr.bf16.mxu1 %v2390_v58  ;;  %2127 = vmatprep.subr.bf16.mxu0 %v2389_v60  ;;  %v1978_v60 = vcombine.low %v1257_v45, %v1258_v50  ;;  %v1981_v7 = vcombine.low %v1259_v51, %v1260_v54  ;;  %v1227_v8 = vrot.slane %v1225_v62, 1  ;;  %v1232_v21 = vshll.u32 %v1924_v3, 16 }
  0x57   : > { %v1214_v6 = vor.u32 %v1213_v59, %v1209_v48  ;;  %v1221_v11 = vor.u32 %v1220_v2, %v1216_v55  ;;  %v1984_v23 = vcombine.low %v1261_v12, %v1262_v17  ;;  %v1237_v24 = vshrl.u32 %v1925_v9, 16 }
  0x58   : > { %1060 = vmatmul.mubr.bf16.gmra.mrb[24].mxu0 %v1874_v4  ;;  %v1917_v4 = vld [vmem:[%s2543_s4 + $0x44] sm:$0x1]  ;;  %2235 = vmatprep.mubr.bf16.mxu1 %v1978_v60  ;;  %v1228_v16 = vor.u32 %v1227_v8, %v1223_v61 }
  0x59   : > { %2228 = vmatpush3.bf16.msra.mxu1 %v2390_v58  ;;  %2128 = vmatpush3.bf16.msra.mxu0 %v2391_v0  ;;  %v2403_v58 = vld [vmem:[%s2829_s1 + $0x1b8] sm:$0xff]   ;;  %v1207_v0 = vor.u32 %v1206_v53, %v1202_v43  ;;  %v1926_v13 = vcombine.low %v1916_v63, %v1917_v4 }
  0x5a   : > { %2229 = vmatprep.subr.bf16.mxu1 %v2393_v10  ;;  %2129 = vmatprep.subr.bf16.mxu0 %v2392_v5  ;;  %v1918_v5 = vld [vmem:[%s2543_s4 + $0x48] sm:$0xf] }
  0x5b   : > { %1067 = vmatprep.mubr.bf16.mxu0 %v1878_v31  ;;  %v1263_v18 = vrot.slane %v1926_v13, 1  ;;  %v1246_v28 = vshll.u32 %v1926_v13, 16  ;;  %v1244_v34 = vshrl.u32 %v1926_v13, 16  ;;  %v1985_v46 = vcombine.low %v1916_v63, %v1918_v5 }
  0x5d   : > { %2230 = vmatpush3.bf16.msra.mxu1 %v2393_v10  ;;  %2130 = vmatpush3.bf16.msra.mxu0 %v2394_v15  ;;  %v1919_v10 = vld [vmem:[%s2543_s4 + $0x4c] sm:$0x1]  ;;  %v1977_v15 = vcombine.low %v1207_v0, %v1214_v6  ;;  %v1248_v37 = vrot.slane %v1246_v28, 1  ;;  %s2014_s4 = sshll.u32 %s2836_s9, 5 }
  0x5e   : > { %2231 = vmatprep.subr.bf16.mxu1 %v2399_v22  ;;  %2131 = vmatprep.subr.bf16.mxu0 %v2398_v25  ;;  %v1927_v14 = vcombine.low %v1918_v5, %v1919_v10  ;;  %v1239_v25 = vshll.u32 %v1925_v9, 16  ;;  %s2801_s23 = scalar_lea.vmem %s2830_s2, %s2014_s4 }
  0x60   : > { %1068 = vmatmul.mubr.bf16.gmra.mrb[28].mxu0 %v1877_v32  ;;  %v1264_v19 = vrot.slane %v1927_v14, 1  ;;  %v1253_v29 = vshll.u32 %v1927_v14, 16  ;;  %v1251_v39 = vshrl.u32 %v1927_v14, 16 }
  0x61   : > { %2232 = vmatpush3.bf16.msra.mxu1 %v2399_v22  ;;  %2132 = vmatpush3.bf16.msra.mxu0 %v2400_v26  ;;  %v1980_v22 = vcombine.low %v1221_v11, %v1228_v16  ;;  %v1234_v26 = vrot.slane %v1232_v21, 1 }
  0x62   : > { %2233 = vmatprep.subr.bf16.mxu1 %v2402_v27  ;;  %2133 = vmatprep.subr.bf16.mxu0 %v2401_v42  ;;  %v1987_v31 = vcombine.low %v1263_v18, %v1264_v19  ;;  %v1255_v40 = vrot.slane %v1253_v29, 1  ;;  %v1249_v42 = vor.u32 %v1248_v37, %v1244_v34 }
  0x63   : > { %1530 = vmatprep.mubr.bf16.mxu0 %v1977_v15  ;;  %v1235_v30 = vor.u32 %v1234_v26, %v1230_v20 }
  0x64   : > { %v1256_v43 = vor.u32 %v1255_v40, %v1251_v39 }
  0x65   : > { %2234 = vmatpush3.bf16.msra.mxu1 %v2402_v27  ;;  %2134 = vmatpush3.bf16.msra.mxu0 %v2403_v58  ;;  %v1241_v27 = vrot.slane %v1239_v25, 1 }
  0x66   : > { %v1986_v45 = vcombine.low %v1249_v42, %v1256_v43 }
  0x67   : > { %v1242_v32 = vor.u32 %v1241_v27, %v1237_v24 }
  0x68   : > { %2236 = vmatmul.mubr.bf16.vlgmr.msra.gmra.mrb[0].mxu1 %v1981_v7  ;;  %1531 = vmatmul.mubr.bf16.vlgmr.msra.gmra.mrb[32].mxu0 %v1976_v1 }
  0x69   : > { %1538 = vmatprep.mubr.bf16.mxu0 %v1980_v22  ;;  %2239 = vmatprep.mubr.bf16.mxu1 %v1984_v23  ;;  %v1983_v36 = vcombine.low %v1235_v30, %v1242_v32 }
  0x70   : > { %2240 = vmatmul.mubr.bf16.gmra.mrb[4].mxu1 %v1987_v31  ;;  %1539 = vmatmul.mubr.bf16.gmra.mrb[36].mxu0 %v1979_v33 }
  0x71   : > { %1546 = vmatprep.mubr.bf16.mxu0 %v1983_v36 }
  0x78   : > { %1547 = vmatmul.mubr.bf16.gmra.mrb[40].mxu0 %v1982_v44 }
  0x79   : > { %1554 = vmatprep.mubr.bf16.mxu0 %v1986_v45 }
  0x80   : > { %1555 = vmatmul.mubr.bf16.gmra.mrb[44].mxu0 %v1985_v46 }
  0xfb   : > { %v2031_v47 = vpop.f32.mrb[0].mxu0 }
  0xfc   : > { %v2032_v35 = vpop.f32.mrb[1].mxu0 }
  0xfd   : > { %v2033_v38 = vadd.f32 %v2032_v35, %v2031_v47  ;;  %v2034_v48 = vpop.f32.mrb[2].mxu0 }
  0xfe   : > { %v2035_v49 = vpop.f32.mrb[3].mxu0 }
  0xff   : > { %v2036_v50 = vadd.f32 %v2035_v49, %v2034_v48 }
 0x103   : > { %v2037_v51 = vpop.f32.mrb[4].mxu0 }
 0x104   : > { %v2038_v53 = vpop.f32.mrb[5].mxu0 }
 0x105   : > { %v2039_v54 = vadd.f32 %v2038_v53, %v2037_v51  ;;  %v2040_v55 = vpop.f32.mrb[6].mxu0 }
 0x106   : > { %v2041_v56 = vpop.f32.mrb[7].mxu0 }
 0x107   : > { %v2042_v57 = vadd.f32 %v2041_v56, %v2040_v55 }
 0x10b   : > { %v2043_v58 = vpop.f32.mrb[8].mxu0 }
 0x10c   : > { %v2044_v59 = vpop.f32.mrb[9].mxu0 }
 0x10d   : > { %v2045_v41 = vadd.f32 %v2044_v59, %v2043_v58  ;;  %v2046_v52 = vpop.f32.mrb[10].mxu0 }
 0x10e   : > { %v2047_v60 = vpop.f32.mrb[11].mxu0 }
 0x10f   : > { %v2048_v61 = vadd.f32 %v2047_v60, %v2046_v52 }
 0x113   : > { %v2049_v62 = vpop.f32.mrb[12].mxu0 }
 0x114   : > { %v2050_v63 = vpop.f32.mrb[13].mxu0 }
 0x115   : > { %v2051_v0 = vadd.f32 %v2050_v63, %v2049_v62  ;;  %v2052_v1 = vpop.f32.mrb[14].mxu0 }
 0x116   : > { %v2053_v2 = vpop.f32.mrb[15].mxu0 }
 0x117   : > { %v2054_v3 = vadd.f32 %v2053_v2, %v2052_v1 }
 0x11b   : > { %v2083_v4 = vpop.f32.mrb[16].mxu0 }
 0x11c   : > { %v2084_v5 = vpop.f32.mrb[17].mxu0 }
 0x11d   : > { %v2085_v6 = vadd.f32 %v2084_v5, %v2083_v4  ;;  %v2086_v7 = vpop.f32.mrb[18].mxu0 }
 0x11e   : > { %v2087_v8 = vpop.f32.mrb[19].mxu0 }
 0x11f   : > { %v2246_v9 = vadd.f32 %v2085_v6, %v2033_v38  ;;  %v2088_v10 = vadd.f32 %v2087_v8, %v2086_v7 }
 0x121   : > { %v2252_v11 = vadd.f32 %v2088_v10, %v2036_v50 }
 0x123   : > { %v2089_v12 = vpop.f32.mrb[20].mxu0 }
 0x124   : > { %v2090_v13 = vpop.f32.mrb[21].mxu0 }
 0x125   : > { %v2091_v14 = vadd.f32 %v2090_v13, %v2089_v12  ;;  %v2092_v15 = vpop.f32.mrb[22].mxu0 }
 0x126   : > { %v2093_v16 = vpop.f32.mrb[23].mxu0 }
 0x127   : > { %v2243_v17 = vadd.f32 %v2091_v14, %v2039_v54  ;;  %v2094_v18 = vadd.f32 %v2093_v16, %v2092_v15 }
 0x129   : > { %v2249_v19 = vadd.f32 %v2094_v18, %v2042_v57 }
 0x12b   : > { %v2095_v20 = vpop.f32.mrb[24].mxu0 }
 0x12c   : > { %v2096_v21 = vpop.f32.mrb[25].mxu0 }
 0x12d   : > { %v2097_v22 = vadd.f32 %v2096_v21, %v2095_v20  ;;  %v2098_v23 = vpop.f32.mrb[26].mxu0 }
 0x12e   : > { %v2099_v24 = vpop.f32.mrb[27].mxu0 }
 0x12f   : > { %v2258_v25 = vadd.f32 %v2097_v22, %v2045_v41  ;;  %v2100_v26 = vadd.f32 %v2099_v24, %v2098_v23 }
 0x131   : > { %v2264_v27 = vadd.f32 %v2100_v26, %v2048_v61 }
 0x133   : > { %v2101_v28 = vpop.f32.mrb[28].mxu0 }
 0x134   : > { %v2102_v29 = vpop.f32.mrb[29].mxu0 }
 0x135   : > { %v2103_v30 = vadd.f32 %v2102_v29, %v2101_v28  ;;  %v2104_v31 = vpop.f32.mrb[30].mxu0 }
 0x136   : > { %v2105_v32 = vpop.f32.mrb[31].mxu0 }
 0x137   : > { %v2255_v33 = vadd.f32 %v2103_v30, %v2051_v0  ;;  %v2106_v34 = vadd.f32 %v2105_v32, %v2104_v31 }
 0x139   : > { %v2261_v36 = vadd.f32 %v2106_v34, %v2054_v3 }
 0x13b   : > { %v2237_v37 = vpop.f32.mrb[0].mxu1  ;;  %v2135_v39 = vpop.f32.mrb[32].mxu0 }
 0x13c   : > { %v1597_v40 = vpop.f32.mrb[1].mxu1  ;;  %v2136_v42 = vpop.f32.mrb[33].mxu0 }
 0x13d   : > { %v2238_v43 = vpop.f32.mrb[2].mxu1  ;;  %v2137_v44 = vadd.f32 %v2136_v42, %v2135_v39  ;;  %v2138_v45 = vpop.f32.mrb[34].mxu0 }
 0x13e   : > { %v1600_v46 = vpop.f32.mrb[3].mxu1  ;;  %v2139_v47 = vpop.f32.mrb[35].mxu0 }
 0x13f   : > { %v2247_v35 = vadd.f32 %v2246_v9, %v2137_v44  ;;  %v2140_v38 = vadd.f32 %v2139_v47, %v2138_v45 }
 0x141   : > { %v2248_v48 = vadd.f32 %v2247_v35, %v1597_v40  ;;  %v2253_v49 = vadd.f32 %v2252_v11, %v2140_v38 }
 0x143   : > { %v2241_v50 = vpop.f32.mrb[4].mxu1  ;;  %v1636_v51 = vpack.c.bf16 %v2248_v48, %v2248_v48  ;;  %v2254_v53 = vadd.f32 %v2253_v49, %v1600_v46  ;;  %v2141_v54 = vpop.f32.mrb[36].mxu0 }
 0x144   : > { %v1613_v55 = vpop.f32.mrb[5].mxu1  ;;  %v2142_v56 = vpop.f32.mrb[37].mxu0 }
 0x145   : > { %v2242_v57 = vpop.f32.mrb[6].mxu1  ;;  %1645 = vst.msk [vmem:[%s2801_s23] sm:$0xf] %vm1644_vm0, %v1636_v51  ;;  %v1637_v58 = vpack.c.bf16 %v2254_v53, %v2254_v53  ;;  %v2143_v59 = vadd.f32 %v2142_v56, %v2141_v54  ;;  %v2144_v41 = vpop.f32.mrb[38].mxu0 }
 0x146   : > { %v1616_v52 = vpop.f32.mrb[7].mxu1  ;;  %v2145_v60 = vpop.f32.mrb[39].mxu0 }
 0x147   : > { %1646 = vst.msk [vmem:[%s2801_s23 + $0x4] sm:$0xf] %vm1644_vm0, %v1637_v58  ;;  %v2244_v61 = vadd.f32 %v2243_v17, %v2143_v59  ;;  %v2146_v62 = vadd.f32 %v2145_v60, %v2144_v41 }
 0x149   : > { %v2245_v63 = vadd.f32 %v2244_v61, %v2237_v37  ;;  %v2250_v0 = vadd.f32 %v2249_v19, %v2146_v62 }
 0x14b   : > { %v1638_v1 = vpack.c.bf16 %v2245_v63, %v2245_v63  ;;  %v2251_v2 = vadd.f32 %v2250_v0, %v2238_v43  ;;  %v2147_v3 = vpop.f32.mrb[40].mxu0 }
 0x14c   : > { %v2148_v4 = vpop.f32.mrb[41].mxu0 }
 0x14d   : > { %1647 = vst.msk [vmem:[%s2801_s23 + $0x8] sm:$0xf] %vm1644_vm0, %v1638_v1  ;;  %v1639_v5 = vpack.c.bf16 %v2251_v2, %v2251_v2  ;;  %v2149_v6 = vadd.f32 %v2148_v4, %v2147_v3  ;;  %v2150_v7 = vpop.f32.mrb[42].mxu0 }
 0x14e   : > { %v2151_v8 = vpop.f32.mrb[43].mxu0 }
 0x14f   : > { %1648 = vst.msk [vmem:[%s2801_s23 + $0xc] sm:$0xf] %vm1644_vm0, %v1639_v5  ;;  %v2259_v9 = vadd.f32 %v2258_v25, %v2149_v6  ;;  %v2152_v10 = vadd.f32 %v2151_v8, %v2150_v7 }
 0x151   : > { %v2260_v11 = vadd.f32 %v2259_v9, %v1613_v55  ;;  %v2265_v12 = vadd.f32 %v2264_v27, %v2152_v10 }
 0x153   : > { %v1640_v13 = vpack.c.bf16 %v2260_v11, %v2260_v11  ;;  %v2266_v14 = vadd.f32 %v2265_v12, %v1616_v52  ;;  %v2153_v15 = vpop.f32.mrb[44].mxu0 }
 0x154   : > { %v2154_v16 = vpop.f32.mrb[45].mxu0 }
 0x155   : > { %1649 = vst.msk [vmem:[%s2801_s23 + $0x10] sm:$0xf] %vm1644_vm0, %v1640_v13  ;;  %v1641_v17 = vpack.c.bf16 %v2266_v14, %v2266_v14  ;;  %v2155_v18 = vadd.f32 %v2154_v16, %v2153_v15  ;;  %v2156_v19 = vpop.f32.mrb[46].mxu0 }
 0x156   : > { %v2157_v20 = vpop.f32.mrb[47].mxu0 }
 0x157   : > { %1650 = vst.msk [vmem:[%s2801_s23 + $0x14] sm:$0xf] %vm1644_vm0, %v1641_v17  ;;  %v2256_v21 = vadd.f32 %v2255_v33, %v2155_v18  ;;  %v2158_v22 = vadd.f32 %v2157_v20, %v2156_v19 }
 0x159   : > { %v2257_v23 = vadd.f32 %v2256_v21, %v2241_v50  ;;  %v2262_v24 = vadd.f32 %v2261_v36, %v2158_v22 }
 0x15b   : > { %v1642_v25 = vpack.c.bf16 %v2257_v23, %v2257_v23  ;;  %v2263_v26 = vadd.f32 %v2262_v24, %v2242_v57 }
 0x15d   : > { %1651 = vst.msk [vmem:[%s2801_s23 + $0x18] sm:$0xf] %vm1644_vm0, %v1642_v25  ;;  %v1643_v27 = vpack.c.bf16 %v2263_v26, %v2263_v26 }
 0x15f   : > { %1652 = vst.msk [vmem:[%s2801_s23 + $0x1c] sm:$0xf] %vm1644_vm0, %v1643_v27 }
 0x160 PF: > { %s12_s11 = sadd.s32 1, %s2438_s11   ;;  %s2831_s9 = smov %s2434_s10 }
 0x161   : > { %p9_p5 = scmp.ge.s32.totalorder %s12_s11, 4   ;;  %s2832_s10 = smov %s2834_s12 }
 0x163   :  { %11 = sbr.rel (!%p9_p5) target bundleno = 2 (0x2), region = 63 }

</bundles_post_ra>
